<compile_context>
chip_gen: v7x
topology: tpu7x:2x2x1
jax: 0.10.0
libtpu: 0.0.40
codegen_flags: <defaults>
</compile_context>

<pallas_src>
import functools

import jax
import jax.numpy as jnp
from jax import lax
from jax.experimental import pallas as pl
from jax.experimental.pallas import tpu as pltpu

EPS = 1e-5          # nn.BatchNorm2d default eps
LANE = 128          # lane width: every channel dim padded to a multiple of this
TILE_M_MAX = 512    # 512-1024 row tiles reach ~85% of HBM roofline; clipped by VMEM budget
EXPANSION = 4       # bottleneck expansion


def _vmem_limit_bytes():
    try:
        cap = int(getattr(pltpu.get_tpu_info(), "vmem_capacity_bytes"))
    except Exception:
        cap = 64 * 1024 * 1024      # conservative fallback (v7x physical VMEM)
    return min(cap * 3 // 4, 96 * 1024 * 1024)


_VMEM_LIMIT = _vmem_limit_bytes()


def _rup(x, m):
    return (x + m - 1) // m * m


def _tiling(m_rows, bytes_per_row):
    """Largest row tile (multiple of 8, <= TILE_M_MAX) that fits the VMEM budget."""
    budget = _VMEM_LIMIT // 4                    # headroom for weights + double-buffered tiles
    tile = budget // max(bytes_per_row, 1)
    tile = max(8, min(TILE_M_MAX, (tile // 8) * 8))
    tile = min(tile, _rup(m_rows, 8))
    return tile, _rup(m_rows, tile)


def _cparams(*semantics):
    return pltpu.CompilerParams(dimension_semantics=semantics,
                                vmem_limit_bytes=_VMEM_LIMIT)


# --------------------- pass A kernels: matmul / 3x3 conv + BN statistics ---------------------

def _matmul_stats_kernel(x_ref, w_ref, y_ref, sum_ref, ssq_ref):
    y = jnp.dot(x_ref[...], w_ref[...], preferred_element_type=jnp.float32)
    y_ref[...] = y

    @pl.when(pl.program_id(0) == 0)
    def _init():
        sum_ref[...] = jnp.zeros_like(sum_ref)
        ssq_ref[...] = jnp.zeros_like(ssq_ref)

    sum_ref[...] += jnp.sum(y, axis=0, keepdims=True)
    ssq_ref[...] += jnp.sum(y * y, axis=0, keepdims=True)


def matmul_stats(x, w):
    """y = x @ w (f32 accumulation) plus per-column sum / sum-of-squares of y."""
    m, k = x.shape
    n = w.shape[1]
    tile, mp = _tiling(m, k * x.dtype.itemsize + n * 4)
    if mp != m:
        x = jnp.pad(x, ((0, mp - m), (0, 0)))    # zero rows do not perturb the sums
    cost = pl.CostEstimate(
        flops=2 * mp * k * n, transcendentals=0,
        bytes_accessed=mp * k * x.dtype.itemsize + k * n * w.dtype.itemsize + mp * n * 4)
    y, s, q = pl.pallas_call(
        _matmul_stats_kernel,
        grid=(mp // tile,),
        in_specs=[pl.BlockSpec((tile, k), lambda i: (i, 0)),
                  pl.BlockSpec((k, n), lambda i: (0, 0))],
        out_specs=(pl.BlockSpec((tile, n), lambda i: (i, 0)),
                   pl.BlockSpec((1, n), lambda i: (0, 0)),
                   pl.BlockSpec((1, n), lambda i: (0, 0))),
        out_shape=(jax.ShapeDtypeStruct((mp, n), jnp.float32),
                   jax.ShapeDtypeStruct((1, n), jnp.float32),
                   jax.ShapeDtypeStruct((1, n), jnp.float32)),
        compiler_params=_cparams("arbitrary"),   # stats accumulate across row tiles
        cost_estimate=cost,
    )(x, w)
    return y[:m], s, q


def _conv3x3_stats_kernel(x_ref, w_ref, y_ref, sum_ref, ssq_ref):
    _, hp, wp, cin = x_ref.shape
    ho, wo = hp - 2, wp - 2
    cout = w_ref.shape[-1]
    x = x_ref[0]                                  # whole padded image (hp, wp, cin) in VMEM
    acc = jnp.zeros((ho * wo, cout), jnp.float32)
    for kh in range(3):                           # 9 shifted dots instead of im2col
        for kw in range(3):
            patch = x[kh:kh + ho, kw:kw + wo, :].reshape(ho * wo, cin)
            acc = acc + jnp.dot(patch, w_ref[kh * 3 + kw],
                                preferred_element_type=jnp.float32)
    y_ref[0] = acc

    @pl.when(pl.program_id(0) == 0)
    def _init():
        sum_ref[...] = jnp.zeros_like(sum_ref)
        ssq_ref[...] = jnp.zeros_like(ssq_ref)

    sum_ref[...] += jnp.sum(acc, axis=0, keepdims=True)
    ssq_ref[...] += jnp.sum(acc * acc, axis=0, keepdims=True)


def conv3x3_stats(xpad, w_taps):
    """3x3 stride-1 'same' conv (input already spatially padded) + BN statistics."""
    n, hp, wp, cin = xpad.shape
    cout = w_taps.shape[-1]
    ho, wo = hp - 2, wp - 2
    cost = pl.CostEstimate(
        flops=2 * n * ho * wo * 9 * cin * cout, transcendentals=0,
        bytes_accessed=(xpad.size * xpad.dtype.itemsize
                        + w_taps.size * w_taps.dtype.itemsize + n * ho * wo * cout * 4))
    y, s, q = pl.pallas_call(
        _conv3x3_stats_kernel,
        grid=(n,),
        in_specs=[pl.BlockSpec((1, hp, wp, cin), lambda i: (i, 0, 0, 0)),
                  pl.BlockSpec((9, cin, cout), lambda i: (0, 0, 0))],
        out_specs=(pl.BlockSpec((1, ho * wo, cout), lambda i: (i, 0, 0)),
                   pl.BlockSpec((1, cout), lambda i: (0, 0)),
                   pl.BlockSpec((1, cout), lambda i: (0, 0))),
        out_shape=(jax.ShapeDtypeStruct((n, ho * wo, cout), jnp.float32),
                   jax.ShapeDtypeStruct((1, cout), jnp.float32),
                   jax.ShapeDtypeStruct((1, cout), jnp.float32)),
        compiler_params=_cparams("arbitrary"),
        cost_estimate=cost,
    )(xpad, w_taps)
    return y.reshape(n * ho * wo, cout), s, q


# ------------------------- pass B kernels: folded-BN apply (+ residual) ------------------------

def _scale_shift_relu_kernel(y_ref, sc_ref, sh_ref, o_ref):
    o_ref[...] = jnp.maximum(y_ref[...] * sc_ref[...] + sh_ref[...], 0.0).astype(o_ref.dtype)


def scale_shift_relu(y, scale, shift, out_dtype):
    m, n = y.shape
    tile, mp = _tiling(m, n * (4 + jnp.dtype(out_dtype).itemsize))
    if mp != m:
        y = jnp.pad(y, ((0, mp - m), (0, 0)))
    out = pl.pallas_call(
        _scale_shift_relu_kernel,
        grid=(mp // tile,),
        in_specs=[pl.BlockSpec((tile, n), lambda i: (i, 0)),
                  pl.BlockSpec((1, n), lambda i: (0, 0)),
                  pl.BlockSpec((1, n), lambda i: (0, 0))],
        out_specs=pl.BlockSpec((tile, n), lambda i: (i, 0)),
        out_shape=jax.ShapeDtypeStruct((mp, n), out_dtype),
        compiler_params=_cparams("parallel"),     # independent row tiles -> megacore on v7x
    )(y, scale, shift)
    return out[:m]


def _residual_apply_kernel(ym_ref, scm_ref, shm_ref, ys_ref, scs_ref, shs_ref, o_ref):
    main = ym_ref[...] * scm_ref[...] + shm_ref[...]
    short = ys_ref[...].astype(jnp.float32) * scs_ref[...] + shs_ref[...]
    o_ref[...] = jnp.maximum(main + short, 0.0).astype(o_ref.dtype)


def residual_apply(y_main, sc_main, sh_main, y_short, sc_short, sh_short, out_dtype):
    m, n = y_main.shape
    tile, mp = _tiling(m, n * (4 + y_short.dtype.itemsize + jnp.dtype(out_dtype).itemsize))
    if mp != m:
        y_main = jnp.pad(y_main, ((0, mp - m), (0, 0)))
        y_short = jnp.pad(y_short, ((0, mp - m), (0, 0)))
    out = pl.pallas_call(
        _residual_apply_kernel,
        grid=(mp // tile,),
        in_specs=[pl.BlockSpec((tile, n), lambda i: (i, 0)),
                  pl.BlockSpec((1, n), lambda i: (0, 0)),
                  pl.BlockSpec((1, n), lambda i: (0, 0)),
                  pl.BlockSpec((tile, n), lambda i: (i, 0)),
                  pl.BlockSpec((1, n), lambda i: (0, 0)),
                  pl.BlockSpec((1, n), lambda i: (0, 0))],
        out_specs=pl.BlockSpec((tile, n), lambda i: (i, 0)),
        out_shape=jax.ShapeDtypeStruct((mp, n), out_dtype),
        compiler_params=_cparams("parallel"),
    )(y_main, sc_main, sh_main, y_short, sc_short, sh_short)
    return out[:m]


# --------------------------------------- glue helpers ------------------------------------------

def _bn_fold(col_sum, col_ssq, num_rows, gamma, beta):
    """Fold train-mode BatchNorm (batch stats, biased variance) into y*scale + shift."""
    mean = col_sum / num_rows
    var = jnp.maximum(col_ssq / num_rows - mean * mean, 0.0)
    scale = gamma * lax.rsqrt(var + EPS)
    shift = beta - mean * scale
    return scale, shift


def _im2col(x, stride):
    # TODO(synk): the stride>1 3x3 conv (first block of a stage) still materialises im2col
    # patches in HBM (9x activation bytes); a halo/phase-split in-kernel variant like
    # conv3x3_stats would remove that traffic.
    n, h, w, c = x.shape
    ho = (h + 2 - 3) // stride + 1
    wo = (w + 2 - 3) // stride + 1
    xp = jnp.pad(x, ((0, 0), (1, 1), (1, 1), (0, 0)))
    taps = []
    for kh in range(3):
        for kw in range(3):
            taps.append(xp[:, kh:kh + (ho - 1) * stride + 1:stride,
                            kw:kw + (wo - 1) * stride + 1:stride, :])
    return jnp.concatenate(taps, axis=-1).reshape(n * ho * wo, 9 * c)


def _bottleneck(x, lyr, stride, downsample, task_idx):
    n, h, w, cin_p = x.shape
    cdt = x.dtype
    cmid_p = lyr["w1"].shape[1]
    cout_p = lyr["w3"].shape[1]
    ho = (h + 2 - 3) // stride + 1
    wo = (w + 2 - 3) // stride + 1
    m_in = n * h * w
    m_out = n * ho * wo

    # conv1 (1x1) + BN1[task] + ReLU
    y1, s1, q1 = matmul_stats(x.reshape(m_in, cin_p), lyr["w1"])
    sc1, sh1 = _bn_fold(s1, q1, m_in, lyr["g1"][task_idx], lyr["b1"][task_idx])
    x1 = scale_shift_relu(y1, sc1, sh1, cdt).reshape(n, h, w, cmid_p)

    # conv2 (3x3, stride, pad=1) + BN2 + ReLU
    if stride == 1:
        xp = jnp.pad(x1, ((0, 0), (1, 1), (1, 1), (0, 0)))
        y2, s2, q2 = conv3x3_stats(xp, lyr["w2_taps"])
    else:
        y2, s2, q2 = matmul_stats(_im2col(x1, stride), lyr["w2_mat"])
    sc2, sh2 = _bn_fold(s2, q2, m_out, lyr["g2"], lyr["b2"])
    x2 = scale_shift_relu(y2, sc2, sh2, cdt)

    # conv3 (1x1) + BN3[task]  plus shortcut, fused add + ReLU epilogue
    y3, s3, q3 = matmul_stats(x2, lyr["w3"])
    sc3, sh3 = _bn_fold(s3, q3, m_out, lyr["g3"][task_idx], lyr["b3"][task_idx])
    if downsample:
        xs = x[:, ::stride, ::stride, :].reshape(m_out, cin_p)
        ysc, ssc, qsc = matmul_stats(xs, lyr["wsc"])
        scs, shs = _bn_fold(ssc, qsc, m_out, lyr["gsc"], lyr["bsc"])
    else:
        ysc = x.reshape(m_out, cout_p)            # identity shortcut (cin_p == cout_p)
        scs = jnp.ones((1, cout_p), jnp.float32)
        shs = jnp.zeros((1, cout_p), jnp.float32)
    out = residual_apply(y3, sc3, sh3, ysc, scs, shs, cdt)
    return out.reshape(n, ho, wo, cout_p)


@functools.partial(jax.jit, static_argnames=("cfg", "task_idx"))
def resblock_forward(x_nchw, layers, cfg, task_idx=0):
    """Forward of ResBlock (stack of bottlenecks; module in train mode -> batch-stat BN)."""
    cdt = layers[0]["w1"].dtype
    x = jnp.transpose(x_nchw, (0, 2, 3, 1))                      # NHWC
    cin_p = layers[0]["w1"].shape[0]
    x = jnp.pad(x, ((0, 0), (0, 0), (0, 0), (0, cin_p - x.shape[3]))).astype(cdt)
    for lyr, (stride, downsample, _cout) in zip(layers, cfg):
        x = _bottleneck(x, lyr, stride, downsample, task_idx)
    x = x[..., :cfg[-1][2]].astype(jnp.float32)                  # drop channel padding
    return jnp.transpose(x, (0, 3, 1, 2))                        # back to NCHW


# ----------------------------- one-time weight preparation ------------------------------------

def _pad2(a, rows, cols):
    return jnp.pad(a, ((0, rows - a.shape[0]), (0, cols - a.shape[1])))


def _pad_row(v, cols):
    return jnp.pad(v, (0, cols - v.shape[0])).reshape(1, cols)


def _pad_rows(v, cols):
    return jnp.pad(v, ((0, 0), (0, cols - v.shape[1]))).reshape(v.shape[0], 1, cols)


def prepare_resblock(params_list, stride_list, compute_dtype=jnp.bfloat16):
    """OIHW weights -> matmul layouts, channels padded to 128 lanes (padded gamma/beta = 0
    so padded output channels stay exactly zero through BN + ReLU)."""
    layers, cfg = [], []
    for p, stride in zip(params_list, stride_list):
        cmid, cin = p["w1_oihw"].shape[0], p["w1_oihw"].shape[1]
        cout = p["w3_oihw"].shape[0]
        cin_p, cmid_p, cout_p = _rup(cin, LANE), _rup(cmid, LANE), _rup(cout, LANE)
        downsample = "wsc_oihw" in p
        lyr = {
            "w1": _pad2(p["w1_oihw"][:, :, 0, 0].T, cin_p, cmid_p).astype(compute_dtype),
            "g1": _pad_rows(p["g1"], cmid_p),
            "b1": _pad_rows(p["b1"], cmid_p),
            "g2": _pad_row(p["g2"], cmid_p),
            "b2": _pad_row(p["b2"], cmid_p),
            "w3": _pad2(p["w3_oihw"][:, :, 0, 0].T, cmid_p, cout_p).astype(compute_dtype),
            "g3": _pad_rows(p["g3"], cout_p),
            "b3": _pad_rows(p["b3"], cout_p),
        }
        taps = [_pad2(p["w2_oihw"][:, :, kh, kw].T, cmid_p, cmid_p)
                for kh in range(3) for kw in range(3)]
        w2 = jnp.stack(taps, axis=0).astype(compute_dtype)        # (9, cmid_p, cmid_p)
        if stride == 1:
            lyr["w2_taps"] = w2
        else:
            lyr["w2_mat"] = w2.reshape(9 * cmid_p, cmid_p)        # matches im2col tap order
        if downsample:
            lyr["wsc"] = _pad2(p["wsc_oihw"][:, :, 0, 0].T, cin_p, cout_p).astype(compute_dtype)
            lyr["gsc"] = _pad_row(p["gsc"], cout_p)
            lyr["bsc"] = _pad_row(p["bsc"], cout_p)
        layers.append(lyr)
        cfg.append((int(stride), bool(downsample), int(cout)))
    return tuple(layers), tuple(cfg)


# --------------------------------- pure-JAX reference ------------------------------------------

def reference_forward(x, params_list, stride_list, task_idx=0):
    def conv(x, w, s, pad):
        return lax.conv_general_dilated(x, w, (s, s), [(pad, pad), (pad, pad)],
                                        dimension_numbers=("NCHW", "OIHW", "NCHW"))

    def bn(y, g, b):
        m = jnp.mean(y, axis=(0, 2, 3), keepdims=True)
        v = jnp.mean((y - m) ** 2, axis=(0, 2, 3), keepdims=True)
        return (y - m) * lax.rsqrt(v + EPS) * g.reshape(1, -1, 1, 1) + b.reshape(1, -1, 1, 1)

    for p, s in zip(params_list, stride_list):
        identity = x
        h = jax.nn.relu(bn(conv(x, p["w1_oihw"], 1, 0), p["g1"][task_idx], p["b1"][task_idx]))
        h = jax.nn.relu(bn(conv(h, p["w2_oihw"], s, 1), p["g2"], p["b2"]))
        h = bn(conv(h, p["w3_oihw"], 1, 0), p["g3"][task_idx], p["b3"][task_idx])
        if "wsc_oihw" in p:
            identity = bn(conv(x, p["wsc_oihw"], s, 0), p["gsc"], p["bsc"])
        x = jax.nn.relu(h + identity)
    return x


# ------------------------------------- init & main ---------------------------------------------

def init_resblock_params(key, in_channels, out_channels, num_blocks, strides, task_num=2):
    stride_list = (strides,) + (1,) * (num_blocks - 1)
    cout = out_channels * EXPANSION
    params_list = []
    cin = in_channels

    def conv_w(k, shape):
        fan_in = shape[1] * shape[2] * shape[3]
        return jax.random.normal(k, shape, jnp.float32) / jnp.sqrt(float(fan_in))

    for s in stride_list:
        key, *ks = jax.random.split(key, 13)
        p = {
            "w1_oihw": conv_w(ks[0], (out_channels, cin, 1, 1)),
            "g1": 1.0 + 0.1 * jax.random.normal(ks[1], (task_num, out_channels), jnp.float32),
            "b1": 0.1 * jax.random.normal(ks[2], (task_num, out_channels), jnp.float32),
            "w2_oihw": conv_w(ks[3], (out_channels, out_channels, 3, 3)),
            "g2": 1.0 + 0.1 * jax.random.normal(ks[4], (out_channels,), jnp.float32),
            "b2": 0.1 * jax.random.normal(ks[5], (out_channels,), jnp.float32),
            "w3_oihw": conv_w(ks[6], (cout, out_channels, 1, 1)),
            "g3": 1.0 + 0.1 * jax.random.normal(ks[7], (task_num, cout), jnp.float32),
            "b3": 0.1 * jax.random.normal(ks[8], (task_num, cout), jnp.float32),
        }
        if s != 1 or cin != cout:       # downsample shortcut (conv 1x1 + BN)
            p["wsc_oihw"] = conv_w(ks[9], (cout, cin, 1, 1))
            p["gsc"] = 1.0 + 0.1 * jax.random.normal(ks[10], (cout,), jnp.float32)
            p["bsc"] = 0.1 * jax.random.normal(ks[11], (cout,), jnp.float32)
        params_list.append(p)
        cin = cout
    return params_list, stride_list


if __name__ == "__main__":
    key = jax.random.PRNGKey(0)
    k_x, k_p = jax.random.split(key)

    # Small demo: 2 bottlenecks; first has stride 2 + downsample shortcut, second is identity.
    # batch=4 so the first conv sees 1024 rows -> two 512-row tiles exercise cross-tile BN stats.
    N, Cin, H, W = 4, 4, 16, 16
    out_channels, num_blocks, strides, task_idx = 4, 2, 2, 0

    x = jax.random.normal(k_x, (N, Cin, H, W), jnp.float32)
    params_list, stride_list = init_resblock_params(
        k_p, Cin, out_channels, num_blocks, strides, task_num=2)

    ref = jax.block_until_ready(reference_forward(x, params_list, stride_list, task_idx))

    # f32 compute path: strict check against the pure-JAX (PyTorch-equivalent) reference.
    layers32, cfg = prepare_resblock(params_list, stride_list, compute_dtype=jnp.float32)
    out32 = jax.block_until_ready(resblock_forward(x, layers32, cfg=cfg, task_idx=task_idx))
    assert out32.shape == ref.shape, (out32.shape, ref.shape)
    assert jnp.allclose(out32, ref, atol=2e-4, rtol=2e-4), \
        float(jnp.max(jnp.abs(out32 - ref)))

    # bf16 MXU inputs (f32 accumulation, f32 BN stats/epilogue): performance configuration.
    layers16, cfg16 = prepare_resblock(params_list, stride_list, compute_dtype=jnp.bfloat16)
    out16 = jax.block_until_ready(resblock_forward(x, layers16, cfg=cfg16, task_idx=task_idx))
    assert jnp.allclose(out16, ref, atol=1e-1, rtol=1e-1), \
        float(jnp.max(jnp.abs(out16 - ref)))

    print("KERNEL_OK")
</pallas_src>

<mosaic_0001>
module attributes {stable_mosaic.version = 11 : i64} {
  func.func @_matmul_stats_kernel(%arg0: i32, %arg1: memref<512x128xf32, #tpu.memory_space<vmem>>, %arg2: memref<128x128xf32, #tpu.memory_space<vmem>>, %arg3: memref<512x128xf32, #tpu.memory_space<vmem>>, %arg4: memref<1x128xf32, #tpu.memory_space<vmem>>, %arg5: memref<1x128xf32, #tpu.memory_space<vmem>>) attributes {dimension_semantics = [#tpu.dimension_semantics<arbitrary>], iteration_bounds = array<i64: 2>, scalar_prefetch = 0 : i64, scratch_operands = 0 : i64, tpu.core_type = #tpu.core_type<tc>, window_params = [{transform_indices = @transform_0, window_bounds = array<i64: 512, 128>}, {pipeline_mode = #tpu.pipeline_mode<synchronous>, transform_indices = @transform_1, window_bounds = array<i64: 128, 128>}, {transform_indices = @transform_2, window_bounds = array<i64: 512, 128>}, {pipeline_mode = #tpu.pipeline_mode<synchronous>, transform_indices = @transform_3, window_bounds = array<i64: 1, 128>}, {pipeline_mode = #tpu.pipeline_mode<synchronous>, transform_indices = @transform_4, window_bounds = array<i64: 1, 128>}]} {
    %c0 = arith.constant 0 : index
    %c0_0 = arith.constant 0 : index
    %0 = vector.load %arg1[%c0, %c0_0] : memref<512x128xf32, #tpu.memory_space<vmem>>, vector<512x128xf32>
    %c0_1 = arith.constant 0 : index
    %c0_2 = arith.constant 0 : index
    %1 = vector.load %arg2[%c0_1, %c0_2] : memref<128x128xf32, #tpu.memory_space<vmem>>, vector<128x128xf32>
    %cst = arith.constant dense<0.000000e+00> : vector<512x128xf32>
    %2 = tpu.matmul %0, %1, %cst {dimension_numbers = #tpu.dot_dimension_numbers<[1], [0], [0], [1], [0, 0, 1, 1], [], []>} : vector<512x128xf32>, vector<128x128xf32>, vector<512x128xf32> -> vector<512x128xf32>
    %c0_3 = arith.constant 0 : index
    %c0_4 = arith.constant 0 : index
    %3 = vector.load %arg3[%c0_3, %c0_4] : memref<512x128xf32, #tpu.memory_space<vmem>>, vector<512x128xf32>
    tpu.vector_store %arg3[%c0_3, %c0_4], %2 {strides = array<i32>} : memref<512x128xf32, #tpu.memory_space<vmem>>, vector<512x128xf32>,
    %c0_i32 = arith.constant 0 : i32
    %4 = arith.cmpi eq, %arg0, %c0_i32 : i32
    %5 = arith.extui %4 : i1 to i32
    %c0_i32_5 = arith.constant 0 : i32
    %6 = arith.cmpi ne, %5, %c0_i32_5 : i32
    scf.if %6 {
      %cst_16 = arith.constant 0.000000e+00 : f32
      %18 = vector.broadcast %cst_16 : f32 to vector<1x128xf32>
      %c0_17 = arith.constant 0 : index
      %c0_18 = arith.constant 0 : index
      %19 = vector.load %arg4[%c0_17, %c0_18] : memref<1x128xf32, #tpu.memory_space<vmem>>, vector<1x128xf32>
      tpu.vector_store %arg4[%c0_17, %c0_18], %18 {strides = array<i32>} : memref<1x128xf32, #tpu.memory_space<vmem>>, vector<1x128xf32>,
      %cst_19 = arith.constant 0.000000e+00 : f32
      %20 = vector.broadcast %cst_19 : f32 to vector<1x128xf32>
      %c0_20 = arith.constant 0 : index
      %c0_21 = arith.constant 0 : index
      %21 = vector.load %arg5[%c0_20, %c0_21] : memref<1x128xf32, #tpu.memory_space<vmem>>, vector<1x128xf32>
      tpu.vector_store %arg5[%c0_20, %c0_21], %20 {strides = array<i32>} : memref<1x128xf32, #tpu.memory_space<vmem>>, vector<1x128xf32>,
    } else {
    }
    %c0_6 = arith.constant 0 : index
    %c0_7 = arith.constant 0 : index
    %7 = vector.load %arg4[%c0_6, %c0_7] : memref<1x128xf32, #tpu.memory_space<vmem>>, vector<1x128xf32>
    %cst_8 = arith.constant dense<0.000000e+00> : vector<128xf32>
    %8 = vector.multi_reduction <add>, %2, %cst_8 [0] : vector<512x128xf32> to vector<128xf32>
    %9 = vector.shape_cast %8 : vector<128xf32> to vector<1x128xf32>
    %10 = arith.addf %7, %9 : vector<1x128xf32>
    %c0_9 = arith.constant 0 : index
    %c0_10 = arith.constant 0 : index
    %11 = vector.load %arg4[%c0_9, %c0_10] : memref<1x128xf32, #tpu.memory_space<vmem>>, vector<1x128xf32>
    tpu.vector_store %arg4[%c0_9, %c0_10], %10 {strides = array<i32>} : memref<1x128xf32, #tpu.memory_space<vmem>>, vector<1x128xf32>,
    %c0_11 = arith.constant 0 : index
    %c0_12 = arith.constant 0 : index
    %12 = vector.load %arg5[%c0_11, %c0_12] : memref<1x128xf32, #tpu.memory_space<vmem>>, vector<1x128xf32>
    %13 = arith.mulf %2, %2 : vector<512x128xf32>
    %cst_13 = arith.constant dense<0.000000e+00> : vector<128xf32>
    %14 = vector.multi_reduction <add>, %13, %cst_13 [0] : vector<512x128xf32> to vector<128xf32>
    %15 = vector.shape_cast %14 : vector<128xf32> to vector<1x128xf32>
    %16 = arith.addf %12, %15 : vector<1x128xf32>
    %c0_14 = arith.constant 0 : index
    %c0_15 = arith.constant 0 : index
    %17 = vector.load %arg5[%c0_14, %c0_15] : memref<1x128xf32, #tpu.memory_space<vmem>>, vector<1x128xf32>
    tpu.vector_store %arg5[%c0_14, %c0_15], %16 {strides = array<i32>} : memref<1x128xf32, #tpu.memory_space<vmem>>, vector<1x128xf32>,
    return
  }
  func.func @transform_0(%arg0: i32) -> (i32, i32) {
    %c0_i32 = arith.constant 0 : i32
    %c0_i32_0 = arith.constant 0 : i32
    return %arg0, %c0_i32 : i32, i32
  }
  func.func @transform_1(%arg0: i32) -> (i32, i32) {
    %c0_i32 = arith.constant 0 : i32
    %c0_i32_0 = arith.constant 0 : i32
    %c0_i32_1 = arith.constant 0 : i32
    return %c0_i32, %c0_i32_0 : i32, i32
  }
  func.func @transform_2(%arg0: i32) -> (i32, i32) {
    %c0_i32 = arith.constant 0 : i32
    %c0_i32_0 = arith.constant 0 : i32
    return %arg0, %c0_i32 : i32, i32
  }
  func.func @transform_3(%arg0: i32) -> (i32, i32) {
    %c0_i32 = arith.constant 0 : i32
    %c0_i32_0 = arith.constant 0 : i32
    %c0_i32_1 = arith.constant 0 : i32
    return %c0_i32, %c0_i32_0 : i32, i32
  }
  func.func @transform_4(%arg0: i32) -> (i32, i32) {
    %c0_i32 = arith.constant 0 : i32
    %c0_i32_0 = arith.constant 0 : i32
    %c0_i32_1 = arith.constant 0 : i32
    return %c0_i32, %c0_i32_0 : i32, i32
  }
}

module attributes {stable_mosaic.version = 11 : i64} {
  func.func @_matmul_stats_kernel(%arg0: i32, %arg1: memref<256x128xf32, #tpu.memory_space<vmem>>, %arg2: memref<128x128xf32, #tpu.memory_space<vmem>>, %arg3: memref<256x128xf32, #tpu.memory_space<vmem>>, %arg4: memref<1x128xf32, #tpu.memory_space<vmem>>, %arg5: memref<1x128xf32, #tpu.memory_space<vmem>>) attributes {dimension_semantics = [#tpu.dimension_semantics<arbitrary>], iteration_bounds = array<i64: 1>, scalar_prefetch = 0 : i64, scratch_operands = 0 : i64, tpu.core_type = #tpu.core_type<tc>, window_params = [{transform_indices = @transform_0, window_bounds = array<i64: 256, 128>}, {pipeline_mode = #tpu.pipeline_mode<synchronous>, transform_indices = @transform_1, window_bounds = array<i64: 128, 128>}, {transform_indices = @transform_2, window_bounds = array<i64: 256, 128>}, {pipeline_mode = #tpu.pipeline_mode<synchronous>, transform_indices = @transform_3, window_bounds = array<i64: 1, 128>}, {pipeline_mode = #tpu.pipeline_mode<synchronous>, transform_indices = @transform_4, window_bounds = array<i64: 1, 128>}]} {
    %c0 = arith.constant 0 : index
    %c0_0 = arith.constant 0 : index
    %0 = vector.load %arg1[%c0, %c0_0] : memref<256x128xf32, #tpu.memory_space<vmem>>, vector<256x128xf32>
    %c0_1 = arith.constant 0 : index
    %c0_2 = arith.constant 0 : index
    %1 = vector.load %arg2[%c0_1, %c0_2] : memref<128x128xf32, #tpu.memory_space<vmem>>, vector<128x128xf32>
    %cst = arith.constant dense<0.000000e+00> : vector<256x128xf32>
    %2 = tpu.matmul %0, %1, %cst {dimension_numbers = #tpu.dot_dimension_numbers<[1], [0], [0], [1], [0, 0, 1, 1], [], []>} : vector<256x128xf32>, vector<128x128xf32>, vector<256x128xf32> -> vector<256x128xf32>
    %c0_3 = arith.constant 0 : index
    %c0_4 = arith.constant 0 : index
    %3 = vector.load %arg3[%c0_3, %c0_4] : memref<256x128xf32, #tpu.memory_space<vmem>>, vector<256x128xf32>
    tpu.vector_store %arg3[%c0_3, %c0_4], %2 {strides = array<i32>} : memref<256x128xf32, #tpu.memory_space<vmem>>, vector<256x128xf32>,
    %c0_i32 = arith.constant 0 : i32
    %4 = arith.cmpi eq, %arg0, %c0_i32 : i32
    %5 = arith.extui %4 : i1 to i32
    %c0_i32_5 = arith.constant 0 : i32
    %6 = arith.cmpi ne, %5, %c0_i32_5 : i32
    scf.if %6 {
      %cst_16 = arith.constant 0.000000e+00 : f32
      %18 = vector.broadcast %cst_16 : f32 to vector<1x128xf32>
      %c0_17 = arith.constant 0 : index
      %c0_18 = arith.constant 0 : index
      %19 = vector.load %arg4[%c0_17, %c0_18] : memref<1x128xf32, #tpu.memory_space<vmem>>, vector<1x128xf32>
      tpu.vector_store %arg4[%c0_17, %c0_18], %18 {strides = array<i32>} : memref<1x128xf32, #tpu.memory_space<vmem>>, vector<1x128xf32>,
      %cst_19 = arith.constant 0.000000e+00 : f32
      %20 = vector.broadcast %cst_19 : f32 to vector<1x128xf32>
      %c0_20 = arith.constant 0 : index
      %c0_21 = arith.constant 0 : index
      %21 = vector.load %arg5[%c0_20, %c0_21] : memref<1x128xf32, #tpu.memory_space<vmem>>, vector<1x128xf32>
      tpu.vector_store %arg5[%c0_20, %c0_21], %20 {strides = array<i32>} : memref<1x128xf32, #tpu.memory_space<vmem>>, vector<1x128xf32>,
    } else {
    }
    %c0_6 = arith.constant 0 : index
    %c0_7 = arith.constant 0 : index
    %7 = vector.load %arg4[%c0_6, %c0_7] : memref<1x128xf32, #tpu.memory_space<vmem>>, vector<1x128xf32>
    %cst_8 = arith.constant dense<0.000000e+00> : vector<128xf32>
    %8 = vector.multi_reduction <add>, %2, %cst_8 [0] : vector<256x128xf32> to vector<128xf32>
    %9 = vector.shape_cast %8 : vector<128xf32> to vector<1x128xf32>
    %10 = arith.addf %7, %9 : vector<1x128xf32>
    %c0_9 = arith.constant 0 : index
    %c0_10 = arith.constant 0 : index
    %11 = vector.load %arg4[%c0_9, %c0_10] : memref<1x128xf32, #tpu.memory_space<vmem>>, vector<1x128xf32>
    tpu.vector_store %arg4[%c0_9, %c0_10], %10 {strides = array<i32>} : memref<1x128xf32, #tpu.memory_space<vmem>>, vector<1x128xf32>,
    %c0_11 = arith.constant 0 : index
    %c0_12 = arith.constant 0 : index
    %12 = vector.load %arg5[%c0_11, %c0_12] : memref<1x128xf32, #tpu.memory_space<vmem>>, vector<1x128xf32>
    %13 = arith.mulf %2, %2 : vector<256x128xf32>
    %cst_13 = arith.constant dense<0.000000e+00> : vector<128xf32>
    %14 = vector.multi_reduction <add>, %13, %cst_13 [0] : vector<256x128xf32> to vector<128xf32>
    %15 = vector.shape_cast %14 : vector<128xf32> to vector<1x128xf32>
    %16 = arith.addf %12, %15 : vector<1x128xf32>
    %c0_14 = arith.constant 0 : index
    %c0_15 = arith.constant 0 : index
    %17 = vector.load %arg5[%c0_14, %c0_15] : memref<1x128xf32, #tpu.memory_space<vmem>>, vector<1x128xf32>
    tpu.vector_store %arg5[%c0_14, %c0_15], %16 {strides = array<i32>} : memref<1x128xf32, #tpu.memory_space<vmem>>, vector<1x128xf32>,
    return
  }
  func.func @transform_0(%arg0: i32) -> (i32, i32) {
    %c0_i32 = arith.constant 0 : i32
    %c0_i32_0 = arith.constant 0 : i32
    return %arg0, %c0_i32 : i32, i32
  }
  func.func @transform_1(%arg0: i32) -> (i32, i32) {
    %c0_i32 = arith.constant 0 : i32
    %c0_i32_0 = arith.constant 0 : i32
    %c0_i32_1 = arith.constant 0 : i32
    return %c0_i32, %c0_i32_0 : i32, i32
  }
  func.func @transform_2(%arg0: i32) -> (i32, i32) {
    %c0_i32 = arith.constant 0 : i32
    %c0_i32_0 = arith.constant 0 : i32
    return %arg0, %c0_i32 : i32, i32
  }
  func.func @transform_3(%arg0: i32) -> (i32, i32) {
    %c0_i32 = arith.constant 0 : i32
    %c0_i32_0 = arith.constant 0 : i32
    %c0_i32_1 = arith.constant 0 : i32
    return %c0_i32, %c0_i32_0 : i32, i32
  }
  func.func @transform_4(%arg0: i32) -> (i32, i32) {
    %c0_i32 = arith.constant 0 : i32
    %c0_i32_0 = arith.constant 0 : i32
    %c0_i32_1 = arith.constant 0 : i32
    return %c0_i32, %c0_i32_0 : i32, i32
  }
}

module attributes {stable_mosaic.version = 11 : i64} {
  func.func @_scale_shift_relu_kernel(%arg0: i32, %arg1: memref<512x128xf32, #tpu.memory_space<vmem>>, %arg2: memref<1x128xf32, #tpu.memory_space<vmem>>, %arg3: memref<1x128xf32, #tpu.memory_space<vmem>>, %arg4: memref<512x128xf32, #tpu.memory_space<vmem>>) attributes {dimension_semantics = [#tpu.dimension_semantics<parallel>], iteration_bounds = array<i64: 2>, scalar_prefetch = 0 : i64, scratch_operands = 0 : i64, tpu.core_type = #tpu.core_type<tc>, window_params = [{transform_indices = @transform_0, window_bounds = array<i64: 512, 128>}, {pipeline_mode = #tpu.pipeline_mode<synchronous>, transform_indices = @transform_1, window_bounds = array<i64: 1, 128>}, {pipeline_mode = #tpu.pipeline_mode<synchronous>, transform_indices = @transform_2, window_bounds = array<i64: 1, 128>}, {transform_indices = @transform_3, window_bounds = array<i64: 512, 128>}]} {
    %c0 = arith.constant 0 : index
    %c0_0 = arith.constant 0 : index
    %0 = vector.load %arg1[%c0, %c0_0] : memref<512x128xf32, #tpu.memory_space<vmem>>, vector<512x128xf32>
    %c0_1 = arith.constant 0 : index
    %c0_2 = arith.constant 0 : index
    %1 = vector.load %arg2[%c0_1, %c0_2] : memref<1x128xf32, #tpu.memory_space<vmem>>, vector<1x128xf32>
    %2 = vector.broadcast %1 : vector<1x128xf32> to vector<512x128xf32>
    %3 = arith.mulf %0, %2 : vector<512x128xf32>
    %c0_3 = arith.constant 0 : index
    %c0_4 = arith.constant 0 : index
    %4 = vector.load %arg3[%c0_3, %c0_4] : memref<1x128xf32, #tpu.memory_space<vmem>>, vector<1x128xf32>
    %5 = vector.broadcast %4 : vector<1x128xf32> to vector<512x128xf32>
    %6 = arith.addf %3, %5 : vector<512x128xf32>
    %cst = arith.constant 0.000000e+00 : f32
    %7 = vector.broadcast %cst : f32 to vector<512x128xf32>
    %8 = arith.maximumf %6, %7 : vector<512x128xf32>
    %c0_5 = arith.constant 0 : index
    %c0_6 = arith.constant 0 : index
    %9 = vector.load %arg4[%c0_5, %c0_6] : memref<512x128xf32, #tpu.memory_space<vmem>>, vector<512x128xf32>
    tpu.vector_store %arg4[%c0_5, %c0_6], %8 {strides = array<i32>} : memref<512x128xf32, #tpu.memory_space<vmem>>, vector<512x128xf32>,
    return
  }
  func.func @transform_0(%arg0: i32) -> (i32, i32) {
    %c0_i32 = arith.constant 0 : i32
    %c0_i32_0 = arith.constant 0 : i32
    return %arg0, %c0_i32 : i32, i32
  }
  func.func @transform_1(%arg0: i32) -> (i32, i32) {
    %c0_i32 = arith.constant 0 : i32
    %c0_i32_0 = arith.constant 0 : i32
    %c0_i32_1 = arith.constant 0 : i32
    return %c0_i32, %c0_i32_0 : i32, i32
  }
  func.func @transform_2(%arg0: i32) -> (i32, i32) {
    %c0_i32 = arith.constant 0 : i32
    %c0_i32_0 = arith.constant 0 : i32
    %c0_i32_1 = arith.constant 0 : i32
    return %c0_i32, %c0_i32_0 : i32, i32
  }
  func.func @transform_3(%arg0: i32) -> (i32, i32) {
    %c0_i32 = arith.constant 0 : i32
    %c0_i32_0 = arith.constant 0 : i32
    return %arg0, %c0_i32 : i32, i32
  }
}

module attributes {stable_mosaic.version = 11 : i64} {
  func.func @_matmul_stats_kernel(%arg0: i32, %arg1: memref<256x1152xf32, #tpu.memory_space<vmem>>, %arg2: memref<1152x128xf32, #tpu.memory_space<vmem>>, %arg3: memref<256x128xf32, #tpu.memory_space<vmem>>, %arg4: memref<1x128xf32, #tpu.memory_space<vmem>>, %arg5: memref<1x128xf32, #tpu.memory_space<vmem>>) attributes {dimension_semantics = [#tpu.dimension_semantics<arbitrary>], iteration_bounds = array<i64: 1>, scalar_prefetch = 0 : i64, scratch_operands = 0 : i64, tpu.core_type = #tpu.core_type<tc>, window_params = [{transform_indices = @transform_0, window_bounds = array<i64: 256, 1152>}, {pipeline_mode = #tpu.pipeline_mode<synchronous>, transform_indices = @transform_1, window_bounds = array<i64: 1152, 128>}, {transform_indices = @transform_2, window_bounds = array<i64: 256, 128>}, {pipeline_mode = #tpu.pipeline_mode<synchronous>, transform_indices = @transform_3, window_bounds = array<i64: 1, 128>}, {pipeline_mode = #tpu.pipeline_mode<synchronous>, transform_indices = @transform_4, window_bounds = array<i64: 1, 128>}]} {
    %c0 = arith.constant 0 : index
    %c0_0 = arith.constant 0 : index
    %0 = vector.load %arg1[%c0, %c0_0] : memref<256x1152xf32, #tpu.memory_space<vmem>>, vector<256x1152xf32>
    %c0_1 = arith.constant 0 : index
    %c0_2 = arith.constant 0 : index
    %1 = vector.load %arg2[%c0_1, %c0_2] : memref<1152x128xf32, #tpu.memory_space<vmem>>, vector<1152x128xf32>
    %cst = arith.constant dense<0.000000e+00> : vector<256x128xf32>
    %2 = tpu.matmul %0, %1, %cst {dimension_numbers = #tpu.dot_dimension_numbers<[1], [0], [0], [1], [0, 0, 1, 1], [], []>} : vector<256x1152xf32>, vector<1152x128xf32>, vector<256x128xf32> -> vector<256x128xf32>
    %c0_3 = arith.constant 0 : index
    %c0_4 = arith.constant 0 : index
    %3 = vector.load %arg3[%c0_3, %c0_4] : memref<256x128xf32, #tpu.memory_space<vmem>>, vector<256x128xf32>
    tpu.vector_store %arg3[%c0_3, %c0_4], %2 {strides = array<i32>} : memref<256x128xf32, #tpu.memory_space<vmem>>, vector<256x128xf32>,
    %c0_i32 = arith.constant 0 : i32
    %4 = arith.cmpi eq, %arg0, %c0_i32 : i32
    %5 = arith.extui %4 : i1 to i32
    %c0_i32_5 = arith.constant 0 : i32
    %6 = arith.cmpi ne, %5, %c0_i32_5 : i32
    scf.if %6 {
      %cst_16 = arith.constant 0.000000e+00 : f32
      %18 = vector.broadcast %cst_16 : f32 to vector<1x128xf32>
      %c0_17 = arith.constant 0 : index
      %c0_18 = arith.constant 0 : index
      %19 = vector.load %arg4[%c0_17, %c0_18] : memref<1x128xf32, #tpu.memory_space<vmem>>, vector<1x128xf32>
      tpu.vector_store %arg4[%c0_17, %c0_18], %18 {strides = array<i32>} : memref<1x128xf32, #tpu.memory_space<vmem>>, vector<1x128xf32>,
      %cst_19 = arith.constant 0.000000e+00 : f32
      %20 = vector.broadcast %cst_19 : f32 to vector<1x128xf32>
      %c0_20 = arith.constant 0 : index
      %c0_21 = arith.constant 0 : index
      %21 = vector.load %arg5[%c0_20, %c0_21] : memref<1x128xf32, #tpu.memory_space<vmem>>, vector<1x128xf32>
      tpu.vector_store %arg5[%c0_20, %c0_21], %20 {strides = array<i32>} : memref<1x128xf32, #tpu.memory_space<vmem>>, vector<1x128xf32>,
    } else {
    }
    %c0_6 = arith.constant 0 : index
    %c0_7 = arith.constant 0 : index
    %7 = vector.load %arg4[%c0_6, %c0_7] : memref<1x128xf32, #tpu.memory_space<vmem>>, vector<1x128xf32>
    %cst_8 = arith.constant dense<0.000000e+00> : vector<128xf32>
    %8 = vector.multi_reduction <add>, %2, %cst_8 [0] : vector<256x128xf32> to vector<128xf32>
    %9 = vector.shape_cast %8 : vector<128xf32> to vector<1x128xf32>
    %10 = arith.addf %7, %9 : vector<1x128xf32>
    %c0_9 = arith.constant 0 : index
    %c0_10 = arith.constant 0 : index
    %11 = vector.load %arg4[%c0_9, %c0_10] : memref<1x128xf32, #tpu.memory_space<vmem>>, vector<1x128xf32>
    tpu.vector_store %arg4[%c0_9, %c0_10], %10 {strides = array<i32>} : memref<1x128xf32, #tpu.memory_space<vmem>>, vector<1x128xf32>,
    %c0_11 = arith.constant 0 : index
    %c0_12 = arith.constant 0 : index
    %12 = vector.load %arg5[%c0_11, %c0_12] : memref<1x128xf32, #tpu.memory_space<vmem>>, vector<1x128xf32>
    %13 = arith.mulf %2, %2 : vector<256x128xf32>
    %cst_13 = arith.constant dense<0.000000e+00> : vector<128xf32>
    %14 = vector.multi_reduction <add>, %13, %cst_13 [0] : vector<256x128xf32> to vector<128xf32>
    %15 = vector.shape_cast %14 : vector<128xf32> to vector<1x128xf32>
    %16 = arith.addf %12, %15 : vector<1x128xf32>
    %c0_14 = arith.constant 0 : index
    %c0_15 = arith.constant 0 : index
    %17 = vector.load %arg5[%c0_14, %c0_15] : memref<1x128xf32, #tpu.memory_space<vmem>>, vector<1x128xf32>
    tpu.vector_store %arg5[%c0_14, %c0_15], %16 {strides = array<i32>} : memref<1x128xf32, #tpu.memory_space<vmem>>, vector<1x128xf32>,
    return
  }
  func.func @transform_0(%arg0: i32) -> (i32, i32) {
    %c0_i32 = arith.constant 0 : i32
    %c0_i32_0 = arith.constant 0 : i32
    return %arg0, %c0_i32 : i32, i32
  }
  func.func @transform_1(%arg0: i32) -> (i32, i32) {
    %c0_i32 = arith.constant 0 : i32
    %c0_i32_0 = arith.constant 0 : i32
    %c0_i32_1 = arith.constant 0 : i32
    return %c0_i32, %c0_i32_0 : i32, i32
  }
  func.func @transform_2(%arg0: i32) -> (i32, i32) {
    %c0_i32 = arith.constant 0 : i32
    %c0_i32_0 = arith.constant 0 : i32
    return %arg0, %c0_i32 : i32, i32
  }
  func.func @transform_3(%arg0: i32) -> (i32, i32) {
    %c0_i32 = arith.constant 0 : i32
    %c0_i32_0 = arith.constant 0 : i32
    %c0_i32_1 = arith.constant 0 : i32
    return %c0_i32, %c0_i32_0 : i32, i32
  }
  func.func @transform_4(%arg0: i32) -> (i32, i32) {
    %c0_i32 = arith.constant 0 : i32
    %c0_i32_0 = arith.constant 0 : i32
    %c0_i32_1 = arith.constant 0 : i32
    return %c0_i32, %c0_i32_0 : i32, i32
  }
}

module attributes {stable_mosaic.version = 11 : i64} {
  func.func @_residual_apply_kernel(%arg0: i32, %arg1: memref<256x128xf32, #tpu.memory_space<vmem>>, %arg2: memref<1x128xf32, #tpu.memory_space<vmem>>, %arg3: memref<1x128xf32, #tpu.memory_space<vmem>>, %arg4: memref<256x128xf32, #tpu.memory_space<vmem>>, %arg5: memref<1x128xf32, #tpu.memory_space<vmem>>, %arg6: memref<1x128xf32, #tpu.memory_space<vmem>>, %arg7: memref<256x128xf32, #tpu.memory_space<vmem>>) attributes {dimension_semantics = [#tpu.dimension_semantics<parallel>], iteration_bounds = array<i64: 1>, scalar_prefetch = 0 : i64, scratch_operands = 0 : i64, tpu.core_type = #tpu.core_type<tc>, window_params = [{transform_indices = @transform_0, window_bounds = array<i64: 256, 128>}, {pipeline_mode = #tpu.pipeline_mode<synchronous>, transform_indices = @transform_1, window_bounds = array<i64: 1, 128>}, {pipeline_mode = #tpu.pipeline_mode<synchronous>, transform_indices = @transform_2, window_bounds = array<i64: 1, 128>}, {transform_indices = @transform_3, window_bounds = array<i64: 256, 128>}, {pipeline_mode = #tpu.pipeline_mode<synchronous>, transform_indices = @transform_4, window_bounds = array<i64: 1, 128>}, {pipeline_mode = #tpu.pipeline_mode<synchronous>, transform_indices = @transform_5, window_bounds = array<i64: 1, 128>}, {transform_indices = @transform_6, window_bounds = array<i64: 256, 128>}]} {
    %c0 = arith.constant 0 : index
    %c0_0 = arith.constant 0 : index
    %0 = vector.load %arg1[%c0, %c0_0] : memref<256x128xf32, #tpu.memory_space<vmem>>, vector<256x128xf32>
    %c0_1 = arith.constant 0 : index
    %c0_2 = arith.constant 0 : index
    %1 = vector.load %arg2[%c0_1, %c0_2] : memref<1x128xf32, #tpu.memory_space<vmem>>, vector<1x128xf32>
    %2 = vector.broadcast %1 : vector<1x128xf32> to vector<256x128xf32>
    %3 = arith.mulf %0, %2 : vector<256x128xf32>
    %c0_3 = arith.constant 0 : index
    %c0_4 = arith.constant 0 : index
    %4 = vector.load %arg3[%c0_3, %c0_4] : memref<1x128xf32, #tpu.memory_space<vmem>>, vector<1x128xf32>
    %5 = vector.broadcast %4 : vector<1x128xf32> to vector<256x128xf32>
    %6 = arith.addf %3, %5 : vector<256x128xf32>
    %c0_5 = arith.constant 0 : index
    %c0_6 = arith.constant 0 : index
    %7 = vector.load %arg4[%c0_5, %c0_6] : memref<256x128xf32, #tpu.memory_space<vmem>>, vector<256x128xf32>
    %c0_7 = arith.constant 0 : index
    %c0_8 = arith.constant 0 : index
    %8 = vector.load %arg5[%c0_7, %c0_8] : memref<1x128xf32, #tpu.memory_space<vmem>>, vector<1x128xf32>
    %9 = vector.broadcast %8 : vector<1x128xf32> to vector<256x128xf32>
    %10 = arith.mulf %7, %9 : vector<256x128xf32>
    %c0_9 = arith.constant 0 : index
    %c0_10 = arith.constant 0 : index
    %11 = vector.load %arg6[%c0_9, %c0_10] : memref<1x128xf32, #tpu.memory_space<vmem>>, vector<1x128xf32>
    %12 = vector.broadcast %11 : vector<1x128xf32> to vector<256x128xf32>
    %13 = arith.addf %10, %12 : vector<256x128xf32>
    %14 = arith.addf %6, %13 : vector<256x128xf32>
    %cst = arith.constant 0.000000e+00 : f32
    %15 = vector.broadcast %cst : f32 to vector<256x128xf32>
    %16 = arith.maximumf %14, %15 : vector<256x128xf32>
    %c0_11 = arith.constant 0 : index
    %c0_12 = arith.constant 0 : index
    %17 = vector.load %arg7[%c0_11, %c0_12] : memref<256x128xf32, #tpu.memory_space<vmem>>, vector<256x128xf32>
    tpu.vector_store %arg7[%c0_11, %c0_12], %16 {strides = array<i32>} : memref<256x128xf32, #tpu.memory_space<vmem>>, vector<256x128xf32>,
    return
  }
  func.func @transform_0(%arg0: i32) -> (i32, i32) {
    %c0_i32 = arith.constant 0 : i32
    %c0_i32_0 = arith.constant 0 : i32
    return %arg0, %c0_i32 : i32, i32
  }
  func.func @transform_1(%arg0: i32) -> (i32, i32) {
    %c0_i32 = arith.constant 0 : i32
    %c0_i32_0 = arith.constant 0 : i32
    %c0_i32_1 = arith.constant 0 : i32
    return %c0_i32, %c0_i32_0 : i32, i32
  }
  func.func @transform_2(%arg0: i32) -> (i32, i32) {
    %c0_i32 = arith.constant 0 : i32
    %c0_i32_0 = arith.constant 0 : i32
    %c0_i32_1 = arith.constant 0 : i32
    return %c0_i32, %c0_i32_0 : i32, i32
  }
  func.func @transform_3(%arg0: i32) -> (i32, i32) {
    %c0_i32 = arith.constant 0 : i32
    %c0_i32_0 = arith.constant 0 : i32
    return %arg0, %c0_i32 : i32, i32
  }
  func.func @transform_4(%arg0: i32) -> (i32, i32) {
    %c0_i32 = arith.constant 0 : i32
    %c0_i32_0 = arith.constant 0 : i32
    %c0_i32_1 = arith.constant 0 : i32
    return %c0_i32, %c0_i32_0 : i32, i32
  }
  func.func @transform_5(%arg0: i32) -> (i32, i32) {
    %c0_i32 = arith.constant 0 : i32
    %c0_i32_0 = arith.constant 0 : i32
    %c0_i32_1 = arith.constant 0 : i32
    return %c0_i32, %c0_i32_0 : i32, i32
  }
  func.func @transform_6(%arg0: i32) -> (i32, i32) {
    %c0_i32 = arith.constant 0 : i32
    %c0_i32_0 = arith.constant 0 : i32
    return %arg0, %c0_i32 : i32, i32
  }
}

module attributes {stable_mosaic.version = 11 : i64} {
  func.func @_scale_shift_relu_kernel(%arg0: i32, %arg1: memref<256x128xf32, #tpu.memory_space<vmem>>, %arg2: memref<1x128xf32, #tpu.memory_space<vmem>>, %arg3: memref<1x128xf32, #tpu.memory_space<vmem>>, %arg4: memref<256x128xf32, #tpu.memory_space<vmem>>) attributes {dimension_semantics = [#tpu.dimension_semantics<parallel>], iteration_bounds = array<i64: 1>, scalar_prefetch = 0 : i64, scratch_operands = 0 : i64, tpu.core_type = #tpu.core_type<tc>, window_params = [{transform_indices = @transform_0, window_bounds = array<i64: 256, 128>}, {pipeline_mode = #tpu.pipeline_mode<synchronous>, transform_indices = @transform_1, window_bounds = array<i64: 1, 128>}, {pipeline_mode = #tpu.pipeline_mode<synchronous>, transform_indices = @transform_2, window_bounds = array<i64: 1, 128>}, {transform_indices = @transform_3, window_bounds = array<i64: 256, 128>}]} {
    %c0 = arith.constant 0 : index
    %c0_0 = arith.constant 0 : index
    %0 = vector.load %arg1[%c0, %c0_0] : memref<256x128xf32, #tpu.memory_space<vmem>>, vector<256x128xf32>
    %c0_1 = arith.constant 0 : index
    %c0_2 = arith.constant 0 : index
    %1 = vector.load %arg2[%c0_1, %c0_2] : memref<1x128xf32, #tpu.memory_space<vmem>>, vector<1x128xf32>
    %2 = vector.broadcast %1 : vector<1x128xf32> to vector<256x128xf32>
    %3 = arith.mulf %0, %2 : vector<256x128xf32>
    %c0_3 = arith.constant 0 : index
    %c0_4 = arith.constant 0 : index
    %4 = vector.load %arg3[%c0_3, %c0_4] : memref<1x128xf32, #tpu.memory_space<vmem>>, vector<1x128xf32>
    %5 = vector.broadcast %4 : vector<1x128xf32> to vector<256x128xf32>
    %6 = arith.addf %3, %5 : vector<256x128xf32>
    %cst = arith.constant 0.000000e+00 : f32
    %7 = vector.broadcast %cst : f32 to vector<256x128xf32>
    %8 = arith.maximumf %6, %7 : vector<256x128xf32>
    %c0_5 = arith.constant 0 : index
    %c0_6 = arith.constant 0 : index
    %9 = vector.load %arg4[%c0_5, %c0_6] : memref<256x128xf32, #tpu.memory_space<vmem>>, vector<256x128xf32>
    tpu.vector_store %arg4[%c0_5, %c0_6], %8 {strides = array<i32>} : memref<256x128xf32, #tpu.memory_space<vmem>>, vector<256x128xf32>,
    return
  }
  func.func @transform_0(%arg0: i32) -> (i32, i32) {
    %c0_i32 = arith.constant 0 : i32
    %c0_i32_0 = arith.constant 0 : i32
    return %arg0, %c0_i32 : i32, i32
  }
  func.func @transform_1(%arg0: i32) -> (i32, i32) {
    %c0_i32 = arith.constant 0 : i32
    %c0_i32_0 = arith.constant 0 : i32
    %c0_i32_1 = arith.constant 0 : i32
    return %c0_i32, %c0_i32_0 : i32, i32
  }
  func.func @transform_2(%arg0: i32) -> (i32, i32) {
    %c0_i32 = arith.constant 0 : i32
    %c0_i32_0 = arith.constant 0 : i32
    %c0_i32_1 = arith.constant 0 : i32
    return %c0_i32, %c0_i32_0 : i32, i32
  }
  func.func @transform_3(%arg0: i32) -> (i32, i32) {
    %c0_i32 = arith.constant 0 : i32
    %c0_i32_0 = arith.constant 0 : i32
    return %arg0, %c0_i32 : i32, i32
  }
}

module attributes {stable_mosaic.version = 11 : i64} {
  func.func @_conv3x3_stats_kernel(%arg0: i32, %arg1: memref<1x10x10x128xf32, #tpu.memory_space<vmem>>, %arg2: memref<9x128x128xf32, #tpu.memory_space<vmem>>, %arg3: memref<1x64x128xf32, #tpu.memory_space<vmem>>, %arg4: memref<1x128xf32, #tpu.memory_space<vmem>>, %arg5: memref<1x128xf32, #tpu.memory_space<vmem>>) attributes {dimension_semantics = [#tpu.dimension_semantics<arbitrary>], iteration_bounds = array<i64: 4>, scalar_prefetch = 0 : i64, scratch_operands = 0 : i64, tpu.core_type = #tpu.core_type<tc>, window_params = [{transform_indices = @transform_0, window_bounds = array<i64: 1, 10, 10, 128>}, {pipeline_mode = #tpu.pipeline_mode<synchronous>, transform_indices = @transform_1, window_bounds = array<i64: 9, 128, 128>}, {transform_indices = @transform_2, window_bounds = array<i64: 1, 64, 128>}, {pipeline_mode = #tpu.pipeline_mode<synchronous>, transform_indices = @transform_3, window_bounds = array<i64: 1, 128>}, {pipeline_mode = #tpu.pipeline_mode<synchronous>, transform_indices = @transform_4, window_bounds = array<i64: 1, 128>}]} {
    %c0 = arith.constant 0 : index
    %c0_0 = arith.constant 0 : index
    %c0_1 = arith.constant 0 : index
    %c0_2 = arith.constant 0 : index
    %0 = vector.load %arg1[%c0, %c0_0, %c0_1, %c0_2] : memref<1x10x10x128xf32, #tpu.memory_space<vmem>>, vector<1x10x10x128xf32>
    %1 = vector.shape_cast %0 : vector<1x10x10x128xf32> to vector<10x10x128xf32>
    %cst = arith.constant 0.000000e+00 : f32
    %2 = vector.broadcast %cst : f32 to vector<64x128xf32>
    %3 = vector.extract_strided_slice %1 {offsets = [0, 0, 0], sizes = [8, 8, 128], strides = [1, 1, 1]} : vector<10x10x128xf32> to vector<8x8x128xf32>
    %4 = vector.shape_cast %3 : vector<8x8x128xf32> to vector<64x128xf32>
    %c0_3 = arith.constant 0 : index
    %c0_4 = arith.constant 0 : index
    %c0_5 = arith.constant 0 : index
    %5 = vector.load %arg2[%c0_3, %c0_4, %c0_5] : memref<9x128x128xf32, #tpu.memory_space<vmem>>, vector<1x128x128xf32>
    %6 = vector.shape_cast %5 : vector<1x128x128xf32> to vector<128x128xf32>
    %cst_6 = arith.constant dense<0.000000e+00> : vector<64x128xf32>
    %7 = tpu.matmul %4, %6, %cst_6 {dimension_numbers = #tpu.dot_dimension_numbers<[1], [0], [0], [1], [0, 0, 1, 1], [], []>} : vector<64x128xf32>, vector<128x128xf32>, vector<64x128xf32> -> vector<64x128xf32>
    %8 = arith.addf %2, %7 : vector<64x128xf32>
    %9 = vector.extract_strided_slice %1 {offsets = [0, 1, 0], sizes = [8, 8, 128], strides = [1, 1, 1]} : vector<10x10x128xf32> to vector<8x8x128xf32>
    %10 = vector.shape_cast %9 : vector<8x8x128xf32> to vector<64x128xf32>
    %c1 = arith.constant 1 : index
    %c0_7 = arith.constant 0 : index
    %c0_8 = arith.constant 0 : index
    %11 = vector.load %arg2[%c1, %c0_7, %c0_8] : memref<9x128x128xf32, #tpu.memory_space<vmem>>, vector<1x128x128xf32>
    %12 = vector.shape_cast %11 : vector<1x128x128xf32> to vector<128x128xf32>
    %cst_9 = arith.constant dense<0.000000e+00> : vector<64x128xf32>
    %13 = tpu.matmul %10, %12, %cst_9 {dimension_numbers = #tpu.dot_dimension_numbers<[1], [0], [0], [1], [0, 0, 1, 1], [], []>} : vector<64x128xf32>, vector<128x128xf32>, vector<64x128xf32> -> vector<64x128xf32>
    %14 = arith.addf %8, %13 : vector<64x128xf32>
    %15 = vector.extract_strided_slice %1 {offsets = [0, 2, 0], sizes = [8, 8, 128], strides = [1, 1, 1]} : vector<10x10x128xf32> to vector<8x8x128xf32>
    %16 = vector.shape_cast %15 : vector<8x8x128xf32> to vector<64x128xf32>
    %c2 = arith.constant 2 : index
    %c0_10 = arith.constant 0 : index
    %c0_11 = arith.constant 0 : index
    %17 = vector.load %arg2[%c2, %c0_10, %c0_11] : memref<9x128x128xf32, #tpu.memory_space<vmem>>, vector<1x128x128xf32>
    %18 = vector.shape_cast %17 : vector<1x128x128xf32> to vector<128x128xf32>
    %cst_12 = arith.constant dense<0.000000e+00> : vector<64x128xf32>
    %19 = tpu.matmul %16, %18, %cst_12 {dimension_numbers = #tpu.dot_dimension_numbers<[1], [0], [0], [1], [0, 0, 1, 1], [], []>} : vector<64x128xf32>, vector<128x128xf32>, vector<64x128xf32> -> vector<64x128xf32>
    %20 = arith.addf %14, %19 : vector<64x128xf32>
    %21 = vector.extract_strided_slice %1 {offsets = [1, 0, 0], sizes = [8, 8, 128], strides = [1, 1, 1]} : vector<10x10x128xf32> to vector<8x8x128xf32>
    %22 = vector.shape_cast %21 : vector<8x8x128xf32> to vector<64x128xf32>
    %c3 = arith.constant 3 : index
    %c0_13 = arith.constant 0 : index
    %c0_14 = arith.constant 0 : index
    %23 = vector.load %arg2[%c3, %c0_13, %c0_14] : memref<9x128x128xf32, #tpu.memory_space<vmem>>, vector<1x128x128xf32>
    %24 = vector.shape_cast %23 : vector<1x128x128xf32> to vector<128x128xf32>
    %cst_15 = arith.constant dense<0.000000e+00> : vector<64x128xf32>
    %25 = tpu.matmul %22, %24, %cst_15 {dimension_numbers = #tpu.dot_dimension_numbers<[1], [0], [0], [1], [0, 0, 1, 1], [], []>} : vector<64x128xf32>, vector<128x128xf32>, vector<64x128xf32> -> vector<64x128xf32>
    %26 = arith.addf %20, %25 : vector<64x128xf32>
    %27 = vector.extract_strided_slice %1 {offsets = [1, 1, 0], sizes = [8, 8, 128], strides = [1, 1, 1]} : vector<10x10x128xf32> to vector<8x8x128xf32>
    %28 = vector.shape_cast %27 : vector<8x8x128xf32> to vector<64x128xf32>
    %c4 = arith.constant 4 : index
    %c0_16 = arith.constant 0 : index
    %c0_17 = arith.constant 0 : index
    %29 = vector.load %arg2[%c4, %c0_16, %c0_17] : memref<9x128x128xf32, #tpu.memory_space<vmem>>, vector<1x128x128xf32>
    %30 = vector.shape_cast %29 : vector<1x128x128xf32> to vector<128x128xf32>
    %cst_18 = arith.constant dense<0.000000e+00> : vector<64x128xf32>
    %31 = tpu.matmul %28, %30, %cst_18 {dimension_numbers = #tpu.dot_dimension_numbers<[1], [0], [0], [1], [0, 0, 1, 1], [], []>} : vector<64x128xf32>, vector<128x128xf32>, vector<64x128xf32> -> vector<64x128xf32>
    %32 = arith.addf %26, %31 : vector<64x128xf32>
    %33 = vector.extract_strided_slice %1 {offsets = [1, 2, 0], sizes = [8, 8, 128], strides = [1, 1, 1]} : vector<10x10x128xf32> to vector<8x8x128xf32>
    %34 = vector.shape_cast %33 : vector<8x8x128xf32> to vector<64x128xf32>
    %c5 = arith.constant 5 : index
    %c0_19 = arith.constant 0 : index
    %c0_20 = arith.constant 0 : index
    %35 = vector.load %arg2[%c5, %c0_19, %c0_20] : memref<9x128x128xf32, #tpu.memory_space<vmem>>, vector<1x128x128xf32>
    %36 = vector.shape_cast %35 : vector<1x128x128xf32> to vector<128x128xf32>
    %cst_21 = arith.constant dense<0.000000e+00> : vector<64x128xf32>
    %37 = tpu.matmul %34, %36, %cst_21 {dimension_numbers = #tpu.dot_dimension_numbers<[1], [0], [0], [1], [0, 0, 1, 1], [], []>} : vector<64x128xf32>, vector<128x128xf32>, vector<64x128xf32> -> vector<64x128xf32>
    %38 = arith.addf %32, %37 : vector<64x128xf32>
    %39 = vector.extract_strided_slice %1 {offsets = [2, 0, 0], sizes = [8, 8, 128], strides = [1, 1, 1]} : vector<10x10x128xf32> to vector<8x8x128xf32>
    %40 = vector.shape_cast %39 : vector<8x8x128xf32> to vector<64x128xf32>
    %c6 = arith.constant 6 : index
    %c0_22 = arith.constant 0 : index
    %c0_23 = arith.constant 0 : index
    %41 = vector.load %arg2[%c6, %c0_22, %c0_23] : memref<9x128x128xf32, #tpu.memory_space<vmem>>, vector<1x128x128xf32>
    %42 = vector.shape_cast %41 : vector<1x128x128xf32> to vector<128x128xf32>
    %cst_24 = arith.constant dense<0.000000e+00> : vector<64x128xf32>
    %43 = tpu.matmul %40, %42, %cst_24 {dimension_numbers = #tpu.dot_dimension_numbers<[1], [0], [0], [1], [0, 0, 1, 1], [], []>} : vector<64x128xf32>, vector<128x128xf32>, vector<64x128xf32> -> vector<64x128xf32>
    %44 = arith.addf %38, %43 : vector<64x128xf32>
    %45 = vector.extract_strided_slice %1 {offsets = [2, 1, 0], sizes = [8, 8, 128], strides = [1, 1, 1]} : vector<10x10x128xf32> to vector<8x8x128xf32>
    %46 = vector.shape_cast %45 : vector<8x8x128xf32> to vector<64x128xf32>
    %c7 = arith.constant 7 : index
    %c0_25 = arith.constant 0 : index
    %c0_26 = arith.constant 0 : index
    %47 = vector.load %arg2[%c7, %c0_25, %c0_26] : memref<9x128x128xf32, #tpu.memory_space<vmem>>, vector<1x128x128xf32>
    %48 = vector.shape_cast %47 : vector<1x128x128xf32> to vector<128x128xf32>
    %cst_27 = arith.constant dense<0.000000e+00> : vector<64x128xf32>
    %49 = tpu.matmul %46, %48, %cst_27 {dimension_numbers = #tpu.dot_dimension_numbers<[1], [0], [0], [1], [0, 0, 1, 1], [], []>} : vector<64x128xf32>, vector<128x128xf32>, vector<64x128xf32> -> vector<64x128xf32>
    %50 = arith.addf %44, %49 : vector<64x128xf32>
    %51 = vector.extract_strided_slice %1 {offsets = [2, 2, 0], sizes = [8, 8, 128], strides = [1, 1, 1]} : vector<10x10x128xf32> to vector<8x8x128xf32>
    %52 = vector.shape_cast %51 : vector<8x8x128xf32> to vector<64x128xf32>
    %c8 = arith.constant 8 : index
    %c0_28 = arith.constant 0 : index
    %c0_29 = arith.constant 0 : index
    %53 = vector.load %arg2[%c8, %c0_28, %c0_29] : memref<9x128x128xf32, #tpu.memory_space<vmem>>, vector<1x128x128xf32>
    %54 = vector.shape_cast %53 : vector<1x128x128xf32> to vector<128x128xf32>
    %cst_30 = arith.constant dense<0.000000e+00> : vector<64x128xf32>
    %55 = tpu.matmul %52, %54, %cst_30 {dimension_numbers = #tpu.dot_dimension_numbers<[1], [0], [0], [1], [0, 0, 1, 1], [], []>} : vector<64x128xf32>, vector<128x128xf32>, vector<64x128xf32> -> vector<64x128xf32>
    %56 = arith.addf %50, %55 : vector<64x128xf32>
    %c0_31 = arith.constant 0 : index
    %c0_32 = arith.constant 0 : index
    %c0_33 = arith.constant 0 : index
    %57 = vector.load %arg3[%c0_31, %c0_32, %c0_33] : memref<1x64x128xf32, #tpu.memory_space<vmem>>, vector<1x64x128xf32>
    %58 = vector.shape_cast %57 : vector<1x64x128xf32> to vector<64x128xf32>
    %59 = vector.shape_cast %56 : vector<64x128xf32> to vector<1x64x128xf32>
    tpu.vector_store %arg3[%c0_31, %c0_32, %c0_33], %59 {strides = array<i32>} : memref<1x64x128xf32, #tpu.memory_space<vmem>>, vector<1x64x128xf32>,
    %c0_i32 = arith.constant 0 : i32
    %60 = arith.cmpi eq, %arg0, %c0_i32 : i32
    %61 = arith.extui %60 : i1 to i32
    %c0_i32_34 = arith.constant 0 : i32
    %62 = arith.cmpi ne, %61, %c0_i32_34 : i32
    scf.if %62 {
      %cst_45 = arith.constant 0.000000e+00 : f32
      %74 = vector.broadcast %cst_45 : f32 to vector<1x128xf32>
      %c0_46 = arith.constant 0 : index
      %c0_47 = arith.constant 0 : index
      %75 = vector.load %arg4[%c0_46, %c0_47] : memref<1x128xf32, #tpu.memory_space<vmem>>, vector<1x128xf32>
      tpu.vector_store %arg4[%c0_46, %c0_47], %74 {strides = array<i32>} : memref<1x128xf32, #tpu.memory_space<vmem>>, vector<1x128xf32>,
      %cst_48 = arith.constant 0.000000e+00 : f32
      %76 = vector.broadcast %cst_48 : f32 to vector<1x128xf32>
      %c0_49 = arith.constant 0 : index
      %c0_50 = arith.constant 0 : index
      %77 = vector.load %arg5[%c0_49, %c0_50] : memref<1x128xf32, #tpu.memory_space<vmem>>, vector<1x128xf32>
      tpu.vector_store %arg5[%c0_49, %c0_50], %76 {strides = array<i32>} : memref<1x128xf32, #tpu.memory_space<vmem>>, vector<1x128xf32>,
    } else {
    }
    %c0_35 = arith.constant 0 : index
    %c0_36 = arith.constant 0 : index
    %63 = vector.load %arg4[%c0_35, %c0_36] : memref<1x128xf32, #tpu.memory_space<vmem>>, vector<1x128xf32>
    %cst_37 = arith.constant dense<0.000000e+00> : vector<128xf32>
    %64 = vector.multi_reduction <add>, %56, %cst_37 [0] : vector<64x128xf32> to vector<128xf32>
    %65 = vector.shape_cast %64 : vector<128xf32> to vector<1x128xf32>
    %66 = arith.addf %63, %65 : vector<1x128xf32>
    %c0_38 = arith.constant 0 : index
    %c0_39 = arith.constant 0 : index
    %67 = vector.load %arg4[%c0_38, %c0_39] : memref<1x128xf32, #tpu.memory_space<vmem>>, vector<1x128xf32>
    tpu.vector_store %arg4[%c0_38, %c0_39], %66 {strides = array<i32>} : memref<1x128xf32, #tpu.memory_space<vmem>>, vector<1x128xf32>,
    %c0_40 = arith.constant 0 : index
    %c0_41 = arith.constant 0 : index
    %68 = vector.load %arg5[%c0_40, %c0_41] : memref<1x128xf32, #tpu.memory_space<vmem>>, vector<1x128xf32>
    %69 = arith.mulf %56, %56 : vector<64x128xf32>
    %cst_42 = arith.constant dense<0.000000e+00> : vector<128xf32>
    %70 = vector.multi_reduction <add>, %69, %cst_42 [0] : vector<64x128xf32> to vector<128xf32>
    %71 = vector.shape_cast %70 : vector<128xf32> to vector<1x128xf32>
    %72 = arith.addf %68, %71 : vector<1x128xf32>
    %c0_43 = arith.constant 0 : index
    %c0_44 = arith.constant 0 : index
    %73 = vector.load %arg5[%c0_43, %c0_44] : memref<1x128xf32, #tpu.memory_space<vmem>>, vector<1x128xf32>
    tpu.vector_store %arg5[%c0_43, %c0_44], %72 {strides = array<i32>} : memref<1x128xf32, #tpu.memory_space<vmem>>, vector<1x128xf32>,
    return
  }
  func.func @transform_0(%arg0: i32) -> (i32, i32, i32, i32) {
    %c0_i32 = arith.constant 0 : i32
    %c0_i32_0 = arith.constant 0 : i32
    %c0_i32_1 = arith.constant 0 : i32
    %c0_i32_2 = arith.constant 0 : i32
    return %arg0, %c0_i32, %c0_i32_0, %c0_i32_1 : i32, i32, i32, i32
  }
  func.func @transform_1(%arg0: i32) -> (i32, i32, i32) {
    %c0_i32 = arith.constant 0 : i32
    %c0_i32_0 = arith.constant 0 : i32
    %c0_i32_1 = arith.constant 0 : i32
    %c0_i32_2 = arith.constant 0 : i32
    return %c0_i32, %c0_i32_0, %c0_i32_1 : i32, i32, i32
  }
  func.func @transform_2(%arg0: i32) -> (i32, i32, i32) {
    %c0_i32 = arith.constant 0 : i32
    %c0_i32_0 = arith.constant 0 : i32
    %c0_i32_1 = arith.constant 0 : i32
    return %arg0, %c0_i32, %c0_i32_0 : i32, i32, i32
  }
  func.func @transform_3(%arg0: i32) -> (i32, i32) {
    %c0_i32 = arith.constant 0 : i32
    %c0_i32_0 = arith.constant 0 : i32
    %c0_i32_1 = arith.constant 0 : i32
    return %c0_i32, %c0_i32_0 : i32, i32
  }
  func.func @transform_4(%arg0: i32) -> (i32, i32) {
    %c0_i32 = arith.constant 0 : i32
    %c0_i32_0 = arith.constant 0 : i32
    %c0_i32_1 = arith.constant 0 : i32
    return %c0_i32, %c0_i32_0 : i32, i32
  }
}

</mosaic_0001>

<bundles_post_ra>
// kernel: resblock_forward.18
= control target key start
LH: loop header
LB: loop body
LE: loop exit
PB: predicated region body
PF: predicated region fallthrough
CT: control target
= control target key end

     0   :  { %v626_v56 = vmov 0.0   ;;  %s988_s1 = inlined_call_operand.vmem [shape: f32[128,128], index: 1, kind: input, shape index: {}]   ;;  %s989_s0 = inlined_call_operand.vmem [shape: f32[256,128], index: 0, kind: input, shape index: {}]   ;;  %s990_s3 = inlined_call_operand.vmem [shape: f32[1,128], index: 3, kind: output, shape index: {1}]   ;;  %s991_s4 = inlined_call_operand.vmem [shape: f32[1,128], index: 4, kind: output, shape index: {2}]   ;;  %s992_s2 = inlined_call_operand.vmem [shape: f32[256,128], index: 2, kind: output, shape index: {0}]  }
   0x1   :  { %v46_v0 = vld [vmem:[%s988_s1] sm:$0xff]  ;;  %v47_v1 = vld [vmem:[%s988_s1 + $0x8] sm:$0xff]  ;;  %v48_v2 = vld [vmem:[%s988_s1 + $0x10] sm:$0xff]  ;;  %323 = vst [vmem:[%s990_s3] sm:$0x1] %v626_v56 }
   0x2   :  { %v577_v3 = vpack.c.bf16 %v47_v1, %v46_v0  ;;  %v49_v4 = vld [vmem:[%s988_s1 + $0x18] sm:$0xff]  ;;  %v50_v6 = vld [vmem:[%s988_s1 + $0x20] sm:$0xff]  ;;  %v51_v7 = vld [vmem:[%s988_s1 + $0x28] sm:$0xff]  ;;  %324 = vst [vmem:[%s991_s4] sm:$0x1] %v626_v56 }
   0x3   :  { %v581_v5 = vpack.c.bf16 %v49_v4, %v48_v2  ;;  %v585_v8 = vpack.c.bf16 %v51_v7, %v50_v6  ;;  %v14_v9 = vld [vmem:[%s989_s0] sm:$0xff]  ;;  %v52_v10 = vld [vmem:[%s988_s1 + $0x30] sm:$0xff]  ;;  %v53_v11 = vld [vmem:[%s988_s1 + $0x38] sm:$0xff] }
   0x4   :  { %578 = vmatprep.subr.bf16.mxu0 %v577_v3  ;;  %609 = vmatprep.subr.bf16.mxu1 %v577_v3  ;;  %v589_v12 = vpack.c.bf16 %v53_v11, %v52_v10  ;;  %v54_v13 = vld [vmem:[%s988_s1 + $0x40] sm:$0xff]  ;;  %v55_v14 = vld [vmem:[%s988_s1 + $0x48] sm:$0xff]  ;;  %v56_v17 = vld [vmem:[%s988_s1 + $0x50] sm:$0xff] }
   0x5   :  { %580 = vmatpush3.bf16.msra.mxu0 %v577_v3  ;;  %617 = vmatpush3.bf16.msra.mxu1 %v577_v3  ;;  %v30_v15 = vld [vmem:[%s989_s0 + $0x80] sm:$0xff]  ;;  %v593_v16 = vpack.c.bf16 %v55_v14, %v54_v13  ;;  %v57_v18 = vld [vmem:[%s988_s1 + $0x58] sm:$0xff]  ;;  %v59_v21 = vld [vmem:[%s988_s1 + $0x68] sm:$0xff] }
   0x6   :  { %582 = vmatprep.subr.bf16.mxu0 %v581_v5  ;;  %610 = vmatprep.subr.bf16.mxu1 %v581_v5  ;;  %v597_v19 = vpack.c.bf16 %v57_v18, %v56_v17  ;;  %v58_v20 = vld [vmem:[%s988_s1 + $0x60] sm:$0xff]  ;;  %v60_v23 = vld [vmem:[%s988_s1 + $0x70] sm:$0xff]  ;;  %v61_v24 = vld [vmem:[%s988_s1 + $0x78] sm:$0xff] }
   0x7   :  { %529 = vmatprep.mubr.f32.mxu0 %v14_v9  ;;  %553 = vmatprep.mubr.f32.mxu1 %v30_v15  ;;  %v601_v22 = vpack.c.bf16 %v59_v21, %v58_v20  ;;  %v605_v25 = vpack.c.bf16 %v61_v24, %v60_v23  ;;  %v15_v26 = vld [vmem:[%s989_s0 + $0x8] sm:$0xff]  ;;  %v16_v28 = vld [vmem:[%s989_s0 + $0x10] sm:$0xff]  ;;  %v17_v30 = vld [vmem:[%s989_s0 + $0x18] sm:$0xff] }
   0x8   :  { %v31_v27 = vld [vmem:[%s989_s0 + $0x88] sm:$0xff]  ;;  %v32_v29 = vld [vmem:[%s989_s0 + $0x90] sm:$0xff]  ;;  %v33_v31 = vld [vmem:[%s989_s0 + $0x98] sm:$0xff] }
   0x9   :  { %584 = vmatpush3.bf16.msra.mxu0 %v581_v5  ;;  %618 = vmatpush3.bf16.msra.mxu1 %v581_v5  ;;  %v18_v32 = vld [vmem:[%s989_s0 + $0x20] sm:$0xff]  ;;  %v19_v34 = vld [vmem:[%s989_s0 + $0x28] sm:$0xff]  ;;  %v20_v36 = vld [vmem:[%s989_s0 + $0x30] sm:$0xff] }
   0xa   :  { %586 = vmatprep.subr.bf16.mxu0 %v585_v8  ;;  %611 = vmatprep.subr.bf16.mxu1 %v585_v8  ;;  %v34_v33 = vld [vmem:[%s989_s0 + $0xa0] sm:$0xff]  ;;  %v35_v35 = vld [vmem:[%s989_s0 + $0xa8] sm:$0xff]  ;;  %v36_v37 = vld [vmem:[%s989_s0 + $0xb0] sm:$0xff] }
   0xb   :  { %v21_v38 = vld [vmem:[%s989_s0 + $0x38] sm:$0xff]  ;;  %v22_v40 = vld [vmem:[%s989_s0 + $0x40] sm:$0xff]  ;;  %v23_v42 = vld [vmem:[%s989_s0 + $0x48] sm:$0xff] }
   0xc   :  { %v37_v39 = vld [vmem:[%s989_s0 + $0xb8] sm:$0xff]  ;;  %v38_v41 = vld [vmem:[%s989_s0 + $0xc0] sm:$0xff]  ;;  %v39_v43 = vld [vmem:[%s989_s0 + $0xc8] sm:$0xff] }
   0xd   :  { %588 = vmatpush3.bf16.msra.mxu0 %v585_v8  ;;  %619 = vmatpush3.bf16.msra.mxu1 %v585_v8  ;;  %v24_v44 = vld [vmem:[%s989_s0 + $0x50] sm:$0xff]  ;;  %v25_v46 = vld [vmem:[%s989_s0 + $0x58] sm:$0xff]  ;;  %v26_v48 = vld [vmem:[%s989_s0 + $0x60] sm:$0xff] }
   0xe   :  { %590 = vmatprep.subr.bf16.mxu0 %v589_v12  ;;  %612 = vmatprep.subr.bf16.mxu1 %v589_v12  ;;  %v40_v45 = vld [vmem:[%s989_s0 + $0xd0] sm:$0xff]  ;;  %v41_v47 = vld [vmem:[%s989_s0 + $0xd8] sm:$0xff]  ;;  %v42_v49 = vld [vmem:[%s989_s0 + $0xe0] sm:$0xff] }
   0xf   :  { %v27_v50 = vld [vmem:[%s989_s0 + $0x68] sm:$0xff]  ;;  %v28_v52 = vld [vmem:[%s989_s0 + $0x70] sm:$0xff]  ;;  %v29_v54 = vld [vmem:[%s989_s0 + $0x78] sm:$0xff] }
  0x10   :  { %v43_v51 = vld [vmem:[%s989_s0 + $0xe8] sm:$0xff]  ;;  %v44_v53 = vld [vmem:[%s989_s0 + $0xf0] sm:$0xff]  ;;  %v45_v55 = vld [vmem:[%s989_s0 + $0xf8] sm:$0xff] }
  0x11   :  { %592 = vmatpush3.bf16.msra.mxu0 %v589_v12  ;;  %620 = vmatpush3.bf16.msra.mxu1 %v589_v12 }
  0x12   :  { %594 = vmatprep.subr.bf16.mxu0 %v593_v16  ;;  %613 = vmatprep.subr.bf16.mxu1 %v593_v16 }
  0x15   :  { %596 = vmatpush3.bf16.msra.mxu0 %v593_v16  ;;  %621 = vmatpush3.bf16.msra.mxu1 %v593_v16 }
  0x16   :  { %598 = vmatprep.subr.bf16.mxu0 %v597_v19  ;;  %614 = vmatprep.subr.bf16.mxu1 %v597_v19 }
  0x19   :  { %600 = vmatpush3.bf16.msra.mxu0 %v597_v19  ;;  %622 = vmatpush3.bf16.msra.mxu1 %v597_v19 }
  0x1a   :  { %602 = vmatprep.subr.bf16.mxu0 %v601_v22  ;;  %615 = vmatprep.subr.bf16.mxu1 %v601_v22 }
  0x1d   :  { %604 = vmatpush3.bf16.msra.mxu0 %v601_v22  ;;  %623 = vmatpush3.bf16.msra.mxu1 %v601_v22 }
  0x1e   :  { %606 = vmatprep.subr.bf16.mxu0 %v605_v25  ;;  %616 = vmatprep.subr.bf16.mxu1 %v605_v25 }
  0x21   :  { %608 = vmatpush3.bf16.msra.mxu0 %v605_v25  ;;  %624 = vmatpush3.bf16.msra.mxu1 %v605_v25 }
  0x24   :  { %530 = vmatmul.mubr.f32.vlgmr.msra.gmra.mrb[0].mxu0 %v15_v26  ;;  %554 = vmatmul.mubr.f32.vlgmr.msra.gmra.mrb[0].mxu1 %v31_v27 }
  0x25   :  { %532 = vmatprep.mubr.f32.mxu0 %v16_v28  ;;  %556 = vmatprep.mubr.f32.mxu1 %v32_v29 }
  0x28   :  { %533 = vmatmul.mubr.f32.gmra.mrb[2].mxu0 %v17_v30  ;;  %557 = vmatmul.mubr.f32.gmra.mrb[2].mxu1 %v33_v31 }
  0x29   :  { %535 = vmatprep.mubr.f32.mxu0 %v18_v32  ;;  %559 = vmatprep.mubr.f32.mxu1 %v34_v33 }
  0x2c   :  { %536 = vmatmul.mubr.f32.gmra.mrb[4].mxu0 %v19_v34  ;;  %560 = vmatmul.mubr.f32.gmra.mrb[4].mxu1 %v35_v35 }
  0x2d   :  { %538 = vmatprep.mubr.f32.mxu0 %v20_v36  ;;  %562 = vmatprep.mubr.f32.mxu1 %v36_v37 }
  0x30   :  { %539 = vmatmul.mubr.f32.gmra.mrb[6].mxu0 %v21_v38  ;;  %563 = vmatmul.mubr.f32.gmra.mrb[6].mxu1 %v37_v39 }
  0x31   :  { %541 = vmatprep.mubr.f32.mxu0 %v22_v40  ;;  %565 = vmatprep.mubr.f32.mxu1 %v38_v41 }
  0x34   :  { %542 = vmatmul.mubr.f32.gmra.mrb[8].mxu0 %v23_v42  ;;  %566 = vmatmul.mubr.f32.gmra.mrb[8].mxu1 %v39_v43 }
  0x35   :  { %544 = vmatprep.mubr.f32.mxu0 %v24_v44  ;;  %568 = vmatprep.mubr.f32.mxu1 %v40_v45 }
  0x38   :  { %545 = vmatmul.mubr.f32.gmra.mrb[10].mxu0 %v25_v46  ;;  %569 = vmatmul.mubr.f32.gmra.mrb[10].mxu1 %v41_v47 }
  0x39   :  { %547 = vmatprep.mubr.f32.mxu0 %v26_v48  ;;  %571 = vmatprep.mubr.f32.mxu1 %v42_v49 }
  0x3c   :  { %548 = vmatmul.mubr.f32.gmra.mrb[12].mxu0 %v27_v50  ;;  %572 = vmatmul.mubr.f32.gmra.mrb[12].mxu1 %v43_v51 }
  0x3d   :  { %550 = vmatprep.mubr.f32.mxu0 %v28_v52  ;;  %574 = vmatprep.mubr.f32.mxu1 %v44_v53 }
  0x40   :  { %551 = vmatmul.mubr.f32.gmra.mrb[14].mxu0 %v29_v54  ;;  %575 = vmatmul.mubr.f32.gmra.mrb[14].mxu1 %v45_v55 }
  0xf7   :  { %v531_v57 = vpop.f32.mrb[0].mxu0  ;;  %v802_v58 = vpop.f32.mrb[0].mxu1 }
  0xf8   :  { %288 = vst [vmem:[%s992_s2 + $0x8] sm:$0xff] %v531_v57  ;;  %v367_v59 = vmul.f32 %v531_v57, %v531_v57  ;;  %v128_v60 = vpop.f32.mrb[1].mxu0  ;;  %304 = vst [vmem:[%s992_s2 + $0x88] sm:$0xff] %v802_v58  ;;  %v811_v61 = vpop.f32.mrb[1].mxu1 }
  0xf9   :  { %287 = vst [vmem:[%s992_s2] sm:$0xff] %v128_v60  ;;  %v326_v62 = vadd.f32 %v531_v57, %v128_v60  ;;  %v366_v63 = vmul.f32 %v128_v60, %v128_v60  ;;  %303 = vst [vmem:[%s992_s2 + $0x80] sm:$0xff] %v811_v61 }
  0xfb   :  { %v398_v0 = vadd.f32 %v367_v59, %v366_v63  ;;  %v534_v1 = vpop.f32.mrb[2].mxu0  ;;  %v820_v2 = vpop.f32.mrb[2].mxu1 }
  0xfc   :  { %290 = vst [vmem:[%s992_s2 + $0x18] sm:$0xff] %v534_v1  ;;  %v138_v3 = vpop.f32.mrb[3].mxu0  ;;  %306 = vst [vmem:[%s992_s2 + $0x98] sm:$0xff] %v820_v2  ;;  %v829_v4 = vpop.f32.mrb[3].mxu1  ;;  %v369_v7 = vmul.f32 %v534_v1, %v534_v1 }
  0xfd   :  { %289 = vst [vmem:[%s992_s2 + $0x10] sm:$0xff] %v138_v3  ;;  %v327_v5 = vadd.f32 %v326_v62, %v138_v3  ;;  %v368_v6 = vmul.f32 %v138_v3, %v138_v3  ;;  %305 = vst [vmem:[%s992_s2 + $0x90] sm:$0xff] %v829_v4 }
  0xff   :  { %v399_v8 = vadd.f32 %v398_v0, %v368_v6  ;;  %v537_v9 = vpop.f32.mrb[4].mxu0  ;;  %v328_v10 = vadd.f32 %v534_v1, %v327_v5  ;;  %v838_v11 = vpop.f32.mrb[4].mxu1 }
 0x100   :  { %292 = vst [vmem:[%s992_s2 + $0x28] sm:$0xff] %v537_v9  ;;  %v148_v12 = vpop.f32.mrb[5].mxu0  ;;  %308 = vst [vmem:[%s992_s2 + $0xa8] sm:$0xff] %v838_v11  ;;  %v847_v13 = vpop.f32.mrb[5].mxu1  ;;  %v371_v17 = vmul.f32 %v537_v9, %v537_v9 }
 0x101   :  { %291 = vst [vmem:[%s992_s2 + $0x20] sm:$0xff] %v148_v12  ;;  %v329_v14 = vadd.f32 %v328_v10, %v148_v12  ;;  %v370_v15 = vmul.f32 %v148_v12, %v148_v12  ;;  %v400_v16 = vadd.f32 %v399_v8, %v369_v7  ;;  %307 = vst [vmem:[%s992_s2 + $0xa0] sm:$0xff] %v847_v13 }
 0x102   :  { %v382_v10 = vmul.f32 %v811_v61, %v811_v61 }
 0x103   :  { %v401_v18 = vadd.f32 %v400_v16, %v370_v15  ;;  %v540_v19 = vpop.f32.mrb[6].mxu0  ;;  %v330_v20 = vadd.f32 %v537_v9, %v329_v14  ;;  %v856_v21 = vpop.f32.mrb[6].mxu1  ;;  %v383_v15 = vmul.f32 %v802_v58, %v802_v58 }
 0x104   :  { %294 = vst [vmem:[%s992_s2 + $0x38] sm:$0xff] %v540_v19  ;;  %v158_v22 = vpop.f32.mrb[7].mxu0  ;;  %310 = vst [vmem:[%s992_s2 + $0xb8] sm:$0xff] %v856_v21  ;;  %v865_v23 = vpop.f32.mrb[7].mxu1  ;;  %v373_v27 = vmul.f32 %v540_v19, %v540_v19 }
 0x105   :  { %293 = vst [vmem:[%s992_s2 + $0x30] sm:$0xff] %v158_v22  ;;  %v331_v24 = vadd.f32 %v330_v20, %v158_v22  ;;  %v372_v25 = vmul.f32 %v158_v22, %v158_v22  ;;  %v402_v26 = vadd.f32 %v401_v18, %v371_v17  ;;  %309 = vst [vmem:[%s992_s2 + $0xb0] sm:$0xff] %v865_v23 }
 0x106   :  { %v384_v18 = vmul.f32 %v829_v4, %v829_v4  ;;  %v385_v22 = vmul.f32 %v820_v2, %v820_v2 }
 0x107   :  { %v403_v28 = vadd.f32 %v402_v26, %v372_v25  ;;  %v543_v29 = vpop.f32.mrb[8].mxu0  ;;  %v332_v30 = vadd.f32 %v540_v19, %v331_v24  ;;  %v874_v31 = vpop.f32.mrb[8].mxu1 }
 0x108   :  { %296 = vst [vmem:[%s992_s2 + $0x48] sm:$0xff] %v543_v29  ;;  %v168_v32 = vpop.f32.mrb[9].mxu0  ;;  %312 = vst [vmem:[%s992_s2 + $0xc8] sm:$0xff] %v874_v31  ;;  %v883_v33 = vpop.f32.mrb[9].mxu1  ;;  %v375_v37 = vmul.f32 %v543_v29, %v543_v29 }
 0x109   :  { %295 = vst [vmem:[%s992_s2 + $0x40] sm:$0xff] %v168_v32  ;;  %v333_v34 = vadd.f32 %v332_v30, %v168_v32  ;;  %v374_v35 = vmul.f32 %v168_v32, %v168_v32  ;;  %v404_v36 = vadd.f32 %v403_v28, %v373_v27  ;;  %311 = vst [vmem:[%s992_s2 + $0xc0] sm:$0xff] %v883_v33 }
 0x10b   :  { %v405_v38 = vadd.f32 %v404_v36, %v374_v35  ;;  %v546_v39 = vpop.f32.mrb[10].mxu0  ;;  %v334_v40 = vadd.f32 %v543_v29, %v333_v34  ;;  %v892_v41 = vpop.f32.mrb[10].mxu1 }
 0x10c   :  { %298 = vst [vmem:[%s992_s2 + $0x58] sm:$0xff] %v546_v39  ;;  %v178_v42 = vpop.f32.mrb[11].mxu0  ;;  %314 = vst [vmem:[%s992_s2 + $0xd8] sm:$0xff] %v892_v41  ;;  %v901_v43 = vpop.f32.mrb[11].mxu1  ;;  %v377_v47 = vmul.f32 %v546_v39, %v546_v39 }
 0x10d   :  { %297 = vst [vmem:[%s992_s2 + $0x50] sm:$0xff] %v178_v42  ;;  %v335_v44 = vadd.f32 %v334_v40, %v178_v42  ;;  %v376_v45 = vmul.f32 %v178_v42, %v178_v42  ;;  %v406_v46 = vadd.f32 %v405_v38, %v375_v37  ;;  %313 = vst [vmem:[%s992_s2 + $0xd0] sm:$0xff] %v901_v43 }
 0x10f   :  { %v407_v48 = vadd.f32 %v406_v46, %v376_v45  ;;  %v549_v49 = vpop.f32.mrb[12].mxu0  ;;  %v336_v50 = vadd.f32 %v546_v39, %v335_v44  ;;  %v910_v51 = vpop.f32.mrb[12].mxu1 }
 0x110   :  { %300 = vst [vmem:[%s992_s2 + $0x68] sm:$0xff] %v549_v49  ;;  %v188_v52 = vpop.f32.mrb[13].mxu0  ;;  %316 = vst [vmem:[%s992_s2 + $0xe8] sm:$0xff] %v910_v51  ;;  %v268_v53 = vpop.f32.mrb[13].mxu1  ;;  %v379_v57 = vmul.f32 %v549_v49, %v549_v49 }
 0x111   :  { %299 = vst [vmem:[%s992_s2 + $0x60] sm:$0xff] %v188_v52  ;;  %v337_v54 = vadd.f32 %v336_v50, %v188_v52  ;;  %v378_v55 = vmul.f32 %v188_v52, %v188_v52  ;;  %v408_v56 = vadd.f32 %v407_v48, %v377_v47  ;;  %315 = vst [vmem:[%s992_s2 + $0xe0] sm:$0xff] %v268_v53 }
 0x112   :  { %v395_v48 = vmul.f32 %v910_v51, %v910_v51 }
 0x113   :  { %v409_v59 = vadd.f32 %v408_v56, %v378_v55  ;;  %v552_v60 = vpop.f32.mrb[14].mxu0  ;;  %v338_v62 = vadd.f32 %v549_v49, %v337_v54  ;;  %v576_v63 = vpop.f32.mrb[14].mxu1 }
 0x114   :  { %302 = vst [vmem:[%s992_s2 + $0x78] sm:$0xff] %v552_v60  ;;  %v198_v0 = vpop.f32.mrb[15].mxu0  ;;  %318 = vst [vmem:[%s992_s2 + $0xf8] sm:$0xff] %v576_v63  ;;  %v278_v1 = vpop.f32.mrb[15].mxu1  ;;  %v381_v7 = vmul.f32 %v552_v60, %v552_v60 }
 0x115   :  { %301 = vst [vmem:[%s992_s2 + $0x70] sm:$0xff] %v198_v0  ;;  %v339_v3 = vadd.f32 %v338_v62, %v198_v0  ;;  %v380_v5 = vmul.f32 %v198_v0, %v198_v0  ;;  %v410_v6 = vadd.f32 %v409_v59, %v379_v57  ;;  %317 = vst [vmem:[%s992_s2 + $0xf0] sm:$0xff] %v278_v1 }
 0x116   :  { %v396_v50 = vmul.f32 %v278_v1, %v278_v1 }
 0x117   :  { %v340_v8 = vadd.f32 %v552_v60, %v339_v3  ;;  %v411_v9 = vadd.f32 %v410_v6, %v380_v5 }
 0x119   :  { %v412_v12 = vadd.f32 %v411_v9, %v381_v7  ;;  %v341_v14 = vadd.f32 %v340_v8, %v811_v61  ;;  %v386_v61 = vmul.f32 %v847_v13, %v847_v13 }
 0x11b   :  { %v413_v16 = vadd.f32 %v412_v12, %v382_v10  ;;  %v342_v17 = vadd.f32 %v802_v58, %v341_v14  ;;  %v387_v58 = vmul.f32 %v838_v11, %v838_v11 }
 0x11d   :  { %v343_v19 = vadd.f32 %v342_v17, %v829_v4  ;;  %v414_v20 = vadd.f32 %v413_v16, %v383_v15  ;;  %v388_v4 = vmul.f32 %v865_v23, %v865_v23 }
 0x11f   :  { %v415_v24 = vadd.f32 %v414_v20, %v384_v18  ;;  %v344_v25 = vadd.f32 %v820_v2, %v343_v19  ;;  %v389_v2 = vmul.f32 %v856_v21, %v856_v21 }
 0x121   :  { %v345_v26 = vadd.f32 %v344_v25, %v847_v13  ;;  %v416_v27 = vadd.f32 %v415_v24, %v385_v22  ;;  %v390_v13 = vmul.f32 %v883_v33, %v883_v33 }
 0x123   :  { %v417_v28 = vadd.f32 %v416_v27, %v386_v61  ;;  %v346_v29 = vadd.f32 %v838_v11, %v345_v26  ;;  %v391_v11 = vmul.f32 %v874_v31, %v874_v31 }
 0x125   :  { %v347_v30 = vadd.f32 %v346_v29, %v865_v23  ;;  %v418_v32 = vadd.f32 %v417_v28, %v387_v58  ;;  %v392_v23 = vmul.f32 %v901_v43, %v901_v43 }
 0x127   :  { %v419_v34 = vadd.f32 %v418_v32, %v388_v4  ;;  %v348_v35 = vadd.f32 %v856_v21, %v347_v30  ;;  %v393_v21 = vmul.f32 %v892_v41, %v892_v41 }
 0x129   :  { %v349_v36 = vadd.f32 %v348_v35, %v883_v33  ;;  %v420_v37 = vadd.f32 %v419_v34, %v389_v2  ;;  %v394_v33 = vmul.f32 %v268_v53, %v268_v53 }
 0x12b   :  { %v421_v38 = vadd.f32 %v420_v37, %v390_v13  ;;  %v350_v39 = vadd.f32 %v874_v31, %v349_v36 }
 0x12d   :  { %v351_v40 = vadd.f32 %v350_v39, %v901_v43  ;;  %v422_v42 = vadd.f32 %v421_v38, %v391_v11  ;;  %v397_v43 = vmul.f32 %v576_v63, %v576_v63 }
 0x12f   :  { %v423_v44 = vadd.f32 %v422_v42, %v392_v23  ;;  %v352_v45 = vadd.f32 %v892_v41, %v351_v40 }
 0x131   :  { %v353_v46 = vadd.f32 %v352_v45, %v268_v53  ;;  %v424_v47 = vadd.f32 %v423_v44, %v393_v21 }
 0x133   :  { %v425_v49 = vadd.f32 %v424_v47, %v394_v33  ;;  %v354_v31 = vadd.f32 %v910_v51, %v353_v46  ;;  %v325_v51 = vld [vmem:[%s990_s3] sm:$0x1] }
 0x135   :  { %v355_v52 = vadd.f32 %v354_v31, %v278_v1  ;;  %v426_v54 = vadd.f32 %v425_v49, %v395_v48 }
 0x137   :  { %v356_v55 = vadd.f32 %v576_v63, %v355_v52  ;;  %v427_v56 = vadd.f32 %v426_v54, %v396_v50  ;;  %v365_v63 = vld [vmem:[%s991_s4] sm:$0x1] }
 0x139   :  { %v357_v57 = vrot.slane %v356_v55, 4  ;;  %v428_v59 = vadd.f32 %v427_v56, %v397_v43 }
 0x13b   :  { %v358_v60 = vadd.f32 %v357_v57, %v356_v55  ;;  %v429_v62 = vrot.slane %v428_v59, 4 }
 0x13d   :  { %v359_v41 = vrot.slane %v358_v60, 2  ;;  %v430_v0 = vadd.f32 %v429_v62, %v428_v59 }
 0x13f   :  { %v360_v53 = vadd.f32 %v359_v41, %v358_v60  ;;  %v431_v3 = vrot.slane %v430_v0, 2 }
 0x141   :  { %v361_v5 = vrot.slane %v360_v53, 1  ;;  %v432_v6 = vadd.f32 %v431_v3, %v430_v0 }
 0x143   :  { %v362_v7 = vadd.f32 %v361_v5, %v360_v53  ;;  %v433_v1 = vrot.slane %v432_v6, 1 }
 0x145   :  { %v363_v8 = vadd.f32 %v362_v7, %v325_v51  ;;  %v434_v9 = vadd.f32 %v433_v1, %v432_v6 }
 0x147   :  { %364 = vst [vmem:[%s990_s3] sm:$0x1] %v363_v8  ;;  %v435_v10 = vadd.f32 %v434_v9, %v365_v63 }
 0x149   :  { %436 = vst [vmem:[%s991_s4] sm:$0x1] %v435_v10 }

// kernel: resblock_forward.13
= control target key start
LH: loop header
LB: loop body
LE: loop exit
PB: predicated region body
PF: predicated region fallthrough
CT: control target
= control target key end

     0   :  { %s1318_s15 = smov 0   ;;  %s1928_s0 = inlined_call_operand.vmem [shape: f32[1024,128], index: 0, kind: input, shape index: {}]   ;;  %s1929_s1 = inlined_call_operand.vmem [shape: f32[128,128], index: 1, kind: input, shape index: {}]   ;;  %s1930_s2 = inlined_call_operand.vmem [shape: f32[1024,128], index: 2, kind: output, shape index: {0}]   ;;  %s1931_s3 = inlined_call_operand.vmem [shape: f32[1,128], index: 3, kind: output, shape index: {1}]   ;;  %s1932_s4 = inlined_call_operand.vmem [shape: f32[1,128], index: 4, kind: output, shape index: {2}]  }
   0x1 LB: > { %s1007_s16 = sadd.s32 4294967295, %s1290_s15   ;;  %p1011_p0 = scmp.ge.s32.totalorder %s1290_s15, 1  ;;  %s1290_s15 = sphi %s1318_s15, %s15_s15  }
   0x2   : > { %p158_p1 = scmp.lt.s32.totalorder %s1290_s15, 3 }
   0x4   : > { %p159_p2 = pnand %p1011_p0, %p158_p1 }
   0x6   : > { %162 = sbr.rel (%p159_p2) target bundleno = 476 (0x1dc), region = 28 }
   0xd   : > { %v260_v0 = vld [vmem:[%s1929_s1] sm:$0xff]  ;;  %v261_v1 = vld [vmem:[%s1929_s1 + $0x8] sm:$0xff]  ;;  %v262_v2 = vld [vmem:[%s1929_s1 + $0x10] sm:$0xff]  ;;  %s1012_s23 = sshll.u32 %s1007_s16, 6  ;;  %p1016_p4 = scmp.ne.s32.totalorder %s1007_s16, 0 }
   0xe   : > { %v1227_v3 = vpack.c.bf16 %v261_v1, %v260_v0  ;;  %v263_v4 = vld [vmem:[%s1929_s1 + $0x18] sm:$0xff]  ;;  %p185_p3 = scmp.lt.s32.totalorder %s1012_s23, 127  ;;  %v264_v6 = vld [vmem:[%s1929_s1 + $0x20] sm:$0xff]  ;;  %v265_v7 = vld [vmem:[%s1929_s1 + $0x28] sm:$0xff] }
   0xf   : > { %v1231_v5 = vpack.c.bf16 %v263_v4, %v262_v2  ;;  %v1235_v8 = vpack.c.bf16 %v265_v7, %v264_v6  ;;  %v266_v9 = vld [vmem:[%s1929_s1 + $0x30] sm:$0xff]  ;;  %v267_v10 = vld [vmem:[%s1929_s1 + $0x38] sm:$0xff]  ;;  %v268_v14 = vld [vmem:[%s1929_s1 + $0x40] sm:$0xff] }
  0x10   : > { %1228 = vmatprep.subr.bf16.mxu0 %v1227_v3  ;;  %1259 = vmatprep.subr.bf16.mxu1 %v1227_v3  ;;  %s1982_s23 = smov (!%p185_p3, %s1012_s23), 127  ;;  %v1239_v13 = vpack.c.bf16 %v267_v10, %v266_v9  ;;  %v269_v15 = vld [vmem:[%s1929_s1 + $0x48] sm:$0xff]  ;;  %v270_v17 = vld [vmem:[%s1929_s1 + $0x50] sm:$0xff]  ;;  %v271_v18 = vld [vmem:[%s1929_s1 + $0x58] sm:$0xff] }
  0x11   : > { %1230 = vmatpush3.bf16.msra.mxu0 %v1227_v3  ;;  %1267 = vmatpush3.bf16.msra.mxu1 %v1227_v3  ;;  %s1013_s30 = sshll.u32 %s1982_s23, 3  ;;  %v1243_v16 = vpack.c.bf16 %v269_v15, %v268_v14  ;;  %v1247_v19 = vpack.c.bf16 %v271_v18, %v270_v17  ;;  %v272_v20 = vld [vmem:[%s1929_s1 + $0x60] sm:$0xff]  ;;  %v273_v21 = vld [vmem:[%s1929_s1 + $0x68] sm:$0xff]  ;;  %v274_v23 = vld [vmem:[%s1929_s1 + $0x70] sm:$0xff] }
  0x12   : > { %1232 = vmatprep.subr.bf16.mxu0 %v1231_v5  ;;  %1260 = vmatprep.subr.bf16.mxu1 %v1231_v5  ;;  %s1360_s11 = scalar_lea.vmem %s1928_s0, %s1013_s30  ;;  %v1251_v22 = vpack.c.bf16 %v273_v21, %v272_v20  ;;  %v275_v24 = vld [vmem:[%s1929_s1 + $0x78] sm:$0xff]  ;;  %s1455_s8 = scalar_lea.vmem %s1930_s2, %s1013_s30 }
  0x13   : > { %v196_v11 = vld [vmem:[%s1360_s11] sm:$0xff]  ;;  %v1255_v25 = vpack.c.bf16 %v275_v24, %v274_v23  ;;  %v197_v26 = vld [vmem:[%s1360_s11 + $0x8] sm:$0xff]  ;;  %v198_v28 = vld [vmem:[%s1360_s11 + $0x10] sm:$0xff] }
  0x14   : > { %v228_v12 = vld [vmem:[%s1360_s11 + $0x100] sm:$0xff]  ;;  %1131 = vmatprep.mubr.f32.mxu0 %v196_v11  ;;  %v229_v27 = vld [vmem:[%s1360_s11 + $0x108] sm:$0xff]  ;;  %v230_v29 = vld [vmem:[%s1360_s11 + $0x110] sm:$0xff] }
  0x15   : > { %1234 = vmatpush3.bf16.msra.mxu0 %v1231_v5  ;;  %1268 = vmatpush3.bf16.msra.mxu1 %v1231_v5  ;;  %v199_v30 = vld [vmem:[%s1360_s11 + $0x18] sm:$0xff]  ;;  %v200_v32 = vld [vmem:[%s1360_s11 + $0x20] sm:$0xff]  ;;  %v201_v34 = vld [vmem:[%s1360_s11 + $0x28] sm:$0xff] }
  0x16   : > { %1236 = vmatprep.subr.bf16.mxu0 %v1235_v8  ;;  %1261 = vmatprep.subr.bf16.mxu1 %v1235_v8  ;;  %v231_v31 = vld [vmem:[%s1360_s11 + $0x118] sm:$0xff]  ;;  %v232_v33 = vld [vmem:[%s1360_s11 + $0x120] sm:$0xff]  ;;  %v233_v35 = vld [vmem:[%s1360_s11 + $0x128] sm:$0xff] }
  0x17   : > { %1179 = vmatprep.mubr.f32.mxu1 %v228_v12  ;;  %v202_v36 = vld [vmem:[%s1360_s11 + $0x30] sm:$0xff]  ;;  %v203_v38 = vld [vmem:[%s1360_s11 + $0x38] sm:$0xff]  ;;  %v204_v40 = vld [vmem:[%s1360_s11 + $0x40] sm:$0xff] }
  0x18   : > { %v234_v37 = vld [vmem:[%s1360_s11 + $0x130] sm:$0xff]  ;;  %v235_v39 = vld [vmem:[%s1360_s11 + $0x138] sm:$0xff]  ;;  %v236_v41 = vld [vmem:[%s1360_s11 + $0x140] sm:$0xff] }
  0x19   : > { %1238 = vmatpush3.bf16.msra.mxu0 %v1235_v8  ;;  %1269 = vmatpush3.bf16.msra.mxu1 %v1235_v8  ;;  %v205_v42 = vld [vmem:[%s1360_s11 + $0x48] sm:$0xff]  ;;  %v206_v44 = vld [vmem:[%s1360_s11 + $0x50] sm:$0xff]  ;;  %v207_v46 = vld [vmem:[%s1360_s11 + $0x58] sm:$0xff] }
  0x1a   : > { %1240 = vmatprep.subr.bf16.mxu0 %v1239_v13  ;;  %1262 = vmatprep.subr.bf16.mxu1 %v1239_v13  ;;  %v237_v43 = vld [vmem:[%s1360_s11 + $0x148] sm:$0xff]  ;;  %v238_v45 = vld [vmem:[%s1360_s11 + $0x150] sm:$0xff]  ;;  %v239_v47 = vld [vmem:[%s1360_s11 + $0x158] sm:$0xff] }
  0x1b   : > { %v208_v48 = vld [vmem:[%s1360_s11 + $0x60] sm:$0xff]  ;;  %v209_v50 = vld [vmem:[%s1360_s11 + $0x68] sm:$0xff]  ;;  %v210_v52 = vld [vmem:[%s1360_s11 + $0x70] sm:$0xff] }
  0x1c   : > { %v240_v49 = vld [vmem:[%s1360_s11 + $0x160] sm:$0xff]  ;;  %v241_v51 = vld [vmem:[%s1360_s11 + $0x168] sm:$0xff]  ;;  %v242_v53 = vld [vmem:[%s1360_s11 + $0x170] sm:$0xff] }
  0x1d   : > { %1242 = vmatpush3.bf16.msra.mxu0 %v1239_v13  ;;  %1270 = vmatpush3.bf16.msra.mxu1 %v1239_v13  ;;  %v211_v54 = vld [vmem:[%s1360_s11 + $0x78] sm:$0xff]  ;;  %v212_v56 = vld [vmem:[%s1360_s11 + $0x80] sm:$0xff]  ;;  %v213_v58 = vld [vmem:[%s1360_s11 + $0x88] sm:$0xff] }
  0x1e   : > { %1244 = vmatprep.subr.bf16.mxu0 %v1243_v16  ;;  %1263 = vmatprep.subr.bf16.mxu1 %v1243_v16  ;;  %v243_v55 = vld [vmem:[%s1360_s11 + $0x178] sm:$0xff]  ;;  %v244_v57 = vld [vmem:[%s1360_s11 + $0x180] sm:$0xff]  ;;  %v245_v59 = vld [vmem:[%s1360_s11 + $0x188] sm:$0xff] }
  0x1f   : > { %v214_v60 = vld [vmem:[%s1360_s11 + $0x90] sm:$0xff]  ;;  %v215_v62 = vld [vmem:[%s1360_s11 + $0x98] sm:$0xff]  ;;  %v216_v0 = vld [vmem:[%s1360_s11 + $0xa0] sm:$0xff] }
  0x20   : > { %v246_v61 = vld [vmem:[%s1360_s11 + $0x190] sm:$0xff]  ;;  %v247_v63 = vld [vmem:[%s1360_s11 + $0x198] sm:$0xff]  ;;  %v248_v1 = vld [vmem:[%s1360_s11 + $0x1a0] sm:$0xff] }
  0x21   : > { %1246 = vmatpush3.bf16.msra.mxu0 %v1243_v16  ;;  %1271 = vmatpush3.bf16.msra.mxu1 %v1243_v16  ;;  %v217_v2 = vld [vmem:[%s1360_s11 + $0xa8] sm:$0xff]  ;;  %v218_v4 = vld [vmem:[%s1360_s11 + $0xb0] sm:$0xff]  ;;  %v219_v6 = vld [vmem:[%s1360_s11 + $0xb8] sm:$0xff] }
  0x22   : > { %1248 = vmatprep.subr.bf16.mxu0 %v1247_v19  ;;  %1264 = vmatprep.subr.bf16.mxu1 %v1247_v19  ;;  %v249_v3 = vld [vmem:[%s1360_s11 + $0x1a8] sm:$0xff]  ;;  %v250_v5 = vld [vmem:[%s1360_s11 + $0x1b0] sm:$0xff]  ;;  %v251_v7 = vld [vmem:[%s1360_s11 + $0x1b8] sm:$0xff] }
  0x23   : > { %v220_v8 = vld [vmem:[%s1360_s11 + $0xc0] sm:$0xff]  ;;  %v221_v10 = vld [vmem:[%s1360_s11 + $0xc8] sm:$0xff]  ;;  %v222_v12 = vld [vmem:[%s1360_s11 + $0xd0] sm:$0xff] }
  0x24   : > { %v252_v9 = vld [vmem:[%s1360_s11 + $0x1c0] sm:$0xff]  ;;  %v253_v11 = vld [vmem:[%s1360_s11 + $0x1c8] sm:$0xff]  ;;  %v254_v13 = vld [vmem:[%s1360_s11 + $0x1d0] sm:$0xff] }
  0x25   : > { %1250 = vmatpush3.bf16.msra.mxu0 %v1247_v19  ;;  %1272 = vmatpush3.bf16.msra.mxu1 %v1247_v19  ;;  %v223_v14 = vld [vmem:[%s1360_s11 + $0xd8] sm:$0xff]  ;;  %v224_v16 = vld [vmem:[%s1360_s11 + $0xe0] sm:$0xff]  ;;  %v225_v18 = vld [vmem:[%s1360_s11 + $0xe8] sm:$0xff] }
  0x26   : > { %1252 = vmatprep.subr.bf16.mxu0 %v1251_v22  ;;  %1265 = vmatprep.subr.bf16.mxu1 %v1251_v22  ;;  %v255_v15 = vld [vmem:[%s1360_s11 + $0x1d8] sm:$0xff]  ;;  %v256_v17 = vld [vmem:[%s1360_s11 + $0x1e0] sm:$0xff]  ;;  %v257_v19 = vld [vmem:[%s1360_s11 + $0x1e8] sm:$0xff] }
  0x27   : > { %v226_v20 = vld [vmem:[%s1360_s11 + $0xf0] sm:$0xff]  ;;  %v259_v23 = vld [vmem:[%s1360_s11 + $0x1f8] sm:$0xff] }
  0x28   : > { %v258_v21 = vld [vmem:[%s1360_s11 + $0x1f0] sm:$0xff] }
  0x29   : > { %1254 = vmatpush3.bf16.msra.mxu0 %v1251_v22  ;;  %1273 = vmatpush3.bf16.msra.mxu1 %v1251_v22  ;;  %v227_v22 = vld [vmem:[%s1360_s11 + $0xf8] sm:$0xff] }
  0x2a   : > { %1256 = vmatprep.subr.bf16.mxu0 %v1255_v25  ;;  %1266 = vmatprep.subr.bf16.mxu1 %v1255_v25 }
  0x2d   : > { %1258 = vmatpush3.bf16.msra.mxu0 %v1255_v25  ;;  %1274 = vmatpush3.bf16.msra.mxu1 %v1255_v25 }
  0x30   : > { %1132 = vmatmul.mubr.f32.vlgmr.msra.gmra.mrb[0].mxu0 %v197_v26  ;;  %1180 = vmatmul.mubr.f32.vlgmr.msra.gmra.mrb[0].mxu1 %v229_v27 }
  0x31   : > { %1134 = vmatprep.mubr.f32.mxu0 %v198_v28  ;;  %1182 = vmatprep.mubr.f32.mxu1 %v230_v29 }
  0x34   : > { %1135 = vmatmul.mubr.f32.gmra.mrb[2].mxu0 %v199_v30  ;;  %1183 = vmatmul.mubr.f32.gmra.mrb[2].mxu1 %v231_v31 }
  0x35   : > { %1137 = vmatprep.mubr.f32.mxu0 %v200_v32  ;;  %1185 = vmatprep.mubr.f32.mxu1 %v232_v33 }
  0x38   : > { %1138 = vmatmul.mubr.f32.gmra.mrb[4].mxu0 %v201_v34  ;;  %1186 = vmatmul.mubr.f32.gmra.mrb[4].mxu1 %v233_v35 }
  0x39   : > { %1140 = vmatprep.mubr.f32.mxu0 %v202_v36  ;;  %1188 = vmatprep.mubr.f32.mxu1 %v234_v37 }
  0x3c   : > { %1141 = vmatmul.mubr.f32.gmra.mrb[6].mxu0 %v203_v38  ;;  %1189 = vmatmul.mubr.f32.gmra.mrb[6].mxu1 %v235_v39 }
  0x3d   : > { %1143 = vmatprep.mubr.f32.mxu0 %v204_v40  ;;  %1191 = vmatprep.mubr.f32.mxu1 %v236_v41 }
  0x40   : > { %1144 = vmatmul.mubr.f32.gmra.mrb[8].mxu0 %v205_v42  ;;  %1192 = vmatmul.mubr.f32.gmra.mrb[8].mxu1 %v237_v43 }
  0x41   : > { %1146 = vmatprep.mubr.f32.mxu0 %v206_v44  ;;  %1194 = vmatprep.mubr.f32.mxu1 %v238_v45 }
  0x44   : > { %1147 = vmatmul.mubr.f32.gmra.mrb[10].mxu0 %v207_v46  ;;  %1195 = vmatmul.mubr.f32.gmra.mrb[10].mxu1 %v239_v47 }
  0x45   : > { %1149 = vmatprep.mubr.f32.mxu0 %v208_v48  ;;  %1197 = vmatprep.mubr.f32.mxu1 %v240_v49 }
  0x48   : > { %1150 = vmatmul.mubr.f32.gmra.mrb[12].mxu0 %v209_v50  ;;  %1198 = vmatmul.mubr.f32.gmra.mrb[12].mxu1 %v241_v51 }
  0x49   : > { %1152 = vmatprep.mubr.f32.mxu0 %v210_v52  ;;  %1200 = vmatprep.mubr.f32.mxu1 %v242_v53 }
  0x4c   : > { %1153 = vmatmul.mubr.f32.gmra.mrb[14].mxu0 %v211_v54  ;;  %1201 = vmatmul.mubr.f32.gmra.mrb[14].mxu1 %v243_v55 }
  0x4d   : > { %1155 = vmatprep.mubr.f32.mxu0 %v212_v56  ;;  %1203 = vmatprep.mubr.f32.mxu1 %v244_v57 }
  0x50   : > { %1156 = vmatmul.mubr.f32.gmra.mrb[16].mxu0 %v213_v58  ;;  %1204 = vmatmul.mubr.f32.gmra.mrb[16].mxu1 %v245_v59 }
  0x51   : > { %1158 = vmatprep.mubr.f32.mxu0 %v214_v60  ;;  %1206 = vmatprep.mubr.f32.mxu1 %v246_v61 }
  0x54   : > { %1159 = vmatmul.mubr.f32.gmra.mrb[18].mxu0 %v215_v62  ;;  %1207 = vmatmul.mubr.f32.gmra.mrb[18].mxu1 %v247_v63 }
  0x55   : > { %1161 = vmatprep.mubr.f32.mxu0 %v216_v0  ;;  %1209 = vmatprep.mubr.f32.mxu1 %v248_v1 }
  0x58   : > { %1162 = vmatmul.mubr.f32.gmra.mrb[20].mxu0 %v217_v2  ;;  %1210 = vmatmul.mubr.f32.gmra.mrb[20].mxu1 %v249_v3 }
  0x59   : > { %1164 = vmatprep.mubr.f32.mxu0 %v218_v4  ;;  %1212 = vmatprep.mubr.f32.mxu1 %v250_v5 }
  0x5c   : > { %1165 = vmatmul.mubr.f32.gmra.mrb[22].mxu0 %v219_v6  ;;  %1213 = vmatmul.mubr.f32.gmra.mrb[22].mxu1 %v251_v7 }
  0x5d   : > { %1167 = vmatprep.mubr.f32.mxu0 %v220_v8  ;;  %1215 = vmatprep.mubr.f32.mxu1 %v252_v9 }
  0x60   : > { %1168 = vmatmul.mubr.f32.gmra.mrb[24].mxu0 %v221_v10  ;;  %1216 = vmatmul.mubr.f32.gmra.mrb[24].mxu1 %v253_v11 }
  0x61   : > { %1170 = vmatprep.mubr.f32.mxu0 %v222_v12  ;;  %1218 = vmatprep.mubr.f32.mxu1 %v254_v13 }
  0x64   : > { %1171 = vmatmul.mubr.f32.gmra.mrb[26].mxu0 %v223_v14  ;;  %1219 = vmatmul.mubr.f32.gmra.mrb[26].mxu1 %v255_v15 }
  0x65   : > { %1173 = vmatprep.mubr.f32.mxu0 %v224_v16  ;;  %1221 = vmatprep.mubr.f32.mxu1 %v256_v17 }
  0x68   : > { %1174 = vmatmul.mubr.f32.gmra.mrb[28].mxu0 %v225_v18  ;;  %1222 = vmatmul.mubr.f32.gmra.mrb[28].mxu1 %v257_v19 }
  0x69   : > { %1176 = vmatprep.mubr.f32.mxu0 %v226_v20  ;;  %1224 = vmatprep.mubr.f32.mxu1 %v258_v21 }
  0x6c   : > { %1177 = vmatmul.mubr.f32.gmra.mrb[30].mxu0 %v227_v22  ;;  %1225 = vmatmul.mubr.f32.gmra.mrb[30].mxu1 %v259_v23 }
 0x103   : > { %v1457_v24 = vpop.f32.mrb[0].mxu0  ;;  %v1459_v25 = vpop.f32.mrb[0].mxu1 }
 0x104   : > { %662 = vst [vmem:[%s1455_s8 + $0x8] sm:$0xff] %v1457_v24  ;;  %694 = vst [vmem:[%s1455_s8 + $0x108] sm:$0xff] %v1459_v25  ;;  %v1465_v26 = vpop.f32.mrb[1].mxu0  ;;  %v1467_v27 = vpop.f32.mrb[1].mxu1 }
 0x105   : > { %661 = vst [vmem:[%s1455_s8] sm:$0xff] %v1465_v26  ;;  %693 = vst [vmem:[%s1455_s8 + $0x100] sm:$0xff] %v1467_v27 }
 0x107   : > { %v1473_v28 = vpop.f32.mrb[2].mxu0  ;;  %v1475_v29 = vpop.f32.mrb[2].mxu1 }
 0x108   : > { %664 = vst [vmem:[%s1455_s8 + $0x18] sm:$0xff] %v1473_v28  ;;  %696 = vst [vmem:[%s1455_s8 + $0x118] sm:$0xff] %v1475_v29  ;;  %v1481_v30 = vpop.f32.mrb[3].mxu0  ;;  %v1483_v31 = vpop.f32.mrb[3].mxu1 }
 0x109   : > { %663 = vst [vmem:[%s1455_s8 + $0x10] sm:$0xff] %v1481_v30  ;;  %695 = vst [vmem:[%s1455_s8 + $0x110] sm:$0xff] %v1483_v31 }
 0x10b   : > { %v1489_v32 = vpop.f32.mrb[4].mxu0  ;;  %v1491_v33 = vpop.f32.mrb[4].mxu1 }
 0x10c   : > { %666 = vst [vmem:[%s1455_s8 + $0x28] sm:$0xff] %v1489_v32  ;;  %698 = vst [vmem:[%s1455_s8 + $0x128] sm:$0xff] %v1491_v33  ;;  %v1497_v34 = vpop.f32.mrb[5].mxu0  ;;  %v1499_v35 = vpop.f32.mrb[5].mxu1 }
 0x10d   : > { %665 = vst [vmem:[%s1455_s8 + $0x20] sm:$0xff] %v1497_v34  ;;  %697 = vst [vmem:[%s1455_s8 + $0x120] sm:$0xff] %v1499_v35 }
 0x10f   : > { %v1505_v36 = vpop.f32.mrb[6].mxu0  ;;  %v1507_v37 = vpop.f32.mrb[6].mxu1 }
 0x110   : > { %668 = vst [vmem:[%s1455_s8 + $0x38] sm:$0xff] %v1505_v36  ;;  %700 = vst [vmem:[%s1455_s8 + $0x138] sm:$0xff] %v1507_v37  ;;  %v1513_v38 = vpop.f32.mrb[7].mxu0  ;;  %v1515_v39 = vpop.f32.mrb[7].mxu1 }
 0x111   : > { %667 = vst [vmem:[%s1455_s8 + $0x30] sm:$0xff] %v1513_v38  ;;  %699 = vst [vmem:[%s1455_s8 + $0x130] sm:$0xff] %v1515_v39 }
 0x113   : > { %v1521_v40 = vpop.f32.mrb[8].mxu0  ;;  %v1523_v41 = vpop.f32.mrb[8].mxu1 }
 0x114   : > { %670 = vst [vmem:[%s1455_s8 + $0x48] sm:$0xff] %v1521_v40  ;;  %702 = vst [vmem:[%s1455_s8 + $0x148] sm:$0xff] %v1523_v41  ;;  %v1529_v42 = vpop.f32.mrb[9].mxu0  ;;  %v1531_v43 = vpop.f32.mrb[9].mxu1 }
 0x115   : > { %669 = vst [vmem:[%s1455_s8 + $0x40] sm:$0xff] %v1529_v42  ;;  %701 = vst [vmem:[%s1455_s8 + $0x140] sm:$0xff] %v1531_v43 }
 0x117   : > { %v1537_v44 = vpop.f32.mrb[10].mxu0  ;;  %v1539_v45 = vpop.f32.mrb[10].mxu1 }
 0x118   : > { %672 = vst [vmem:[%s1455_s8 + $0x58] sm:$0xff] %v1537_v44  ;;  %704 = vst [vmem:[%s1455_s8 + $0x158] sm:$0xff] %v1539_v45  ;;  %v1545_v46 = vpop.f32.mrb[11].mxu0  ;;  %v1547_v47 = vpop.f32.mrb[11].mxu1 }
 0x119   : > { %671 = vst [vmem:[%s1455_s8 + $0x50] sm:$0xff] %v1545_v46  ;;  %703 = vst [vmem:[%s1455_s8 + $0x150] sm:$0xff] %v1547_v47 }
 0x11b   : > { %v1553_v48 = vpop.f32.mrb[12].mxu0  ;;  %v1555_v49 = vpop.f32.mrb[12].mxu1 }
 0x11c   : > { %674 = vst [vmem:[%s1455_s8 + $0x68] sm:$0xff] %v1553_v48  ;;  %706 = vst [vmem:[%s1455_s8 + $0x168] sm:$0xff] %v1555_v49  ;;  %v1561_v50 = vpop.f32.mrb[13].mxu0  ;;  %v1563_v51 = vpop.f32.mrb[13].mxu1 }
 0x11d   : > { %673 = vst [vmem:[%s1455_s8 + $0x60] sm:$0xff] %v1561_v50  ;;  %705 = vst [vmem:[%s1455_s8 + $0x160] sm:$0xff] %v1563_v51 }
 0x11f   : > { %v1569_v52 = vpop.f32.mrb[14].mxu0  ;;  %v1571_v53 = vpop.f32.mrb[14].mxu1 }
 0x120   : > { %676 = vst [vmem:[%s1455_s8 + $0x78] sm:$0xff] %v1569_v52  ;;  %708 = vst [vmem:[%s1455_s8 + $0x178] sm:$0xff] %v1571_v53  ;;  %v1577_v54 = vpop.f32.mrb[15].mxu0  ;;  %v1579_v55 = vpop.f32.mrb[15].mxu1 }
 0x121   : > { %675 = vst [vmem:[%s1455_s8 + $0x70] sm:$0xff] %v1577_v54  ;;  %707 = vst [vmem:[%s1455_s8 + $0x170] sm:$0xff] %v1579_v55 }
 0x123   : > { %v1585_v56 = vpop.f32.mrb[16].mxu0  ;;  %v1587_v57 = vpop.f32.mrb[16].mxu1 }
 0x124   : > { %678 = vst [vmem:[%s1455_s8 + $0x88] sm:$0xff] %v1585_v56  ;;  %710 = vst [vmem:[%s1455_s8 + $0x188] sm:$0xff] %v1587_v57  ;;  %v1593_v58 = vpop.f32.mrb[17].mxu0  ;;  %v1595_v59 = vpop.f32.mrb[17].mxu1 }
 0x125   : > { %677 = vst [vmem:[%s1455_s8 + $0x80] sm:$0xff] %v1593_v58  ;;  %709 = vst [vmem:[%s1455_s8 + $0x180] sm:$0xff] %v1595_v59 }
 0x127   : > { %v1601_v60 = vpop.f32.mrb[18].mxu0  ;;  %v1603_v61 = vpop.f32.mrb[18].mxu1 }
 0x128   : > { %680 = vst [vmem:[%s1455_s8 + $0x98] sm:$0xff] %v1601_v60  ;;  %712 = vst [vmem:[%s1455_s8 + $0x198] sm:$0xff] %v1603_v61  ;;  %v1609_v62 = vpop.f32.mrb[19].mxu0  ;;  %v1611_v63 = vpop.f32.mrb[19].mxu1 }
 0x129   : > { %679 = vst [vmem:[%s1455_s8 + $0x90] sm:$0xff] %v1609_v62  ;;  %711 = vst [vmem:[%s1455_s8 + $0x190] sm:$0xff] %v1611_v63 }
 0x12b   : > { %v1617_v0 = vpop.f32.mrb[20].mxu0  ;;  %v1619_v1 = vpop.f32.mrb[20].mxu1 }
 0x12c   : > { %1957 = vst [vmem:[#allocation2_spill] sm:$0xff] %v1619_v1  ;;  %682 = vst [vmem:[%s1455_s8 + $0xa8] sm:$0xff] %v1617_v0  ;;  %v1625_v2 = vpop.f32.mrb[21].mxu0  ;;  %v1627_v3 = vpop.f32.mrb[21].mxu1 }
 0x12d   : > { %714 = vst [vmem:[%s1455_s8 + $0x1a8] sm:$0xff] %v1619_v1  ;;  %1958 = vst [vmem:[#allocation3_spill] sm:$0xff] %v1627_v3 }
 0x12e   : > { %681 = vst [vmem:[%s1455_s8 + $0xa0] sm:$0xff] %v1625_v2  ;;  %713 = vst [vmem:[%s1455_s8 + $0x1a0] sm:$0xff] %v1627_v3 }
 0x12f   : > { %v1633_v4 = vpop.f32.mrb[22].mxu0  ;;  %v1635_v5 = vpop.f32.mrb[22].mxu1 }
 0x130   : > { %1959 = vst [vmem:[#allocation4_spill] sm:$0xff] %v1635_v5  ;;  %684 = vst [vmem:[%s1455_s8 + $0xb8] sm:$0xff] %v1633_v4  ;;  %v1641_v6 = vpop.f32.mrb[23].mxu0  ;;  %v1643_v7 = vpop.f32.mrb[23].mxu1 }
 0x131   : > { %716 = vst [vmem:[%s1455_s8 + $0x1b8] sm:$0xff] %v1635_v5  ;;  %1960 = vst [vmem:[#allocation5_spill] sm:$0xff] %v1643_v7 }
 0x132   : > { %683 = vst [vmem:[%s1455_s8 + $0xb0] sm:$0xff] %v1641_v6  ;;  %715 = vst [vmem:[%s1455_s8 + $0x1b0] sm:$0xff] %v1643_v7 }
 0x133   : > { %v1649_v8 = vpop.f32.mrb[24].mxu0  ;;  %v1651_v9 = vpop.f32.mrb[24].mxu1 }
 0x134   : > { %1961 = vst [vmem:[#allocation6_spill] sm:$0xff] %v1651_v9  ;;  %686 = vst [vmem:[%s1455_s8 + $0xc8] sm:$0xff] %v1649_v8  ;;  %v1657_v10 = vpop.f32.mrb[25].mxu0  ;;  %v1659_v11 = vpop.f32.mrb[25].mxu1 }
 0x135   : > { %718 = vst [vmem:[%s1455_s8 + $0x1c8] sm:$0xff] %v1651_v9  ;;  %1962 = vst [vmem:[#allocation7_spill] sm:$0xff] %v1659_v11 }
 0x136   : > { %685 = vst [vmem:[%s1455_s8 + $0xc0] sm:$0xff] %v1657_v10  ;;  %717 = vst [vmem:[%s1455_s8 + $0x1c0] sm:$0xff] %v1659_v11 }
 0x137   : > { %v1665_v12 = vpop.f32.mrb[26].mxu0  ;;  %v1667_v13 = vpop.f32.mrb[26].mxu1 }
 0x138   : > { %1963 = vst [vmem:[#allocation8_spill] sm:$0xff] %v1667_v13  ;;  %688 = vst [vmem:[%s1455_s8 + $0xd8] sm:$0xff] %v1665_v12  ;;  %v1673_v14 = vpop.f32.mrb[27].mxu0  ;;  %v1675_v15 = vpop.f32.mrb[27].mxu1 }
 0x139   : > { %720 = vst [vmem:[%s1455_s8 + $0x1d8] sm:$0xff] %v1667_v13  ;;  %1964 = vst [vmem:[#allocation9_spill] sm:$0xff] %v1675_v15 }
 0x13a   : > { %687 = vst [vmem:[%s1455_s8 + $0xd0] sm:$0xff] %v1673_v14  ;;  %719 = vst [vmem:[%s1455_s8 + $0x1d0] sm:$0xff] %v1675_v15 }
 0x13b   : > { %v1681_v16 = vpop.f32.mrb[28].mxu0  ;;  %v1683_v17 = vpop.f32.mrb[28].mxu1 }
 0x13c   : > { %1965 = vst [vmem:[#allocation10_spill] sm:$0xff] %v1683_v17  ;;  %690 = vst [vmem:[%s1455_s8 + $0xe8] sm:$0xff] %v1681_v16  ;;  %v1689_v18 = vpop.f32.mrb[29].mxu0  ;;  %v1691_v19 = vpop.f32.mrb[29].mxu1  ;;  %728 = sbr.rel (%p1016_p4) target bundleno = 323 (0x143), region = 32 }
 0x13d   : > { %722 = vst [vmem:[%s1455_s8 + $0x1e8] sm:$0xff] %v1683_v17  ;;  %1966 = vst [vmem:[#allocation11_spill] sm:$0xff] %v1691_v19  ;;  %v1292_v17 = vmov (!%p1016_p4), 0.0  }
 0x13e   : > { %689 = vst [vmem:[%s1455_s8 + $0xe0] sm:$0xff] %v1689_v18  ;;  %721 = vst [vmem:[%s1455_s8 + $0x1e0] sm:$0xff] %v1691_v19 }
 0x13f   : > { %v1697_v20 = vpop.f32.mrb[30].mxu0  ;;  %v1699_v21 = vpop.f32.mrb[30].mxu1  ;;  %729 = vst [vmem:[%s1931_s3] sm:$0x1] (!%p1016_p4), %v1292_v17  ;;  %730 = vst [vmem:[%s1932_s4] sm:$0x1] (!%p1016_p4), %v1292_v17 }
 0x140   : > { %1967 = vst [vmem:[#allocation12_spill] sm:$0xff] %v1699_v21  ;;  %692 = vst [vmem:[%s1455_s8 + $0xf8] sm:$0xff] %v1697_v20  ;;  %v1705_v22 = vpop.f32.mrb[31].mxu0  ;;  %v1707_v23 = vpop.f32.mrb[31].mxu1 }
 0x141   : > { %724 = vst [vmem:[%s1455_s8 + $0x1f8] sm:$0xff] %v1699_v21  ;;  %1968 = vst [vmem:[#allocation13_spill] sm:$0xff] %v1707_v23 }
 0x142   : > { %691 = vst [vmem:[%s1455_s8 + $0xf0] sm:$0xff] %v1705_v22  ;;  %723 = vst [vmem:[%s1455_s8 + $0x1f0] sm:$0xff] %v1707_v23 }
 0x143 PF: > { %v732_v21 = vadd.f32 %v1457_v24, %v1465_v26  ;;  %v804_v17 = vmul.f32 %v1465_v26, %v1465_v26  ;;  %v805_v7 = vmul.f32 %v1457_v24, %v1457_v24  ;;  %v809_v24 = vmul.f32 %v1489_v32, %v1489_v32 }
 0x145   : > { %v733_v19 = vadd.f32 %v732_v21, %v1481_v30 }
 0x147   : > { %v734_v23 = vadd.f32 %v1473_v28, %v733_v19  ;;  %v806_v19 = vmul.f32 %v1481_v30, %v1481_v30 }
 0x149   : > { %v735_v13 = vadd.f32 %v734_v23, %v1497_v34 }
 0x14b   : > { %v736_v15 = vadd.f32 %v1489_v32, %v735_v13  ;;  %v807_v13 = vmul.f32 %v1473_v28, %v1473_v28 }
 0x14d   : > { %v737_v9 = vadd.f32 %v736_v15, %v1513_v38  ;;  %v868_v15 = vadd.f32 %v805_v7, %v804_v17  ;;  %v811_v7 = vmul.f32 %v1505_v36, %v1505_v36 }
 0x14f   : > { %v738_v11 = vadd.f32 %v1505_v36, %v737_v9  ;;  %v869_v26 = vadd.f32 %v868_v15, %v806_v19  ;;  %v812_v19 = vmul.f32 %v1529_v42, %v1529_v42  ;;  %v814_v15 = vmul.f32 %v1545_v46, %v1545_v46 }
 0x151   : > { %v739_v5 = vadd.f32 %v738_v11, %v1529_v42  ;;  %v808_v11 = vmul.f32 %v1497_v34, %v1497_v34 }
 0x153   : > { %v740_v21 = vadd.f32 %v1521_v40, %v739_v5  ;;  %v870_v5 = vadd.f32 %v869_v26, %v807_v13  ;;  %v816_v26 = vmul.f32 %v1561_v50, %v1561_v50 }
 0x155   : > { %v741_v23 = vadd.f32 %v740_v21, %v1545_v46  ;;  %v810_v21 = vmul.f32 %v1513_v38, %v1513_v38  ;;  %v871_v3 = vadd.f32 %v870_v5, %v808_v11  ;;  %v817_v5 = vmul.f32 %v1553_v48, %v1553_v48 }
 0x157   : > { %v742_v9 = vadd.f32 %v1537_v44, %v741_v23  ;;  %v872_v17 = vadd.f32 %v871_v3, %v809_v24  ;;  %v815_v3 = vmul.f32 %v1537_v44, %v1537_v44 }
 0x159   : > { %v743_v1 = vadd.f32 %v742_v9, %v1561_v50  ;;  %v873_v23 = vadd.f32 %v872_v17, %v810_v21  ;;  %v818_v21 = vmul.f32 %v1577_v54, %v1577_v54 }
 0x15b   : > { %v744_v30 = vadd.f32 %v1553_v48, %v743_v1  ;;  %v813_v1 = vmul.f32 %v1521_v40, %v1521_v40  ;;  %v874_v13 = vadd.f32 %v873_v23, %v811_v7  ;;  %v819_v7 = vmul.f32 %v1569_v52, %v1569_v52 }
 0x15c   : > { %v821_v23 = vmul.f32 %v1585_v56, %v1585_v56 }
 0x15d   : > { %v745_v28 = vadd.f32 %v744_v30, %v1577_v54  ;;  %v875_v9 = vadd.f32 %v874_v13, %v812_v19 }
 0x15f   : > { %v746_v34 = vadd.f32 %v1569_v52, %v745_v28  ;;  %v876_v11 = vadd.f32 %v875_v9, %v813_v1  ;;  %v822_v1 = vmul.f32 %v1609_v62, %v1609_v62  ;;  %v824_v9 = vmul.f32 %v1625_v2, %v1625_v2 }
 0x161   : > { %v747_v32 = vadd.f32 %v746_v34, %v1593_v58  ;;  %v877_v24 = vadd.f32 %v876_v11, %v814_v15  ;;  %v820_v34 = vmul.f32 %v1593_v58, %v1593_v58 }
 0x163   : > { %v748_v38 = vadd.f32 %v1585_v56, %v747_v32  ;;  %v878_v30 = vadd.f32 %v877_v24, %v815_v3  ;;  %v825_v3 = vmul.f32 %v1617_v0, %v1617_v0  ;;  %v827_v24 = vmul.f32 %v1633_v4, %v1633_v4 }
 0x165   : > { %v749_v36 = vadd.f32 %v748_v38, %v1609_v62  ;;  %v879_v28 = vadd.f32 %v878_v30, %v816_v26  ;;  %v823_v38 = vmul.f32 %v1601_v60, %v1601_v60 }
 0x167   : > { %v750_v42 = vadd.f32 %v1601_v60, %v749_v36  ;;  %v880_v17 = vadd.f32 %v879_v28, %v817_v5  ;;  %v828_v5 = vmul.f32 %v1657_v10, %v1657_v10  ;;  %v830_v28 = vmul.f32 %v1673_v14, %v1673_v14 }
 0x169   : > { %v751_v40 = vadd.f32 %v750_v42, %v1625_v2  ;;  %v881_v19 = vadd.f32 %v880_v17, %v818_v21  ;;  %v826_v42 = vmul.f32 %v1641_v6, %v1641_v6 }
 0x16b   : > { %v752_v46 = vadd.f32 %v1617_v0, %v751_v40  ;;  %v882_v32 = vadd.f32 %v881_v19, %v819_v7  ;;  %v831_v7 = vmul.f32 %v1665_v12, %v1665_v12  ;;  %v833_v19 = vmul.f32 %v1681_v16, %v1681_v16 }
 0x16d   : > { %v753_v44 = vadd.f32 %v752_v46, %v1641_v6  ;;  %v883_v13 = vadd.f32 %v882_v32, %v820_v34  ;;  %v829_v46 = vmul.f32 %v1649_v8, %v1649_v8 }
 0x16f   : > { %v754_v50 = vadd.f32 %v1633_v4, %v753_v44  ;;  %v884_v15 = vadd.f32 %v883_v13, %v821_v23  ;;  %v834_v23 = vmul.f32 %v1705_v22, %v1705_v22  ;;  %v836_v13 = vmul.f32 %v1467_v27, %v1467_v27 }
 0x171   : > { %v755_v48 = vadd.f32 %v754_v50, %v1657_v10  ;;  %v885_v36 = vadd.f32 %v884_v15, %v822_v1  ;;  %v832_v50 = vmul.f32 %v1689_v18, %v1689_v18 }
 0x173   : > { %v756_v54 = vadd.f32 %v1649_v8, %v755_v48  ;;  %v886_v11 = vadd.f32 %v885_v36, %v823_v38  ;;  %v837_v38 = vmul.f32 %v1459_v25, %v1459_v25  ;;  %v839_v36 = vmul.f32 %v1475_v29, %v1475_v29 }
 0x175   : > { %v757_v52 = vadd.f32 %v756_v54, %v1673_v14  ;;  %v887_v26 = vadd.f32 %v886_v11, %v824_v9  ;;  %v835_v54 = vmul.f32 %v1697_v20, %v1697_v20 }
 0x177   : > { %v758_v58 = vadd.f32 %v1665_v12, %v757_v52  ;;  %v888_v40 = vadd.f32 %v887_v26, %v825_v3  ;;  %v840_v3 = vmul.f32 %v1499_v35, %v1499_v35  ;;  %v842_v26 = vmul.f32 %v1515_v39, %v1515_v39 }
 0x179   : > { %v759_v56 = vadd.f32 %v758_v58, %v1689_v18  ;;  %v889_v30 = vadd.f32 %v888_v40, %v826_v42  ;;  %v838_v58 = vmul.f32 %v1483_v31, %v1483_v31 }
 0x17b   : > { %v760_v62 = vadd.f32 %v1681_v16, %v759_v56  ;;  %v890_v21 = vadd.f32 %v889_v30, %v827_v24  ;;  %v843_v24 = vmul.f32 %v1507_v37, %v1507_v37  ;;  %v845_v30 = vmul.f32 %v1523_v41, %v1523_v41 }
 0x17d   : > { %v761_v60 = vadd.f32 %v760_v62, %v1705_v22  ;;  %v891_v44 = vadd.f32 %v890_v21, %v828_v5  ;;  %v841_v62 = vmul.f32 %v1491_v33, %v1491_v33 }
 0x17f   : > { %v762_v2 = vadd.f32 %v1697_v20, %v761_v60  ;;  %v892_v17 = vadd.f32 %v891_v44, %v829_v46  ;;  %v846_v46 = vmul.f32 %v1547_v47, %v1547_v47  ;;  %v848_v44 = vmul.f32 %v1563_v51, %v1563_v51 }
 0x181   : > { %v763_v0 = vadd.f32 %v762_v2, %v1467_v27  ;;  %v893_v34 = vadd.f32 %v892_v17, %v830_v28  ;;  %v844_v2 = vmul.f32 %v1531_v43, %v1531_v43  ;;  %v849_v17 = vmul.f32 %v1555_v49, %v1555_v49 }
 0x183   : > { %v764_v6 = vadd.f32 %v1459_v25, %v763_v0  ;;  %v894_v48 = vadd.f32 %v893_v34, %v831_v7  ;;  %v850_v34 = vmul.f32 %v1579_v55, %v1579_v55 }
 0x185   : > { %v765_v4 = vadd.f32 %v764_v6, %v1483_v31  ;;  %v895_v32 = vadd.f32 %v894_v48, %v832_v50  ;;  %v847_v6 = vmul.f32 %v1539_v45, %v1539_v45  ;;  %v851_v48 = vmul.f32 %v1571_v53, %v1571_v53 }
 0x187   : > { %v766_v10 = vadd.f32 %v1475_v29, %v765_v4  ;;  %v896_v1 = vadd.f32 %v895_v32, %v833_v19  ;;  %v852_v32 = vmul.f32 %v1595_v59, %v1595_v59 }
 0x189   : > { %v767_v8 = vadd.f32 %v766_v10, %v1499_v35  ;;  %v897_v52 = vadd.f32 %v896_v1, %v834_v23  ;;  %v853_v1 = vmul.f32 %v1587_v57, %v1587_v57 }
 0x18b   : > { %v768_v14 = vadd.f32 %v1491_v33, %v767_v8  ;;  %v898_v15 = vadd.f32 %v897_v52, %v835_v54  ;;  %v854_v52 = vmul.f32 %v1611_v63, %v1611_v63 }
 0x18d   : > { %v769_v12 = vadd.f32 %v768_v14, %v1515_v39  ;;  %v899_v9 = vadd.f32 %v898_v15, %v836_v13  ;;  %v855_v15 = vmul.f32 %v1603_v61, %v1603_v61 }
 0x18f   : > { %v770_v18 = vadd.f32 %v1507_v37, %v769_v12  ;;  %v900_v56 = vadd.f32 %v899_v9, %v837_v38 }
 0x191   : > { %v771_v16 = vadd.f32 %v770_v18, %v1531_v43  ;;  %v901_v11 = vadd.f32 %v900_v56, %v838_v58 }
 0x193   : > { %v772_v22 = vadd.f32 %v1523_v41, %v771_v16  ;;  %v902_v42 = vadd.f32 %v901_v11, %v839_v36  ;;  %v1969_v41 = vld [vmem:[#allocation3_spill] sm:$0xff] }
 0x194   : > { %v856_v9 = vmul.f32 %v1969_v41, %v1969_v41 }
 0x195   : > { %v773_v20 = vadd.f32 %v772_v22, %v1547_v47  ;;  %v903_v60 = vadd.f32 %v902_v42, %v840_v3  ;;  %v1970_v47 = vld [vmem:[#allocation2_spill] sm:$0xff] }
 0x196   : > { %v857_v56 = vmul.f32 %v1970_v47, %v1970_v47 }
 0x197   : > { %v774_v27 = vadd.f32 %v1539_v45, %v773_v20  ;;  %v904_v40 = vadd.f32 %v903_v60, %v841_v62  ;;  %v1971_v45 = vld [vmem:[#allocation5_spill] sm:$0xff] }
 0x198   : > { %v858_v11 = vmul.f32 %v1971_v45, %v1971_v45 }
 0x199   : > { %v775_v25 = vadd.f32 %v774_v27, %v1563_v51  ;;  %v905_v5 = vadd.f32 %v904_v40, %v842_v26  ;;  %v1972_v51 = vld [vmem:[#allocation4_spill] sm:$0xff] }
 0x19a   : > { %v859_v42 = vmul.f32 %v1972_v51, %v1972_v51  ;;  %v1980_v26 = vld [vmem:[#allocation12_spill] sm:$0xff] }
 0x19b   : > { %v776_v31 = vadd.f32 %v1555_v49, %v775_v25  ;;  %v906_v0 = vadd.f32 %v905_v5, %v843_v24  ;;  %v1973_v49 = vld [vmem:[#allocation7_spill] sm:$0xff] }
 0x19d   : > { %v777_v29 = vadd.f32 %v776_v31, %v1579_v55  ;;  %v907_v21 = vadd.f32 %v906_v0, %v844_v2  ;;  %v1974_v55 = vld [vmem:[#allocation6_spill] sm:$0xff] }
 0x19f   : > { %v778_v35 = vadd.f32 %v1571_v53, %v777_v29  ;;  %v908_v28 = vadd.f32 %v907_v21, %v845_v30  ;;  %v1975_v53 = vld [vmem:[#allocation9_spill] sm:$0xff]  ;;  %v860_v29 = vmul.f32 %v1973_v49, %v1973_v49 }
 0x1a1   : > { %v779_v33 = vadd.f32 %v778_v35, %v1595_v59  ;;  %v909_v4 = vadd.f32 %v908_v28, %v846_v46  ;;  %v1976_v59 = vld [vmem:[#allocation8_spill] sm:$0xff]  ;;  %v861_v35 = vmul.f32 %v1974_v55, %v1974_v55 }
 0x1a3   : > { %v780_v39 = vadd.f32 %v1587_v57, %v779_v33  ;;  %v910_v10 = vadd.f32 %v909_v4, %v847_v6  ;;  %v1977_v57 = vld [vmem:[#allocation11_spill] sm:$0xff]  ;;  %v862_v33 = vmul.f32 %v1975_v53, %v1975_v53  ;;  %v731_v4 = vld [vmem:[%s1931_s3] sm:$0x1] }
 0x1a5   : > { %v781_v37 = vadd.f32 %v780_v39, %v1611_v63  ;;  %v911_v8 = vadd.f32 %v910_v10, %v848_v44  ;;  %v1978_v63 = vld [vmem:[#allocation10_spill] sm:$0xff]  ;;  %v863_v39 = vmul.f32 %v1976_v59, %v1976_v59 }
 0x1a7   : > { %v782_v43 = vadd.f32 %v1603_v61, %v781_v37  ;;  %v912_v14 = vadd.f32 %v911_v8, %v849_v17  ;;  %v1979_v61 = vld [vmem:[#allocation13_spill] sm:$0xff]  ;;  %v864_v37 = vmul.f32 %v1977_v57, %v1977_v57 }
 0x1a9   : > { %v783_v7 = vadd.f32 %v782_v43, %v1969_v41  ;;  %v913_v12 = vadd.f32 %v912_v14, %v850_v34  ;;  %v865_v43 = vmul.f32 %v1978_v63, %v1978_v63 }
 0x1ab   : > { %v784_v50 = vadd.f32 %v1970_v47, %v783_v7  ;;  %v914_v18 = vadd.f32 %v913_v12, %v851_v48  ;;  %v866_v7 = vmul.f32 %v1979_v61, %v1979_v61  ;;  %v867_v47 = vmul.f32 %v1980_v26, %v1980_v26 }
 0x1ad   : > { %v785_v19 = vadd.f32 %v784_v50, %v1971_v45  ;;  %v915_v16 = vadd.f32 %v914_v18, %v852_v32 }
 0x1af   : > { %v786_v23 = vadd.f32 %v1972_v51, %v785_v19  ;;  %v916_v22 = vadd.f32 %v915_v16, %v853_v1 }
 0x1b1   : > { %v787_v54 = vadd.f32 %v786_v23, %v1973_v49  ;;  %v917_v20 = vadd.f32 %v916_v22, %v854_v52  ;;  %v803_v23 = vld [vmem:[%s1932_s4] sm:$0x1] }
 0x1b3   : > { %v788_v13 = vadd.f32 %v1974_v55, %v787_v54  ;;  %v918_v27 = vadd.f32 %v917_v20, %v855_v15 }
 0x1b5   : > { %v789_v38 = vadd.f32 %v788_v13, %v1975_v53  ;;  %v919_v25 = vadd.f32 %v918_v27, %v856_v9 }
 0x1b7   : > { %v790_v58 = vadd.f32 %v1976_v59, %v789_v38  ;;  %v920_v31 = vadd.f32 %v919_v25, %v857_v56 }
 0x1b9   : > { %v791_v36 = vadd.f32 %v790_v58, %v1977_v57  ;;  %v921_v24 = vadd.f32 %v920_v31, %v858_v11 }
 0x1bb   : > { %v792_v3 = vadd.f32 %v1978_v63, %v791_v36  ;;  %v922_v2 = vadd.f32 %v921_v24, %v859_v42 }
 0x1bd   : > { %v793_v62 = vadd.f32 %v792_v3, %v1979_v61  ;;  %v923_v30 = vadd.f32 %v922_v2, %v860_v29 }
 0x1bf   : > { %v794_v60 = vadd.f32 %v1980_v26, %v793_v62  ;;  %v924_v46 = vadd.f32 %v923_v30, %v861_v35 }
 0x1c1   : > { %v795_v40 = vrot.slane %v794_v60, 4  ;;  %v925_v6 = vadd.f32 %v924_v46, %v862_v33 }
 0x1c3   : > { %v796_v5 = vadd.f32 %v795_v40, %v794_v60  ;;  %v926_v44 = vadd.f32 %v925_v6, %v863_v39 }
 0x1c5   : > { %v797_v0 = vrot.slane %v796_v5, 2  ;;  %v927_v17 = vadd.f32 %v926_v44, %v864_v37 }
 0x1c7   : > { %v798_v21 = vadd.f32 %v797_v0, %v796_v5  ;;  %v928_v50 = vadd.f32 %v927_v17, %v865_v43 }
 0x1c9   : > { %v799_v28 = vrot.slane %v798_v21, 1  ;;  %v929_v34 = vadd.f32 %v928_v50, %v866_v7 }
 0x1cb   : > { %v800_v41 = vadd.f32 %v799_v28, %v798_v21  ;;  %v930_v8 = vadd.f32 %v929_v34, %v867_v47 }
 0x1cd   : > { %v801_v10 = vadd.f32 %v800_v41, %v731_v4  ;;  %v931_v45 = vrot.slane %v930_v8, 4 }
 0x1cf   : > { %802 = vst [vmem:[%s1931_s3] sm:$0x1] %v801_v10  ;;  %v932_v19 = vadd.f32 %v931_v45, %v930_v8 }
 0x1d1   : > { %v933_v48 = vrot.slane %v932_v19, 2 }
 0x1d3   : > { %v934_v14 = vadd.f32 %v933_v48, %v932_v19 }
 0x1d5   : > { %v935_v51 = vrot.slane %v934_v14, 1 }
 0x1d7   : > { %v936_v32 = vadd.f32 %v935_v51, %v934_v14 }
 0x1d9   : > { %v937_v12 = vadd.f32 %v936_v32, %v803_v23 }
 0x1db   : > { %938 = vst [vmem:[%s1932_s4] sm:$0x1] %v937_v12 }
 0x1dc PF: > { %s15_s15 = sadd.s32 1, %s1290_s15  }
 0x1dd   : > { %p12_p5 = scmp.ge.s32.totalorder %s15_s15, 4  }
 0x1df   :  { %14 = sbr.rel (!%p12_p5) target bundleno = 1 (0x1), region = 78 }

// kernel: resblock_forward.14
= control target key start
LH: loop header
LB: loop body
LE: loop exit
PB: predicated region body
PF: predicated region fallthrough
CT: control target
= control target key end

     0   :  { %s613_s12 = smov 0   ;;  %s900_s0 = inlined_call_operand.vmem [shape: f32[1024,128], index: 0, kind: input, shape index: {}]   ;;  %s901_s1 = inlined_call_operand.vmem [shape: f32[1,128], index: 1, kind: input, shape index: {}]   ;;  %s902_s2 = inlined_call_operand.vmem [shape: f32[1,128], index: 2, kind: input, shape index: {}]   ;;  %s903_s3 = inlined_call_operand.vmem [shape: f32[1024,128], index: 3, kind: output, shape index: {}]  }
   0x1 LB: > { %s564_s13 = sadd.s32 4294967295, %s591_s12   ;;  %p568_p0 = scmp.ge.s32.totalorder %s591_s12, 1  ;;  %s591_s12 = sphi %s613_s12, %s13_s12  }
   0x2   : > { %p138_p1 = scmp.lt.s32.totalorder %s591_s12, 3 }
   0x4   : > { %p139_p2 = pnand %p568_p0, %p138_p1 }
   0x5   : > { %s569_s14 = sshll.u32 (!%p139_p2), %s564_s13, 6  ;;  %v624_v0 = vld [vmem:[%s901_s1] ss:$0 sm:$0xff] (!%p139_p2) }
   0x6   : > { %142 = sbr.rel (%p139_p2) target bundleno = 70 (0x46), region = 32  ;;  %p163_p3 = scmp.lt.s32.totalorder (!%p139_p2), %s569_s14, 127  ;;  %v634_v1 = vld [vmem:[%s902_s2] ss:$0 sm:$0xff] (!%p139_p2) }
   0xd   : > { %s905_s14 = smov (!%p163_p3, %s569_s14), 127 }
   0xe   : > { %s570_s15 = sshll.u32 %s905_s14, 3 }
   0xf   : > { %s629_s20 = scalar_lea.vmem %s900_s0, %s570_s15  ;;  %s657_s25 = scalar_lea.vmem %s903_s3, %s570_s15 }
  0x10   : > { %v174_v2 = vld [vmem:[%s629_s20] sm:$0xff]  ;;  %v175_v3 = vld [vmem:[%s629_s20 + $0x8] sm:$0xff]  ;;  %v176_v4 = vld [vmem:[%s629_s20 + $0x10] sm:$0xff] }
  0x11   : > { %v245_v5 = vmul.f32 %v624_v0, %v174_v2  ;;  %v246_v6 = vmul.f32 %v624_v0, %v175_v3  ;;  %v247_v7 = vmul.f32 %v624_v0, %v176_v4  ;;  %v177_v8 = vld [vmem:[%s629_s20 + $0x18] sm:$0xff]  ;;  %v178_v9 = vld [vmem:[%s629_s20 + $0x20] sm:$0xff]  ;;  %v179_v10 = vld [vmem:[%s629_s20 + $0x28] sm:$0xff] }
  0x12   : > { %v248_v11 = vmul.f32 %v624_v0, %v177_v8  ;;  %v249_v12 = vmul.f32 %v624_v0, %v178_v9  ;;  %v250_v13 = vmul.f32 %v624_v0, %v179_v10  ;;  %v180_v14 = vld [vmem:[%s629_s20 + $0x30] sm:$0xff]  ;;  %v181_v15 = vld [vmem:[%s629_s20 + $0x38] sm:$0xff]  ;;  %v182_v24 = vld [vmem:[%s629_s20 + $0x40] sm:$0xff] }
  0x13   : > { %v316_v16 = vadd.f32 %v634_v1, %v245_v5  ;;  %v317_v17 = vadd.f32 %v634_v1, %v246_v6  ;;  %v318_v18 = vadd.f32 %v634_v1, %v247_v7  ;;  %v251_v19 = vmul.f32 %v624_v0, %v180_v14  ;;  %v183_v25 = vld [vmem:[%s629_s20 + $0x48] sm:$0xff]  ;;  %v184_v26 = vld [vmem:[%s629_s20 + $0x50] sm:$0xff]  ;;  %v185_v31 = vld [vmem:[%s629_s20 + $0x58] sm:$0xff] }
  0x14   : > { %v319_v20 = vadd.f32 %v634_v1, %v248_v11  ;;  %v320_v21 = vadd.f32 %v634_v1, %v249_v12  ;;  %v321_v22 = vadd.f32 %v634_v1, %v250_v13  ;;  %v252_v23 = vmul.f32 %v624_v0, %v181_v15  ;;  %v186_v32 = vld [vmem:[%s629_s20 + $0x60] sm:$0xff]  ;;  %v187_v33 = vld [vmem:[%s629_s20 + $0x68] sm:$0xff]  ;;  %v188_v38 = vld [vmem:[%s629_s20 + $0x70] sm:$0xff] }
  0x15   : > { %v380_v27 = vmax.f32 %v316_v16, 0.0  ;;  %v381_v28 = vmax.f32 %v317_v17, 0.0  ;;  %v382_v29 = vmax.f32 %v318_v18, 0.0  ;;  %v322_v30 = vadd.f32 %v634_v1, %v251_v19  ;;  %v189_v43 = vld [vmem:[%s629_s20 + $0x78] sm:$0xff]  ;;  %v190_v56 = vld [vmem:[%s629_s20 + $0x80] sm:$0xff]  ;;  %v191_v57 = vld [vmem:[%s629_s20 + $0x88] sm:$0xff] }
  0x16   : > { %v383_v34 = vmax.f32 %v319_v20, 0.0  ;;  %v384_v35 = vmax.f32 %v320_v21, 0.0  ;;  %v385_v36 = vmax.f32 %v321_v22, 0.0  ;;  %v323_v37 = vadd.f32 %v634_v1, %v252_v23  ;;  %v192_v58 = vld [vmem:[%s629_s20 + $0x90] sm:$0xff]  ;;  %v193_v63 = vld [vmem:[%s629_s20 + $0x98] sm:$0xff]  ;;  %v194_v2 = vld [vmem:[%s629_s20 + $0xa0] sm:$0xff] }
  0x17   : > { %444 = vst [vmem:[%s657_s25] sm:$0xff] %v380_v27  ;;  %445 = vst [vmem:[%s657_s25 + $0x8] sm:$0xff] %v381_v28  ;;  %v386_v39 = vmax.f32 %v322_v30, 0.0  ;;  %v253_v40 = vmul.f32 %v624_v0, %v182_v24  ;;  %v254_v41 = vmul.f32 %v624_v0, %v183_v25  ;;  %v255_v42 = vmul.f32 %v624_v0, %v184_v26  ;;  %v195_v3 = vld [vmem:[%s629_s20 + $0xa8] sm:$0xff]  ;;  %v196_v8 = vld [vmem:[%s629_s20 + $0xb0] sm:$0xff] }
  0x18   : > { %446 = vst [vmem:[%s657_s25 + $0x10] sm:$0xff] %v382_v29  ;;  %447 = vst [vmem:[%s657_s25 + $0x18] sm:$0xff] %v383_v34  ;;  %v387_v44 = vmax.f32 %v323_v37, 0.0  ;;  %v256_v45 = vmul.f32 %v624_v0, %v185_v31  ;;  %v257_v46 = vmul.f32 %v624_v0, %v186_v32  ;;  %v258_v47 = vmul.f32 %v624_v0, %v187_v33  ;;  %v197_v13 = vld [vmem:[%s629_s20 + $0xb8] sm:$0xff]  ;;  %v198_v26 = vld [vmem:[%s629_s20 + $0xc0] sm:$0xff] }
  0x19   : > { %448 = vst [vmem:[%s657_s25 + $0x20] sm:$0xff] %v384_v35  ;;  %449 = vst [vmem:[%s657_s25 + $0x28] sm:$0xff] %v385_v36  ;;  %v324_v48 = vadd.f32 %v634_v1, %v253_v40  ;;  %v325_v49 = vadd.f32 %v634_v1, %v254_v41  ;;  %v326_v50 = vadd.f32 %v634_v1, %v255_v42  ;;  %v199_v27 = vld [vmem:[%s629_s20 + $0xc8] sm:$0xff]  ;;  %v200_v28 = vld [vmem:[%s629_s20 + $0xd0] sm:$0xff] }
  0x1a   : > { %450 = vst [vmem:[%s657_s25 + $0x30] sm:$0xff] %v386_v39  ;;  %v259_v51 = vmul.f32 %v624_v0, %v188_v38  ;;  %451 = vst [vmem:[%s657_s25 + $0x38] sm:$0xff] %v387_v44  ;;  %v327_v52 = vadd.f32 %v634_v1, %v256_v45  ;;  %v328_v53 = vadd.f32 %v634_v1, %v257_v46  ;;  %v201_v33 = vld [vmem:[%s629_s20 + $0xd8] sm:$0xff]  ;;  %v202_v34 = vld [vmem:[%s629_s20 + $0xe0] sm:$0xff] }
  0x1b   : > { %v329_v54 = vadd.f32 %v634_v1, %v258_v47  ;;  %v260_v55 = vmul.f32 %v624_v0, %v189_v43  ;;  %v388_v59 = vmax.f32 %v324_v48, 0.0  ;;  %v389_v60 = vmax.f32 %v325_v49, 0.0  ;;  %v203_v35 = vld [vmem:[%s629_s20 + $0xe8] sm:$0xff]  ;;  %v204_v40 = vld [vmem:[%s629_s20 + $0xf0] sm:$0xff]  ;;  %v205_v45 = vld [vmem:[%s629_s20 + $0xf8] sm:$0xff] }
  0x1c   : > { %v390_v61 = vmax.f32 %v326_v50, 0.0  ;;  %v330_v62 = vadd.f32 %v634_v1, %v259_v51  ;;  %v391_v4 = vmax.f32 %v327_v52, 0.0  ;;  %v392_v5 = vmax.f32 %v328_v53, 0.0 }
  0x1d   : > { %v393_v6 = vmax.f32 %v329_v54, 0.0  ;;  %v331_v7 = vadd.f32 %v634_v1, %v260_v55  ;;  %452 = vst [vmem:[%s657_s25 + $0x40] sm:$0xff] %v388_v59  ;;  %453 = vst [vmem:[%s657_s25 + $0x48] sm:$0xff] %v389_v60  ;;  %v261_v10 = vmul.f32 %v624_v0, %v190_v56  ;;  %v262_v11 = vmul.f32 %v624_v0, %v191_v57  ;;  %v207_v59 = vld [vmem:[%s629_s20 + $0x108] sm:$0xff]  ;;  %v208_v60 = vld [vmem:[%s629_s20 + $0x110] sm:$0xff] }
  0x1e   : > { %454 = vst [vmem:[%s657_s25 + $0x50] sm:$0xff] %v390_v61  ;;  %v394_v9 = vmax.f32 %v330_v62, 0.0  ;;  %v263_v12 = vmul.f32 %v624_v0, %v192_v58  ;;  %455 = vst [vmem:[%s657_s25 + $0x58] sm:$0xff] %v391_v4  ;;  %v264_v15 = vmul.f32 %v624_v0, %v193_v63  ;;  %v265_v16 = vmul.f32 %v624_v0, %v194_v2  ;;  %v206_v58 = vld [vmem:[%s629_s20 + $0x100] sm:$0xff] }
  0x1f   : > { %456 = vst [vmem:[%s657_s25 + $0x60] sm:$0xff] %v392_v5  ;;  %457 = vst [vmem:[%s657_s25 + $0x68] sm:$0xff] %v393_v6  ;;  %v395_v14 = vmax.f32 %v331_v7, 0.0  ;;  %v266_v17 = vmul.f32 %v624_v0, %v195_v3  ;;  %v332_v18 = vadd.f32 %v634_v1, %v261_v10  ;;  %v333_v19 = vadd.f32 %v634_v1, %v262_v11  ;;  %v209_v3 = vld [vmem:[%s629_s20 + $0x118] sm:$0xff]  ;;  %v210_v4 = vld [vmem:[%s629_s20 + $0x120] sm:$0xff] }
  0x20   : > { %458 = vst [vmem:[%s657_s25 + $0x70] sm:$0xff] %v394_v9  ;;  %v334_v20 = vadd.f32 %v634_v1, %v263_v12  ;;  %v267_v21 = vmul.f32 %v624_v0, %v196_v8  ;;  %v335_v22 = vadd.f32 %v634_v1, %v264_v15  ;;  %v336_v23 = vadd.f32 %v634_v1, %v265_v16  ;;  %v211_v5 = vld [vmem:[%s629_s20 + $0x128] sm:$0xff]  ;;  %v212_v10 = vld [vmem:[%s629_s20 + $0x130] sm:$0xff]  ;;  %v213_v15 = vld [vmem:[%s629_s20 + $0x138] sm:$0xff] }
  0x21   : > { %459 = vst [vmem:[%s657_s25 + $0x78] sm:$0xff] %v395_v14  ;;  %v337_v24 = vadd.f32 %v634_v1, %v266_v17  ;;  %v268_v25 = vmul.f32 %v624_v0, %v197_v13  ;;  %v396_v29 = vmax.f32 %v332_v18, 0.0  ;;  %v397_v30 = vmax.f32 %v333_v19, 0.0 }
  0x22   : > { %v398_v31 = vmax.f32 %v334_v20, 0.0  ;;  %v338_v32 = vadd.f32 %v634_v1, %v267_v21  ;;  %v399_v36 = vmax.f32 %v335_v22, 0.0  ;;  %v400_v37 = vmax.f32 %v336_v23, 0.0 }
  0x23   : > { %v401_v38 = vmax.f32 %v337_v24, 0.0  ;;  %v339_v39 = vadd.f32 %v634_v1, %v268_v25  ;;  %460 = vst [vmem:[%s657_s25 + $0x80] sm:$0xff] %v396_v29  ;;  %461 = vst [vmem:[%s657_s25 + $0x88] sm:$0xff] %v397_v30  ;;  %v269_v42 = vmul.f32 %v624_v0, %v198_v26  ;;  %v270_v43 = vmul.f32 %v624_v0, %v199_v27  ;;  %v215_v29 = vld [vmem:[%s629_s20 + $0x148] sm:$0xff]  ;;  %v216_v30 = vld [vmem:[%s629_s20 + $0x150] sm:$0xff] }
  0x24   : > { %462 = vst [vmem:[%s657_s25 + $0x90] sm:$0xff] %v398_v31  ;;  %v402_v41 = vmax.f32 %v338_v32, 0.0  ;;  %v271_v44 = vmul.f32 %v624_v0, %v200_v28  ;;  %463 = vst [vmem:[%s657_s25 + $0x98] sm:$0xff] %v399_v36  ;;  %v272_v47 = vmul.f32 %v624_v0, %v201_v33  ;;  %v273_v48 = vmul.f32 %v624_v0, %v202_v34  ;;  %v214_v28 = vld [vmem:[%s629_s20 + $0x140] sm:$0xff] }
  0x25   : > { %464 = vst [vmem:[%s657_s25 + $0xa0] sm:$0xff] %v400_v37  ;;  %465 = vst [vmem:[%s657_s25 + $0xa8] sm:$0xff] %v401_v38  ;;  %v403_v46 = vmax.f32 %v339_v39, 0.0  ;;  %v274_v49 = vmul.f32 %v624_v0, %v203_v35  ;;  %v340_v50 = vadd.f32 %v634_v1, %v269_v42  ;;  %v341_v51 = vadd.f32 %v634_v1, %v270_v43  ;;  %v217_v35 = vld [vmem:[%s629_s20 + $0x158] sm:$0xff]  ;;  %v218_v36 = vld [vmem:[%s629_s20 + $0x160] sm:$0xff] }
  0x26   : > { %466 = vst [vmem:[%s657_s25 + $0xb0] sm:$0xff] %v402_v41  ;;  %v342_v52 = vadd.f32 %v634_v1, %v271_v44  ;;  %v275_v53 = vmul.f32 %v624_v0, %v204_v40  ;;  %v343_v54 = vadd.f32 %v634_v1, %v272_v47  ;;  %v344_v55 = vadd.f32 %v634_v1, %v273_v48  ;;  %v219_v37 = vld [vmem:[%s629_s20 + $0x168] sm:$0xff]  ;;  %v220_v42 = vld [vmem:[%s629_s20 + $0x170] sm:$0xff]  ;;  %v221_v47 = vld [vmem:[%s629_s20 + $0x178] sm:$0xff] }
  0x27   : > { %467 = vst [vmem:[%s657_s25 + $0xb8] sm:$0xff] %v403_v46  ;;  %v345_v56 = vadd.f32 %v634_v1, %v274_v49  ;;  %v276_v57 = vmul.f32 %v624_v0, %v205_v45  ;;  %v404_v61 = vmax.f32 %v340_v50, 0.0  ;;  %v405_v62 = vmax.f32 %v341_v51, 0.0 }
  0x28   : > { %v406_v63 = vmax.f32 %v342_v52, 0.0  ;;  %v346_v2 = vadd.f32 %v634_v1, %v275_v53  ;;  %v407_v6 = vmax.f32 %v343_v54, 0.0  ;;  %v408_v7 = vmax.f32 %v344_v55, 0.0 }
  0x29   : > { %v409_v8 = vmax.f32 %v345_v56, 0.0  ;;  %v347_v9 = vadd.f32 %v634_v1, %v276_v57  ;;  %468 = vst [vmem:[%s657_s25 + $0xc0] sm:$0xff] %v404_v61  ;;  %469 = vst [vmem:[%s657_s25 + $0xc8] sm:$0xff] %v405_v62  ;;  %v277_v12 = vmul.f32 %v624_v0, %v206_v58  ;;  %v278_v13 = vmul.f32 %v624_v0, %v207_v59  ;;  %v223_v61 = vld [vmem:[%s629_s20 + $0x188] sm:$0xff]  ;;  %v224_v62 = vld [vmem:[%s629_s20 + $0x190] sm:$0xff] }
  0x2a   : > { %470 = vst [vmem:[%s657_s25 + $0xd0] sm:$0xff] %v406_v63  ;;  %v410_v11 = vmax.f32 %v346_v2, 0.0  ;;  %v279_v14 = vmul.f32 %v624_v0, %v208_v60  ;;  %471 = vst [vmem:[%s657_s25 + $0xd8] sm:$0xff] %v407_v6  ;;  %v280_v17 = vmul.f32 %v624_v0, %v209_v3  ;;  %v281_v18 = vmul.f32 %v624_v0, %v210_v4  ;;  %v222_v60 = vld [vmem:[%s629_s20 + $0x180] sm:$0xff] }
  0x2b   : > { %472 = vst [vmem:[%s657_s25 + $0xe0] sm:$0xff] %v408_v7  ;;  %473 = vst [vmem:[%s657_s25 + $0xe8] sm:$0xff] %v409_v8  ;;  %v411_v16 = vmax.f32 %v347_v9, 0.0  ;;  %v282_v19 = vmul.f32 %v624_v0, %v211_v5  ;;  %v348_v20 = vadd.f32 %v634_v1, %v277_v12  ;;  %v349_v21 = vadd.f32 %v634_v1, %v278_v13  ;;  %v225_v5 = vld [vmem:[%s629_s20 + $0x198] sm:$0xff]  ;;  %v226_v6 = vld [vmem:[%s629_s20 + $0x1a0] sm:$0xff] }
  0x2c   : > { %474 = vst [vmem:[%s657_s25 + $0xf0] sm:$0xff] %v410_v11  ;;  %v350_v22 = vadd.f32 %v634_v1, %v279_v14  ;;  %v283_v23 = vmul.f32 %v624_v0, %v212_v10  ;;  %v351_v24 = vadd.f32 %v634_v1, %v280_v17  ;;  %v352_v25 = vadd.f32 %v634_v1, %v281_v18  ;;  %v227_v7 = vld [vmem:[%s629_s20 + $0x1a8] sm:$0xff]  ;;  %v228_v12 = vld [vmem:[%s629_s20 + $0x1b0] sm:$0xff]  ;;  %v229_v17 = vld [vmem:[%s629_s20 + $0x1b8] sm:$0xff] }
  0x2d   : > { %475 = vst [vmem:[%s657_s25 + $0xf8] sm:$0xff] %v411_v16  ;;  %v353_v26 = vadd.f32 %v634_v1, %v282_v19  ;;  %v284_v27 = vmul.f32 %v624_v0, %v213_v15  ;;  %v412_v31 = vmax.f32 %v348_v20, 0.0  ;;  %v413_v32 = vmax.f32 %v349_v21, 0.0 }
  0x2e   : > { %v414_v33 = vmax.f32 %v350_v22, 0.0  ;;  %v354_v34 = vadd.f32 %v634_v1, %v283_v23  ;;  %v415_v38 = vmax.f32 %v351_v24, 0.0  ;;  %v416_v39 = vmax.f32 %v352_v25, 0.0 }
  0x2f   : > { %v417_v40 = vmax.f32 %v353_v26, 0.0  ;;  %v355_v41 = vadd.f32 %v634_v1, %v284_v27  ;;  %476 = vst [vmem:[%s657_s25 + $0x100] sm:$0xff] %v412_v31  ;;  %477 = vst [vmem:[%s657_s25 + $0x108] sm:$0xff] %v413_v32  ;;  %v285_v44 = vmul.f32 %v624_v0, %v214_v28  ;;  %v286_v45 = vmul.f32 %v624_v0, %v215_v29  ;;  %v231_v31 = vld [vmem:[%s629_s20 + $0x1c8] sm:$0xff]  ;;  %v232_v32 = vld [vmem:[%s629_s20 + $0x1d0] sm:$0xff] }
  0x30   : > { %478 = vst [vmem:[%s657_s25 + $0x110] sm:$0xff] %v414_v33  ;;  %v418_v43 = vmax.f32 %v354_v34, 0.0  ;;  %v287_v46 = vmul.f32 %v624_v0, %v216_v30  ;;  %479 = vst [vmem:[%s657_s25 + $0x118] sm:$0xff] %v415_v38  ;;  %v288_v49 = vmul.f32 %v624_v0, %v217_v35  ;;  %v289_v50 = vmul.f32 %v624_v0, %v218_v36  ;;  %v230_v30 = vld [vmem:[%s629_s20 + $0x1c0] sm:$0xff] }
  0x31   : > { %480 = vst [vmem:[%s657_s25 + $0x120] sm:$0xff] %v416_v39  ;;  %481 = vst [vmem:[%s657_s25 + $0x128] sm:$0xff] %v417_v40  ;;  %v419_v48 = vmax.f32 %v355_v41, 0.0  ;;  %v290_v51 = vmul.f32 %v624_v0, %v219_v37  ;;  %v356_v52 = vadd.f32 %v634_v1, %v285_v44  ;;  %v357_v53 = vadd.f32 %v634_v1, %v286_v45  ;;  %v233_v37 = vld [vmem:[%s629_s20 + $0x1d8] sm:$0xff]  ;;  %v234_v38 = vld [vmem:[%s629_s20 + $0x1e0] sm:$0xff] }
  0x32   : > { %482 = vst [vmem:[%s657_s25 + $0x130] sm:$0xff] %v418_v43  ;;  %v358_v54 = vadd.f32 %v634_v1, %v287_v46  ;;  %v291_v55 = vmul.f32 %v624_v0, %v220_v42  ;;  %v359_v56 = vadd.f32 %v634_v1, %v288_v49  ;;  %v360_v57 = vadd.f32 %v634_v1, %v289_v50  ;;  %v235_v39 = vld [vmem:[%s629_s20 + $0x1e8] sm:$0xff]  ;;  %v236_v44 = vld [vmem:[%s629_s20 + $0x1f0] sm:$0xff]  ;;  %v237_v49 = vld [vmem:[%s629_s20 + $0x1f8] sm:$0xff] }
  0x33   : > { %483 = vst [vmem:[%s657_s25 + $0x138] sm:$0xff] %v419_v48  ;;  %v361_v58 = vadd.f32 %v634_v1, %v290_v51  ;;  %v292_v59 = vmul.f32 %v624_v0, %v221_v47  ;;  %v420_v63 = vmax.f32 %v356_v52, 0.0  ;;  %v421_v2 = vmax.f32 %v357_v53, 0.0 }
  0x34   : > { %v422_v3 = vmax.f32 %v358_v54, 0.0  ;;  %v362_v4 = vadd.f32 %v634_v1, %v291_v55  ;;  %v423_v8 = vmax.f32 %v359_v56, 0.0  ;;  %v424_v9 = vmax.f32 %v360_v57, 0.0 }
  0x35   : > { %v425_v10 = vmax.f32 %v361_v58, 0.0  ;;  %v363_v11 = vadd.f32 %v634_v1, %v292_v59  ;;  %484 = vst [vmem:[%s657_s25 + $0x140] sm:$0xff] %v420_v63  ;;  %485 = vst [vmem:[%s657_s25 + $0x148] sm:$0xff] %v421_v2  ;;  %v293_v14 = vmul.f32 %v624_v0, %v222_v60  ;;  %v294_v15 = vmul.f32 %v624_v0, %v223_v61 }
  0x36   : > { %486 = vst [vmem:[%s657_s25 + $0x150] sm:$0xff] %v422_v3  ;;  %v426_v13 = vmax.f32 %v362_v4, 0.0  ;;  %v295_v16 = vmul.f32 %v624_v0, %v224_v62  ;;  %487 = vst [vmem:[%s657_s25 + $0x158] sm:$0xff] %v423_v8  ;;  %v296_v19 = vmul.f32 %v624_v0, %v225_v5  ;;  %v297_v20 = vmul.f32 %v624_v0, %v226_v6 }
  0x37   : > { %488 = vst [vmem:[%s657_s25 + $0x160] sm:$0xff] %v424_v9  ;;  %489 = vst [vmem:[%s657_s25 + $0x168] sm:$0xff] %v425_v10  ;;  %v427_v18 = vmax.f32 %v363_v11, 0.0  ;;  %v298_v21 = vmul.f32 %v624_v0, %v227_v7  ;;  %v364_v22 = vadd.f32 %v634_v1, %v293_v14  ;;  %v365_v23 = vadd.f32 %v634_v1, %v294_v15 }
  0x38   : > { %490 = vst [vmem:[%s657_s25 + $0x170] sm:$0xff] %v426_v13  ;;  %v366_v24 = vadd.f32 %v634_v1, %v295_v16  ;;  %v299_v25 = vmul.f32 %v624_v0, %v228_v12  ;;  %v367_v26 = vadd.f32 %v634_v1, %v296_v19  ;;  %v368_v27 = vadd.f32 %v634_v1, %v297_v20 }
  0x39   : > { %491 = vst [vmem:[%s657_s25 + $0x178] sm:$0xff] %v427_v18  ;;  %v369_v28 = vadd.f32 %v634_v1, %v298_v21  ;;  %v300_v29 = vmul.f32 %v624_v0, %v229_v17  ;;  %v428_v33 = vmax.f32 %v364_v22, 0.0  ;;  %v429_v34 = vmax.f32 %v365_v23, 0.0 }
  0x3a   : > { %v430_v35 = vmax.f32 %v366_v24, 0.0  ;;  %v370_v36 = vadd.f32 %v634_v1, %v299_v25  ;;  %v431_v40 = vmax.f32 %v367_v26, 0.0  ;;  %v432_v41 = vmax.f32 %v368_v27, 0.0 }
  0x3b   : > { %v433_v42 = vmax.f32 %v369_v28, 0.0  ;;  %v371_v43 = vadd.f32 %v634_v1, %v300_v29  ;;  %492 = vst [vmem:[%s657_s25 + $0x180] sm:$0xff] %v428_v33  ;;  %493 = vst [vmem:[%s657_s25 + $0x188] sm:$0xff] %v429_v34  ;;  %v301_v46 = vmul.f32 %v624_v0, %v230_v30  ;;  %v302_v47 = vmul.f32 %v624_v0, %v231_v31 }
  0x3c   : > { %494 = vst [vmem:[%s657_s25 + $0x190] sm:$0xff] %v430_v35  ;;  %v434_v45 = vmax.f32 %v370_v36, 0.0  ;;  %v303_v48 = vmul.f32 %v624_v0, %v232_v32  ;;  %495 = vst [vmem:[%s657_s25 + $0x198] sm:$0xff] %v431_v40  ;;  %v304_v51 = vmul.f32 %v624_v0, %v233_v37  ;;  %v305_v52 = vmul.f32 %v624_v0, %v234_v38 }
  0x3d   : > { %496 = vst [vmem:[%s657_s25 + $0x1a0] sm:$0xff] %v432_v41  ;;  %497 = vst [vmem:[%s657_s25 + $0x1a8] sm:$0xff] %v433_v42  ;;  %v435_v50 = vmax.f32 %v371_v43, 0.0  ;;  %v306_v53 = vmul.f32 %v624_v0, %v235_v39  ;;  %v372_v54 = vadd.f32 %v634_v1, %v301_v46  ;;  %v373_v55 = vadd.f32 %v634_v1, %v302_v47 }
  0x3e   : > { %498 = vst [vmem:[%s657_s25 + $0x1b0] sm:$0xff] %v434_v45  ;;  %v374_v56 = vadd.f32 %v634_v1, %v303_v48  ;;  %v307_v57 = vmul.f32 %v624_v0, %v236_v44  ;;  %v375_v58 = vadd.f32 %v634_v1, %v304_v51  ;;  %v376_v59 = vadd.f32 %v634_v1, %v305_v52 }
  0x3f   : > { %499 = vst [vmem:[%s657_s25 + $0x1b8] sm:$0xff] %v435_v50  ;;  %v377_v60 = vadd.f32 %v634_v1, %v306_v53  ;;  %v308_v61 = vmul.f32 %v624_v0, %v237_v49  ;;  %v436_v62 = vmax.f32 %v372_v54, 0.0  ;;  %v437_v63 = vmax.f32 %v373_v55, 0.0 }
  0x40   : > { %v438_v2 = vmax.f32 %v374_v56, 0.0  ;;  %v378_v3 = vadd.f32 %v634_v1, %v307_v57  ;;  %v439_v4 = vmax.f32 %v375_v58, 0.0  ;;  %v440_v5 = vmax.f32 %v376_v59, 0.0 }
  0x41   : > { %v441_v6 = vmax.f32 %v377_v60, 0.0  ;;  %v379_v7 = vadd.f32 %v634_v1, %v308_v61  ;;  %500 = vst [vmem:[%s657_s25 + $0x1c0] sm:$0xff] %v436_v62  ;;  %501 = vst [vmem:[%s657_s25 + $0x1c8] sm:$0xff] %v437_v63 }
  0x42   : > { %502 = vst [vmem:[%s657_s25 + $0x1d0] sm:$0xff] %v438_v2  ;;  %v442_v8 = vmax.f32 %v378_v3, 0.0  ;;  %503 = vst [vmem:[%s657_s25 + $0x1d8] sm:$0xff] %v439_v4 }
  0x43   : > { %504 = vst [vmem:[%s657_s25 + $0x1e0] sm:$0xff] %v440_v5  ;;  %505 = vst [vmem:[%s657_s25 + $0x1e8] sm:$0xff] %v441_v6  ;;  %v443_v0 = vmax.f32 %v379_v7, 0.0 }
  0x44   : > { %506 = vst [vmem:[%s657_s25 + $0x1f0] sm:$0xff] %v442_v8 }
  0x45   : > { %507 = vst [vmem:[%s657_s25 + $0x1f8] sm:$0xff] %v443_v0 }
  0x46 PF: > { %s13_s12 = sadd.s32 1, %s591_s12  }
  0x47   : > { %p10_p4 = scmp.ge.s32.totalorder %s13_s12, 4  }
  0x49   :  { %12 = sbr.rel (!%p10_p4) target bundleno = 1 (0x1), region = 62 }

// kernel: resblock_forward.19
= control target key start
LH: loop header
LB: loop body
LE: loop exit
PB: predicated region body
PF: predicated region fallthrough
CT: control target
= control target key end

     0   :  { %s818_s0 = inlined_call_operand.vmem [shape: f32[256,128], index: 0, kind: input, shape index: {}]   ;;  %s819_s1 = inlined_call_operand.vmem [shape: f32[1,128], index: 1, kind: input, shape index: {}]   ;;  %s820_s2 = inlined_call_operand.vmem [shape: f32[1,128], index: 2, kind: input, shape index: {}]   ;;  %s821_s3 = inlined_call_operand.vmem [shape: f32[256,128], index: 3, kind: input, shape index: {}]   ;;  %s822_s4 = inlined_call_operand.vmem [shape: f32[1,128], index: 4, kind: input, shape index: {}]   ;;  %s823_s5 = inlined_call_operand.vmem [shape: f32[1,128], index: 5, kind: input, shape index: {}]   ;;  %s824_s6 = inlined_call_operand.vmem [shape: f32[256,128], index: 6, kind: output, shape index: {}]  }
   0x1   :  { %v23_v0 = vld [vmem:[%s818_s0] sm:$0xff]  ;;  %v24_v8 = vld [vmem:[%s818_s0 + $0x8] sm:$0xff]  ;;  %v25_v10 = vld [vmem:[%s818_s0 + $0x10] sm:$0xff] }
   0x2   :  { %v388_v1 = vld [vmem:[%s819_s1] ss:$0 sm:$0xff]  ;;  %v134_v9 = vld [vmem:[%s821_s3 + $0x8] sm:$0xff]  ;;  %v135_v15 = vld [vmem:[%s821_s3 + $0x10] sm:$0xff] }
   0x3   :  { %v393_v2 = vld [vmem:[%s820_s2] ss:$0 sm:$0xff]  ;;  %v62_v3 = vmul.f32 %v388_v1, %v23_v0  ;;  %v63_v12 = vmul.f32 %v388_v1, %v24_v8  ;;  %v64_v14 = vmul.f32 %v388_v1, %v25_v10  ;;  %v26_v16 = vld [vmem:[%s818_s0 + $0x18] sm:$0xff]  ;;  %v28_v24 = vld [vmem:[%s818_s0 + $0x28] sm:$0xff] }
   0x4   :  { %v133_v4 = vld [vmem:[%s821_s3] sm:$0xff]  ;;  %v136_v17 = vld [vmem:[%s821_s3 + $0x18] sm:$0xff]  ;;  %v65_v20 = vmul.f32 %v388_v1, %v26_v16  ;;  %v138_v29 = vld [vmem:[%s821_s3 + $0x28] sm:$0xff]  ;;  %v67_v38 = vmul.f32 %v388_v1, %v28_v24 }
   0x5   :  { %v402_v5 = vld [vmem:[%s822_s4] ss:$0 sm:$0xff]  ;;  %v101_v11 = vadd.f32 %v393_v2, %v62_v3  ;;  %v102_v25 = vadd.f32 %v393_v2, %v63_v12  ;;  %v103_v27 = vadd.f32 %v393_v2, %v64_v14  ;;  %v29_v34 = vld [vmem:[%s818_s0 + $0x30] sm:$0xff]  ;;  %v30_v44 = vld [vmem:[%s818_s0 + $0x38] sm:$0xff] }
   0x6   :  { %v407_v6 = vld [vmem:[%s823_s5] ss:$0 sm:$0xff]  ;;  %v172_v7 = vmul.f32 %v402_v5, %v133_v4  ;;  %v173_v13 = vmul.f32 %v402_v5, %v134_v9  ;;  %v174_v19 = vmul.f32 %v402_v5, %v135_v15  ;;  %v175_v21 = vmul.f32 %v402_v5, %v136_v17  ;;  %v139_v39 = vld [vmem:[%s821_s3 + $0x30] sm:$0xff]  ;;  %v140_v45 = vld [vmem:[%s821_s3 + $0x38] sm:$0xff] }
   0x7   :  { %v27_v22 = vld [vmem:[%s818_s0 + $0x20] sm:$0xff]  ;;  %v104_v32 = vadd.f32 %v393_v2, %v65_v20  ;;  %v177_v43 = vmul.f32 %v402_v5, %v138_v29  ;;  %v106_v48 = vadd.f32 %v393_v2, %v67_v38  ;;  %v68_v49 = vmul.f32 %v388_v1, %v29_v34  ;;  %v32_v56 = vld [vmem:[%s818_s0 + $0x48] sm:$0xff]  ;;  %v33_v4 = vld [vmem:[%s818_s0 + $0x50] sm:$0xff] }
   0x8   :  { %v211_v18 = vadd.f32 %v407_v6, %v172_v7  ;;  %v137_v23 = vld [vmem:[%s821_s3 + $0x20] sm:$0xff]  ;;  %v212_v26 = vadd.f32 %v407_v6, %v173_v13  ;;  %v66_v28 = vmul.f32 %v388_v1, %v27_v22  ;;  %v213_v31 = vadd.f32 %v407_v6, %v174_v19  ;;  %v142_v3 = vld [vmem:[%s821_s3 + $0x48] sm:$0xff]  ;;  %v34_v12 = vld [vmem:[%s818_s0 + $0x58] sm:$0xff] }
   0x9   :  { %v214_v33 = vadd.f32 %v407_v6, %v175_v21  ;;  %v176_v37 = vmul.f32 %v402_v5, %v137_v23  ;;  %v31_v50 = vld [vmem:[%s818_s0 + $0x40] sm:$0xff]  ;;  %v216_v54 = vadd.f32 %v407_v6, %v177_v43  ;;  %v178_v55 = vmul.f32 %v402_v5, %v139_v39  ;;  %v144_v17 = vld [vmem:[%s821_s3 + $0x58] sm:$0xff]  ;;  %v37_v34 = vld [vmem:[%s818_s0 + $0x70] sm:$0xff] }
   0xa   :  { %v243_v30 = vadd.f32 %v211_v18, %v101_v11  ;;  %v244_v35 = vadd.f32 %v212_v26, %v102_v25  ;;  %v105_v36 = vadd.f32 %v393_v2, %v66_v28  ;;  %v245_v41 = vadd.f32 %v213_v31, %v103_v27  ;;  %v141_v51 = vld [vmem:[%s821_s3 + $0x40] sm:$0xff]  ;;  %v143_v11 = vld [vmem:[%s821_s3 + $0x50] sm:$0xff]  ;;  %v36_v28 = vld [vmem:[%s818_s0 + $0x68] sm:$0xff] }
   0xb   :  { %v246_v42 = vadd.f32 %v214_v33, %v104_v32  ;;  %v215_v47 = vadd.f32 %v407_v6, %v176_v37  ;;  %v107_v58 = vadd.f32 %v393_v2, %v68_v49  ;;  %v69_v59 = vmul.f32 %v388_v1, %v30_v44  ;;  %v35_v22 = vld [vmem:[%s818_s0 + $0x60] sm:$0xff]  ;;  %v146_v33 = vld [vmem:[%s821_s3 + $0x68] sm:$0xff]  ;;  %v147_v43 = vld [vmem:[%s821_s3 + $0x70] sm:$0xff] }
   0xc   :  { %v275_v40 = vmax.f32 %v243_v30, 0.0  ;;  %v276_v46 = vmax.f32 %v244_v35, 0.0  ;;  %v277_v52 = vmax.f32 %v245_v41, 0.0  ;;  %v179_v60 = vmul.f32 %v402_v5, %v140_v45  ;;  %v145_v27 = vld [vmem:[%s821_s3 + $0x60] sm:$0xff]  ;;  %v148_v49 = vld [vmem:[%s821_s3 + $0x78] sm:$0xff] }
   0xd   :  { %v278_v53 = vmax.f32 %v246_v42, 0.0  ;;  %v247_v57 = vadd.f32 %v215_v47, %v105_v36  ;;  %v248_v61 = vadd.f32 %v216_v54, %v106_v48  ;;  %v217_v62 = vadd.f32 %v407_v6, %v178_v55  ;;  %v38_v48 = vld [vmem:[%s818_s0 + $0x78] sm:$0xff]  ;;  %v39_v54 = vld [vmem:[%s818_s0 + $0x80] sm:$0xff] }
   0xe   :  { %307 = vst [vmem:[%s824_s6] sm:$0xff] %v275_v40  ;;  %308 = vst [vmem:[%s824_s6 + $0x8] sm:$0xff] %v276_v46  ;;  %v70_v63 = vmul.f32 %v388_v1, %v31_v50  ;;  %v180_v0 = vmul.f32 %v402_v5, %v141_v51  ;;  %v108_v8 = vadd.f32 %v393_v2, %v69_v59  ;;  %v149_v55 = vld [vmem:[%s821_s3 + $0x80] sm:$0xff] }
   0xf   :  { %309 = vst [vmem:[%s824_s6 + $0x10] sm:$0xff] %v277_v52  ;;  %310 = vst [vmem:[%s824_s6 + $0x18] sm:$0xff] %v278_v53  ;;  %v279_v7 = vmax.f32 %v247_v57, 0.0  ;;  %v218_v9 = vadd.f32 %v407_v6, %v179_v60  ;;  %v71_v10 = vmul.f32 %v388_v1, %v32_v56  ;;  %v280_v13 = vmax.f32 %v248_v61, 0.0  ;;  %v40_v60 = vld [vmem:[%s818_s0 + $0x88] sm:$0xff] }
  0x10   :  { %v249_v14 = vadd.f32 %v217_v62, %v107_v58  ;;  %v109_v15 = vadd.f32 %v393_v2, %v70_v63  ;;  %v219_v16 = vadd.f32 %v407_v6, %v180_v0  ;;  %v181_v20 = vmul.f32 %v402_v5, %v142_v3 }
  0x11   :  { %311 = vst [vmem:[%s824_s6 + $0x20] sm:$0xff] %v279_v7  ;;  %v250_v18 = vadd.f32 %v218_v9, %v108_v8  ;;  %v110_v19 = vadd.f32 %v393_v2, %v71_v10  ;;  %v72_v21 = vmul.f32 %v388_v1, %v33_v4  ;;  %312 = vst [vmem:[%s824_s6 + $0x28] sm:$0xff] %v280_v13  ;;  %v150_v9 = vld [vmem:[%s821_s3 + $0x88] sm:$0xff]  ;;  %v41_v10 = vld [vmem:[%s818_s0 + $0x90] sm:$0xff] }
  0x12   :  { %v281_v23 = vmax.f32 %v249_v14, 0.0  ;;  %v251_v24 = vadd.f32 %v219_v16, %v109_v15  ;;  %v182_v25 = vmul.f32 %v402_v5, %v143_v11  ;;  %v73_v26 = vmul.f32 %v388_v1, %v34_v12  ;;  %v151_v15 = vld [vmem:[%s821_s3 + $0x90] sm:$0xff]  ;;  %v42_v16 = vld [vmem:[%s818_s0 + $0x98] sm:$0xff] }
  0x13   :  { %v282_v29 = vmax.f32 %v250_v18, 0.0  ;;  %v220_v30 = vadd.f32 %v407_v6, %v181_v20  ;;  %v111_v31 = vadd.f32 %v393_v2, %v72_v21  ;;  %v183_v32 = vmul.f32 %v402_v5, %v144_v17  ;;  %v152_v21 = vld [vmem:[%s821_s3 + $0x98] sm:$0xff] }
  0x14   :  { %313 = vst [vmem:[%s824_s6 + $0x30] sm:$0xff] %v281_v23  ;;  %v283_v35 = vmax.f32 %v251_v24, 0.0  ;;  %v221_v36 = vadd.f32 %v407_v6, %v182_v25  ;;  %v112_v37 = vadd.f32 %v393_v2, %v73_v26  ;;  %v74_v38 = vmul.f32 %v388_v1, %v35_v22  ;;  %v43_v26 = vld [vmem:[%s818_s0 + $0xa0] sm:$0xff] }
  0x15   :  { %314 = vst [vmem:[%s824_s6 + $0x38] sm:$0xff] %v282_v29  ;;  %v252_v39 = vadd.f32 %v220_v30, %v110_v19  ;;  %v222_v40 = vadd.f32 %v407_v6, %v183_v32  ;;  %v184_v41 = vmul.f32 %v402_v5, %v145_v27  ;;  %v75_v42 = vmul.f32 %v388_v1, %v36_v28  ;;  %v44_v32 = vld [vmem:[%s818_s0 + $0xa8] sm:$0xff] }
  0x16   :  { %315 = vst [vmem:[%s824_s6 + $0x40] sm:$0xff] %v283_v35  ;;  %v253_v44 = vadd.f32 %v221_v36, %v111_v31  ;;  %v113_v45 = vadd.f32 %v393_v2, %v74_v38  ;;  %v185_v46 = vmul.f32 %v402_v5, %v146_v33  ;;  %v76_v47 = vmul.f32 %v388_v1, %v37_v34  ;;  %v153_v31 = vld [vmem:[%s821_s3 + $0xa0] sm:$0xff]  ;;  %v45_v38 = vld [vmem:[%s818_s0 + $0xb0] sm:$0xff] }
  0x17   :  { %v284_v50 = vmax.f32 %v252_v39, 0.0  ;;  %v254_v51 = vadd.f32 %v222_v40, %v112_v37  ;;  %v223_v52 = vadd.f32 %v407_v6, %v184_v41  ;;  %v114_v53 = vadd.f32 %v393_v2, %v75_v42  ;;  %v154_v37 = vld [vmem:[%s821_s3 + $0xa8] sm:$0xff] }
  0x18   :  { %v285_v56 = vmax.f32 %v253_v44, 0.0  ;;  %v224_v57 = vadd.f32 %v407_v6, %v185_v46  ;;  %v115_v58 = vadd.f32 %v393_v2, %v76_v47  ;;  %v186_v59 = vmul.f32 %v402_v5, %v147_v43  ;;  %v155_v47 = vld [vmem:[%s821_s3 + $0xb0] sm:$0xff] }
  0x19   :  { %316 = vst [vmem:[%s824_s6 + $0x48] sm:$0xff] %v284_v50  ;;  %v286_v61 = vmax.f32 %v254_v51, 0.0  ;;  %v255_v62 = vadd.f32 %v223_v52, %v113_v45  ;;  %v77_v63 = vmul.f32 %v388_v1, %v38_v48  ;;  %v187_v0 = vmul.f32 %v402_v5, %v148_v49  ;;  %v46_v52 = vld [vmem:[%s818_s0 + $0xb8] sm:$0xff] }
  0x1a   :  { %317 = vst [vmem:[%s824_s6 + $0x50] sm:$0xff] %v285_v56  ;;  %v256_v3 = vadd.f32 %v224_v57, %v114_v53  ;;  %v225_v4 = vadd.f32 %v407_v6, %v186_v59  ;;  %v78_v7 = vmul.f32 %v388_v1, %v39_v54  ;;  %v188_v8 = vmul.f32 %v402_v5, %v149_v55  ;;  %v156_v53 = vld [vmem:[%s821_s3 + $0xb8] sm:$0xff]  ;;  %v157_v59 = vld [vmem:[%s821_s3 + $0xc0] sm:$0xff] }
  0x1b   :  { %318 = vst [vmem:[%s824_s6 + $0x58] sm:$0xff] %v286_v61  ;;  %v287_v11 = vmax.f32 %v255_v62, 0.0  ;;  %v116_v12 = vadd.f32 %v393_v2, %v77_v63  ;;  %v226_v13 = vadd.f32 %v407_v6, %v187_v0  ;;  %v79_v14 = vmul.f32 %v388_v1, %v40_v60  ;;  %v48_v0 = vld [vmem:[%s818_s0 + $0xc8] sm:$0xff] }
  0x1c   :  { %v288_v17 = vmax.f32 %v256_v3, 0.0  ;;  %v257_v18 = vadd.f32 %v225_v4, %v115_v58  ;;  %v117_v19 = vadd.f32 %v393_v2, %v78_v7  ;;  %v227_v20 = vadd.f32 %v407_v6, %v188_v8  ;;  %v47_v58 = vld [vmem:[%s818_s0 + $0xc0] sm:$0xff] }
  0x1d   :  { %319 = vst [vmem:[%s824_s6 + $0x60] sm:$0xff] %v287_v11  ;;  %v258_v22 = vadd.f32 %v226_v13, %v116_v12  ;;  %v118_v23 = vadd.f32 %v393_v2, %v79_v14  ;;  %v189_v24 = vmul.f32 %v402_v5, %v150_v9  ;;  %v80_v25 = vmul.f32 %v388_v1, %v41_v10  ;;  %v158_v13 = vld [vmem:[%s821_s3 + $0xc8] sm:$0xff]  ;;  %v49_v14 = vld [vmem:[%s818_s0 + $0xd0] sm:$0xff] }
  0x1e   :  { %320 = vst [vmem:[%s824_s6 + $0x68] sm:$0xff] %v288_v17  ;;  %v289_v27 = vmax.f32 %v257_v18, 0.0  ;;  %v259_v28 = vadd.f32 %v227_v20, %v117_v19  ;;  %v190_v29 = vmul.f32 %v402_v5, %v151_v15  ;;  %v81_v30 = vmul.f32 %v388_v1, %v42_v16  ;;  %v159_v19 = vld [vmem:[%s821_s3 + $0xd0] sm:$0xff]  ;;  %v50_v20 = vld [vmem:[%s818_s0 + $0xd8] sm:$0xff] }
  0x1f   :  { %v290_v33 = vmax.f32 %v258_v22, 0.0  ;;  %v228_v34 = vadd.f32 %v407_v6, %v189_v24  ;;  %v119_v35 = vadd.f32 %v393_v2, %v80_v25  ;;  %v191_v36 = vmul.f32 %v402_v5, %v152_v21  ;;  %v160_v25 = vld [vmem:[%s821_s3 + $0xd8] sm:$0xff] }
  0x20   :  { %321 = vst [vmem:[%s824_s6 + $0x70] sm:$0xff] %v289_v27  ;;  %v291_v39 = vmax.f32 %v259_v28, 0.0  ;;  %v229_v40 = vadd.f32 %v407_v6, %v190_v29  ;;  %v120_v41 = vadd.f32 %v393_v2, %v81_v30  ;;  %v82_v42 = vmul.f32 %v388_v1, %v43_v26  ;;  %v51_v30 = vld [vmem:[%s818_s0 + $0xe0] sm:$0xff] }
  0x21   :  { %322 = vst [vmem:[%s824_s6 + $0x78] sm:$0xff] %v290_v33  ;;  %v260_v43 = vadd.f32 %v228_v34, %v118_v23  ;;  %v230_v44 = vadd.f32 %v407_v6, %v191_v36  ;;  %v192_v45 = vmul.f32 %v402_v5, %v153_v31  ;;  %v83_v46 = vmul.f32 %v388_v1, %v44_v32  ;;  %v52_v36 = vld [vmem:[%s818_s0 + $0xe8] sm:$0xff] }
  0x22   :  { %323 = vst [vmem:[%s824_s6 + $0x80] sm:$0xff] %v291_v39  ;;  %v261_v48 = vadd.f32 %v229_v40, %v119_v35  ;;  %v121_v49 = vadd.f32 %v393_v2, %v82_v42  ;;  %v193_v50 = vmul.f32 %v402_v5, %v154_v37  ;;  %v84_v51 = vmul.f32 %v388_v1, %v45_v38  ;;  %v161_v35 = vld [vmem:[%s821_s3 + $0xe0] sm:$0xff]  ;;  %v53_v42 = vld [vmem:[%s818_s0 + $0xf0] sm:$0xff] }
  0x23   :  { %v292_v54 = vmax.f32 %v260_v43, 0.0  ;;  %v262_v55 = vadd.f32 %v230_v44, %v120_v41  ;;  %v231_v56 = vadd.f32 %v407_v6, %v192_v45  ;;  %v122_v57 = vadd.f32 %v393_v2, %v83_v46  ;;  %v162_v41 = vld [vmem:[%s821_s3 + $0xe8] sm:$0xff] }
  0x24   :  { %v293_v60 = vmax.f32 %v261_v48, 0.0  ;;  %v232_v61 = vadd.f32 %v407_v6, %v193_v50  ;;  %v123_v62 = vadd.f32 %v393_v2, %v84_v51  ;;  %v194_v63 = vmul.f32 %v402_v5, %v155_v47  ;;  %v163_v51 = vld [vmem:[%s821_s3 + $0xf0] sm:$0xff] }
  0x25   :  { %324 = vst [vmem:[%s824_s6 + $0x88] sm:$0xff] %v292_v54  ;;  %v294_v3 = vmax.f32 %v262_v55, 0.0  ;;  %v263_v4 = vadd.f32 %v231_v56, %v121_v49  ;;  %v85_v7 = vmul.f32 %v388_v1, %v46_v52  ;;  %v195_v8 = vmul.f32 %v402_v5, %v156_v53  ;;  %v54_v56 = vld [vmem:[%s818_s0 + $0xf8] sm:$0xff] }
  0x26   :  { %325 = vst [vmem:[%s824_s6 + $0x90] sm:$0xff] %v293_v60  ;;  %v264_v9 = vadd.f32 %v232_v61, %v122_v57  ;;  %v233_v10 = vadd.f32 %v407_v6, %v194_v63  ;;  %v86_v11 = vmul.f32 %v388_v1, %v47_v58  ;;  %v196_v12 = vmul.f32 %v402_v5, %v157_v59  ;;  %v164_v57 = vld [vmem:[%s821_s3 + $0xf8] sm:$0xff] }
  0x27   :  { %326 = vst [vmem:[%s824_s6 + $0x98] sm:$0xff] %v294_v3  ;;  %v295_v15 = vmax.f32 %v263_v4, 0.0  ;;  %v124_v16 = vadd.f32 %v393_v2, %v85_v7  ;;  %v234_v17 = vadd.f32 %v407_v6, %v195_v8  ;;  %v87_v18 = vmul.f32 %v388_v1, %v48_v0 }
  0x28   :  { %v296_v21 = vmax.f32 %v264_v9, 0.0  ;;  %v265_v22 = vadd.f32 %v233_v10, %v123_v62  ;;  %v125_v23 = vadd.f32 %v393_v2, %v86_v11  ;;  %v235_v24 = vadd.f32 %v407_v6, %v196_v12 }
  0x29   :  { %327 = vst [vmem:[%s824_s6 + $0xa0] sm:$0xff] %v295_v15  ;;  %v266_v26 = vadd.f32 %v234_v17, %v124_v16  ;;  %v126_v27 = vadd.f32 %v393_v2, %v87_v18  ;;  %v197_v28 = vmul.f32 %v402_v5, %v158_v13  ;;  %v88_v29 = vmul.f32 %v388_v1, %v49_v14 }
  0x2a   :  { %328 = vst [vmem:[%s824_s6 + $0xa8] sm:$0xff] %v296_v21  ;;  %v297_v31 = vmax.f32 %v265_v22, 0.0  ;;  %v267_v32 = vadd.f32 %v235_v24, %v125_v23  ;;  %v198_v33 = vmul.f32 %v402_v5, %v159_v19  ;;  %v89_v34 = vmul.f32 %v388_v1, %v50_v20 }
  0x2b   :  { %v298_v37 = vmax.f32 %v266_v26, 0.0  ;;  %v236_v38 = vadd.f32 %v407_v6, %v197_v28  ;;  %v127_v39 = vadd.f32 %v393_v2, %v88_v29  ;;  %v199_v40 = vmul.f32 %v402_v5, %v160_v25 }
  0x2c   :  { %329 = vst [vmem:[%s824_s6 + $0xb0] sm:$0xff] %v297_v31  ;;  %v299_v43 = vmax.f32 %v267_v32, 0.0  ;;  %v237_v44 = vadd.f32 %v407_v6, %v198_v33  ;;  %v128_v45 = vadd.f32 %v393_v2, %v89_v34  ;;  %v90_v46 = vmul.f32 %v388_v1, %v51_v30 }
  0x2d   :  { %330 = vst [vmem:[%s824_s6 + $0xb8] sm:$0xff] %v298_v37  ;;  %v268_v47 = vadd.f32 %v236_v38, %v126_v27  ;;  %v238_v48 = vadd.f32 %v407_v6, %v199_v40  ;;  %v200_v49 = vmul.f32 %v402_v5, %v161_v35  ;;  %v91_v50 = vmul.f32 %v388_v1, %v52_v36 }
  0x2e   :  { %331 = vst [vmem:[%s824_s6 + $0xc0] sm:$0xff] %v299_v43  ;;  %v269_v52 = vadd.f32 %v237_v44, %v127_v39  ;;  %v129_v53 = vadd.f32 %v393_v2, %v90_v46  ;;  %v201_v54 = vmul.f32 %v402_v5, %v162_v41  ;;  %v92_v55 = vmul.f32 %v388_v1, %v53_v42 }
  0x2f   :  { %v300_v58 = vmax.f32 %v268_v47, 0.0  ;;  %v270_v59 = vadd.f32 %v238_v48, %v128_v45  ;;  %v239_v60 = vadd.f32 %v407_v6, %v200_v49  ;;  %v130_v61 = vadd.f32 %v393_v2, %v91_v50 }
  0x30   :  { %v301_v62 = vmax.f32 %v269_v52, 0.0  ;;  %v240_v63 = vadd.f32 %v407_v6, %v201_v54  ;;  %v131_v0 = vadd.f32 %v393_v2, %v92_v55  ;;  %v202_v3 = vmul.f32 %v402_v5, %v163_v51 }
  0x31   :  { %332 = vst [vmem:[%s824_s6 + $0xc8] sm:$0xff] %v300_v58  ;;  %v302_v4 = vmax.f32 %v270_v59, 0.0  ;;  %v271_v7 = vadd.f32 %v239_v60, %v129_v53  ;;  %v93_v8 = vmul.f32 %v388_v1, %v54_v56  ;;  %v203_v9 = vmul.f32 %v402_v5, %v164_v57 }
  0x32   :  { %333 = vst [vmem:[%s824_s6 + $0xd0] sm:$0xff] %v301_v62  ;;  %v272_v10 = vadd.f32 %v240_v63, %v130_v61  ;;  %v241_v11 = vadd.f32 %v407_v6, %v202_v3 }
  0x33   :  { %334 = vst [vmem:[%s824_s6 + $0xd8] sm:$0xff] %v302_v4  ;;  %v303_v12 = vmax.f32 %v271_v7, 0.0  ;;  %v132_v13 = vadd.f32 %v393_v2, %v93_v8  ;;  %v242_v14 = vadd.f32 %v407_v6, %v203_v9 }
  0x34   :  { %v304_v15 = vmax.f32 %v272_v10, 0.0  ;;  %v273_v1 = vadd.f32 %v241_v11, %v131_v0 }
  0x35   :  { %335 = vst [vmem:[%s824_s6 + $0xe0] sm:$0xff] %v303_v12  ;;  %v274_v5 = vadd.f32 %v242_v14, %v132_v13 }
  0x36   :  { %336 = vst [vmem:[%s824_s6 + $0xe8] sm:$0xff] %v304_v15  ;;  %v305_v16 = vmax.f32 %v273_v1, 0.0 }
  0x37   :  { %v306_v17 = vmax.f32 %v274_v5, 0.0 }
  0x38   :  { %337 = vst [vmem:[%s824_s6 + $0xf0] sm:$0xff] %v305_v16 }
  0x39   :  { %338 = vst [vmem:[%s824_s6 + $0xf8] sm:$0xff] %v306_v17 }

// kernel: resblock_forward.16
= control target key start
LH: loop header
LB: loop body
LE: loop exit
PB: predicated region body
PF: predicated region fallthrough
CT: control target
= control target key end

     0   :  { %s480_s0 = inlined_call_operand.vmem [shape: f32[256,128], index: 0, kind: input, shape index: {}]   ;;  %s481_s1 = inlined_call_operand.vmem [shape: f32[1,128], index: 1, kind: input, shape index: {}]   ;;  %s482_s2 = inlined_call_operand.vmem [shape: f32[1,128], index: 2, kind: input, shape index: {}]   ;;  %s483_s3 = inlined_call_operand.vmem [shape: f32[256,128], index: 3, kind: output, shape index: {}]  }
   0x1   :  { %v14_v0 = vld [vmem:[%s480_s0] sm:$0xff]  ;;  %v15_v4 = vld [vmem:[%s480_s0 + $0x8] sm:$0xff]  ;;  %v16_v5 = vld [vmem:[%s480_s0 + $0x10] sm:$0xff] }
   0x2   :  { %v220_v1 = vld [vmem:[%s481_s1] ss:$0 sm:$0xff]  ;;  %v17_v6 = vld [vmem:[%s480_s0 + $0x18] sm:$0xff]  ;;  %v19_v11 = vld [vmem:[%s480_s0 + $0x28] sm:$0xff] }
   0x3   :  { %v225_v2 = vld [vmem:[%s482_s2] ss:$0 sm:$0xff]  ;;  %v53_v3 = vmul.f32 %v220_v1, %v14_v0  ;;  %v54_v7 = vmul.f32 %v220_v1, %v15_v4  ;;  %v55_v8 = vmul.f32 %v220_v1, %v16_v5  ;;  %v56_v9 = vmul.f32 %v220_v1, %v17_v6  ;;  %v20_v12 = vld [vmem:[%s480_s0 + $0x30] sm:$0xff]  ;;  %v21_v17 = vld [vmem:[%s480_s0 + $0x38] sm:$0xff] }
   0x4   :  { %v18_v10 = vld [vmem:[%s480_s0 + $0x20] sm:$0xff]  ;;  %v58_v15 = vmul.f32 %v220_v1, %v19_v11  ;;  %v59_v16 = vmul.f32 %v220_v1, %v20_v12  ;;  %v60_v21 = vmul.f32 %v220_v1, %v21_v17  ;;  %v23_v27 = vld [vmem:[%s480_s0 + $0x48] sm:$0xff]  ;;  %v24_v28 = vld [vmem:[%s480_s0 + $0x50] sm:$0xff] }
   0x5   :  { %v92_v13 = vadd.f32 %v225_v2, %v53_v3  ;;  %v57_v14 = vmul.f32 %v220_v1, %v18_v10  ;;  %v93_v18 = vadd.f32 %v225_v2, %v54_v7  ;;  %v94_v19 = vadd.f32 %v225_v2, %v55_v8  ;;  %v22_v22 = vld [vmem:[%s480_s0 + $0x40] sm:$0xff]  ;;  %v25_v29 = vld [vmem:[%s480_s0 + $0x58] sm:$0xff]  ;;  %v27_v35 = vld [vmem:[%s480_s0 + $0x68] sm:$0xff] }
   0x6   :  { %v95_v20 = vadd.f32 %v225_v2, %v56_v9  ;;  %v97_v25 = vadd.f32 %v225_v2, %v58_v15  ;;  %v98_v26 = vadd.f32 %v225_v2, %v59_v16  ;;  %v99_v33 = vadd.f32 %v225_v2, %v60_v21  ;;  %v26_v34 = vld [vmem:[%s480_s0 + $0x60] sm:$0xff]  ;;  %v28_v36 = vld [vmem:[%s480_s0 + $0x70] sm:$0xff]  ;;  %v29_v41 = vld [vmem:[%s480_s0 + $0x78] sm:$0xff] }
   0x7   :  { %v124_v23 = vmax.f32 %v92_v13, 0.0  ;;  %v96_v24 = vadd.f32 %v225_v2, %v57_v14  ;;  %v125_v30 = vmax.f32 %v93_v18, 0.0  ;;  %v126_v31 = vmax.f32 %v94_v19, 0.0  ;;  %v30_v54 = vld [vmem:[%s480_s0 + $0x80] sm:$0xff]  ;;  %v31_v59 = vld [vmem:[%s480_s0 + $0x88] sm:$0xff]  ;;  %v32_v60 = vld [vmem:[%s480_s0 + $0x90] sm:$0xff] }
   0x8   :  { %v127_v32 = vmax.f32 %v95_v20, 0.0  ;;  %v129_v38 = vmax.f32 %v97_v25, 0.0  ;;  %v130_v39 = vmax.f32 %v98_v26, 0.0  ;;  %v61_v40 = vmul.f32 %v220_v1, %v22_v22  ;;  %v33_v61 = vld [vmem:[%s480_s0 + $0x98] sm:$0xff]  ;;  %v34_v4 = vld [vmem:[%s480_s0 + $0xa0] sm:$0xff]  ;;  %v35_v5 = vld [vmem:[%s480_s0 + $0xa8] sm:$0xff] }
   0x9   :  { %156 = vst [vmem:[%s483_s3] sm:$0xff] %v124_v23  ;;  %v128_v37 = vmax.f32 %v96_v24, 0.0  ;;  %157 = vst [vmem:[%s483_s3 + $0x8] sm:$0xff] %v125_v30  ;;  %v131_v42 = vmax.f32 %v99_v33, 0.0  ;;  %v62_v43 = vmul.f32 %v220_v1, %v23_v27  ;;  %v63_v44 = vmul.f32 %v220_v1, %v24_v28  ;;  %v36_v6 = vld [vmem:[%s480_s0 + $0xb0] sm:$0xff]  ;;  %v37_v11 = vld [vmem:[%s480_s0 + $0xb8] sm:$0xff] }
   0xa   :  { %158 = vst [vmem:[%s483_s3 + $0x10] sm:$0xff] %v126_v31  ;;  %159 = vst [vmem:[%s483_s3 + $0x18] sm:$0xff] %v127_v32  ;;  %v64_v45 = vmul.f32 %v220_v1, %v25_v29  ;;  %v100_v46 = vadd.f32 %v225_v2, %v61_v40  ;;  %v65_v47 = vmul.f32 %v220_v1, %v26_v34  ;;  %v38_v24 = vld [vmem:[%s480_s0 + $0xc0] sm:$0xff]  ;;  %v39_v29 = vld [vmem:[%s480_s0 + $0xc8] sm:$0xff] }
   0xb   :  { %160 = vst [vmem:[%s483_s3 + $0x20] sm:$0xff] %v128_v37  ;;  %161 = vst [vmem:[%s483_s3 + $0x28] sm:$0xff] %v129_v38  ;;  %v66_v48 = vmul.f32 %v220_v1, %v27_v35  ;;  %v67_v49 = vmul.f32 %v220_v1, %v28_v36  ;;  %v101_v50 = vadd.f32 %v225_v2, %v62_v43  ;;  %v40_v30 = vld [vmem:[%s480_s0 + $0xd0] sm:$0xff]  ;;  %v41_v31 = vld [vmem:[%s480_s0 + $0xd8] sm:$0xff] }
   0xc   :  { %162 = vst [vmem:[%s483_s3 + $0x30] sm:$0xff] %v130_v39  ;;  %163 = vst [vmem:[%s483_s3 + $0x38] sm:$0xff] %v131_v42  ;;  %v102_v51 = vadd.f32 %v225_v2, %v63_v44  ;;  %v103_v52 = vadd.f32 %v225_v2, %v64_v45  ;;  %v68_v53 = vmul.f32 %v220_v1, %v29_v41  ;;  %v132_v55 = vmax.f32 %v100_v46, 0.0  ;;  %v42_v36 = vld [vmem:[%s480_s0 + $0xe0] sm:$0xff]  ;;  %v43_v37 = vld [vmem:[%s480_s0 + $0xe8] sm:$0xff] }
   0xd   :  { %v104_v56 = vadd.f32 %v225_v2, %v65_v47  ;;  %v105_v57 = vadd.f32 %v225_v2, %v66_v48  ;;  %v106_v58 = vadd.f32 %v225_v2, %v67_v49  ;;  %v133_v62 = vmax.f32 %v101_v50, 0.0  ;;  %v44_v38 = vld [vmem:[%s480_s0 + $0xf0] sm:$0xff]  ;;  %v45_v43 = vld [vmem:[%s480_s0 + $0xf8] sm:$0xff] }
   0xe   :  { %v134_v63 = vmax.f32 %v102_v51, 0.0  ;;  %v135_v0 = vmax.f32 %v103_v52, 0.0  ;;  %v107_v3 = vadd.f32 %v225_v2, %v68_v53  ;;  %164 = vst [vmem:[%s483_s3 + $0x40] sm:$0xff] %v132_v55  ;;  %v69_v10 = vmul.f32 %v220_v1, %v30_v54 }
   0xf   :  { %v136_v7 = vmax.f32 %v104_v56, 0.0  ;;  %v137_v8 = vmax.f32 %v105_v57, 0.0  ;;  %v138_v9 = vmax.f32 %v106_v58, 0.0  ;;  %165 = vst [vmem:[%s483_s3 + $0x48] sm:$0xff] %v133_v62  ;;  %v70_v13 = vmul.f32 %v220_v1, %v31_v59 }
  0x10   :  { %166 = vst [vmem:[%s483_s3 + $0x50] sm:$0xff] %v134_v63  ;;  %167 = vst [vmem:[%s483_s3 + $0x58] sm:$0xff] %v135_v0  ;;  %v139_v12 = vmax.f32 %v107_v3, 0.0  ;;  %v71_v14 = vmul.f32 %v220_v1, %v32_v60  ;;  %v72_v15 = vmul.f32 %v220_v1, %v33_v61  ;;  %v108_v16 = vadd.f32 %v225_v2, %v69_v10 }
  0x11   :  { %168 = vst [vmem:[%s483_s3 + $0x60] sm:$0xff] %v136_v7  ;;  %169 = vst [vmem:[%s483_s3 + $0x68] sm:$0xff] %v137_v8  ;;  %v73_v17 = vmul.f32 %v220_v1, %v34_v4  ;;  %v74_v18 = vmul.f32 %v220_v1, %v35_v5  ;;  %v75_v19 = vmul.f32 %v220_v1, %v36_v6 }
  0x12   :  { %170 = vst [vmem:[%s483_s3 + $0x70] sm:$0xff] %v138_v9  ;;  %171 = vst [vmem:[%s483_s3 + $0x78] sm:$0xff] %v139_v12  ;;  %v109_v20 = vadd.f32 %v225_v2, %v70_v13  ;;  %v110_v21 = vadd.f32 %v225_v2, %v71_v14  ;;  %v111_v22 = vadd.f32 %v225_v2, %v72_v15  ;;  %v140_v25 = vmax.f32 %v108_v16, 0.0 }
  0x13   :  { %v76_v23 = vmul.f32 %v220_v1, %v37_v11  ;;  %v112_v26 = vadd.f32 %v225_v2, %v73_v17  ;;  %v113_v27 = vadd.f32 %v225_v2, %v74_v18  ;;  %v114_v28 = vadd.f32 %v225_v2, %v75_v19 }
  0x14   :  { %v141_v32 = vmax.f32 %v109_v20, 0.0  ;;  %v142_v33 = vmax.f32 %v110_v21, 0.0  ;;  %v143_v34 = vmax.f32 %v111_v22, 0.0  ;;  %172 = vst [vmem:[%s483_s3 + $0x80] sm:$0xff] %v140_v25  ;;  %v77_v42 = vmul.f32 %v220_v1, %v38_v24 }
  0x15   :  { %v115_v35 = vadd.f32 %v225_v2, %v76_v23  ;;  %v144_v39 = vmax.f32 %v112_v26, 0.0  ;;  %v145_v40 = vmax.f32 %v113_v27, 0.0  ;;  %v146_v41 = vmax.f32 %v114_v28, 0.0 }
  0x16   :  { %173 = vst [vmem:[%s483_s3 + $0x88] sm:$0xff] %v141_v32  ;;  %174 = vst [vmem:[%s483_s3 + $0x90] sm:$0xff] %v142_v33  ;;  %v78_v45 = vmul.f32 %v220_v1, %v39_v29  ;;  %v79_v46 = vmul.f32 %v220_v1, %v40_v30  ;;  %v80_v47 = vmul.f32 %v220_v1, %v41_v31 }
  0x17   :  { %175 = vst [vmem:[%s483_s3 + $0x98] sm:$0xff] %v143_v34  ;;  %v147_v44 = vmax.f32 %v115_v35, 0.0  ;;  %176 = vst [vmem:[%s483_s3 + $0xa0] sm:$0xff] %v144_v39  ;;  %v116_v48 = vadd.f32 %v225_v2, %v77_v42  ;;  %v81_v49 = vmul.f32 %v220_v1, %v42_v36  ;;  %v82_v50 = vmul.f32 %v220_v1, %v43_v37 }
  0x18   :  { %177 = vst [vmem:[%s483_s3 + $0xa8] sm:$0xff] %v145_v40  ;;  %178 = vst [vmem:[%s483_s3 + $0xb0] sm:$0xff] %v146_v41  ;;  %v83_v51 = vmul.f32 %v220_v1, %v44_v38  ;;  %v117_v52 = vadd.f32 %v225_v2, %v78_v45  ;;  %v118_v53 = vadd.f32 %v225_v2, %v79_v46 }
  0x19   :  { %179 = vst [vmem:[%s483_s3 + $0xb8] sm:$0xff] %v147_v44  ;;  %v119_v54 = vadd.f32 %v225_v2, %v80_v47  ;;  %v84_v55 = vmul.f32 %v220_v1, %v45_v43  ;;  %v148_v56 = vmax.f32 %v116_v48, 0.0  ;;  %v120_v57 = vadd.f32 %v225_v2, %v81_v49 }
  0x1a   :  { %v121_v58 = vadd.f32 %v225_v2, %v82_v50  ;;  %v122_v59 = vadd.f32 %v225_v2, %v83_v51  ;;  %v149_v60 = vmax.f32 %v117_v52, 0.0  ;;  %v150_v61 = vmax.f32 %v118_v53, 0.0 }
  0x1b   :  { %v151_v62 = vmax.f32 %v119_v54, 0.0  ;;  %v123_v63 = vadd.f32 %v225_v2, %v84_v55  ;;  %180 = vst [vmem:[%s483_s3 + $0xc0] sm:$0xff] %v148_v56  ;;  %v152_v0 = vmax.f32 %v120_v57, 0.0 }
  0x1c   :  { %v153_v3 = vmax.f32 %v121_v58, 0.0  ;;  %v154_v4 = vmax.f32 %v122_v59, 0.0  ;;  %181 = vst [vmem:[%s483_s3 + $0xc8] sm:$0xff] %v149_v60  ;;  %182 = vst [vmem:[%s483_s3 + $0xd0] sm:$0xff] %v150_v61 }
  0x1d   :  { %183 = vst [vmem:[%s483_s3 + $0xd8] sm:$0xff] %v151_v62  ;;  %v155_v1 = vmax.f32 %v123_v63, 0.0  ;;  %184 = vst [vmem:[%s483_s3 + $0xe0] sm:$0xff] %v152_v0 }
  0x1e   :  { %185 = vst [vmem:[%s483_s3 + $0xe8] sm:$0xff] %v153_v3  ;;  %186 = vst [vmem:[%s483_s3 + $0xf0] sm:$0xff] %v154_v4 }
  0x1f   :  { %187 = vst [vmem:[%s483_s3 + $0xf8] sm:$0xff] %v155_v1 }

// kernel: resblock_forward.15
= control target key start
LH: loop header
LB: loop body
LE: loop exit
PB: predicated region body
PF: predicated region fallthrough
CT: control target
= control target key end

     0   :  { %v2255_v0 = vmov 0.0|0.0   ;;  %s4185_s1 = inlined_call_operand.vmem [shape: f32[1152,128], index: 1, kind: input, shape index: {}]   ;;  %s4186_s0 = inlined_call_operand.vmem [shape: f32[256,1152], index: 0, kind: input, shape index: {}]   ;;  %s4187_s3 = inlined_call_operand.vmem [shape: f32[1,128], index: 3, kind: output, shape index: {1}]   ;;  %s4188_s4 = inlined_call_operand.vmem [shape: f32[1,128], index: 4, kind: output, shape index: {2}]   ;;  %s4189_s2 = inlined_call_operand.vmem [shape: f32[256,128], index: 2, kind: output, shape index: {0}]  }
   0x1   :  { %1861 = vmatprep.subr.bf16.mxu1 %v2255_v0  ;;  %1909 = vmatprep.subr.bf16.mxu0 %v2255_v0  ;;  %v302_v1 = vld [vmem:[%s4185_s1] sm:$0xff]  ;;  %v303_v2 = vld [vmem:[%s4185_s1 + $0x8] sm:$0xff]  ;;  %v304_v6 = vld [vmem:[%s4185_s1 + $0x10] sm:$0xff] }
   0x2   :  { %v334_v3 = vld [vmem:[%s4185_s1 + $0x100] sm:$0xff]  ;;  %v1862_v4 = vpack.c.bf16 %v303_v2, %v302_v1  ;;  %v335_v5 = vld [vmem:[%s4185_s1 + $0x108] sm:$0xff]  ;;  %v305_v7 = vld [vmem:[%s4185_s1 + $0x18] sm:$0xff] }
   0x3   :  { %v1910_v8 = vpack.c.bf16 %v335_v5, %v334_v3  ;;  %v336_v9 = vld [vmem:[%s4185_s1 + $0x110] sm:$0xff]  ;;  %v337_v10 = vld [vmem:[%s4185_s1 + $0x118] sm:$0xff]  ;;  %v1865_v11 = vpack.c.bf16 %v305_v7, %v304_v6  ;;  %v306_v13 = vld [vmem:[%s4185_s1 + $0x20] sm:$0xff] }
   0x4   :  { %1863 = vmatpush1.bf16.msra.mxu1 %v1862_v4  ;;  %v1913_v12 = vpack.c.bf16 %v337_v10, %v336_v9  ;;  %v307_v14 = vld [vmem:[%s4185_s1 + $0x28] sm:$0xff]  ;;  %v338_v15 = vld [vmem:[%s4185_s1 + $0x120] sm:$0xff]  ;;  %v308_v19 = vld [vmem:[%s4185_s1 + $0x30] sm:$0xff] }
   0x5   :  { %1911 = vmatpush1.bf16.msra.mxu0 %v1910_v8  ;;  %1864 = vmatprep.subr.bf16.mxu1 %v2255_v0  ;;  %v339_v16 = vld [vmem:[%s4185_s1 + $0x128] sm:$0xff]  ;;  %v1868_v17 = vpack.c.bf16 %v307_v14, %v306_v13  ;;  %v309_v20 = vld [vmem:[%s4185_s1 + $0x38] sm:$0xff]  ;;  %v340_v21 = vld [vmem:[%s4185_s1 + $0x130] sm:$0xff] }
   0x6   :  { %1912 = vmatprep.subr.bf16.mxu0 %v2255_v0  ;;  %v1916_v18 = vpack.c.bf16 %v339_v16, %v338_v15  ;;  %v341_v22 = vld [vmem:[%s4185_s1 + $0x138] sm:$0xff]  ;;  %v1871_v23 = vpack.c.bf16 %v309_v20, %v308_v19  ;;  %v310_v25 = vld [vmem:[%s4185_s1 + $0x40] sm:$0xff]  ;;  %v311_v26 = vld [vmem:[%s4185_s1 + $0x48] sm:$0xff] }
   0x7   :  { %v1919_v24 = vpack.c.bf16 %v341_v22, %v340_v21  ;;  %v342_v27 = vld [vmem:[%s4185_s1 + $0x140] sm:$0xff]  ;;  %v343_v28 = vld [vmem:[%s4185_s1 + $0x148] sm:$0xff]  ;;  %v1874_v29 = vpack.c.bf16 %v311_v26, %v310_v25  ;;  %v312_v31 = vld [vmem:[%s4185_s1 + $0x50] sm:$0xff] }
   0x8   :  { %1866 = vmatpush1.bf16.msra.mxu1 %v1865_v11  ;;  %v1922_v30 = vpack.c.bf16 %v343_v28, %v342_v27  ;;  %v313_v32 = vld [vmem:[%s4185_s1 + $0x58] sm:$0xff]  ;;  %v344_v33 = vld [vmem:[%s4185_s1 + $0x150] sm:$0xff]  ;;  %v314_v37 = vld [vmem:[%s4185_s1 + $0x60] sm:$0xff] }
   0x9   :  { %1914 = vmatpush1.bf16.msra.mxu0 %v1913_v12  ;;  %1867 = vmatprep.subr.bf16.mxu1 %v2255_v0  ;;  %v345_v34 = vld [vmem:[%s4185_s1 + $0x158] sm:$0xff]  ;;  %v1877_v35 = vpack.c.bf16 %v313_v32, %v312_v31  ;;  %v315_v38 = vld [vmem:[%s4185_s1 + $0x68] sm:$0xff]  ;;  %v346_v39 = vld [vmem:[%s4185_s1 + $0x160] sm:$0xff] }
   0xa   :  { %1915 = vmatprep.subr.bf16.mxu0 %v2255_v0  ;;  %v1925_v36 = vpack.c.bf16 %v345_v34, %v344_v33  ;;  %v347_v40 = vld [vmem:[%s4185_s1 + $0x168] sm:$0xff]  ;;  %v17_v42 = vld [vmem:[%s4186_s0 + $0x18] sm:$0xff]  ;;  %v1880_v43 = vpack.c.bf16 %v315_v38, %v314_v37  ;;  %v316_v45 = vld [vmem:[%s4185_s1 + $0x70] sm:$0xff] }
   0xb   :  { %v15_v41 = vld [vmem:[%s4186_s0 + $0x8] sm:$0xff]  ;;  %735 = vmatprep.mubr.f32.mxu0 %v17_v42  ;;  %v1928_v44 = vpack.c.bf16 %v347_v40, %v346_v39  ;;  %v317_v46 = vld [vmem:[%s4185_s1 + $0x78] sm:$0xff]  ;;  %v348_v47 = vld [vmem:[%s4185_s1 + $0x170] sm:$0xff] }
   0xc   :  { %1869 = vmatpush1.bf16.msra.mxu1 %v1868_v17  ;;  %510 = vmatprep.mubr.f32.mxu1 %v15_v41  ;;  %v349_v48 = vld [vmem:[%s4185_s1 + $0x178] sm:$0xff]  ;;  %v1883_v49 = vpack.c.bf16 %v317_v46, %v316_v45  ;;  %v318_v51 = vld [vmem:[%s4185_s1 + $0x80] sm:$0xff]  ;;  %v319_v52 = vld [vmem:[%s4185_s1 + $0x88] sm:$0xff] }
   0xd   :  { %1917 = vmatpush1.bf16.msra.mxu0 %v1916_v18  ;;  %1870 = vmatprep.subr.bf16.mxu1 %v2255_v0  ;;  %v1931_v50 = vpack.c.bf16 %v349_v48, %v348_v47  ;;  %v350_v53 = vld [vmem:[%s4185_s1 + $0x180] sm:$0xff]  ;;  %v351_v54 = vld [vmem:[%s4185_s1 + $0x188] sm:$0xff]  ;;  %v1886_v55 = vpack.c.bf16 %v319_v52, %v318_v51  ;;  %v320_v57 = vld [vmem:[%s4185_s1 + $0x90] sm:$0xff] }
   0xe   :  { %1918 = vmatprep.subr.bf16.mxu0 %v2255_v0  ;;  %v1934_v56 = vpack.c.bf16 %v351_v54, %v350_v53  ;;  %v321_v58 = vld [vmem:[%s4185_s1 + $0x98] sm:$0xff]  ;;  %v352_v59 = vld [vmem:[%s4185_s1 + $0x190] sm:$0xff]  ;;  %v322_v63 = vld [vmem:[%s4185_s1 + $0xa0] sm:$0xff] }
   0xf   :  { %v353_v60 = vld [vmem:[%s4185_s1 + $0x198] sm:$0xff]  ;;  %v1889_v61 = vpack.c.bf16 %v321_v58, %v320_v57  ;;  %v323_v1 = vld [vmem:[%s4185_s1 + $0xa8] sm:$0xff]  ;;  %v354_v2 = vld [vmem:[%s4185_s1 + $0x1a0] sm:$0xff] }
  0x10   :  { %1872 = vmatpush1.bf16.msra.mxu1 %v1871_v23  ;;  %v1937_v62 = vpack.c.bf16 %v353_v60, %v352_v59  ;;  %v355_v3 = vld [vmem:[%s4185_s1 + $0x1a8] sm:$0xff]  ;;  %v1892_v4 = vpack.c.bf16 %v323_v1, %v322_v63  ;;  %v324_v6 = vld [vmem:[%s4185_s1 + $0xb0] sm:$0xff]  ;;  %v325_v7 = vld [vmem:[%s4185_s1 + $0xb8] sm:$0xff] }
  0x11   :  { %1920 = vmatpush1.bf16.msra.mxu0 %v1919_v24  ;;  %1873 = vmatprep.subr.bf16.mxu1 %v2255_v0  ;;  %v1940_v5 = vpack.c.bf16 %v355_v3, %v354_v2  ;;  %v356_v8 = vld [vmem:[%s4185_s1 + $0x1b0] sm:$0xff]  ;;  %v357_v9 = vld [vmem:[%s4185_s1 + $0x1b8] sm:$0xff]  ;;  %v1895_v10 = vpack.c.bf16 %v325_v7, %v324_v6  ;;  %v326_v12 = vld [vmem:[%s4185_s1 + $0xc0] sm:$0xff] }
  0x12   :  { %1921 = vmatprep.subr.bf16.mxu0 %v2255_v0  ;;  %v1943_v11 = vpack.c.bf16 %v357_v9, %v356_v8  ;;  %v327_v13 = vld [vmem:[%s4185_s1 + $0xc8] sm:$0xff]  ;;  %v358_v14 = vld [vmem:[%s4185_s1 + $0x1c0] sm:$0xff]  ;;  %v328_v18 = vld [vmem:[%s4185_s1 + $0xd0] sm:$0xff] }
  0x13   :  { %v359_v15 = vld [vmem:[%s4185_s1 + $0x1c8] sm:$0xff]  ;;  %v1898_v16 = vpack.c.bf16 %v327_v13, %v326_v12  ;;  %v329_v19 = vld [vmem:[%s4185_s1 + $0xd8] sm:$0xff]  ;;  %v360_v20 = vld [vmem:[%s4185_s1 + $0x1d0] sm:$0xff] }
  0x14   :  { %1875 = vmatpush1.bf16.msra.mxu1 %v1874_v29  ;;  %v1946_v17 = vpack.c.bf16 %v359_v15, %v358_v14  ;;  %v361_v21 = vld [vmem:[%s4185_s1 + $0x1d8] sm:$0xff]  ;;  %v1901_v22 = vpack.c.bf16 %v329_v19, %v328_v18  ;;  %v330_v24 = vld [vmem:[%s4185_s1 + $0xe0] sm:$0xff]  ;;  %v331_v25 = vld [vmem:[%s4185_s1 + $0xe8] sm:$0xff] }
  0x15   :  { %1923 = vmatpush1.bf16.msra.mxu0 %v1922_v30  ;;  %1876 = vmatprep.subr.bf16.mxu1 %v2255_v0  ;;  %v1949_v23 = vpack.c.bf16 %v361_v21, %v360_v20  ;;  %v362_v26 = vld [vmem:[%s4185_s1 + $0x1e0] sm:$0xff]  ;;  %v363_v27 = vld [vmem:[%s4185_s1 + $0x1e8] sm:$0xff]  ;;  %v1904_v28 = vpack.c.bf16 %v331_v25, %v330_v24  ;;  %v332_v30 = vld [vmem:[%s4185_s1 + $0xf0] sm:$0xff] }
  0x16   :  { %1924 = vmatprep.subr.bf16.mxu0 %v2255_v0  ;;  %v1952_v29 = vpack.c.bf16 %v363_v27, %v362_v26  ;;  %v333_v31 = vld [vmem:[%s4185_s1 + $0xf8] sm:$0xff]  ;;  %v364_v32 = vld [vmem:[%s4185_s1 + $0x1f0] sm:$0xff]  ;;  %v367_v37 = vld [vmem:[%s4185_s1 + $0x208] sm:$0xff] }
  0x17   :  { %v365_v33 = vld [vmem:[%s4185_s1 + $0x1f8] sm:$0xff]  ;;  %v1907_v34 = vpack.c.bf16 %v333_v31, %v332_v30  ;;  %v398_v38 = vld [vmem:[%s4185_s1 + $0x300] sm:$0xff]  ;;  %v399_v39 = vld [vmem:[%s4185_s1 + $0x308] sm:$0xff] }
  0x18   :  { %1878 = vmatpush1.bf16.msra.mxu1 %v1877_v35  ;;  %v1955_v35 = vpack.c.bf16 %v365_v33, %v364_v32  ;;  %v14_v40 = vld [vmem:[%s4186_s0] sm:$0xff]  ;;  %v16_v41 = vld [vmem:[%s4186_s0 + $0x10] sm:$0xff]  ;;  %v369_v46 = vld [vmem:[%s4185_s1 + $0x218] sm:$0xff]  ;;  %v2544_v47 = vpack.c.bf16 %v399_v39, %v398_v38 }
  0x19   :  { %1926 = vmatpush1.bf16.msra.mxu0 %v1925_v36  ;;  %1879 = vmatprep.subr.bf16.mxu1 %v2255_v0  ;;  %v366_v36 = vld [vmem:[%s4185_s1 + $0x200] sm:$0xff]  ;;  %v368_v45 = vld [vmem:[%s4185_s1 + $0x210] sm:$0xff]  ;;  %v25_v51 = vld [vmem:[%s4186_s0 + $0x58] sm:$0xff] }
  0x1a   :  { %1927 = vmatprep.subr.bf16.mxu0 %v2255_v0  ;;  %v1958_v42 = vpack.c.bf16 %v367_v37, %v366_v36  ;;  %v400_v48 = vld [vmem:[%s4185_s1 + $0x310] sm:$0xff]  ;;  %v33_v52 = vld [vmem:[%s4186_s0 + $0x98] sm:$0xff]  ;;  %v1961_v53 = vpack.c.bf16 %v369_v46, %v368_v45  ;;  %v35_v54 = vld [vmem:[%s4186_s0 + $0xa8] sm:$0xff] }
  0x1b   :  { %v402_v58 = vld [vmem:[%s4185_s1 + $0x320] sm:$0xff]  ;;  %v403_v59 = vld [vmem:[%s4185_s1 + $0x328] sm:$0xff]  ;;  %v32_v60 = vld [vmem:[%s4186_s0 + $0x90] sm:$0xff] }
  0x1c   :  { %1881 = vmatpush1.bf16.msra.mxu1 %v1880_v43  ;;  %v24_v43 = vld [vmem:[%s4186_s0 + $0x50] sm:$0xff]  ;;  %v373_v3 = vld [vmem:[%s4185_s1 + $0x238] sm:$0xff]  ;;  %v43_v8 = vld [vmem:[%s4186_s0 + $0xe8] sm:$0xff] }
  0x1d   :  { %1929 = vmatpush1.bf16.msra.mxu0 %v1928_v44  ;;  %1882 = vmatprep.subr.bf16.mxu1 %v2255_v0  ;;  %v26_v44 = vld [vmem:[%s4186_s0 + $0x60] sm:$0xff]  ;;  %v44_v1 = vld [vmem:[%s4186_s0 + $0xf0] sm:$0xff]  ;;  %v405_v6 = vld [vmem:[%s4185_s1 + $0x338] sm:$0xff] }
  0x1e   :  { %1930 = vmatprep.subr.bf16.mxu0 %v2255_v0  ;;  %v372_v2 = vld [vmem:[%s4185_s1 + $0x230] sm:$0xff]  ;;  %v41_v7 = vld [vmem:[%s4186_s0 + $0xd8] sm:$0xff]  ;;  %v51_v9 = vld [vmem:[%s4186_s0 + $0x128] sm:$0xff] }
  0x1f   :  { %v374_v12 = vld [vmem:[%s4185_s1 + $0x240] sm:$0xff]  ;;  %v375_v13 = vld [vmem:[%s4185_s1 + $0x248] sm:$0xff]  ;;  %v52_v18 = vld [vmem:[%s4186_s0 + $0x130] sm:$0xff] }
  0x20   :  { %1884 = vmatpush1.bf16.msra.mxu1 %v1883_v49  ;;  %v401_v49 = vld [vmem:[%s4185_s1 + $0x318] sm:$0xff]  ;;  %v406_v15 = vld [vmem:[%s4185_s1 + $0x340] sm:$0xff]  ;;  %v60_v19 = vld [vmem:[%s4186_s0 + $0x170] sm:$0xff]  ;;  %v1970_v20 = vpack.c.bf16 %v375_v13, %v374_v12 }
  0x21   :  { %1932 = vmatpush1.bf16.msra.mxu0 %v1931_v50  ;;  %1885 = vmatprep.subr.bf16.mxu1 %v2255_v0  ;;  %v23_v50 = vld [vmem:[%s4186_s0 + $0x48] sm:$0xff]  ;;  %v2572_v57 = vpack.c.bf16 %v401_v49, %v400_v48  ;;  %v62_v21 = vld [vmem:[%s4186_s0 + $0x180] sm:$0xff]  ;;  %v408_v25 = vld [vmem:[%s4185_s1 + $0x350] sm:$0xff] }
  0x22   :  { %1933 = vmatprep.subr.bf16.mxu0 %v2255_v0  ;;  %v409_v26 = vld [vmem:[%s4185_s1 + $0x358] sm:$0xff]  ;;  %v59_v27 = vld [vmem:[%s4186_s0 + $0x168] sm:$0xff]  ;;  %v378_v32 = vld [vmem:[%s4185_s1 + $0x260] sm:$0xff] }
  0x23   :  { %v71_v31 = vld [vmem:[%s4186_s0 + $0x1c8] sm:$0xff]  ;;  %v68_v37 = vld [vmem:[%s4186_s0 + $0x1b0] sm:$0xff]  ;;  %v70_v38 = vld [vmem:[%s4186_s0 + $0x1c0] sm:$0xff] }
  0x24   :  { %1887 = vmatpush1.bf16.msra.mxu1 %v1886_v55  ;;  %v370_v55 = vld [vmem:[%s4185_s1 + $0x220] sm:$0xff]  ;;  %v379_v33 = vld [vmem:[%s4185_s1 + $0x268] sm:$0xff]  ;;  %v412_v45 = vld [vmem:[%s4185_s1 + $0x370] sm:$0xff] }
  0x25   :  { %1935 = vmatpush1.bf16.msra.mxu0 %v1934_v56  ;;  %1888 = vmatprep.subr.bf16.mxu1 %v2255_v0  ;;  %v371_v56 = vld [vmem:[%s4185_s1 + $0x228] sm:$0xff]  ;;  %v78_v39 = vld [vmem:[%s4186_s0 + $0x200] sm:$0xff]  ;;  %v413_v46 = vld [vmem:[%s4185_s1 + $0x378] sm:$0xff] }
  0x26   :  { %1936 = vmatprep.subr.bf16.mxu0 %v2255_v0  ;;  %v1964_v63 = vpack.c.bf16 %v371_v56, %v370_v55  ;;  %v411_v36 = vld [vmem:[%s4185_s1 + $0x368] sm:$0xff]  ;;  %v77_v48 = vld [vmem:[%s4186_s0 + $0x1f8] sm:$0xff]  ;;  %v2746_v55 = vpack.c.bf16 %v413_v46, %v412_v45  ;;  %v414_v56 = vld [vmem:[%s4185_s1 + $0x380] sm:$0xff] }
  0x27   :  { %v79_v49 = vld [vmem:[%s4186_s0 + $0x208] sm:$0xff]  ;;  %v386_v12 = vld [vmem:[%s4185_s1 + $0x2a0] sm:$0xff]  ;;  %v392_v46 = vld [vmem:[%s4185_s1 + $0x2d0] sm:$0xff] }
  0x28   :  { %1890 = vmatpush1.bf16.msra.mxu1 %v1889_v61  ;;  %v34_v61 = vld [vmem:[%s4186_s0 + $0xa0] sm:$0xff]  ;;  %v387_v13 = vld [vmem:[%s4185_s1 + $0x2a8] sm:$0xff] }
  0x29   :  { %1938 = vmatpush1.bf16.msra.mxu0 %v1937_v62  ;;  %1891 = vmatprep.subr.bf16.mxu1 %v2255_v0  ;;  %v42_v62 = vld [vmem:[%s4186_s0 + $0xe0] sm:$0xff] }
  0x2a   :  { %1939 = vmatprep.subr.bf16.mxu0 %v2255_v0  ;;  %v134_v45 = vld [vmem:[%s4186_s0 + $0x3c0] sm:$0xff] }
  0x2c   :  { %1893 = vmatpush1.bf16.msra.mxu1 %v1892_v4  ;;  %v2601_v4 = vpack.c.bf16 %v403_v59, %v402_v58  ;;  %v415_v58 = vld [vmem:[%s4185_s1 + $0x388] sm:$0xff]  ;;  %v86_v59 = vld [vmem:[%s4186_s0 + $0x240] sm:$0xff] }
  0x2d   :  { %1941 = vmatpush1.bf16.msra.mxu0 %v1940_v5  ;;  %1894 = vmatprep.subr.bf16.mxu1 %v2255_v0  ;;  %v404_v5 = vld [vmem:[%s4185_s1 + $0x330] sm:$0xff] }
  0x2e   :  { %1942 = vmatprep.subr.bf16.mxu0 %v2255_v0  ;;  %v2630_v14 = vpack.c.bf16 %v405_v6, %v404_v5  ;;  %v416_v5 = vld [vmem:[%s4185_s1 + $0x390] sm:$0xff]  ;;  %v417_v6 = vld [vmem:[%s4185_s1 + $0x398] sm:$0xff] }
  0x30   :  { %1896 = vmatpush1.bf16.msra.mxu1 %v1895_v10  ;;  %v1967_v10 = vpack.c.bf16 %v373_v3, %v372_v2  ;;  %v385_v2 = vld [vmem:[%s4185_s1 + $0x298] sm:$0xff]  ;;  %v2775_v3 = vpack.c.bf16 %v415_v58, %v414_v56  ;;  %v143_v58 = vld [vmem:[%s4186_s0 + $0x408] sm:$0xff] }
  0x31   :  { %1944 = vmatpush1.bf16.msra.mxu0 %v1943_v11  ;;  %1897 = vmatprep.subr.bf16.mxu1 %v2255_v0  ;;  %v53_v11 = vld [vmem:[%s4186_s0 + $0x138] sm:$0xff] }
  0x32   :  { %1945 = vmatprep.subr.bf16.mxu0 %v2255_v0 }
  0x34   :  { %1899 = vmatpush1.bf16.msra.mxu1 %v1898_v16  ;;  %v407_v16 = vld [vmem:[%s4185_s1 + $0x348] sm:$0xff] }
  0x35   :  { %1947 = vmatpush1.bf16.msra.mxu0 %v1946_v17  ;;  %1900 = vmatprep.subr.bf16.mxu1 %v2255_v0  ;;  %v50_v17 = vld [vmem:[%s4186_s0 + $0x120] sm:$0xff]  ;;  %v2659_v24 = vpack.c.bf16 %v407_v16, %v406_v15  ;;  %v2804_v15 = vpack.c.bf16 %v417_v6, %v416_v5 }
  0x36   :  { %1948 = vmatprep.subr.bf16.mxu0 %v2255_v0  ;;  %v418_v16 = vld [vmem:[%s4185_s1 + $0x3a0] sm:$0xff] }
  0x37   :  { %v150_v5 = vld [vmem:[%s4186_s0 + $0x440] sm:$0xff] }
  0x38   :  { %1902 = vmatpush1.bf16.msra.mxu1 %v1901_v22  ;;  %v376_v22 = vld [vmem:[%s4185_s1 + $0x250] sm:$0xff] }
  0x39   :  { %1950 = vmatpush1.bf16.msra.mxu0 %v1949_v23  ;;  %1903 = vmatprep.subr.bf16.mxu1 %v2255_v0  ;;  %v377_v23 = vld [vmem:[%s4185_s1 + $0x258] sm:$0xff] }
  0x3a   :  { %1951 = vmatprep.subr.bf16.mxu0 %v2255_v0  ;;  %v1973_v30 = vpack.c.bf16 %v377_v23, %v376_v22  ;;  %v116_v22 = vld [vmem:[%s4186_s0 + $0x330] sm:$0xff] }
  0x3b   :  { %v388_v23 = vld [vmem:[%s4185_s1 + $0x2b0] sm:$0xff] }
  0x3c   :  { %1905 = vmatpush1.bf16.msra.mxu1 %v1904_v28  ;;  %v61_v28 = vld [vmem:[%s4186_s0 + $0x178] sm:$0xff] }
  0x3d   :  { %1953 = vmatpush1.bf16.msra.mxu0 %v1952_v29  ;;  %1906 = vmatprep.subr.bf16.mxu1 %v2255_v0  ;;  %v69_v29 = vld [vmem:[%s4186_s0 + $0x1b8] sm:$0xff] }
  0x3e   :  { %1954 = vmatprep.subr.bf16.mxu0 %v2255_v0 }
  0x40   :  { %1908 = vmatpush1.bf16.msra.mxu1 %v1907_v34  ;;  %v2688_v34 = vpack.c.bf16 %v409_v26, %v408_v25  ;;  %v389_v25 = vld [vmem:[%s4185_s1 + $0x2b8] sm:$0xff] }
  0x41   :  { %1956 = vmatpush1.bf16.msra.mxu0 %v1955_v35  ;;  %2085 = vmatprep.subr.bf16.mxu1 %v2255_v0  ;;  %v410_v35 = vld [vmem:[%s4185_s1 + $0x360] sm:$0xff] }
  0x42   :  { %1957 = vmatprep.subr.bf16.mxu0 %v2255_v0 }
  0x43   :  { %511 = vmatmul.mubr.f32.vlgmr.msra.gmra.mrb[0].mxu1 %v14_v40  ;;  %v1976_v40 = vpack.c.bf16 %v379_v33, %v378_v32  ;;  %v1991_v32 = vpack.c.bf16 %v389_v25, %v388_v23  ;;  %v125_v33 = vld [vmem:[%s4186_s0 + $0x378] sm:$0xff]  ;;  %v158_v25 = vld [vmem:[%s4186_s0 + $0x480] sm:$0xff] }
  0x44   :  { %736 = vmatmul.mubr.f32.vlgmr.msra.gmra.mrb[0].mxu0 %v16_v41  ;;  %515 = vmatprep.mubr.f32.mxu1 %v24_v43  ;;  %v80_v41 = vld [vmem:[%s4186_s0 + $0x210] sm:$0xff]  ;;  %v381_v43 = vld [vmem:[%s4185_s1 + $0x278] sm:$0xff] }
  0x45   :  { %1959 = vmatpush1.bf16.msra.mxu0 %v1958_v42  ;;  %740 = vmatprep.mubr.f32.mxu0 %v26_v44  ;;  %v380_v42 = vld [vmem:[%s4185_s1 + $0x270] sm:$0xff]  ;;  %v2717_v44 = vpack.c.bf16 %v411_v36, %v410_v35  ;;  %v390_v35 = vld [vmem:[%s4185_s1 + $0x2c0] sm:$0xff]  ;;  %v391_v36 = vld [vmem:[%s4185_s1 + $0x2c8] sm:$0xff] }
  0x46   :  { %1960 = vmatprep.subr.bf16.mxu0 %v2255_v0  ;;  %2101 = vmatpush1.bf16.msra.mxu1 %v2544_v47 }
  0x47   :  { %516 = vmatmul.mubr.f32.gmra.mrb[2].mxu1 %v23_v50  ;;  %2086 = vmatprep.subr.bf16.mxu1 %v2255_v0  ;;  %v87_v50 = vld [vmem:[%s4186_s0 + $0x248] sm:$0xff] }
  0x48   :  { %741 = vmatmul.mubr.f32.gmra.mrb[2].mxu0 %v25_v51  ;;  %520 = vmatprep.mubr.f32.mxu1 %v33_v52  ;;  %v1979_v51 = vpack.c.bf16 %v381_v43, %v380_v42  ;;  %v89_v52 = vld [vmem:[%s4186_s0 + $0x258] sm:$0xff]  ;;  %v132_v42 = vld [vmem:[%s4186_s0 + $0x3b0] sm:$0xff]  ;;  %v1994_v43 = vpack.c.bf16 %v391_v36, %v390_v35  ;;  %v178_v36 = vld [vmem:[%s4186_s0 + $0x520] sm:$0xff] }
  0x49   :  { %745 = vmatprep.mubr.f32.mxu0 %v35_v54  ;;  %1962 = vmatpush1.bf16.msra.mxu0 %v1961_v53  ;;  %v382_v53 = vld [vmem:[%s4185_s1 + $0x280] sm:$0xff]  ;;  %v383_v54 = vld [vmem:[%s4185_s1 + $0x288] sm:$0xff]  ;;  %v176_v35 = vld [vmem:[%s4186_s0 + $0x510] sm:$0xff] }
  0x4a   :  { %1963 = vmatprep.subr.bf16.mxu0 %v2255_v0  ;;  %2102 = vmatpush1.bf16.msra.mxu1 %v2572_v57 }
  0x4b   :  { %521 = vmatmul.mubr.f32.gmra.mrb[4].mxu1 %v32_v60  ;;  %2087 = vmatprep.subr.bf16.mxu1 %v2255_v0  ;;  %v88_v60 = vld [vmem:[%s4186_s0 + $0x250] sm:$0xff] }
  0x4c   :  { %746 = vmatmul.mubr.f32.gmra.mrb[4].mxu0 %v34_v61  ;;  %525 = vmatprep.mubr.f32.mxu1 %v42_v62  ;;  %v96_v61 = vld [vmem:[%s4186_s0 + $0x290] sm:$0xff]  ;;  %v1982_v62 = vpack.c.bf16 %v383_v54, %v382_v53  ;;  %v133_v53 = vld [vmem:[%s4186_s0 + $0x3b8] sm:$0xff] }
  0x4d   :  { %750 = vmatprep.mubr.f32.mxu0 %v44_v1  ;;  %1965 = vmatpush1.bf16.msra.mxu0 %v1964_v63  ;;  %v98_v63 = vld [vmem:[%s4186_s0 + $0x2a0] sm:$0xff]  ;;  %v384_v1 = vld [vmem:[%s4185_s1 + $0x290] sm:$0xff]  ;;  %v141_v54 = vld [vmem:[%s4186_s0 + $0x3f8] sm:$0xff] }
  0x4e   :  { %1966 = vmatprep.subr.bf16.mxu0 %v2255_v0  ;;  %2103 = vmatpush1.bf16.msra.mxu1 %v2601_v4 }
  0x4f   :  { %526 = vmatmul.mubr.f32.gmra.mrb[6].mxu1 %v41_v7  ;;  %2088 = vmatprep.subr.bf16.mxu1 %v2255_v0  ;;  %v95_v7 = vld [vmem:[%s4186_s0 + $0x288] sm:$0xff] }
  0x50   :  { %751 = vmatmul.mubr.f32.gmra.mrb[6].mxu0 %v43_v8  ;;  %530 = vmatprep.mubr.f32.mxu1 %v51_v9  ;;  %v97_v8 = vld [vmem:[%s4186_s0 + $0x298] sm:$0xff] }
  0x51   :  { %755 = vmatprep.mubr.f32.mxu0 %v53_v11  ;;  %1968 = vmatpush1.bf16.msra.mxu0 %v1967_v10  ;;  %v105_v9 = vld [vmem:[%s4186_s0 + $0x2d8] sm:$0xff]  ;;  %v1985_v10 = vpack.c.bf16 %v385_v2, %v384_v1  ;;  %v107_v11 = vld [vmem:[%s4186_s0 + $0x2e8] sm:$0xff]  ;;  %v140_v1 = vld [vmem:[%s4186_s0 + $0x3f0] sm:$0xff] }
  0x52   :  { %1969 = vmatprep.subr.bf16.mxu0 %v2255_v0  ;;  %2104 = vmatpush1.bf16.msra.mxu1 %v2630_v14  ;;  %v142_v2 = vld [vmem:[%s4186_s0 + $0x400] sm:$0xff] }
  0x53   :  { %531 = vmatmul.mubr.f32.gmra.mrb[8].mxu1 %v50_v17  ;;  %2089 = vmatprep.subr.bf16.mxu1 %v2255_v0  ;;  %v419_v17 = vld [vmem:[%s4185_s1 + $0x3a8] sm:$0xff] }
  0x54   :  { %756 = vmatmul.mubr.f32.gmra.mrb[8].mxu0 %v52_v18  ;;  %535 = vmatprep.mubr.f32.mxu1 %v60_v19  ;;  %v104_v18 = vld [vmem:[%s4186_s0 + $0x2d0] sm:$0xff]  ;;  %v106_v19 = vld [vmem:[%s4186_s0 + $0x2e0] sm:$0xff]  ;;  %v2833_v26 = vpack.c.bf16 %v419_v17, %v418_v16  ;;  %v431_v17 = vld [vmem:[%s4185_s1 + $0x408] sm:$0xff] }
  0x55   :  { %760 = vmatprep.mubr.f32.mxu0 %v62_v21  ;;  %1971 = vmatpush1.bf16.msra.mxu0 %v1970_v20  ;;  %v114_v20 = vld [vmem:[%s4186_s0 + $0x320] sm:$0xff]  ;;  %v1988_v21 = vpack.c.bf16 %v387_v13, %v386_v12  ;;  %v429_v12 = vld [vmem:[%s4185_s1 + $0x3f8] sm:$0xff] }
  0x56   :  { %1972 = vmatprep.subr.bf16.mxu0 %v2255_v0  ;;  %2105 = vmatpush1.bf16.msra.mxu1 %v2659_v24  ;;  %v149_v13 = vld [vmem:[%s4186_s0 + $0x438] sm:$0xff]  ;;  %v430_v16 = vld [vmem:[%s4185_s1 + $0x400] sm:$0xff] }
  0x57   :  { %536 = vmatmul.mubr.f32.gmra.mrb[10].mxu1 %v59_v27  ;;  %2090 = vmatprep.subr.bf16.mxu1 %v2255_v0  ;;  %v420_v27 = vld [vmem:[%s4185_s1 + $0x3b0] sm:$0xff]  ;;  %v2981_v23 = vpack.c.bf16 %v431_v17, %v430_v16  ;;  %v250_v17 = vld [vmem:[%s4186_s0 + $0x760] sm:$0xff] }
  0x58   :  { %761 = vmatmul.mubr.f32.gmra.mrb[10].mxu0 %v61_v28  ;;  %540 = vmatprep.mubr.f32.mxu1 %v69_v29  ;;  %v421_v28 = vld [vmem:[%s4185_s1 + $0x3b8] sm:$0xff]  ;;  %v248_v16 = vld [vmem:[%s4186_s0 + $0x750] sm:$0xff] }
  0x59   :  { %765 = vmatprep.mubr.f32.mxu0 %v71_v31  ;;  %1974 = vmatpush1.bf16.msra.mxu0 %v1973_v30  ;;  %v113_v29 = vld [vmem:[%s4186_s0 + $0x318] sm:$0xff]  ;;  %v115_v30 = vld [vmem:[%s4186_s0 + $0x328] sm:$0xff] }
  0x5a   :  { %1975 = vmatprep.subr.bf16.mxu0 %v2255_v0  ;;  %2106 = vmatpush1.bf16.msra.mxu1 %v2688_v34  ;;  %v123_v31 = vld [vmem:[%s4186_s0 + $0x368] sm:$0xff] }
  0x5b   :  { %541 = vmatmul.mubr.f32.gmra.mrb[12].mxu1 %v68_v37  ;;  %2091 = vmatprep.subr.bf16.mxu1 %v2255_v0  ;;  %v2862_v37 = vpack.c.bf16 %v421_v28, %v420_v27  ;;  %v160_v27 = vld [vmem:[%s4186_s0 + $0x490] sm:$0xff] }
  0x5c   :  { %766 = vmatmul.mubr.f32.gmra.mrb[12].mxu0 %v70_v38  ;;  %545 = vmatprep.mubr.f32.mxu1 %v78_v39  ;;  %v422_v38 = vld [vmem:[%s4185_s1 + $0x3c0] sm:$0xff]  ;;  %v423_v39 = vld [vmem:[%s4185_s1 + $0x3c8] sm:$0xff]  ;;  %v168_v28 = vld [vmem:[%s4186_s0 + $0x4d0] sm:$0xff] }
  0x5d   :  { %770 = vmatprep.mubr.f32.mxu0 %v80_v41  ;;  %1977 = vmatpush1.bf16.msra.mxu0 %v1976_v40  ;;  %v122_v40 = vld [vmem:[%s4186_s0 + $0x360] sm:$0xff]  ;;  %v124_v41 = vld [vmem:[%s4186_s0 + $0x370] sm:$0xff] }
  0x5e   :  { %1978 = vmatprep.subr.bf16.mxu0 %v2255_v0  ;;  %2107 = vmatpush1.bf16.msra.mxu1 %v2717_v44 }
  0x5f   :  { %546 = vmatmul.mubr.f32.gmra.mrb[14].mxu1 %v77_v48  ;;  %2092 = vmatprep.subr.bf16.mxu1 %v2255_v0  ;;  %v393_v48 = vld [vmem:[%s4185_s1 + $0x2d8] sm:$0xff] }
  0x60   :  { %771 = vmatmul.mubr.f32.gmra.mrb[14].mxu0 %v79_v49  ;;  %550 = vmatprep.mubr.f32.mxu1 %v87_v50  ;;  %v2891_v49 = vpack.c.bf16 %v423_v39, %v422_v38  ;;  %v424_v50 = vld [vmem:[%s4185_s1 + $0x3d0] sm:$0xff]  ;;  %v1997_v56 = vpack.c.bf16 %v393_v48, %v392_v46  ;;  %v186_v38 = vld [vmem:[%s4186_s0 + $0x560] sm:$0xff] }
  0x61   :  { %775 = vmatprep.mubr.f32.mxu0 %v89_v52  ;;  %1980 = vmatpush1.bf16.msra.mxu0 %v1979_v51  ;;  %v425_v51 = vld [vmem:[%s4185_s1 + $0x3d8] sm:$0xff]  ;;  %v131_v52 = vld [vmem:[%s4186_s0 + $0x3a8] sm:$0xff]  ;;  %v188_v39 = vld [vmem:[%s4186_s0 + $0x570] sm:$0xff] }
  0x62   :  { %1981 = vmatprep.subr.bf16.mxu0 %v2255_v0  ;;  %2108 = vmatpush1.bf16.msra.mxu1 %v2746_v55  ;;  %v196_v46 = vld [vmem:[%s4186_s0 + $0x5b0] sm:$0xff] }
  0x63   :  { %551 = vmatmul.mubr.f32.gmra.mrb[16].mxu1 %v86_v59  ;;  %2093 = vmatprep.subr.bf16.mxu1 %v2255_v0  ;;  %v394_v59 = vld [vmem:[%s4185_s1 + $0x2e0] sm:$0xff]  ;;  %v204_v48 = vld [vmem:[%s4186_s0 + $0x5f0] sm:$0xff] }
  0x64   :  { %776 = vmatmul.mubr.f32.gmra.mrb[16].mxu0 %v88_v60  ;;  %555 = vmatprep.mubr.f32.mxu1 %v96_v61  ;;  %v395_v60 = vld [vmem:[%s4185_s1 + $0x2e8] sm:$0xff]  ;;  %v2920_v61 = vpack.c.bf16 %v425_v51, %v424_v50  ;;  %v206_v50 = vld [vmem:[%s4186_s0 + $0x600] sm:$0xff] }
  0x65   :  { %780 = vmatprep.mubr.f32.mxu0 %v98_v63  ;;  %1983 = vmatpush1.bf16.msra.mxu0 %v1982_v62  ;;  %v426_v62 = vld [vmem:[%s4185_s1 + $0x3e0] sm:$0xff]  ;;  %v427_v63 = vld [vmem:[%s4185_s1 + $0x3e8] sm:$0xff]  ;;  %v2000_v6 = vpack.c.bf16 %v395_v60, %v394_v59  ;;  %v224_v60 = vld [vmem:[%s4186_s0 + $0x690] sm:$0xff] }
  0x66   :  { %1984 = vmatprep.subr.bf16.mxu0 %v2255_v0  ;;  %2109 = vmatpush1.bf16.msra.mxu1 %v2775_v3  ;;  %v203_v51 = vld [vmem:[%s4186_s0 + $0x5e8] sm:$0xff]  ;;  %v222_v59 = vld [vmem:[%s4186_s0 + $0x680] sm:$0xff] }
  0x67   :  { %556 = vmatmul.mubr.f32.gmra.mrb[18].mxu1 %v95_v7  ;;  %2094 = vmatprep.subr.bf16.mxu1 %v2255_v0  ;;  %v152_v7 = vld [vmem:[%s4186_s0 + $0x450] sm:$0xff] }
  0x68   :  { %781 = vmatmul.mubr.f32.gmra.mrb[18].mxu0 %v97_v8  ;;  %560 = vmatprep.mubr.f32.mxu1 %v105_v9  ;;  %v396_v8 = vld [vmem:[%s4185_s1 + $0x2f0] sm:$0xff]  ;;  %v397_v9 = vld [vmem:[%s4185_s1 + $0x2f8] sm:$0xff] }
  0x69   :  { %785 = vmatprep.mubr.f32.mxu0 %v107_v11  ;;  %1986 = vmatpush1.bf16.msra.mxu0 %v1985_v10  ;;  %v2949_v10 = vpack.c.bf16 %v427_v63, %v426_v62  ;;  %v428_v11 = vld [vmem:[%s4185_s1 + $0x3f0] sm:$0xff]  ;;  %v221_v62 = vld [vmem:[%s4186_s0 + $0x678] sm:$0xff]  ;;  %v223_v63 = vld [vmem:[%s4186_s0 + $0x688] sm:$0xff] }
  0x6a   :  { %1987 = vmatprep.subr.bf16.mxu0 %v2255_v0  ;;  %2110 = vmatpush1.bf16.msra.mxu1 %v2804_v15 }
  0x6b   :  { %561 = vmatmul.mubr.f32.gmra.mrb[20].mxu1 %v104_v18  ;;  %2095 = vmatprep.subr.bf16.mxu1 %v2255_v0  ;;  %v151_v18 = vld [vmem:[%s4186_s0 + $0x448] sm:$0xff] }
  0x6c   :  { %786 = vmatmul.mubr.f32.gmra.mrb[20].mxu0 %v106_v19  ;;  %565 = vmatprep.mubr.f32.mxu1 %v114_v20  ;;  %v159_v19 = vld [vmem:[%s4186_s0 + $0x488] sm:$0xff]  ;;  %v2003_v20 = vpack.c.bf16 %v397_v9, %v396_v8  ;;  %v242_v8 = vld [vmem:[%s4186_s0 + $0x720] sm:$0xff] }
  0x6d   :  { %790 = vmatprep.mubr.f32.mxu0 %v116_v22  ;;  %1989 = vmatpush1.bf16.msra.mxu0 %v1988_v21  ;;  %v161_v21 = vld [vmem:[%s4186_s0 + $0x498] sm:$0xff]  ;;  %v2978_v22 = vpack.c.bf16 %v429_v12, %v428_v11  ;;  %v239_v9 = vld [vmem:[%s4186_s0 + $0x708] sm:$0xff] }
  0x6e   :  { %1990 = vmatprep.subr.bf16.mxu0 %v2255_v0  ;;  %2111 = vmatpush1.bf16.msra.mxu1 %v2833_v26  ;;  %v241_v11 = vld [vmem:[%s4186_s0 + $0x718] sm:$0xff] }
  0x6f   :  { %566 = vmatmul.mubr.f32.gmra.mrb[22].mxu1 %v113_v29  ;;  %2096 = vmatprep.subr.bf16.mxu1 %v2255_v0  ;;  %v170_v29 = vld [vmem:[%s4186_s0 + $0x4e0] sm:$0xff]  ;;  %v249_v12 = vld [vmem:[%s4186_s0 + $0x758] sm:$0xff] }
  0x70   :  { %791 = vmatmul.mubr.f32.gmra.mrb[22].mxu0 %v115_v30  ;;  %570 = vmatprep.mubr.f32.mxu1 %v123_v31  ;;  %v167_v30 = vld [vmem:[%s4186_s0 + $0x4c8] sm:$0xff]  ;;  %v169_v31 = vld [vmem:[%s4186_s0 + $0x4d8] sm:$0xff] }
  0x71   :  { %795 = vmatprep.mubr.f32.mxu0 %v125_v33  ;;  %1992 = vmatpush1.bf16.msra.mxu0 %v1991_v32  ;;  %v177_v32 = vld [vmem:[%s4186_s0 + $0x518] sm:$0xff]  ;;  %v179_v33 = vld [vmem:[%s4186_s0 + $0x528] sm:$0xff] }
  0x72   :  { %1993 = vmatprep.subr.bf16.mxu0 %v2255_v0  ;;  %2112 = vmatpush1.bf16.msra.mxu1 %v2862_v37 }
  0x73   :  { %571 = vmatmul.mubr.f32.gmra.mrb[24].mxu1 %v122_v40  ;;  %2097 = vmatprep.subr.bf16.mxu1 %v2255_v0  ;;  %v185_v40 = vld [vmem:[%s4186_s0 + $0x558] sm:$0xff] }
  0x74   :  { %796 = vmatmul.mubr.f32.gmra.mrb[24].mxu0 %v124_v41  ;;  %575 = vmatprep.mubr.f32.mxu1 %v132_v42  ;;  %v187_v41 = vld [vmem:[%s4186_s0 + $0x568] sm:$0xff] }
  0x75   :  { %800 = vmatprep.mubr.f32.mxu0 %v134_v45  ;;  %1995 = vmatpush1.bf16.msra.mxu0 %v1994_v43  ;;  %v195_v42 = vld [vmem:[%s4186_s0 + $0x5a8] sm:$0xff]  ;;  %v197_v43 = vld [vmem:[%s4186_s0 + $0x5b8] sm:$0xff]  ;;  %v194_v45 = vld [vmem:[%s4186_s0 + $0x5a0] sm:$0xff] }
  0x76   :  { %1996 = vmatprep.subr.bf16.mxu0 %v2255_v0  ;;  %2113 = vmatpush1.bf16.msra.mxu1 %v2891_v49 }
  0x77   :  { %576 = vmatmul.mubr.f32.gmra.mrb[26].mxu1 %v131_v52  ;;  %2098 = vmatprep.subr.bf16.mxu1 %v2255_v0  ;;  %v205_v52 = vld [vmem:[%s4186_s0 + $0x5f8] sm:$0xff] }
  0x78   :  { %801 = vmatmul.mubr.f32.gmra.mrb[26].mxu0 %v133_v53  ;;  %580 = vmatprep.mubr.f32.mxu1 %v141_v54  ;;  %v213_v53 = vld [vmem:[%s4186_s0 + $0x638] sm:$0xff]  ;;  %v215_v54 = vld [vmem:[%s4186_s0 + $0x648] sm:$0xff] }
  0x79   :  { %805 = vmatprep.mubr.f32.mxu0 %v143_v58  ;;  %1998 = vmatpush1.bf16.msra.mxu0 %v1997_v56  ;;  %v212_v56 = vld [vmem:[%s4186_s0 + $0x630] sm:$0xff]  ;;  %v214_v58 = vld [vmem:[%s4186_s0 + $0x640] sm:$0xff] }
  0x7a   :  { %1999 = vmatprep.subr.bf16.mxu0 %v2255_v0  ;;  %2114 = vmatpush1.bf16.msra.mxu1 %v2920_v61 }
  0x7b   :  { %581 = vmatmul.mubr.f32.gmra.mrb[28].mxu1 %v140_v1  ;;  %2099 = vmatprep.subr.bf16.mxu1 %v2255_v0  ;;  %v231_v1 = vld [vmem:[%s4186_s0 + $0x6c8] sm:$0xff] }
  0x7c   :  { %806 = vmatmul.mubr.f32.gmra.mrb[28].mxu0 %v142_v2  ;;  %585 = vmatprep.mubr.f32.mxu1 %v150_v5  ;;  %v233_v2 = vld [vmem:[%s4186_s0 + $0x6d8] sm:$0xff]  ;;  %v230_v5 = vld [vmem:[%s4186_s0 + $0x6c0] sm:$0xff] }
  0x7d   :  { %810 = vmatprep.mubr.f32.mxu0 %v152_v7  ;;  %2001 = vmatpush1.bf16.msra.mxu0 %v2000_v6  ;;  %v232_v6 = vld [vmem:[%s4186_s0 + $0x6d0] sm:$0xff] }
  0x7e   :  { %2002 = vmatprep.subr.bf16.mxu0 %v2255_v0  ;;  %2115 = vmatpush1.bf16.msra.mxu1 %v2949_v10  ;;  %v240_v7 = vld [vmem:[%s4186_s0 + $0x710] sm:$0xff] }
  0x7f   :  { %586 = vmatmul.mubr.f32.gmra.mrb[30].mxu1 %v149_v13  ;;  %2100 = vmatprep.subr.bf16.mxu1 %v2255_v0  ;;  %v251_v13 = vld [vmem:[%s4186_s0 + $0x768] sm:$0xff] }
  0x80   :  { %811 = vmatmul.mubr.f32.gmra.mrb[30].mxu0 %v151_v18  ;;  %590 = vmatprep.mubr.f32.mxu1 %v159_v19  ;;  %v258_v18 = vld [vmem:[%s4186_s0 + $0x7a0] sm:$0xff]  ;;  %v260_v19 = vld [vmem:[%s4186_s0 + $0x7b0] sm:$0xff] }
  0x81   :  { %815 = vmatprep.mubr.f32.mxu0 %v161_v21  ;;  %2004 = vmatpush1.bf16.msra.mxu0 %v2003_v20  ;;  %v257_v20 = vld [vmem:[%s4186_s0 + $0x798] sm:$0xff]  ;;  %v259_v21 = vld [vmem:[%s4186_s0 + $0x7a8] sm:$0xff] }
  0x82   :  { %2116 = vmatpush1.bf16.msra.mxu1 %v2978_v22  ;;  %2005 = vmatprep.subr.bf16.mxu0 %v2255_v0 }
  0x83   :  { %591 = vmatmul.mubr.f32.gmra.mrb[32].mxu1 %v158_v25  ;;  %2054 = vmatprep.subr.bf16.mxu1 %v2981_v23  ;;  %v267_v25 = vld [vmem:[%s4186_s0 + $0x7e8] sm:$0xff] }
  0x84   :  { %816 = vmatmul.mubr.f32.gmra.mrb[32].mxu0 %v160_v27  ;;  %595 = vmatprep.mubr.f32.mxu1 %v168_v28  ;;  %v269_v27 = vld [vmem:[%s4186_s0 + $0x7f8] sm:$0xff]  ;;  %v266_v28 = vld [vmem:[%s4186_s0 + $0x7e0] sm:$0xff] }
  0x85   :  { %820 = vmatprep.mubr.f32.mxu0 %v170_v29  ;;  %v268_v29 = vld [vmem:[%s4186_s0 + $0x7f0] sm:$0xff] }
  0x87   :  { %596 = vmatmul.mubr.f32.gmra.mrb[34].mxu1 %v167_v30  ;;  %v276_v30 = vld [vmem:[%s4186_s0 + $0x830] sm:$0xff] }
  0x88   :  { %821 = vmatmul.mubr.f32.gmra.mrb[34].mxu0 %v169_v31  ;;  %600 = vmatprep.mubr.f32.mxu1 %v177_v32  ;;  %v278_v31 = vld [vmem:[%s4186_s0 + $0x840] sm:$0xff]  ;;  %v275_v32 = vld [vmem:[%s4186_s0 + $0x828] sm:$0xff] }
  0x89   :  { %825 = vmatprep.mubr.f32.mxu0 %v179_v33  ;;  %v277_v33 = vld [vmem:[%s4186_s0 + $0x838] sm:$0xff] }
  0x8b   :  { %601 = vmatmul.mubr.f32.gmra.mrb[36].mxu1 %v176_v35  ;;  %v285_v35 = vld [vmem:[%s4186_s0 + $0x878] sm:$0xff] }
  0x8c   :  { %826 = vmatmul.mubr.f32.gmra.mrb[36].mxu0 %v178_v36  ;;  %605 = vmatprep.mubr.f32.mxu1 %v186_v38  ;;  %v287_v36 = vld [vmem:[%s4186_s0 + $0x888] sm:$0xff]  ;;  %v284_v38 = vld [vmem:[%s4186_s0 + $0x870] sm:$0xff] }
  0x8d   :  { %830 = vmatprep.mubr.f32.mxu0 %v188_v39  ;;  %v286_v39 = vld [vmem:[%s4186_s0 + $0x880] sm:$0xff] }
  0x8f   :  { %606 = vmatmul.mubr.f32.gmra.mrb[38].mxu1 %v185_v40  ;;  %v294_v40 = vld [vmem:[%s4186_s0 + $0x8c0] sm:$0xff] }
  0x90   :  { %831 = vmatmul.mubr.f32.gmra.mrb[38].mxu0 %v187_v41  ;;  %610 = vmatprep.mubr.f32.mxu1 %v195_v42  ;;  %v296_v41 = vld [vmem:[%s4186_s0 + $0x8d0] sm:$0xff]  ;;  %v293_v42 = vld [vmem:[%s4186_s0 + $0x8b8] sm:$0xff] }
  0x91   :  { %835 = vmatprep.mubr.f32.mxu0 %v197_v43  ;;  %v295_v43 = vld [vmem:[%s4186_s0 + $0x8c8] sm:$0xff] }
  0x93   :  { %611 = vmatmul.mubr.f32.gmra.mrb[40].mxu1 %v194_v45  ;;  %v93_v45 = vld [vmem:[%s4186_s0 + $0x278] sm:$0xff] }
  0x94   :  { %836 = vmatmul.mubr.f32.gmra.mrb[40].mxu0 %v196_v46  ;;  %615 = vmatprep.mubr.f32.mxu1 %v204_v48  ;;  %v19_v46 = vld [vmem:[%s4186_s0 + $0x28] sm:$0xff]  ;;  %v92_v48 = vld [vmem:[%s4186_s0 + $0x270] sm:$0xff] }
  0x95   :  { %840 = vmatprep.mubr.f32.mxu0 %v206_v50  ;;  %v432_v50 = vld [vmem:[%s4185_s1 + $0x410] sm:$0xff] }
  0x97   :  { %616 = vmatmul.mubr.f32.gmra.mrb[42].mxu1 %v203_v51  ;;  %v433_v51 = vld [vmem:[%s4185_s1 + $0x418] sm:$0xff] }
  0x98   :  { %841 = vmatmul.mubr.f32.gmra.mrb[42].mxu0 %v205_v52  ;;  %620 = vmatprep.mubr.f32.mxu1 %v213_v53  ;;  %v18_v52 = vld [vmem:[%s4186_s0 + $0x20] sm:$0xff] }
  0x99   :  { %845 = vmatprep.mubr.f32.mxu0 %v215_v54  ;;  %v102_v53 = vld [vmem:[%s4186_s0 + $0x2c0] sm:$0xff]  ;;  %v28_v54 = vld [vmem:[%s4186_s0 + $0x70] sm:$0xff] }
  0x9b   :  { %621 = vmatmul.mubr.f32.gmra.mrb[44].mxu1 %v212_v56  ;;  %v2057_v56 = vpack.c.bf16 %v433_v51, %v432_v50  ;;  %v174_v50 = vld [vmem:[%s4186_s0 + $0x500] sm:$0xff]  ;;  %v100_v51 = vld [vmem:[%s4186_s0 + $0x2b0] sm:$0xff] }
  0x9c   :  { %846 = vmatmul.mubr.f32.gmra.mrb[44].mxu0 %v214_v58  ;;  %625 = vmatprep.mubr.f32.mxu1 %v222_v59  ;;  %v101_v58 = vld [vmem:[%s4186_s0 + $0x2b8] sm:$0xff]  ;;  %v434_v59 = vld [vmem:[%s4185_s1 + $0x420] sm:$0xff] }
  0x9d   :  { %850 = vmatprep.mubr.f32.mxu0 %v224_v60  ;;  %v435_v60 = vld [vmem:[%s4185_s1 + $0x428] sm:$0xff] }
  0x9f   :  { %626 = vmatmul.mubr.f32.gmra.mrb[46].mxu1 %v221_v62  ;;  %v27_v62 = vld [vmem:[%s4186_s0 + $0x68] sm:$0xff] }
  0xa0   :  { %851 = vmatmul.mubr.f32.gmra.mrb[46].mxu0 %v223_v63  ;;  %630 = vmatprep.mubr.f32.mxu1 %v231_v1  ;;  %v111_v63 = vld [vmem:[%s4186_s0 + $0x308] sm:$0xff]  ;;  %v37_v1 = vld [vmem:[%s4186_s0 + $0xb8] sm:$0xff] }
  0xa1   :  { %855 = vmatprep.mubr.f32.mxu0 %v233_v2  ;;  %v110_v2 = vld [vmem:[%s4186_s0 + $0x300] sm:$0xff] }
  0xa3   :  { %631 = vmatmul.mubr.f32.gmra.mrb[48].mxu1 %v230_v5  ;;  %v436_v5 = vld [vmem:[%s4185_s1 + $0x430] sm:$0xff] }
  0xa4   :  { %856 = vmatmul.mubr.f32.gmra.mrb[48].mxu0 %v232_v6  ;;  %635 = vmatprep.mubr.f32.mxu1 %v240_v7  ;;  %v437_v6 = vld [vmem:[%s4185_s1 + $0x438] sm:$0xff]  ;;  %v120_v7 = vld [vmem:[%s4186_s0 + $0x350] sm:$0xff] }
  0xa5   :  { %860 = vmatprep.mubr.f32.mxu0 %v242_v8  ;;  %v46_v8 = vld [vmem:[%s4186_s0 + $0x100] sm:$0xff] }
  0xa7   :  { %636 = vmatmul.mubr.f32.gmra.mrb[50].mxu1 %v239_v9  ;;  %v2065_v9 = vpack.c.bf16 %v437_v6, %v436_v5  ;;  %v209_v5 = vld [vmem:[%s4186_s0 + $0x618] sm:$0xff]  ;;  %v135_v6 = vld [vmem:[%s4186_s0 + $0x3c8] sm:$0xff] }
  0xa8   :  { %861 = vmatmul.mubr.f32.gmra.mrb[50].mxu0 %v241_v11  ;;  %640 = vmatprep.mubr.f32.mxu1 %v249_v12  ;;  %v438_v11 = vld [vmem:[%s4185_s1 + $0x440] sm:$0xff]  ;;  %v439_v12 = vld [vmem:[%s4185_s1 + $0x448] sm:$0xff] }
  0xa9   :  { %865 = vmatprep.mubr.f32.mxu0 %v251_v13  ;;  %v45_v13 = vld [vmem:[%s4186_s0 + $0xf8] sm:$0xff] }
  0xab   :  { %641 = vmatmul.mubr.f32.gmra.mrb[52].mxu1 %v248_v16  ;;  %v129_v16 = vld [vmem:[%s4186_s0 + $0x398] sm:$0xff] }
  0xac   :  { %866 = vmatmul.mubr.f32.gmra.mrb[52].mxu0 %v250_v17  ;;  %645 = vmatprep.mubr.f32.mxu1 %v258_v18  ;;  %v55_v17 = vld [vmem:[%s4186_s0 + $0x148] sm:$0xff]  ;;  %v2069_v18 = vpack.c.bf16 %v439_v12, %v438_v11  ;;  %v153_v11 = vld [vmem:[%s4186_s0 + $0x458] sm:$0xff] }
  0xad   :  { %870 = vmatprep.mubr.f32.mxu0 %v260_v19  ;;  %v128_v19 = vld [vmem:[%s4186_s0 + $0x390] sm:$0xff]  ;;  %v163_v12 = vld [vmem:[%s4186_s0 + $0x4a8] sm:$0xff] }
  0xaf   :  { %646 = vmatmul.mubr.f32.gmra.mrb[54].mxu1 %v257_v20  ;;  %v441_v20 = vld [vmem:[%s4185_s1 + $0x458] sm:$0xff] }
  0xb0   :  { %871 = vmatmul.mubr.f32.gmra.mrb[54].mxu0 %v259_v21  ;;  %650 = vmatprep.mubr.f32.mxu1 %v267_v25  ;;  %v54_v21 = vld [vmem:[%s4186_s0 + $0x140] sm:$0xff] }
  0xb1   :  { %875 = vmatprep.mubr.f32.mxu0 %v269_v27  ;;  %v138_v25 = vld [vmem:[%s4186_s0 + $0x3e0] sm:$0xff]  ;;  %v64_v27 = vld [vmem:[%s4186_s0 + $0x190] sm:$0xff] }
  0xb3   :  { %651 = vmatmul.mubr.f32.gmra.mrb[56].mxu1 %v266_v28 }
  0xb4   :  { %876 = vmatmul.mubr.f32.gmra.mrb[56].mxu0 %v268_v29  ;;  %655 = vmatprep.mubr.f32.mxu1 %v276_v30  ;;  %v137_v29 = vld [vmem:[%s4186_s0 + $0x3d8] sm:$0xff]  ;;  %v443_v30 = vld [vmem:[%s4185_s1 + $0x468] sm:$0xff] }
  0xb5   :  { %880 = vmatprep.mubr.f32.mxu0 %v278_v31  ;;  %v63_v31 = vld [vmem:[%s4186_s0 + $0x188] sm:$0xff] }
  0xb7   :  { %656 = vmatmul.mubr.f32.gmra.mrb[58].mxu1 %v275_v32  ;;  %v147_v32 = vld [vmem:[%s4186_s0 + $0x428] sm:$0xff] }
  0xb8   :  { %881 = vmatmul.mubr.f32.gmra.mrb[58].mxu0 %v277_v33  ;;  %660 = vmatprep.mubr.f32.mxu1 %v285_v35  ;;  %v73_v33 = vld [vmem:[%s4186_s0 + $0x1d8] sm:$0xff] }
  0xb9   :  { %885 = vmatprep.mubr.f32.mxu0 %v287_v36  ;;  %v146_v36 = vld [vmem:[%s4186_s0 + $0x420] sm:$0xff] }
  0xbb   :  { %661 = vmatmul.mubr.f32.gmra.mrb[60].mxu1 %v284_v38  ;;  %v445_v38 = vld [vmem:[%s4185_s1 + $0x478] sm:$0xff] }
  0xbc   :  { %886 = vmatmul.mubr.f32.gmra.mrb[60].mxu0 %v286_v39  ;;  %665 = vmatprep.mubr.f32.mxu1 %v294_v40  ;;  %v72_v39 = vld [vmem:[%s4186_s0 + $0x1d0] sm:$0xff] }
  0xbd   :  { %890 = vmatprep.mubr.f32.mxu0 %v296_v41  ;;  %v156_v40 = vld [vmem:[%s4186_s0 + $0x470] sm:$0xff]  ;;  %v82_v41 = vld [vmem:[%s4186_s0 + $0x220] sm:$0xff] }
  0xbf   :  { %666 = vmatmul.mubr.f32.gmra.mrb[62].mxu1 %v293_v42 }
  0xc0   :  { %891 = vmatmul.mubr.f32.gmra.mrb[62].mxu0 %v295_v43  ;;  %1225 = vmatprep.mubr.f32.mxu1 %v93_v45  ;;  %v155_v43 = vld [vmem:[%s4186_s0 + $0x468] sm:$0xff]  ;;  %v165_v45 = vld [vmem:[%s4186_s0 + $0x4b8] sm:$0xff] }
  0xc1   :  { %960 = vmatprep.mubr.f32.mxu0 %v19_v46  ;;  %v91_v46 = vld [vmem:[%s4186_s0 + $0x268] sm:$0xff] }
  0xc3   :  { %1226 = vmatmul.mubr.f32.vlgmr.msra.gmra.mrb[64].mxu1 %v92_v48  ;;  %v164_v48 = vld [vmem:[%s4186_s0 + $0x4b0] sm:$0xff] }
  0xc4   :  { %961 = vmatmul.mubr.f32.vlgmr.msra.gmra.mrb[0].mxu0 %v18_v52  ;;  %1230 = vmatprep.mubr.f32.mxu1 %v102_v53  ;;  %v173_v52 = vld [vmem:[%s4186_s0 + $0x4f8] sm:$0xff]  ;;  %v99_v53 = vld [vmem:[%s4186_s0 + $0x2a8] sm:$0xff] }
  0xc5   :  { %2007 = vmatpush1.bf16.msra.mxu0 %v2544_v47  ;;  %965 = vmatprep.mubr.f32.mxu0 %v28_v54  ;;  %v2061_v47 = vpack.c.bf16 %v435_v60, %v434_v59  ;;  %v109_v54 = vld [vmem:[%s4186_s0 + $0x2f8] sm:$0xff]  ;;  %v118_v59 = vld [vmem:[%s4186_s0 + $0x340] sm:$0xff]  ;;  %v191_v60 = vld [vmem:[%s4186_s0 + $0x588] sm:$0xff] }
  0xc6   :  { %2008 = vmatprep.subr.bf16.mxu0 %v2255_v0  ;;  %2056 = vmatpush3.bf16.msra.mxu1 %v2981_v23  ;;  %v36_v23 = vld [vmem:[%s4186_s0 + $0xb0] sm:$0xff] }
  0xc7   :  { %1231 = vmatmul.mubr.f32.gmra.mrb[66].mxu1 %v101_v58  ;;  %2058 = vmatprep.subr.bf16.mxu1 %v2057_v56  ;;  %v108_v58 = vld [vmem:[%s4186_s0 + $0x2f0] sm:$0xff] }
  0xc8   :  { %966 = vmatmul.mubr.f32.gmra.mrb[2].mxu0 %v27_v62  ;;  %1235 = vmatprep.mubr.f32.mxu1 %v111_v63  ;;  %v117_v62 = vld [vmem:[%s4186_s0 + $0x338] sm:$0xff]  ;;  %v127_v63 = vld [vmem:[%s4186_s0 + $0x388] sm:$0xff] }
  0xc9   :  { %970 = vmatprep.mubr.f32.mxu0 %v37_v1  ;;  %2010 = vmatpush1.bf16.msra.mxu0 %v2572_v57  ;;  %v119_v57 = vld [vmem:[%s4186_s0 + $0x348] sm:$0xff]  ;;  %v200_v1 = vld [vmem:[%s4186_s0 + $0x5d0] sm:$0xff] }
  0xca   :  { %2011 = vmatprep.subr.bf16.mxu0 %v2255_v0  ;;  %2060 = vmatpush3.bf16.msra.mxu1 %v2057_v56  ;;  %v182_v56 = vld [vmem:[%s4186_s0 + $0x540] sm:$0xff] }
  0xcb   :  { %1236 = vmatmul.mubr.f32.gmra.mrb[68].mxu1 %v110_v2  ;;  %2062 = vmatprep.subr.bf16.mxu1 %v2061_v47  ;;  %v136_v2 = vld [vmem:[%s4186_s0 + $0x3d0] sm:$0xff] }
  0xcc   :  { %971 = vmatmul.mubr.f32.gmra.mrb[4].mxu0 %v36_v23  ;;  %1240 = vmatprep.mubr.f32.mxu1 %v120_v7  ;;  %v145_v23 = vld [vmem:[%s4186_s0 + $0x418] sm:$0xff]  ;;  %v218_v7 = vld [vmem:[%s4186_s0 + $0x660] sm:$0xff] }
  0xcd   :  { %975 = vmatprep.mubr.f32.mxu0 %v46_v8  ;;  %2013 = vmatpush1.bf16.msra.mxu0 %v2601_v4  ;;  %v440_v4 = vld [vmem:[%s4185_s1 + $0x450] sm:$0xff] }
  0xce   :  { %2014 = vmatprep.subr.bf16.mxu0 %v2255_v0  ;;  %2064 = vmatpush3.bf16.msra.mxu1 %v2061_v47  ;;  %v2073_v28 = vpack.c.bf16 %v441_v20, %v440_v4  ;;  %v126_v47 = vld [vmem:[%s4186_s0 + $0x380] sm:$0xff]  ;;  %v144_v8 = vld [vmem:[%s4186_s0 + $0x410] sm:$0xff] }
  0xcf   :  { %1241 = vmatmul.mubr.f32.gmra.mrb[70].mxu1 %v119_v57  ;;  %2066 = vmatprep.subr.bf16.mxu1 %v2065_v9  ;;  %v227_v57 = vld [vmem:[%s4186_s0 + $0x6a8] sm:$0xff]  ;;  %v254_v4 = vld [vmem:[%s4186_s0 + $0x780] sm:$0xff]  ;;  %v180_v20 = vld [vmem:[%s4186_s0 + $0x530] sm:$0xff] }
  0xd0   :  { %976 = vmatmul.mubr.f32.gmra.mrb[6].mxu0 %v45_v13  ;;  %1245 = vmatprep.mubr.f32.mxu1 %v129_v16  ;;  %v236_v13 = vld [vmem:[%s4186_s0 + $0x6f0] sm:$0xff]  ;;  %v162_v16 = vld [vmem:[%s4186_s0 + $0x4a0] sm:$0xff] }
  0xd1   :  { %980 = vmatprep.mubr.f32.mxu0 %v55_v17  ;;  %2016 = vmatpush1.bf16.msra.mxu0 %v2630_v14  ;;  %v442_v14 = vld [vmem:[%s4185_s1 + $0x460] sm:$0xff]  ;;  %v245_v17 = vld [vmem:[%s4186_s0 + $0x738] sm:$0xff] }
  0xd2   :  { %2017 = vmatprep.subr.bf16.mxu0 %v2255_v0  ;;  %2068 = vmatpush3.bf16.msra.mxu1 %v2065_v9  ;;  %v2077_v35 = vpack.c.bf16 %v443_v30, %v442_v14  ;;  %v154_v9 = vld [vmem:[%s4186_s0 + $0x460] sm:$0xff]  ;;  %v199_v14 = vld [vmem:[%s4186_s0 + $0x5c8] sm:$0xff]  ;;  %v272_v30 = vld [vmem:[%s4186_s0 + $0x810] sm:$0xff] }
  0xd3   :  { %1246 = vmatmul.mubr.f32.gmra.mrb[72].mxu1 %v128_v19  ;;  %2070 = vmatprep.subr.bf16.mxu1 %v2069_v18  ;;  %v181_v19 = vld [vmem:[%s4186_s0 + $0x538] sm:$0xff] }
  0xd4   :  { %981 = vmatmul.mubr.f32.gmra.mrb[8].mxu0 %v54_v21  ;;  %1250 = vmatprep.mubr.f32.mxu1 %v138_v25  ;;  %v264_v21 = vld [vmem:[%s4186_s0 + $0x7d0] sm:$0xff]  ;;  %v190_v25 = vld [vmem:[%s4186_s0 + $0x580] sm:$0xff] }
  0xd5   :  { %985 = vmatprep.mubr.f32.mxu0 %v64_v27  ;;  %2019 = vmatpush1.bf16.msra.mxu0 %v2659_v24  ;;  %v444_v24 = vld [vmem:[%s4185_s1 + $0x470] sm:$0xff]  ;;  %v263_v27 = vld [vmem:[%s4186_s0 + $0x7c8] sm:$0xff] }
  0xd6   :  { %2020 = vmatprep.subr.bf16.mxu0 %v2255_v0  ;;  %2072 = vmatpush3.bf16.msra.mxu1 %v2069_v18  ;;  %v2081_v42 = vpack.c.bf16 %v445_v38, %v444_v24  ;;  %v171_v18 = vld [vmem:[%s4186_s0 + $0x4e8] sm:$0xff]  ;;  %v217_v38 = vld [vmem:[%s4186_s0 + $0x658] sm:$0xff] }
  0xd7   :  { %1251 = vmatmul.mubr.f32.gmra.mrb[74].mxu1 %v137_v29  ;;  %2074 = vmatprep.subr.bf16.mxu1 %v2073_v28  ;;  %v273_v29 = vld [vmem:[%s4186_s0 + $0x818] sm:$0xff]  ;;  %v291_v24 = vld [vmem:[%s4186_s0 + $0x8a8] sm:$0xff] }
  0xd8   :  { %986 = vmatmul.mubr.f32.gmra.mrb[10].mxu0 %v63_v31  ;;  %1255 = vmatprep.mubr.f32.mxu1 %v147_v32  ;;  %v198_v31 = vld [vmem:[%s4186_s0 + $0x5c0] sm:$0xff] }
  0xd9   :  { %990 = vmatprep.mubr.f32.mxu0 %v73_v33  ;;  %2022 = vmatpush1.bf16.msra.mxu0 %v2688_v34  ;;  %v81_v34 = vld [vmem:[%s4186_s0 + $0x218] sm:$0xff]  ;;  %v282_v32 = vld [vmem:[%s4186_s0 + $0x860] sm:$0xff]  ;;  %v208_v33 = vld [vmem:[%s4186_s0 + $0x610] sm:$0xff] }
  0xda   :  { %2023 = vmatprep.subr.bf16.mxu0 %v2255_v0  ;;  %2076 = vmatpush3.bf16.msra.mxu1 %v2073_v28  ;;  %v189_v28 = vld [vmem:[%s4186_s0 + $0x578] sm:$0xff] }
  0xdb   :  { %1256 = vmatmul.mubr.f32.gmra.mrb[76].mxu1 %v146_v36  ;;  %2078 = vmatprep.subr.bf16.mxu1 %v2077_v35  ;;  %v207_v36 = vld [vmem:[%s4186_s0 + $0x608] sm:$0xff] }
  0xdc   :  { %991 = vmatmul.mubr.f32.gmra.mrb[12].mxu0 %v72_v39  ;;  %1260 = vmatprep.mubr.f32.mxu1 %v156_v40 }
  0xdd   :  { %995 = vmatprep.mubr.f32.mxu0 %v82_v41  ;;  %2025 = vmatpush1.bf16.msra.mxu0 %v2717_v44  ;;  %v90_v44 = vld [vmem:[%s4186_s0 + $0x260] sm:$0xff] }
  0xde   :  { %2026 = vmatprep.subr.bf16.mxu0 %v2255_v0  ;;  %2080 = vmatpush3.bf16.msra.mxu1 %v2077_v35  ;;  %v281_v35 = vld [vmem:[%s4186_s0 + $0x858] sm:$0xff]  ;;  %v290_v41 = vld [vmem:[%s4186_s0 + $0x8a0] sm:$0xff] }
  0xdf   :  { %1261 = vmatmul.mubr.f32.gmra.mrb[78].mxu1 %v155_v43  ;;  %2082 = vmatprep.subr.bf16.mxu1 %v2081_v42  ;;  %v300_v43 = vld [vmem:[%s4186_s0 + $0x8f0] sm:$0xff] }
  0xe0   :  { %996 = vmatmul.mubr.f32.gmra.mrb[14].mxu0 %v81_v34  ;;  %1265 = vmatprep.mubr.f32.mxu1 %v165_v45  ;;  %v226_v34 = vld [vmem:[%s4186_s0 + $0x6a0] sm:$0xff] }
  0xe1   :  { %1000 = vmatprep.mubr.f32.mxu0 %v91_v46  ;;  %2028 = vmatpush1.bf16.msra.mxu0 %v2746_v55  ;;  %v183_v55 = vld [vmem:[%s4186_s0 + $0x548] sm:$0xff] }
  0xe2   :  { %2029 = vmatprep.subr.bf16.mxu0 %v2255_v0  ;;  %2084 = vmatpush3.bf16.msra.mxu1 %v2081_v42  ;;  %v216_v42 = vld [vmem:[%s4186_s0 + $0x650] sm:$0xff] }
  0xe3   :  { %1266 = vmatmul.mubr.f32.gmra.mrb[80].mxu1 %v164_v48  ;;  %v299_v48 = vld [vmem:[%s4186_s0 + $0x8e8] sm:$0xff] }
  0xe4   :  { %1001 = vmatmul.mubr.f32.gmra.mrb[16].mxu0 %v90_v44  ;;  %1270 = vmatprep.mubr.f32.mxu1 %v174_v50  ;;  %v225_v44 = vld [vmem:[%s4186_s0 + $0x698] sm:$0xff]  ;;  %v22_v50 = vld [vmem:[%s4186_s0 + $0x40] sm:$0xff] }
  0xe5   :  { %1005 = vmatprep.mubr.f32.mxu0 %v100_v51  ;;  %2031 = vmatpush1.bf16.msra.mxu0 %v2775_v3  ;;  %v192_v3 = vld [vmem:[%s4186_s0 + $0x590] sm:$0xff]  ;;  %v235_v51 = vld [vmem:[%s4186_s0 + $0x6e8] sm:$0xff] }
  0xe6   :  { %2032 = vmatprep.subr.bf16.mxu0 %v2255_v0 }
  0xe7   :  { %1271 = vmatmul.mubr.f32.gmra.mrb[82].mxu1 %v173_v52 }
  0xe8   :  { %1006 = vmatmul.mubr.f32.gmra.mrb[18].mxu0 %v99_v53  ;;  %1275 = vmatprep.mubr.f32.mxu1 %v183_v55  ;;  %v31_v55 = vld [vmem:[%s4186_s0 + $0x88] sm:$0xff] }
  0xe9   :  { %1010 = vmatprep.mubr.f32.mxu0 %v109_v54  ;;  %2034 = vmatpush1.bf16.msra.mxu0 %v2804_v15  ;;  %v201_v15 = vld [vmem:[%s4186_s0 + $0x5d8] sm:$0xff]  ;;  %v234_v54 = vld [vmem:[%s4186_s0 + $0x6e0] sm:$0xff] }
  0xea   :  { %2035 = vmatprep.subr.bf16.mxu0 %v2255_v0 }
  0xeb   :  { %1276 = vmatmul.mubr.f32.gmra.mrb[84].mxu1 %v182_v56  ;;  %v40_v56 = vld [vmem:[%s4186_s0 + $0xd0] sm:$0xff] }
  0xec   :  { %1011 = vmatmul.mubr.f32.gmra.mrb[20].mxu0 %v108_v58  ;;  %1280 = vmatprep.mubr.f32.mxu1 %v192_v3  ;;  %v244_v58 = vld [vmem:[%s4186_s0 + $0x730] sm:$0xff] }
  0xed   :  { %1015 = vmatprep.mubr.f32.mxu0 %v118_v59  ;;  %2037 = vmatpush1.bf16.msra.mxu0 %v2833_v26  ;;  %v210_v26 = vld [vmem:[%s4186_s0 + $0x620] sm:$0xff] }
  0xee   :  { %2038 = vmatprep.subr.bf16.mxu0 %v2255_v0 }
  0xef   :  { %1281 = vmatmul.mubr.f32.gmra.mrb[86].mxu1 %v191_v60  ;;  %v49_v60 = vld [vmem:[%s4186_s0 + $0x118] sm:$0xff] }
  0xf0   :  { %1016 = vmatmul.mubr.f32.gmra.mrb[22].mxu0 %v117_v62  ;;  %1285 = vmatprep.mubr.f32.mxu1 %v201_v15  ;;  %v243_v62 = vld [vmem:[%s4186_s0 + $0x728] sm:$0xff]  ;;  %v58_v15 = vld [vmem:[%s4186_s0 + $0x160] sm:$0xff] }
  0xf1   :  { %1020 = vmatprep.mubr.f32.mxu0 %v127_v63  ;;  %2040 = vmatpush1.bf16.msra.mxu0 %v2862_v37  ;;  %v219_v37 = vld [vmem:[%s4186_s0 + $0x668] sm:$0xff]  ;;  %v253_v63 = vld [vmem:[%s4186_s0 + $0x778] sm:$0xff] }
  0xf2   :  { %2041 = vmatprep.subr.bf16.mxu0 %v2255_v0 }
  0xf3   :  { %1286 = vmatmul.mubr.f32.gmra.mrb[88].mxu1 %v200_v1 }
  0xf4   :  { %1021 = vmatmul.mubr.f32.gmra.mrb[24].mxu0 %v126_v47  ;;  %1290 = vmatprep.mubr.f32.mxu1 %v210_v26  ;;  %v67_v26 = vld [vmem:[%s4186_s0 + $0x1a8] sm:$0xff] }
  0xf5   :  { %1025 = vmatprep.mubr.f32.mxu0 %v136_v2  ;;  %2043 = vmatpush1.bf16.msra.mxu0 %v2891_v49  ;;  %v228_v49 = vld [vmem:[%s4186_s0 + $0x6b0] sm:$0xff] }
  0xf6   :  { %2044 = vmatprep.subr.bf16.mxu0 %v2255_v0  ;;  %v252_v2 = vld [vmem:[%s4186_s0 + $0x770] sm:$0xff] }
  0xf7   :  { %1291 = vmatmul.mubr.f32.gmra.mrb[90].mxu1 %v209_v5  ;;  %v76_v5 = vld [vmem:[%s4186_s0 + $0x1f0] sm:$0xff] }
  0xf8   :  { %1026 = vmatmul.mubr.f32.gmra.mrb[26].mxu0 %v135_v6  ;;  %1295 = vmatprep.mubr.f32.mxu1 %v219_v37  ;;  %v262_v6 = vld [vmem:[%s4186_s0 + $0x7c0] sm:$0xff] }
  0xf9   :  { %1030 = vmatprep.mubr.f32.mxu0 %v145_v23  ;;  %2046 = vmatpush1.bf16.msra.mxu0 %v2920_v61  ;;  %v237_v61 = vld [vmem:[%s4186_s0 + $0x6f8] sm:$0xff] }
  0xfa   :  { %2047 = vmatprep.subr.bf16.mxu0 %v2255_v0 }
  0xfb   :  { %1296 = vmatmul.mubr.f32.gmra.mrb[92].mxu1 %v218_v7  ;;  %v85_v7 = vld [vmem:[%s4186_s0 + $0x238] sm:$0xff] }
  0xfc   :  { %1031 = vmatmul.mubr.f32.gmra.mrb[28].mxu0 %v144_v8  ;;  %1300 = vmatprep.mubr.f32.mxu1 %v228_v49  ;;  %v261_v8 = vld [vmem:[%s4186_s0 + $0x7b8] sm:$0xff]  ;;  %v94_v49 = vld [vmem:[%s4186_s0 + $0x280] sm:$0xff] }
  0xfd   :  { %1035 = vmatprep.mubr.f32.mxu0 %v154_v9  ;;  %2049 = vmatpush1.bf16.msra.mxu0 %v2949_v10  ;;  %v246_v10 = vld [vmem:[%s4186_s0 + $0x740] sm:$0xff]  ;;  %v271_v9 = vld [vmem:[%s4186_s0 + $0x808] sm:$0xff] }
  0xfe   :  { %2050 = vmatprep.subr.bf16.mxu0 %v2255_v0  ;;  %v172_v0 = vld [vmem:[%s4186_s0 + $0x4f0] sm:$0xff] }
  0xff   :  { %1301 = vmatmul.mubr.f32.gmra.mrb[94].mxu1 %v227_v57 }
 0x100   :  { %1036 = vmatmul.mubr.f32.gmra.mrb[30].mxu0 %v153_v11  ;;  %1305 = vmatprep.mubr.f32.mxu1 %v237_v61  ;;  %v103_v61 = vld [vmem:[%s4186_s0 + $0x2c8] sm:$0xff] }
 0x101   :  { %1040 = vmatprep.mubr.f32.mxu0 %v163_v12  ;;  %2052 = vmatpush1.bf16.msra.mxu0 %v2978_v22  ;;  %v255_v22 = vld [vmem:[%s4186_s0 + $0x788] sm:$0xff]  ;;  %v270_v12 = vld [vmem:[%s4186_s0 + $0x800] sm:$0xff] }
 0x103   :  { %1306 = vmatmul.mubr.f32.gmra.mrb[96].mxu1 %v236_v13  ;;  %v112_v13 = vld [vmem:[%s4186_s0 + $0x310] sm:$0xff] }
 0x104   :  { %1041 = vmatmul.mubr.f32.gmra.mrb[32].mxu0 %v162_v16  ;;  %1310 = vmatprep.mubr.f32.mxu1 %v246_v10  ;;  %v280_v16 = vld [vmem:[%s4186_s0 + $0x850] sm:$0xff] }
 0x105   :  { %1045 = vmatprep.mubr.f32.mxu0 %v172_v0 }
 0x107   :  { %1311 = vmatmul.mubr.f32.gmra.mrb[98].mxu1 %v245_v17  ;;  %v121_v17 = vld [vmem:[%s4186_s0 + $0x358] sm:$0xff] }
 0x108   :  { %1046 = vmatmul.mubr.f32.gmra.mrb[34].mxu0 %v171_v18  ;;  %1315 = vmatprep.mubr.f32.mxu1 %v255_v22  ;;  %v279_v18 = vld [vmem:[%s4186_s0 + $0x848] sm:$0xff]  ;;  %v130_v22 = vld [vmem:[%s4186_s0 + $0x3a0] sm:$0xff] }
 0x109   :  { %1050 = vmatprep.mubr.f32.mxu0 %v181_v19  ;;  %v289_v19 = vld [vmem:[%s4186_s0 + $0x898] sm:$0xff] }
 0x10b   :  { %1316 = vmatmul.mubr.f32.gmra.mrb[100].mxu1 %v254_v4 }
 0x10c   :  { %1051 = vmatmul.mubr.f32.gmra.mrb[36].mxu0 %v180_v20  ;;  %1320 = vmatprep.mubr.f32.mxu1 %v264_v21  ;;  %v139_v21 = vld [vmem:[%s4186_s0 + $0x3e8] sm:$0xff] }
 0x10d   :  { %1055 = vmatprep.mubr.f32.mxu0 %v190_v25  ;;  %v288_v25 = vld [vmem:[%s4186_s0 + $0x890] sm:$0xff] }
 0x10f   :  { %1321 = vmatmul.mubr.f32.gmra.mrb[102].mxu1 %v263_v27  ;;  %v148_v27 = vld [vmem:[%s4186_s0 + $0x430] sm:$0xff] }
 0x110   :  { %1056 = vmatmul.mubr.f32.gmra.mrb[38].mxu0 %v189_v28  ;;  %1325 = vmatprep.mubr.f32.mxu1 %v273_v29  ;;  %v298_v28 = vld [vmem:[%s4186_s0 + $0x8e0] sm:$0xff] }
 0x111   :  { %1060 = vmatprep.mubr.f32.mxu0 %v199_v14 }
 0x113   :  { %1326 = vmatmul.mubr.f32.gmra.mrb[104].mxu1 %v272_v30  ;;  %v157_v30 = vld [vmem:[%s4186_s0 + $0x478] sm:$0xff] }
 0x114   :  { %1061 = vmatmul.mubr.f32.gmra.mrb[40].mxu0 %v198_v31  ;;  %1330 = vmatprep.mubr.f32.mxu1 %v282_v32  ;;  %v297_v31 = vld [vmem:[%s4186_s0 + $0x8d8] sm:$0xff]  ;;  %v166_v32 = vld [vmem:[%s4186_s0 + $0x4c0] sm:$0xff] }
 0x115   :  { %1065 = vmatprep.mubr.f32.mxu0 %v208_v33  ;;  %v21_v33 = vld [vmem:[%s4186_s0 + $0x38] sm:$0xff] }
 0x116   :  { %v3516_v39 = vpop.f32.mrb[0].mxu1 }
 0x117   :  { %1331 = vmatmul.mubr.f32.gmra.mrb[106].mxu1 %v281_v35  ;;  %v514_v40 = vpop.f32.mrb[1].mxu1 }
 0x118   :  { %1066 = vmatmul.mubr.f32.gmra.mrb[42].mxu0 %v207_v36  ;;  %1335 = vmatprep.mubr.f32.mxu1 %v291_v24  ;;  %v175_v24 = vld [vmem:[%s4186_s0 + $0x508] sm:$0xff]  ;;  %v184_v40 = vld [vmem:[%s4186_s0 + $0x550] sm:$0xff] }
 0x119   :  { %1070 = vmatprep.mubr.f32.mxu0 %v217_v38  ;;  %v20_v38 = vld [vmem:[%s4186_s0 + $0x30] sm:$0xff] }
 0x11a   :  { %v3530_v45 = vpop.f32.mrb[2].mxu1 }
 0x11b   :  { %1336 = vmatmul.mubr.f32.gmra.mrb[108].mxu1 %v290_v41  ;;  %v519_v46 = vpop.f32.mrb[3].mxu1  ;;  %v30_v41 = vld [vmem:[%s4186_s0 + $0x80] sm:$0xff] }
 0x11c   :  { %1071 = vmatmul.mubr.f32.gmra.mrb[44].mxu0 %v216_v42  ;;  %1340 = vmatprep.mubr.f32.mxu1 %v300_v43  ;;  %v29_v46 = vld [vmem:[%s4186_s0 + $0x78] sm:$0xff] }
 0x11d   :  { %1075 = vmatprep.mubr.f32.mxu0 %v226_v34  ;;  %v193_v34 = vld [vmem:[%s4186_s0 + $0x598] sm:$0xff] }
 0x11e   :  { %v3544_v52 = vpop.f32.mrb[4].mxu1 }
 0x11f   :  { %1341 = vmatmul.mubr.f32.gmra.mrb[110].mxu1 %v299_v48  ;;  %v524_v53 = vpop.f32.mrb[5].mxu1  ;;  %v202_v48 = vld [vmem:[%s4186_s0 + $0x5e0] sm:$0xff] }
 0x120   :  { %1076 = vmatmul.mubr.f32.gmra.mrb[46].mxu0 %v225_v44  ;;  %1813 = vmatprep.mubr.f32.mxu1 %v22_v50  ;;  %v39_v44 = vld [vmem:[%s4186_s0 + $0xc8] sm:$0xff] }
 0x121   :  { %1080 = vmatprep.mubr.f32.mxu0 %v235_v51  ;;  %v211_v53 = vld [vmem:[%s4186_s0 + $0x628] sm:$0xff] }
 0x122   :  { %v3558_v3 = vpop.f32.mrb[6].mxu1 }
 0x123   :  { %1814 = vmatmul.mubr.f32.vlgmr.msra.gmra.mrb[112].mxu1 %v31_v55  ;;  %v529_v59 = vpop.f32.mrb[7].mxu1  ;;  %v38_v55 = vld [vmem:[%s4186_s0 + $0xc0] sm:$0xff] }
 0x124   :  { %1081 = vmatmul.mubr.f32.gmra.mrb[48].mxu0 %v234_v54  ;;  %1816 = vmatprep.mubr.f32.mxu1 %v40_v56  ;;  %v220_v54 = vld [vmem:[%s4186_s0 + $0x670] sm:$0xff] }
 0x125   :  { %1085 = vmatprep.mubr.f32.mxu0 %v244_v58  ;;  %v48_v56 = vld [vmem:[%s4186_s0 + $0x110] sm:$0xff] }
 0x126   :  { %v3572_v1 = vpop.f32.mrb[8].mxu1 }
 0x127   :  { %1817 = vmatmul.mubr.f32.gmra.mrb[114].mxu1 %v49_v60  ;;  %v534_v47 = vpop.f32.mrb[9].mxu1  ;;  %v229_v60 = vld [vmem:[%s4186_s0 + $0x6b8] sm:$0xff] }
 0x128   :  { %1086 = vmatmul.mubr.f32.gmra.mrb[50].mxu0 %v243_v62  ;;  %1819 = vmatprep.mubr.f32.mxu1 %v58_v15  ;;  %v47_v62 = vld [vmem:[%s4186_s0 + $0x108] sm:$0xff]  ;;  %v238_v15 = vld [vmem:[%s4186_s0 + $0x700] sm:$0xff] }
 0x129   :  { %1090 = vmatprep.mubr.f32.mxu0 %v253_v63  ;;  %v57_v63 = vld [vmem:[%s4186_s0 + $0x158] sm:$0xff] }
 0x12a   :  { %v3586_v37 = vpop.f32.mrb[10].mxu1 }
 0x12b   :  { %1820 = vmatmul.mubr.f32.gmra.mrb[116].mxu1 %v67_v26  ;;  %v539_v23 = vpop.f32.mrb[11].mxu1 }
 0x12c   :  { %1091 = vmatmul.mubr.f32.gmra.mrb[52].mxu0 %v252_v2  ;;  %1822 = vmatprep.mubr.f32.mxu1 %v76_v5  ;;  %v247_v2 = vld [vmem:[%s4186_s0 + $0x748] sm:$0xff]  ;;  %v56_v5 = vld [vmem:[%s4186_s0 + $0x150] sm:$0xff]  ;;  %v66_v23 = vld [vmem:[%s4186_s0 + $0x1a0] sm:$0xff] }
 0x12d   :  { %1095 = vmatprep.mubr.f32.mxu0 %v262_v6  ;;  %v256_v6 = vld [vmem:[%s4186_s0 + $0x790] sm:$0xff] }
 0x12e   :  { %v3600_v57 = vpop.f32.mrb[12].mxu1 }
 0x12f   :  { %1823 = vmatmul.mubr.f32.gmra.mrb[118].mxu1 %v85_v7  ;;  %v544_v11 = vpop.f32.mrb[13].mxu1 }
 0x130   :  { %1096 = vmatmul.mubr.f32.gmra.mrb[54].mxu0 %v261_v8  ;;  %1825 = vmatprep.mubr.f32.mxu1 %v94_v49  ;;  %v265_v49 = vld [vmem:[%s4186_s0 + $0x7d8] sm:$0xff]  ;;  %v274_v11 = vld [vmem:[%s4186_s0 + $0x820] sm:$0xff] }
 0x131   :  { %1100 = vmatprep.mubr.f32.mxu0 %v271_v9  ;;  %v65_v9 = vld [vmem:[%s4186_s0 + $0x198] sm:$0xff] }
 0x132   :  { %v3614_v10 = vpop.f32.mrb[14].mxu1 }
 0x133   :  { %1826 = vmatmul.mubr.f32.gmra.mrb[120].mxu1 %v103_v61  ;;  %v549_v0 = vpop.f32.mrb[15].mxu1  ;;  %v75_v61 = vld [vmem:[%s4186_s0 + $0x1e8] sm:$0xff] }
 0x134   :  { %1101 = vmatmul.mubr.f32.gmra.mrb[56].mxu0 %v270_v12  ;;  %1828 = vmatprep.mubr.f32.mxu1 %v112_v13  ;;  %v74_v0 = vld [vmem:[%s4186_s0 + $0x1e0] sm:$0xff] }
 0x135   :  { %1105 = vmatprep.mubr.f32.mxu0 %v280_v16  ;;  %v283_v16 = vld [vmem:[%s4186_s0 + $0x868] sm:$0xff] }
 0x136   :  { %v3628_v4 = vpop.f32.mrb[16].mxu1 }
 0x137   :  { %1829 = vmatmul.mubr.f32.gmra.mrb[122].mxu1 %v121_v17  ;;  %v554_v20 = vpop.f32.mrb[17].mxu1  ;;  %v292_v17 = vld [vmem:[%s4186_s0 + $0x8b0] sm:$0xff] }
 0x138   :  { %1106 = vmatmul.mubr.f32.gmra.mrb[58].mxu0 %v279_v18  ;;  %1831 = vmatprep.mubr.f32.mxu1 %v130_v22  ;;  %v84_v18 = vld [vmem:[%s4186_s0 + $0x230] sm:$0xff]  ;;  %v301_v20 = vld [vmem:[%s4186_s0 + $0x8f8] sm:$0xff] }
 0x139   :  { %1110 = vmatprep.mubr.f32.mxu0 %v289_v19 }
 0x13a   :  { %v3642_v29 = vpop.f32.mrb[18].mxu1 }
 0x13b   :  { %1832 = vmatmul.mubr.f32.gmra.mrb[124].mxu1 %v139_v21  ;;  %v559_v14 = vpop.f32.mrb[19].mxu1  ;;  %v83_v21 = vld [vmem:[%s4186_s0 + $0x228] sm:$0xff] }
 0x13c   :  { %1111 = vmatmul.mubr.f32.gmra.mrb[60].mxu0 %v288_v25  ;;  %1834 = vmatprep.mubr.f32.mxu1 %v148_v27 }
 0x13d   :  { %1115 = vmatprep.mubr.f32.mxu0 %v298_v28 }
 0x13e   :  { %v3656_v35 = vpop.f32.mrb[20].mxu1 }
 0x13f   :  { %1835 = vmatmul.mubr.f32.gmra.mrb[126].mxu1 %v157_v30  ;;  %v564_v36 = vpop.f32.mrb[21].mxu1 }
 0x140   :  { %1116 = vmatmul.mubr.f32.gmra.mrb[62].mxu0 %v297_v31  ;;  %1837 = vmatprep.mubr.f32.mxu1 %v166_v32 }
 0x141   :  { %1185 = vmatprep.mubr.f32.mxu0 %v21_v33 }
 0x142   :  { %v3670_v42 = vpop.f32.mrb[22].mxu1 }
 0x143   :  { %1838 = vmatmul.mubr.f32.gmra.mrb[128].mxu1 %v175_v24  ;;  %v569_v43 = vpop.f32.mrb[23].mxu1 }
 0x144   :  { %1186 = vmatmul.mubr.f32.vlgmr.msra.gmra.mrb[0].mxu0 %v20_v38  ;;  %1840 = vmatprep.mubr.f32.mxu1 %v184_v40 }
 0x145   :  { %1190 = vmatprep.mubr.f32.mxu0 %v30_v41 }
 0x146   :  { %v3684_v50 = vpop.f32.mrb[24].mxu1 }
 0x147   :  { %1841 = vmatmul.mubr.f32.gmra.mrb[130].mxu1 %v193_v34  ;;  %v574_v51 = vpop.f32.mrb[25].mxu1 }
 0x148   :  { %1191 = vmatmul.mubr.f32.gmra.mrb[2].mxu0 %v29_v46  ;;  %1843 = vmatprep.mubr.f32.mxu1 %v202_v48 }
 0x149   :  { %1195 = vmatprep.mubr.f32.mxu0 %v39_v44 }
 0x14a   :  { %v3698_v58 = vpop.f32.mrb[26].mxu1 }
 0x14b   :  { %1844 = vmatmul.mubr.f32.gmra.mrb[132].mxu1 %v211_v53  ;;  %v579_v59 = vpop.f32.mrb[27].mxu1 }
 0x14c   :  { %1196 = vmatmul.mubr.f32.gmra.mrb[4].mxu0 %v38_v55  ;;  %1846 = vmatprep.mubr.f32.mxu1 %v220_v54 }
 0x14d   :  { %1200 = vmatprep.mubr.f32.mxu0 %v48_v56 }
 0x14e   :  { %v3712_v47 = vpop.f32.mrb[28].mxu1 }
 0x14f   :  { %1847 = vmatmul.mubr.f32.gmra.mrb[134].mxu1 %v229_v60  ;;  %v584_v26 = vpop.f32.mrb[29].mxu1 }
 0x150   :  { %1201 = vmatmul.mubr.f32.gmra.mrb[6].mxu0 %v47_v62  ;;  %1849 = vmatprep.mubr.f32.mxu1 %v238_v15 }
 0x151   :  { %1205 = vmatprep.mubr.f32.mxu0 %v57_v63 }
 0x152   :  { %v3726_v7 = vpop.f32.mrb[30].mxu1 }
 0x153   :  { %1850 = vmatmul.mubr.f32.gmra.mrb[136].mxu1 %v247_v2  ;;  %v589_v8 = vpop.f32.mrb[31].mxu1 }
 0x154   :  { %1206 = vmatmul.mubr.f32.gmra.mrb[8].mxu0 %v56_v5  ;;  %1852 = vmatprep.mubr.f32.mxu1 %v256_v6 }
 0x155   :  { %1210 = vmatprep.mubr.f32.mxu0 %v66_v23 }
 0x156   :  { %v3740_v12 = vpop.f32.mrb[32].mxu1 }
 0x157   :  { %1853 = vmatmul.mubr.f32.gmra.mrb[138].mxu1 %v265_v49  ;;  %v594_v13 = vpop.f32.mrb[33].mxu1 }
 0x158   :  { %1211 = vmatmul.mubr.f32.gmra.mrb[10].mxu0 %v65_v9  ;;  %1855 = vmatprep.mubr.f32.mxu1 %v274_v11 }
 0x159   :  { %1215 = vmatprep.mubr.f32.mxu0 %v75_v61 }
 0x15a   :  { %v3754_v22 = vpop.f32.mrb[34].mxu1 }
 0x15b   :  { %1856 = vmatmul.mubr.f32.gmra.mrb[140].mxu1 %v283_v16  ;;  %v599_v19 = vpop.f32.mrb[35].mxu1 }
 0x15c   :  { %1216 = vmatmul.mubr.f32.gmra.mrb[12].mxu0 %v74_v0  ;;  %1858 = vmatprep.mubr.f32.mxu1 %v292_v17 }
 0x15d   :  { %1220 = vmatprep.mubr.f32.mxu0 %v84_v18 }
 0x15e   :  { %v3762_v25 = vpop.f32.mrb[36].mxu1 }
 0x15f   :  { %1859 = vmatmul.mubr.f32.gmra.mrb[142].mxu1 %v301_v20  ;;  %v604_v27 = vpop.f32.mrb[37].mxu1 }
 0x160   :  { %1221 = vmatmul.mubr.f32.gmra.mrb[14].mxu0 %v83_v21 }
 0x162   :  { %v3764_v28 = vpop.f32.mrb[38].mxu1 }
 0x163   :  { %v609_v14 = vpop.f32.mrb[39].mxu1 }
 0x166   :  { %v3766_v30 = vpop.f32.mrb[40].mxu1 }
 0x167   :  { %v614_v31 = vpop.f32.mrb[41].mxu1 }
 0x16a   :  { %v3768_v32 = vpop.f32.mrb[42].mxu1 }
 0x16b   :  { %v619_v33 = vpop.f32.mrb[43].mxu1 }
 0x16e   :  { %v3770_v36 = vpop.f32.mrb[44].mxu1 }
 0x16f   :  { %v624_v24 = vpop.f32.mrb[45].mxu1 }
 0x172   :  { %v3772_v38 = vpop.f32.mrb[46].mxu1 }
 0x173   :  { %v629_v40 = vpop.f32.mrb[47].mxu1 }
 0x176   :  { %v3774_v41 = vpop.f32.mrb[48].mxu1 }
 0x177   :  { %v634_v43 = vpop.f32.mrb[49].mxu1 }
 0x17a   :  { %v3776_v34 = vpop.f32.mrb[50].mxu1 }
 0x17b   :  { %v639_v46 = vpop.f32.mrb[51].mxu1 }
 0x17e   :  { %v3778_v48 = vpop.f32.mrb[52].mxu1 }
 0x17f   :  { %v644_v44 = vpop.f32.mrb[53].mxu1 }
 0x182   :  { %v3780_v51 = vpop.f32.mrb[54].mxu1 }
 0x183   :  { %v649_v53 = vpop.f32.mrb[55].mxu1 }
 0x186   :  { %v3782_v55 = vpop.f32.mrb[56].mxu1 }
 0x187   :  { %v654_v54 = vpop.f32.mrb[57].mxu1 }
 0x18a   :  { %v3784_v56 = vpop.f32.mrb[58].mxu1 }
 0x18b   :  { %v659_v59 = vpop.f32.mrb[59].mxu1 }
 0x18e   :  { %v3786_v60 = vpop.f32.mrb[60].mxu1 }
 0x18f   :  { %v664_v62 = vpop.f32.mrb[61].mxu1 }
 0x192   :  { %v3788_v15 = vpop.f32.mrb[62].mxu1 }
 0x193   :  { %v669_v63 = vpop.f32.mrb[63].mxu1 }
 0x196   :  { %v1227_v26 = vpop.f32.mrb[64].mxu1 }
 0x197   :  { %v1229_v2 = vpop.f32.mrb[65].mxu1 }
 0x19a   :  { %v1232_v5 = vpop.f32.mrb[66].mxu1 }
 0x19b   :  { %v1234_v6 = vpop.f32.mrb[67].mxu1 }
 0x19e   :  { %v1237_v23 = vpop.f32.mrb[68].mxu1 }
 0x19f   :  { %v1239_v8 = vpop.f32.mrb[69].mxu1 }
 0x1a2   :  { %v1242_v49 = vpop.f32.mrb[70].mxu1 }
 0x1a3   :  { %v1244_v9 = vpop.f32.mrb[71].mxu1 }
 0x1a6   :  { %v1247_v11 = vpop.f32.mrb[72].mxu1 }
 0x1a7   :  { %v1249_v61 = vpop.f32.mrb[73].mxu1 }
 0x1aa   :  { %v1252_v13 = vpop.f32.mrb[74].mxu1 }
 0x1ab   :  { %v1254_v16 = vpop.f32.mrb[75].mxu1 }
 0x1ae   :  { %v1257_v0 = vpop.f32.mrb[76].mxu1 }
 0x1af   :  { %v1259_v17 = vpop.f32.mrb[77].mxu1 }
 0x1b2   :  { %v1262_v18 = vpop.f32.mrb[78].mxu1 }
 0x1b3   :  { %v1264_v19 = vpop.f32.mrb[79].mxu1 }
 0x1b6   :  { %v1267_v20 = vpop.f32.mrb[80].mxu1 }
 0x1b7   :  { %v1002_v21 = vpop.f32.mrb[16].mxu0  ;;  %v1269_v27 = vpop.f32.mrb[81].mxu1 }
 0x1b8   :  { %v2125_v14 = vadd.f32 %v1002_v21, %v3628_v4  ;;  %v1004_v31 = vpop.f32.mrb[17].mxu0 }
 0x1ba   :  { %v3791_v33 = vadd.f32 %v2125_v14, %v1227_v26  ;;  %v1272_v24 = vpop.f32.mrb[82].mxu1 }
 0x1bb   :  { %v1007_v40 = vpop.f32.mrb[18].mxu0  ;;  %v1274_v43 = vpop.f32.mrb[83].mxu1 }
 0x1bc   :  { %v2127_v46 = vadd.f32 %v1007_v40, %v3642_v29  ;;  %v1009_v44 = vpop.f32.mrb[19].mxu0 }
 0x1bd   :  { %v2256_v44 = vmov 0.0  }
 0x1be   :  { %v3794_v53 = vadd.f32 %v2127_v46, %v1232_v5  ;;  %v1277_v54 = vpop.f32.mrb[84].mxu1  ;;  %1607 = vst [vmem:[%s4187_s3] sm:$0x1] %v2256_v44  ;;  %1608 = vst [vmem:[%s4188_s4] sm:$0x1] %v2256_v44 }
 0x1bf   :  { %v1012_v59 = vpop.f32.mrb[20].mxu0  ;;  %v1279_v62 = vpop.f32.mrb[85].mxu1 }
 0x1c0   :  { %v2129_v63 = vadd.f32 %v1012_v59, %v3656_v35  ;;  %v1014_v2 = vpop.f32.mrb[21].mxu0 }
 0x1c2   :  { %v3797_v6 = vadd.f32 %v2129_v63, %v1237_v23  ;;  %v1282_v4 = vpop.f32.mrb[86].mxu1 }
 0x1c3   :  { %v1017_v8 = vpop.f32.mrb[22].mxu0  ;;  %v1284_v26 = vpop.f32.mrb[87].mxu1 }
 0x1c4   :  { %v2131_v9 = vadd.f32 %v1017_v8, %v3670_v42  ;;  %v1019_v61 = vpop.f32.mrb[23].mxu0 }
 0x1c6   :  { %v3800_v16 = vadd.f32 %v2131_v9, %v1242_v49  ;;  %v1287_v29 = vpop.f32.mrb[88].mxu1 }
 0x1c7   :  { %v1022_v17 = vpop.f32.mrb[24].mxu0  ;;  %v1289_v5 = vpop.f32.mrb[89].mxu1 }
 0x1c8   :  { %v2133_v19 = vadd.f32 %v1022_v17, %v3684_v50  ;;  %v1024_v21 = vpop.f32.mrb[25].mxu0 }
 0x1ca   :  { %v3803_v27 = vadd.f32 %v2133_v19, %v1247_v11  ;;  %v1292_v35 = vpop.f32.mrb[90].mxu1 }
 0x1cb   :  { %v1027_v14 = vpop.f32.mrb[26].mxu0  ;;  %v1294_v23 = vpop.f32.mrb[91].mxu1 }
 0x1cc   :  { %v2135_v31 = vadd.f32 %v1027_v14, %v3698_v58  ;;  %v1029_v40 = vpop.f32.mrb[27].mxu0 }
 0x1ce   :  { %v3806_v43 = vadd.f32 %v2135_v31, %v1252_v13  ;;  %v1297_v42 = vpop.f32.mrb[92].mxu1 }
 0x1cf   :  { %v1032_v46 = vpop.f32.mrb[28].mxu0  ;;  %v1299_v49 = vpop.f32.mrb[93].mxu1 }
 0x1d0   :  { %v2137_v50 = vadd.f32 %v1032_v46, %v3712_v47  ;;  %v1034_v11 = vpop.f32.mrb[29].mxu0 }
 0x1d2   :  { %v3815_v59 = vadd.f32 %v2137_v50, %v1257_v0  ;;  %v1302_v58 = vpop.f32.mrb[94].mxu1 }
 0x1d3   :  { %v1037_v13 = vpop.f32.mrb[30].mxu0  ;;  %v1304_v62 = vpop.f32.mrb[95].mxu1 }
 0x1d4   :  { %v2139_v63 = vadd.f32 %v1037_v13, %v3726_v7  ;;  %v1039_v2 = vpop.f32.mrb[31].mxu0 }
 0x1d6   :  { %v3818_v8 = vadd.f32 %v2139_v63, %v1262_v18  ;;  %v1307_v26 = vpop.f32.mrb[96].mxu1 }
 0x1d7   :  { %v1042_v9 = vpop.f32.mrb[32].mxu0  ;;  %v1309_v61 = vpop.f32.mrb[97].mxu1 }
 0x1d8   :  { %v2141_v17 = vadd.f32 %v1042_v9, %v3740_v12  ;;  %v1044_v5 = vpop.f32.mrb[33].mxu0 }
 0x1da   :  { %v3821_v19 = vadd.f32 %v2141_v17, %v1267_v20  ;;  %v1312_v47 = vpop.f32.mrb[98].mxu1 }
 0x1db   :  { %v1047_v21 = vpop.f32.mrb[34].mxu0  ;;  %v1314_v0 = vpop.f32.mrb[99].mxu1 }
 0x1dc   :  { %v2143_v14 = vadd.f32 %v1047_v21, %v3754_v22  ;;  %v1049_v23 = vpop.f32.mrb[35].mxu0 }
 0x1de   :  { %v3824_v31 = vadd.f32 %v2143_v14, %v1272_v24  ;;  %v1317_v7 = vpop.f32.mrb[100].mxu1 }
 0x1df   :  { %v1052_v40 = vpop.f32.mrb[36].mxu0  ;;  %v1319_v18 = vpop.f32.mrb[101].mxu1 }
 0x1e0   :  { %v2145_v46 = vadd.f32 %v1052_v40, %v3762_v25  ;;  %v1054_v49 = vpop.f32.mrb[37].mxu0 }
 0x1e2   :  { %v3827_v44 = vadd.f32 %v2145_v46, %v1277_v54  ;;  %v1322_v12 = vpop.f32.mrb[102].mxu1 }
 0x1e3   :  { %v1057_v50 = vpop.f32.mrb[38].mxu0  ;;  %v1324_v20 = vpop.f32.mrb[103].mxu1 }
 0x1e4   :  { %v2147_v11 = vadd.f32 %v1057_v50, %v3764_v28  ;;  %v1059_v13 = vpop.f32.mrb[39].mxu0 }
 0x1e6   :  { %v3830_v62 = vadd.f32 %v2147_v11, %v1282_v4  ;;  %v1327_v22 = vpop.f32.mrb[104].mxu1 }
 0x1e7   :  { %v1062_v63 = vpop.f32.mrb[40].mxu0  ;;  %v1329_v24 = vpop.f32.mrb[105].mxu1 }
 0x1e8   :  { %v2149_v2 = vadd.f32 %v1062_v63, %v3766_v30  ;;  %v1064_v9 = vpop.f32.mrb[41].mxu0 }
 0x1ea   :  { %v3833_v61 = vadd.f32 %v2149_v2, %v1287_v29  ;;  %v3835_v25 = vpop.f32.mrb[106].mxu1 }
 0x1eb   :  { %v1067_v54 = vpop.f32.mrb[42].mxu0  ;;  %v1334_v17 = vpop.f32.mrb[107].mxu1 }
 0x1ec   :  { %v2151_v5 = vadd.f32 %v1067_v54, %v3768_v32  ;;  %v1069_v21 = vpop.f32.mrb[43].mxu0 }
 0x1ee   :  { %v3838_v0 = vpop.f32.mrb[108].mxu1  ;;  %v3840_v28 = vadd.f32 %v2151_v5, %v1292_v35 }
 0x1ef   :  { %v1072_v4 = vpop.f32.mrb[44].mxu0  ;;  %v1339_v14 = vpop.f32.mrb[109].mxu1 }
 0x1f0   :  { %v2153_v23 = vadd.f32 %v1072_v4, %v3770_v36  ;;  %v1074_v40 = vpop.f32.mrb[45].mxu0 }
 0x1f2   :  { %v3843_v30 = vpop.f32.mrb[110].mxu1  ;;  %v3845_v29 = vadd.f32 %v2153_v23, %v1297_v42 }
 0x1f3   :  { %v1077_v18 = vpop.f32.mrb[46].mxu0  ;;  %v1344_v46 = vpop.f32.mrb[111].mxu1 }
 0x1f4   :  { %v2155_v49 = vadd.f32 %v1077_v18, %v3772_v38  ;;  %v1079_v50 = vpop.f32.mrb[47].mxu0 }
 0x1f6   :  { %v3848_v32 = vpop.f32.mrb[112].mxu1  ;;  %v3850_v20 = vadd.f32 %v2155_v49, %v1302_v58 }
 0x1f7   :  { %v1082_v35 = vpop.f32.mrb[48].mxu0  ;;  %v3852_v11 = vpop.f32.mrb[113].mxu1 }
 0x1f8   :  { %v2157_v13 = vadd.f32 %v1082_v35, %v3774_v41  ;;  %v1084_v36 = vpop.f32.mrb[49].mxu0 }
 0x1fa   :  { %v3855_v63 = vpop.f32.mrb[114].mxu1  ;;  %v3857_v24 = vadd.f32 %v2157_v13, %v1307_v26 }
 0x1fb   :  { %v1087_v42 = vpop.f32.mrb[50].mxu0  ;;  %v3859_v2 = vpop.f32.mrb[115].mxu1 }
 0x1fc   :  { %v2159_v38 = vadd.f32 %v1087_v42, %v3776_v34  ;;  %v1089_v9 = vpop.f32.mrb[51].mxu0 }
 0x1fe   :  { %v3862_v54 = vpop.f32.mrb[116].mxu1  ;;  %v3864_v58 = vadd.f32 %v2159_v38, %v1312_v47 }
 0x1ff   :  { %v1092_v17 = vpop.f32.mrb[52].mxu0  ;;  %v3866_v5 = vpop.f32.mrb[117].mxu1 }
 0x200   :  { %v2161_v41 = vadd.f32 %v1092_v17, %v3778_v48  ;;  %v1094_v21 = vpop.f32.mrb[53].mxu0 }
 0x202   :  { %v3869_v4 = vpop.f32.mrb[118].mxu1  ;;  %v3871_v26 = vadd.f32 %v2161_v41, %v1317_v7 }
 0x203   :  { %v1097_v14 = vpop.f32.mrb[54].mxu0  ;;  %v3873_v23 = vpop.f32.mrb[119].mxu1 }
 0x204   :  { %v2163_v34 = vadd.f32 %v1097_v14, %v3780_v51  ;;  %v1099_v40 = vpop.f32.mrb[55].mxu0 }
 0x206   :  { %v1827_v18 = vpop.f32.mrb[120].mxu1  ;;  %v3876_v46 = vadd.f32 %v2163_v34, %v1322_v12 }
 0x207   :  { %v1102_v47 = vpop.f32.mrb[56].mxu0  ;;  %v3879_v49 = vadd.f32 %v3794_v53, %v1827_v18  ;;  %v1452_v50 = vpop.f32.mrb[121].mxu1 }
 0x208   :  { %v2165_v48 = vadd.f32 %v1102_v47, %v3782_v55  ;;  %v1104_v35 = vpop.f32.mrb[57].mxu0  ;;  %v3883_v7 = vadd.f32 %v3791_v33, %v1452_v50 }
 0x209   :  { %1580 = vst [vmem:[%s4189_s2 + $0x48] sm:$0xff] %v3879_v49 }
 0x20a   :  { %1579 = vst [vmem:[%s4189_s2 + $0x40] sm:$0xff] %v3883_v7  ;;  %v1830_v51 = vpop.f32.mrb[122].mxu1  ;;  %v3893_v53 = vadd.f32 %v2165_v48, %v1327_v22 }
 0x20b   :  { %v1107_v12 = vpop.f32.mrb[58].mxu0  ;;  %v3896_v55 = vadd.f32 %v3800_v16, %v1830_v51  ;;  %v1462_v13 = vpop.f32.mrb[123].mxu1 }
 0x20c   :  { %v2167_v33 = vadd.f32 %v1107_v12, %v3784_v56  ;;  %v1109_v36 = vpop.f32.mrb[59].mxu0  ;;  %v3900_v42 = vadd.f32 %v3797_v6, %v1462_v13 }
 0x20d   :  { %1582 = vst [vmem:[%s4189_s2 + $0x58] sm:$0xff] %v3896_v55 }
 0x20e   :  { %1581 = vst [vmem:[%s4189_s2 + $0x50] sm:$0xff] %v3900_v42  ;;  %v1833_v22 = vpop.f32.mrb[124].mxu1  ;;  %v3911_v16 = vadd.f32 %v2167_v33, %v3835_v25 }
 0x20f   :  { %v1112_v38 = vpop.f32.mrb[60].mxu0  ;;  %v3914_v56 = vadd.f32 %v3806_v43, %v1833_v22  ;;  %v1472_v6 = vpop.f32.mrb[125].mxu1 }
 0x210   :  { %v2169_v9 = vadd.f32 %v1112_v38, %v3786_v60  ;;  %v1114_v17 = vpop.f32.mrb[61].mxu0  ;;  %v3918_v41 = vadd.f32 %v3803_v27, %v1472_v6 }
 0x211   :  { %1584 = vst [vmem:[%s4189_s2 + $0x68] sm:$0xff] %v3914_v56 }
 0x212   :  { %1583 = vst [vmem:[%s4189_s2 + $0x60] sm:$0xff] %v3918_v41  ;;  %v1836_v25 = vpop.f32.mrb[126].mxu1  ;;  %v3929_v43 = vadd.f32 %v2169_v9, %v3838_v0 }
 0x213   :  { %v1117_v21 = vpop.f32.mrb[62].mxu0  ;;  %v3932_v60 = vadd.f32 %v3818_v8, %v1836_v25  ;;  %v1482_v27 = vpop.f32.mrb[127].mxu1 }
 0x214   :  { %v2171_v14 = vadd.f32 %v1117_v21, %v3788_v15  ;;  %v1119_v34 = vpop.f32.mrb[63].mxu0  ;;  %v3936_v40 = vadd.f32 %v3815_v59, %v1482_v27 }
 0x215   :  { %1586 = vst [vmem:[%s4189_s2 + $0x78] sm:$0xff] %v3932_v60 }
 0x216   :  { %1585 = vst [vmem:[%s4189_s2 + $0x70] sm:$0xff] %v3936_v40  ;;  %v1839_v0 = vpop.f32.mrb[128].mxu1  ;;  %v3947_v8 = vadd.f32 %v2171_v14, %v3843_v30 }
 0x217   :  { %v1187_v18 = vpop.f32.mrb[0].mxu0  ;;  %v3950_v15 = vadd.f32 %v3824_v31, %v1839_v0  ;;  %v1492_v59 = vpop.f32.mrb[129].mxu1 }
 0x218   :  { %v2117_v47 = vadd.f32 %v1187_v18, %v3516_v39  ;;  %v1189_v50 = vpop.f32.mrb[1].mxu0  ;;  %v3954_v48 = vadd.f32 %v3821_v19, %v1492_v59 }
 0x219   :  { %1588 = vst [vmem:[%s4189_s2 + $0x88] sm:$0xff] %v3950_v15 }
 0x21a   :  { %v1413_v35 = vadd.f32 %v2117_v47, %v3852_v11  ;;  %1587 = vst [vmem:[%s4189_s2 + $0x80] sm:$0xff] %v3954_v48  ;;  %v1842_v31 = vpop.f32.mrb[130].mxu1 }
 0x21b   :  { %v1192_v30 = vpop.f32.mrb[2].mxu0  ;;  %v3966_v39 = vadd.f32 %v3830_v62, %v1842_v31  ;;  %v1502_v51 = vpop.f32.mrb[131].mxu1 }
 0x21c   :  { %1571 = vst [vmem:[%s4189_s2] sm:$0xff] %v1413_v35  ;;  %v2118_v19 = vadd.f32 %v1192_v30, %v3530_v45  ;;  %v1194_v12 = vpop.f32.mrb[3].mxu0  ;;  %v3973_v11 = vadd.f32 %v3827_v44, %v1502_v51  ;;  %v1650_v33 = vmul.f32 %v1413_v35, %v1413_v35 }
 0x21d   :  { %1590 = vst [vmem:[%s4189_s2 + $0x98] sm:$0xff] %v3966_v39 }
 0x21e   :  { %v1418_v13 = vadd.f32 %v2118_v19, %v3848_v32  ;;  %1589 = vst [vmem:[%s4189_s2 + $0x90] sm:$0xff] %v3973_v11  ;;  %v1845_v62 = vpop.f32.mrb[132].mxu1 }
 0x21f   :  { %v1197_v36 = vpop.f32.mrb[4].mxu0  ;;  %v3985_v45 = vadd.f32 %v3840_v28, %v1845_v62  ;;  %v1512_v44 = vpop.f32.mrb[133].mxu1 }
 0x220   :  { %1572 = vst [vmem:[%s4189_s2 + $0x8] sm:$0xff] %v1418_v13  ;;  %v1610_v22 = vadd.f32 %v1418_v13, %v1413_v35  ;;  %v1651_v38 = vmul.f32 %v1418_v13, %v1418_v13  ;;  %v2119_v32 = vadd.f32 %v1197_v36, %v3544_v52  ;;  %v1199_v6 = vpop.f32.mrb[5].mxu0  ;;  %v3992_v9 = vadd.f32 %v3833_v61, %v1512_v44 }
 0x221   :  { %1592 = vst [vmem:[%s4189_s2 + $0xa8] sm:$0xff] %v3985_v45 }
 0x222   :  { %v1682_v28 = vadd.f32 %v1651_v38, %v1650_v33  ;;  %v1423_v17 = vadd.f32 %v2119_v32, %v3859_v2  ;;  %1591 = vst [vmem:[%s4189_s2 + $0xa0] sm:$0xff] %v3992_v9  ;;  %v1848_v25 = vpop.f32.mrb[134].mxu1 }
 0x223   :  { %v1202_v21 = vpop.f32.mrb[6].mxu0  ;;  %v4004_v52 = vadd.f32 %v3850_v20, %v1848_v25  ;;  %v1522_v61 = vpop.f32.mrb[135].mxu1 }
 0x224   :  { %1573 = vst [vmem:[%s4189_s2 + $0x10] sm:$0xff] %v1423_v17  ;;  %v1611_v27 = vadd.f32 %v1610_v22, %v1423_v17  ;;  %v1652_v14 = vmul.f32 %v1423_v17, %v1423_v17  ;;  %v2120_v34 = vadd.f32 %v1202_v21, %v3558_v3  ;;  %v1204_v2 = vpop.f32.mrb[7].mxu0  ;;  %v4011_v0 = vadd.f32 %v3845_v29, %v1522_v61 }
 0x225   :  { %1594 = vst [vmem:[%s4189_s2 + $0xb8] sm:$0xff] %v4004_v52 }
 0x226   :  { %v1683_v20 = vadd.f32 %v1682_v28, %v1652_v14  ;;  %v1428_v18 = vadd.f32 %v2120_v34, %v3855_v63  ;;  %1593 = vst [vmem:[%s4189_s2 + $0xb0] sm:$0xff] %v4011_v0  ;;  %v1851_v59 = vpop.f32.mrb[136].mxu1 }
 0x227   :  { %v1207_v47 = vpop.f32.mrb[8].mxu0  ;;  %v4023_v3 = vadd.f32 %v3864_v58, %v1851_v59  ;;  %v1532_v29 = vpop.f32.mrb[137].mxu1 }
 0x228   :  { %1574 = vst [vmem:[%s4189_s2 + $0x18] sm:$0xff] %v1428_v18  ;;  %v1612_v50 = vadd.f32 %v1611_v27, %v1428_v18  ;;  %v1653_v35 = vmul.f32 %v1428_v18, %v1428_v18  ;;  %v2121_v31 = vadd.f32 %v1207_v47, %v3572_v1  ;;  %v1209_v63 = vpop.f32.mrb[9].mxu0  ;;  %v4030_v30 = vadd.f32 %v3857_v24, %v1532_v29 }
 0x229   :  { %1596 = vst [vmem:[%s4189_s2 + $0xc8] sm:$0xff] %v4023_v3  ;;  %v1658_v18 = vmul.f32 %v3883_v7, %v3883_v7 }
 0x22a   :  { %v1684_v58 = vadd.f32 %v1683_v20, %v1653_v35  ;;  %v1433_v51 = vadd.f32 %v2121_v31, %v3866_v5  ;;  %1595 = vst [vmem:[%s4189_s2 + $0xc0] sm:$0xff] %v4030_v30  ;;  %v1854_v19 = vpop.f32.mrb[138].mxu1  ;;  %v1660_v35 = vmul.f32 %v3900_v42, %v3900_v42 }
 0x22b   :  { %v1212_v12 = vpop.f32.mrb[10].mxu0  ;;  %v4042_v1 = vadd.f32 %v3876_v46, %v1854_v19  ;;  %v1542_v24 = vpop.f32.mrb[139].mxu1 }
 0x22c   :  { %1575 = vst [vmem:[%s4189_s2 + $0x20] sm:$0xff] %v1433_v51  ;;  %v1613_v13 = vadd.f32 %v1612_v50, %v1433_v51  ;;  %v1654_v62 = vmul.f32 %v1433_v51, %v1433_v51  ;;  %v2122_v33 = vadd.f32 %v1212_v12, %v3586_v37  ;;  %v1214_v5 = vpop.f32.mrb[11].mxu0  ;;  %v4049_v36 = vadd.f32 %v3871_v26, %v1542_v24 }
 0x22d   :  { %1598 = vst [vmem:[%s4189_s2 + $0xd8] sm:$0xff] %v4042_v1 }
 0x22e   :  { %v1685_v46 = vadd.f32 %v1684_v58, %v1654_v62  ;;  %v1438_v44 = vadd.f32 %v2122_v33, %v3862_v54  ;;  %1597 = vst [vmem:[%s4189_s2 + $0xd0] sm:$0xff] %v4049_v36  ;;  %v1857_v22 = vpop.f32.mrb[140].mxu1  ;;  %v1661_v58 = vmul.f32 %v3896_v55, %v3896_v55 }
 0x22f   :  { %v1217_v38 = vpop.f32.mrb[12].mxu0  ;;  %v4061_v37 = vadd.f32 %v3911_v16, %v1857_v22  ;;  %v1552_v26 = vpop.f32.mrb[141].mxu1 }
 0x230   :  { %1576 = vst [vmem:[%s4189_s2 + $0x28] sm:$0xff] %v1438_v44  ;;  %v1614_v32 = vadd.f32 %v1613_v13, %v1438_v44  ;;  %v1655_v6 = vmul.f32 %v1438_v44, %v1438_v44  ;;  %v2123_v28 = vadd.f32 %v1217_v38, %v3600_v57  ;;  %v1219_v54 = vpop.f32.mrb[13].mxu0  ;;  %v4068_v17 = vadd.f32 %v3893_v53, %v1552_v26 }
 0x231   :  { %1600 = vst [vmem:[%s4189_s2 + $0xe8] sm:$0xff] %v4061_v37 }
 0x232   :  { %v1686_v16 = vadd.f32 %v1685_v46, %v1655_v6  ;;  %v1443_v25 = vadd.f32 %v2123_v28, %v3873_v23  ;;  %1599 = vst [vmem:[%s4189_s2 + $0xe0] sm:$0xff] %v4068_v17  ;;  %v1860_v21 = vpop.f32.mrb[142].mxu1 }
 0x233   :  { %v1222_v61 = vpop.f32.mrb[14].mxu0  ;;  %v4080_v57 = vadd.f32 %v3947_v8, %v1860_v21  ;;  %v1562_v53 = vpop.f32.mrb[143].mxu1 }
 0x234   :  { %1577 = vst [vmem:[%s4189_s2 + $0x30] sm:$0xff] %v1443_v25  ;;  %v1615_v27 = vadd.f32 %v1614_v32, %v1443_v25  ;;  %v1656_v14 = vmul.f32 %v1443_v25, %v1443_v25  ;;  %v2124_v34 = vadd.f32 %v1222_v61, %v3614_v10  ;;  %v1224_v23 = vpop.f32.mrb[15].mxu0  ;;  %v4087_v2 = vadd.f32 %v3929_v43, %v1562_v53 }
 0x235   :  { %1602 = vst [vmem:[%s4189_s2 + $0xf8] sm:$0xff] %v4080_v57 }
 0x236   :  { %v1687_v8 = vadd.f32 %v1686_v16, %v1656_v14  ;;  %v1448_v20 = vadd.f32 %v2124_v34, %v3869_v4  ;;  %1601 = vst [vmem:[%s4189_s2 + $0xf0] sm:$0xff] %v4087_v2  ;;  %v1659_v4 = vmul.f32 %v3879_v49, %v3879_v49 }
 0x238   :  { %1578 = vst [vmem:[%s4189_s2 + $0x38] sm:$0xff] %v1448_v20  ;;  %v1616_v10 = vadd.f32 %v1615_v27, %v1448_v20  ;;  %v1657_v43 = vmul.f32 %v1448_v20, %v1448_v20 }
 0x23a   :  { %v1617_v59 = vadd.f32 %v1616_v10, %v3883_v7  ;;  %v1688_v47 = vadd.f32 %v1687_v8, %v1657_v43  ;;  %v1662_v7 = vmul.f32 %v3918_v41, %v3918_v41 }
 0x23c   :  { %v1618_v29 = vadd.f32 %v1617_v59, %v3879_v49  ;;  %v1689_v50 = vadd.f32 %v1688_v47, %v1658_v18  ;;  %v1663_v49 = vmul.f32 %v3914_v56, %v3914_v56 }
 0x23e   :  { %v1619_v31 = vadd.f32 %v1618_v29, %v3900_v42  ;;  %v1690_v63 = vadd.f32 %v1689_v50, %v1659_v4  ;;  %v1664_v42 = vmul.f32 %v3936_v40, %v3936_v40 }
 0x240   :  { %v1620_v51 = vadd.f32 %v1619_v31, %v3896_v55  ;;  %v1691_v19 = vadd.f32 %v1690_v63, %v1660_v35  ;;  %v1665_v55 = vmul.f32 %v3932_v60, %v3932_v60  ;;  %v1680_v63 = vmul.f32 %v4087_v2, %v4087_v2 }
 0x242   :  { %v1621_v12 = vadd.f32 %v1620_v51, %v3918_v41  ;;  %v1692_v24 = vadd.f32 %v1691_v19, %v1661_v58  ;;  %v1666_v41 = vmul.f32 %v3954_v48, %v3954_v48 }
 0x244   :  { %v1622_v13 = vadd.f32 %v1621_v12, %v3914_v56  ;;  %v1693_v62 = vadd.f32 %v1692_v24, %v1662_v7  ;;  %v1667_v56 = vmul.f32 %v3950_v15, %v3950_v15 }
 0x246   :  { %v1623_v33 = vadd.f32 %v1622_v13, %v3936_v40  ;;  %v1694_v5 = vadd.f32 %v1693_v62, %v1663_v49  ;;  %v1668_v40 = vmul.f32 %v3973_v11, %v3973_v11 }
 0x248   :  { %v1624_v46 = vadd.f32 %v1623_v33, %v3932_v60  ;;  %v1695_v44 = vadd.f32 %v1694_v5, %v1664_v42  ;;  %v1669_v60 = vmul.f32 %v3966_v39, %v3966_v39 }
 0x24a   :  { %v1625_v22 = vadd.f32 %v1624_v46, %v3954_v48  ;;  %v1696_v38 = vadd.f32 %v1695_v44, %v1665_v55  ;;  %v1670_v48 = vmul.f32 %v3992_v9, %v3992_v9 }
 0x24c   :  { %v1626_v26 = vadd.f32 %v1625_v22, %v3950_v15  ;;  %v1697_v32 = vadd.f32 %v1696_v38, %v1666_v41  ;;  %v1671_v15 = vmul.f32 %v3985_v45, %v3985_v45 }
 0x24e   :  { %v1698_v6 = vadd.f32 %v1697_v32, %v1667_v56  ;;  %v1627_v28 = vadd.f32 %v1626_v26, %v3973_v11  ;;  %v1672_v11 = vmul.f32 %v4011_v0, %v4011_v0 }
 0x250   :  { %v1628_v54 = vadd.f32 %v1627_v28, %v3966_v39  ;;  %v1699_v16 = vadd.f32 %v1698_v6, %v1668_v40  ;;  %v1673_v39 = vmul.f32 %v4004_v52, %v4004_v52 }
 0x252   :  { %v1629_v25 = vadd.f32 %v1628_v54, %v3992_v9  ;;  %v1700_v21 = vadd.f32 %v1699_v16, %v1669_v60  ;;  %v1674_v9 = vmul.f32 %v4030_v30, %v4030_v30 }
 0x254   :  { %v1630_v61 = vadd.f32 %v1629_v25, %v3985_v45  ;;  %v1701_v53 = vadd.f32 %v1700_v21, %v1670_v48  ;;  %v1675_v45 = vmul.f32 %v4023_v3, %v4023_v3 }
 0x256   :  { %v1631_v27 = vadd.f32 %v1630_v61, %v4011_v0  ;;  %v1702_v14 = vadd.f32 %v1701_v53, %v1671_v15  ;;  %v1676_v0 = vmul.f32 %v4049_v36, %v4049_v36 }
 0x258   :  { %v1632_v34 = vadd.f32 %v1631_v27, %v4004_v52  ;;  %v1703_v23 = vadd.f32 %v1702_v14, %v1672_v11  ;;  %v1677_v52 = vmul.f32 %v4042_v1, %v4042_v1 }
 0x25a   :  { %v1633_v8 = vadd.f32 %v1632_v34, %v4030_v30  ;;  %v1704_v20 = vadd.f32 %v1703_v23, %v1673_v39  ;;  %v1678_v30 = vmul.f32 %v4068_v17, %v4068_v17 }
 0x25c   :  { %v1634_v10 = vadd.f32 %v1633_v8, %v4023_v3  ;;  %v1705_v43 = vadd.f32 %v1704_v20, %v1674_v9  ;;  %v1679_v3 = vmul.f32 %v4061_v37, %v4061_v37 }
 0x25e   :  { %v1635_v18 = vadd.f32 %v1634_v10, %v4049_v36  ;;  %v1706_v59 = vadd.f32 %v1705_v43, %v1675_v45 }
 0x260   :  { %v1636_v47 = vadd.f32 %v1635_v18, %v4042_v1  ;;  %v1707_v4 = vadd.f32 %v1706_v59, %v1676_v0  ;;  %v1681_v1 = vmul.f32 %v4080_v57, %v4080_v57 }
 0x262   :  { %v1637_v29 = vadd.f32 %v1636_v47, %v4068_v17  ;;  %v1708_v50 = vadd.f32 %v1707_v4, %v1677_v52 }
 0x264   :  { %v1638_v35 = vadd.f32 %v1637_v29, %v4061_v37  ;;  %v1709_v31 = vadd.f32 %v1708_v50, %v1678_v30 }
 0x266   :  { %v1639_v36 = vadd.f32 %v1638_v35, %v4087_v2  ;;  %v1710_v58 = vadd.f32 %v1709_v31, %v1679_v3  ;;  %v1609_v2 = vld [vmem:[%s4187_s3] sm:$0x1] }
 0x268   :  { %v1640_v51 = vadd.f32 %v1639_v36, %v4080_v57  ;;  %v1711_v19 = vadd.f32 %v1710_v58, %v1680_v63  ;;  %v1649_v57 = vld [vmem:[%s4188_s4] sm:$0x1] }
 0x26a   :  { %v1641_v17 = vrot.slane %v1640_v51, 4  ;;  %v1712_v7 = vadd.f32 %v1711_v19, %v1681_v1 }
 0x26c   :  { %v1642_v12 = vadd.f32 %v1641_v17, %v1640_v51  ;;  %v1713_v24 = vrot.slane %v1712_v7, 4 }
 0x26e   :  { %v1643_v49 = vrot.slane %v1642_v12, 2  ;;  %v1714_v13 = vadd.f32 %v1713_v24, %v1712_v7 }
 0x270   :  { %v1644_v37 = vadd.f32 %v1643_v49, %v1642_v12  ;;  %v1715_v62 = vrot.slane %v1714_v13, 2 }
 0x272   :  { %v1645_v42 = vrot.slane %v1644_v37, 1  ;;  %v1716_v33 = vadd.f32 %v1715_v62, %v1714_v13 }
 0x274   :  { %v1646_v5 = vadd.f32 %v1645_v42, %v1644_v37  ;;  %v1717_v55 = vrot.slane %v1716_v33, 1 }
 0x276   :  { %v1647_v46 = vadd.f32 %v1646_v5, %v1609_v2  ;;  %v1718_v44 = vadd.f32 %v1717_v55, %v1716_v33 }
 0x278   :  { %1648 = vst [vmem:[%s4187_s3] sm:$0x1] %v1647_v46  ;;  %v1719_v41 = vadd.f32 %v1718_v44, %v1649_v57 }
 0x27a   :  { %1720 = vst [vmem:[%s4188_s4] sm:$0x1] %v1719_v41 }

// kernel: resblock_forward.22
= control target key start
LH: loop header
LB: loop body
LE: loop exit
PB: predicated region body
PF: predicated region fallthrough
CT: control target
= control target key end

     0   :  { %s2753_s15 = smov 0   ;;  %s3452_s0 = inlined_call_operand.vmem [shape: f32[4,10,10,128], index: 0, kind: input, shape index: {}]   ;;  %s3453_s1 = inlined_call_operand.vmem [shape: f32[9,128,128], index: 1, kind: input, shape index: {}]   ;;  %s3454_s2 = inlined_call_operand.vmem [shape: f32[4,64,128], index: 2, kind: output, shape index: {0}]   ;;  %s3455_s3 = inlined_call_operand.vmem [shape: f32[1,128], index: 3, kind: output, shape index: {1}]   ;;  %s3456_s4 = inlined_call_operand.vmem [shape: f32[1,128], index: 4, kind: output, shape index: {2}]  }
   0x1 LB: > { %s2759_s16 = sadd.s32 4294967295, %s2725_s15   ;;  %p1593_p0 = scmp.ge.s32.totalorder %s2725_s15, 1  ;;  %s2725_s15 = sphi %s2753_s15, %s15_s15  }
   0x2   : > { %p157_p1 = scmp.lt.s32.totalorder %s2725_s15, 5 }
   0x4   : > { %p158_p2 = pnand %p1593_p0, %p157_p1 }
   0x5   : > { %v1597_v0 = vld [vmem:[%s3453_s1 + $0x80] sm:$0xff] (!%p158_p2)  ;;  %v1598_v1 = vld [vmem:[%s3453_s1 + $0x88] sm:$0xff] (!%p158_p2)  ;;  %p183_p3 = scmp.lt.s32.totalorder (!%p158_p2), %s2759_s16, 3  ;;  %v1599_v5 = vld [vmem:[%s3453_s1 + $0x90] sm:$0xff] (!%p158_p2)  ;;  %vm245_vm0 = vcmask (!%p158_p2), 1046528   ;;  %vm505_vm1 = vcmask (!%p158_p2), 1045504  }
   0x6   : > { %161 = sbr.rel (%p158_p2) target bundleno = 420 (0x1a4), region = 28  ;;  %v1645_v2 = vld [vmem:[%s3453_s1 + $0x200] sm:$0xff] (!%p158_p2)  ;;  %v2341_v3 = vpack.c.bf16 (!%p158_p2), %v1598_v1, %v1597_v0  ;;  %v1646_v4 = vld [vmem:[%s3453_s1 + $0x208] sm:$0xff] (!%p158_p2)  ;;  %v1600_v6 = vld [vmem:[%s3453_s1 + $0x98] sm:$0xff] (!%p158_p2)  ;;  %p1725_p4 = scmp.ne.s32.totalorder (!%p158_p2), %s2759_s16, 0 }
   0x7   : > { %v2469_v7 = vpack.c.bf16 (!%p158_p2), %v1646_v4, %v1645_v2  ;;  %v2345_v8 = vpack.c.bf16 (!%p158_p2), %v1600_v6, %v1599_v5  ;;  %v1647_v9 = vld [vmem:[%s3453_s1 + $0x210] sm:$0xff] (!%p158_p2)  ;;  %v1648_v10 = vld [vmem:[%s3453_s1 + $0x218] sm:$0xff] (!%p158_p2)  ;;  %v1601_v11 = vld [vmem:[%s3453_s1 + $0xa0] sm:$0xff] (!%p158_p2) }
   0x8   : > { %2342 = vmatprep.subr.bf16.mxu1 (!%p158_p2), %v2341_v3  ;;  %v2473_v12 = vpack.c.bf16 (!%p158_p2), %v1648_v10, %v1647_v9  ;;  %v1602_v13 = vld [vmem:[%s3453_s1 + $0xa8] sm:$0xff] (!%p158_p2)  ;;  %v1649_v14 = vld [vmem:[%s3453_s1 + $0x220] sm:$0xff] (!%p158_p2)  ;;  %v1603_v18 = vld [vmem:[%s3453_s1 + $0xb0] sm:$0xff] (!%p158_p2) }
   0x9   : > { %v1650_v15 = vld [vmem:[%s3453_s1 + $0x228] sm:$0xff] (!%p158_p2)  ;;  %2470 = vmatprep.subr.bf16.mxu0 (!%p158_p2), %v2469_v7  ;;  %2344 = vmatpush3.bf16.msra.mxu1 (!%p158_p2), %v2341_v3  ;;  %v2349_v16 = vpack.c.bf16 (!%p158_p2), %v1602_v13, %v1601_v11  ;;  %v1604_v19 = vld [vmem:[%s3453_s1 + $0xb8] sm:$0xff] (!%p158_p2)  ;;  %v1651_v20 = vld [vmem:[%s3453_s1 + $0x230] sm:$0xff] (!%p158_p2) }
   0xa   : > { %2472 = vmatpush3.bf16.msra.mxu0 (!%p158_p2), %v2469_v7  ;;  %2346 = vmatprep.subr.bf16.mxu1 (!%p158_p2), %v2345_v8  ;;  %v2477_v17 = vpack.c.bf16 (!%p158_p2), %v1650_v15, %v1649_v14  ;;  %v1652_v21 = vld [vmem:[%s3453_s1 + $0x238] sm:$0xff] (!%p158_p2)  ;;  %v2353_v22 = vpack.c.bf16 (!%p158_p2), %v1604_v19, %v1603_v18  ;;  %v1605_v23 = vld [vmem:[%s3453_s1 + $0xc0] sm:$0xff] (!%p158_p2)  ;;  %v1606_v24 = vld [vmem:[%s3453_s1 + $0xc8] sm:$0xff] (!%p158_p2) }
   0xb   : > { %2474 = vmatprep.subr.bf16.mxu0 (!%p158_p2), %v2473_v12  ;;  %v2481_v25 = vpack.c.bf16 (!%p158_p2), %v1652_v21, %v1651_v20  ;;  %v1653_v27 = vld [vmem:[%s3453_s1 + $0x240] sm:$0xff] (!%p158_p2)  ;;  %v1654_v28 = vld [vmem:[%s3453_s1 + $0x248] sm:$0xff] (!%p158_p2)  ;;  %v2357_v31 = vpack.c.bf16 (!%p158_p2), %v1606_v24, %v1605_v23  ;;  %v1607_v40 = vld [vmem:[%s3453_s1 + $0xd0] sm:$0xff] (!%p158_p2) }
   0xc   : > { %v2485_v39 = vpack.c.bf16 (!%p158_p2), %v1654_v28, %v1653_v27  ;;  %v1608_v41 = vld [vmem:[%s3453_s1 + $0xd8] sm:$0xff] (!%p158_p2)  ;;  %v1655_v43 = vld [vmem:[%s3453_s1 + $0x250] sm:$0xff] (!%p158_p2)  ;;  %v1609_v49 = vld [vmem:[%s3453_s1 + $0xe0] sm:$0xff] (!%p158_p2) }
   0xd   : > { %s2792_s9 = scalar_select %p183_p3, %s2759_s16, 3  ;;  %2348 = vmatpush3.bf16.msra.mxu1 %v2345_v8  ;;  %v1656_v44 = vld [vmem:[%s3453_s1 + $0x258] sm:$0xff]  ;;  %v2361_v46 = vpack.c.bf16 %v1608_v41, %v1607_v40  ;;  %v1610_v50 = vld [vmem:[%s3453_s1 + $0xe8] sm:$0xff]  ;;  %v1657_v51 = vld [vmem:[%s3453_s1 + $0x260] sm:$0xff] }
   0xe   : > { %2476 = vmatpush3.bf16.msra.mxu0 %v2473_v12  ;;  %2350 = vmatprep.subr.bf16.mxu1 %v2349_v16  ;;  %v2489_v48 = vpack.c.bf16 %v1656_v44, %v1655_v43  ;;  %v1658_v52 = vld [vmem:[%s3453_s1 + $0x268] sm:$0xff]  ;;  %v2365_v53 = vpack.c.bf16 %v1610_v50, %v1609_v49  ;;  %v1611_v55 = vld [vmem:[%s3453_s1 + $0xf0] sm:$0xff]  ;;  %v1612_v56 = vld [vmem:[%s3453_s1 + $0xf8] sm:$0xff] }
   0xf   : > { %s2709_s18 = smul.u32 160, %s2792_s9  ;;  %2478 = vmatprep.subr.bf16.mxu0 %v2477_v17  ;;  %v2493_v54 = vpack.c.bf16 %v1658_v52, %v1657_v51  ;;  %v1659_v57 = vld [vmem:[%s3453_s1 + $0x270] sm:$0xff]  ;;  %v1660_v58 = vld [vmem:[%s3453_s1 + $0x278] sm:$0xff]  ;;  %v2369_v59 = vpack.c.bf16 %v1612_v56, %v1611_v55  ;;  %v213_v60 = vld [vmem:[%s3453_s1] sm:$0xff]  ;;  %s1728_s11 = sshll.u32 %s2792_s9, 6 }
  0x10   : > { %v2497_v61 = vpack.c.bf16 %v1660_v58, %v1659_v57  ;;  %v214_v62 = vld [vmem:[%s3453_s1 + $0x8] sm:$0xff]  ;;  %v1661_v1 = vld [vmem:[%s3453_s1 + $0x280] sm:$0xff]  ;;  %v215_v6 = vld [vmem:[%s3453_s1 + $0x10] sm:$0xff]  ;;  %s192_s14 = scalar_lea.vmem %s3454_s2, %s1728_s11 }
  0x11   : > { %s2819_s29 = scalar_lea.vmem %s3452_s0, %s2709_s18  ;;  %2352 = vmatpush3.bf16.msra.mxu1 %v2349_v16  ;;  %v1662_v2 = vld [vmem:[%s3453_s1 + $0x288] sm:$0xff]  ;;  %v2373_v3 = vpack.c.bf16 %v214_v62, %v213_v60  ;;  %v216_v10 = vld [vmem:[%s3453_s1 + $0x18] sm:$0xff]  ;;  %v1663_v13 = vld [vmem:[%s3453_s1 + $0x290] sm:$0xff] }
  0x12   : > { %v2828_v26 = vld [vmem:[%s2819_s29] sm:$0xff]  ;;  %v194_v29 = vld [vmem:[%s2819_s29 + $0x8] sm:$0x3]  ;;  %v2839_v33 = vld [vmem:[%s2819_s29 + $0x10] sm:$0xff]  ;;  %2480 = vmatpush3.bf16.msra.mxu0 %v2477_v17  ;;  %2354 = vmatprep.subr.bf16.mxu1 %v2353_v22  ;;  %v2501_v9 = vpack.c.bf16 %v1662_v2, %v1661_v1  ;;  %v2377_v18 = vpack.c.bf16 %v216_v10, %v215_v6 }
  0x13   : > { %v246_v30 = vrot.slane %v2828_v26, 1  ;;  %v247_v32 = vrot.slane %v194_v29, 1  ;;  %v2842_v34 = vld [vmem:[%s2819_s29 + $0x18] sm:$0x3]  ;;  %v249_v35 = vrot.slane %v2839_v33, 1  ;;  %v506_v37 = vrot.slane %v2828_v26, 2  ;;  %2482 = vmatprep.subr.bf16.mxu0 %v2481_v25 }
  0x14   : > { %v250_v36 = vrot.slane %v2842_v34, 1  ;;  %v507_v38 = vrot.slane %v194_v29, 2  ;;  %v2898_v63 = vld [vmem:[%s2819_s29 + $0x20] sm:$0xff]  ;;  %v2901_v0 = vld [vmem:[%s2819_s29 + $0x28] sm:$0x3]  ;;  %v2915_v7 = vld [vmem:[%s2819_s29 + $0x30] sm:$0xff] }
  0x15   : > { %v248_v42 = vsel %vm245_vm0, %v246_v30, %v247_v32  ;;  %2356 = vmatpush3.bf16.msra.mxu1 %v2353_v22  ;;  %v252_v4 = vrot.slane %v2898_v63, 1  ;;  %v253_v5 = vrot.slane %v2901_v0, 1  ;;  %v2918_v8 = vld [vmem:[%s2819_s29 + $0x38] sm:$0x3]  ;;  %v2924_v11 = vld [vmem:[%s2819_s29 + $0x40] sm:$0xff]  ;;  %v255_v15 = vrot.slane %v2915_v7, 1 }
  0x16   : > { %1977 = vmatprep.mubr.f32.mxu1 %v248_v42  ;;  %v2861_v45 = vsel %vm245_vm0, %v249_v35, %v250_v36  ;;  %2484 = vmatpush3.bf16.msra.mxu0 %v2481_v25  ;;  %v2865_v47 = vsel %vm505_vm1, %v506_v37, %v507_v38  ;;  %v2927_v12 = vld [vmem:[%s2819_s29 + $0x48] sm:$0x3]  ;;  %v1664_v14 = vld [vmem:[%s3453_s1 + $0x298] sm:$0xff]  ;;  %v256_v16 = vrot.slane %v2918_v8, 1  ;;  %v217_v19 = vld [vmem:[%s3453_s1 + $0x20] sm:$0xff]  ;;  %v258_v20 = vrot.slane %v2924_v11, 1 }
  0x17   : > { %2153 = vmatprep.mubr.f32.mxu0 %v2861_v45  ;;  %2358 = vmatprep.subr.bf16.mxu1 %v2357_v31  ;;  %v2938_v17 = vsel %vm245_vm0, %v252_v4, %v253_v5  ;;  %v259_v21 = vrot.slane %v2927_v12, 1  ;;  %v2946_v22 = vld [vmem:[%s2819_s29 + $0x50] sm:$0xff]  ;;  %v2949_v23 = vld [vmem:[%s2819_s29 + $0x58] sm:$0x3]  ;;  %v2505_v24 = vpack.c.bf16 %v1664_v14, %v1663_v13  ;;  %v218_v25 = vld [vmem:[%s3453_s1 + $0x28] sm:$0xff]  ;;  %v509_v1 = vrot.slane %v2839_v33, 2 }
  0x18   : > { %2486 = vmatprep.subr.bf16.mxu0 %v2485_v39  ;;  %v2955_v27 = vld [vmem:[%s2819_s29 + $0x60] sm:$0xff]  ;;  %v2958_v28 = vld [vmem:[%s2819_s29 + $0x68] sm:$0x3]  ;;  %v261_v32 = vrot.slane %v2946_v22, 1  ;;  %v262_v35 = vrot.slane %v2949_v23, 1  ;;  %v2381_v36 = vpack.c.bf16 %v218_v25, %v217_v19  ;;  %v219_v37 = vld [vmem:[%s3453_s1 + $0x30] sm:$0xff] }
  0x19   : > { %2360 = vmatpush3.bf16.msra.mxu1 %v2357_v31  ;;  %v1665_v29 = vld [vmem:[%s3453_s1 + $0x2a0] sm:$0xff]  ;;  %v1666_v30 = vld [vmem:[%s3453_s1 + $0x2a8] sm:$0xff]  ;;  %v2969_v31 = vsel %vm245_vm0, %v255_v15, %v256_v16  ;;  %v2977_v38 = vsel %vm245_vm0, %v258_v20, %v259_v21  ;;  %v265_v40 = vrot.slane %v2958_v28, 1  ;;  %v2982_v41 = vld [vmem:[%s2819_s29 + $0x70] sm:$0xff]  ;;  %v510_v2 = vrot.slane %v2842_v34, 2 }
  0x1a   : > { %2488 = vmatpush3.bf16.msra.mxu0 %v2485_v39  ;;  %2362 = vmatprep.subr.bf16.mxu1 %v2361_v46  ;;  %v264_v39 = vrot.slane %v2955_v27, 1  ;;  %v2985_v42 = vld [vmem:[%s2819_s29 + $0x78] sm:$0x3]  ;;  %v2509_v43 = vpack.c.bf16 %v1666_v30, %v1665_v29  ;;  %v3007_v50 = vsel %vm245_vm0, %v261_v32, %v262_v35  ;;  %v267_v51 = vrot.slane %v2982_v41, 1  ;;  %v221_v58 = vld [vmem:[%s3453_s1 + $0x40] sm:$0xff]  ;;  %v223_v6 = vld [vmem:[%s3453_s1 + $0x50] sm:$0xff] }
  0x1b   : > { %2490 = vmatprep.subr.bf16.mxu0 %v2489_v48  ;;  %v220_v44 = vld [vmem:[%s3453_s1 + $0x38] sm:$0xff]  ;;  %v268_v52 = vrot.slane %v2985_v42, 1  ;;  %v1669_v60 = vld [vmem:[%s3453_s1 + $0x2c0] sm:$0xff]  ;;  %v1671_v34 = vld [vmem:[%s3453_s1 + $0x2d0] sm:$0xff]  ;;  %v3057_v13 = vsel %vm505_vm1, %v509_v1, %v510_v2  ;;  %v515_v2 = vrot.slane %v2915_v7, 2 }
  0x1c   : > { %v1668_v49 = vld [vmem:[%s3453_s1 + $0x2b8] sm:$0xff]  ;;  %v3060_v15 = vld [vmem:[%s2819_s29 + $0x90] sm:$0xff]  ;;  %v226_v19 = vld [vmem:[%s3453_s1 + $0x68] sm:$0xff] }
  0x1d   : > { %2364 = vmatpush3.bf16.msra.mxu1 %v2361_v46  ;;  %v2995_v46 = vld [vmem:[%s2819_s29 + $0x88] sm:$0x3]  ;;  %v3033_v62 = vsel %vm245_vm0, %v267_v51, %v268_v52  ;;  %v1672_v10 = vld [vmem:[%s3453_s1 + $0x2d8] sm:$0xff]  ;;  %v1200_v20 = vrot.slane %v3060_v15, 1  ;;  %v1334_v21 = vrot.slane %v3060_v15, 2  ;;  %v1613_v51 = vld [vmem:[%s3453_s1 + $0x100] sm:$0xff] }
  0x1e   : > { %2492 = vmatpush3.bf16.msra.mxu0 %v2489_v48  ;;  %2366 = vmatprep.subr.bf16.mxu1 %v2365_v53  ;;  %v1667_v48 = vld [vmem:[%s3453_s1 + $0x2b0] sm:$0xff]  ;;  %v801_v56 = vrot.slane %v2995_v46, 1  ;;  %v2521_v16 = vpack.c.bf16 %v1672_v10, %v1671_v34  ;;  %v1674_v25 = vld [vmem:[%s3453_s1 + $0x2e8] sm:$0xff]  ;;  %v212_v29 = vld [vmem:[%s2819_s29 + $0x98] sm:$0x3]  ;;  %v519_v34 = vrot.slane %v2927_v12, 2 }
  0x1f   : > { %2494 = vmatprep.subr.bf16.mxu0 %v2493_v54  ;;  %v2513_v57 = vpack.c.bf16 %v1668_v49, %v1667_v48  ;;  %v1201_v30 = vrot.slane %v212_v29, 1  ;;  %v1335_v32 = vrot.slane %v212_v29, 2  ;;  %v1614_v52 = vld [vmem:[%s3453_s1 + $0x108] sm:$0xff]  ;;  %v1679_v1 = vld [vmem:[%s3453_s1 + $0x310] sm:$0xff]  ;;  %v525_v29 = vrot.slane %v2958_v28, 2  ;;  %v1684_v28 = vld [vmem:[%s3453_s1 + $0x338] sm:$0xff] }
  0x20   : > { %v1682_v12 = vld [vmem:[%s3453_s1 + $0x328] sm:$0xff] }
  0x21   : > { %2368 = vmatpush3.bf16.msra.mxu1 %v2365_v53  ;;  %v2385_v53 = vpack.c.bf16 %v220_v44, %v219_v37  ;;  %v228_v37 = vld [vmem:[%s3453_s1 + $0x78] sm:$0xff] }
  0x22   : > { %2496 = vmatpush3.bf16.msra.mxu0 %v2493_v54  ;;  %2370 = vmatprep.subr.bf16.mxu1 %v2369_v59  ;;  %v3012_v54 = vsel %vm245_vm0, %v264_v39, %v265_v40  ;;  %v3086_v39 = vsel %vm245_vm0, %v1200_v20, %v1201_v30  ;;  %v3089_v40 = vsel %vm505_vm1, %v1334_v21, %v1335_v32  ;;  %v1676_v44 = vld [vmem:[%s3453_s1 + $0x2f8] sm:$0xff]  ;;  %v522_v20 = vrot.slane %v2949_v23, 2  ;;  %v1619_v32 = vld [vmem:[%s3453_s1 + $0x130] sm:$0xff] }
  0x23   : > { %2498 = vmatprep.subr.bf16.mxu0 %v2497_v61  ;;  %v1620_v23 = vld [vmem:[%s3453_s1 + $0x138] sm:$0xff] }
  0x25   : > { %2372 = vmatpush3.bf16.msra.mxu1 %v2369_v59  ;;  %v222_v59 = vld [vmem:[%s3453_s1 + $0x48] sm:$0xff] }
  0x26   : > { %2500 = vmatpush3.bf16.msra.mxu0 %v2497_v61  ;;  %2374 = vmatprep.subr.bf16.mxu1 %v2373_v3  ;;  %v1670_v61 = vld [vmem:[%s3453_s1 + $0x2c8] sm:$0xff] }
  0x27   : > { %2502 = vmatprep.subr.bf16.mxu0 %v2501_v9  ;;  %v2517_v5 = vpack.c.bf16 %v1670_v61, %v1669_v60  ;;  %v1615_v60 = vld [vmem:[%s3453_s1 + $0x110] sm:$0xff]  ;;  %v1616_v61 = vld [vmem:[%s3453_s1 + $0x118] sm:$0xff] }
  0x28   : > { %1978 = vmatmul.mubr.f32.vlgmr.msra.gmra.mrb[0].mxu1 %v2861_v45  ;;  %v2992_v45 = vld [vmem:[%s2819_s29 + $0x80] sm:$0xff] }
  0x29   : > { %2376 = vmatpush3.bf16.msra.mxu1 %v2373_v3  ;;  %2154 = vmatmul.mubr.f32.vlgmr.msra.gmra.mrb[0].mxu0 %v2938_v17  ;;  %v800_v55 = vrot.slane %v2992_v45, 1  ;;  %v2389_v3 = vpack.c.bf16 %v222_v59, %v221_v58  ;;  %v512_v58 = vrot.slane %v2898_v63, 2 }
  0x2a   : > { %2504 = vmatpush3.bf16.msra.mxu0 %v2501_v9  ;;  %2378 = vmatprep.subr.bf16.mxu1 %v2377_v18  ;;  %v224_v9 = vld [vmem:[%s3453_s1 + $0x58] sm:$0xff] }
  0x2b   : > { %2506 = vmatprep.subr.bf16.mxu0 %v2505_v24  ;;  %1980 = vmatprep.mubr.f32.mxu1 %v2938_v17  ;;  %v3038_v4 = vsel %vm245_vm0, %v800_v55, %v801_v56  ;;  %v2393_v14 = vpack.c.bf16 %v224_v9, %v223_v6  ;;  %v1678_v55 = vld [vmem:[%s3453_s1 + $0x308] sm:$0xff]  ;;  %v513_v56 = vrot.slane %v2901_v0, 2  ;;  %v1680_v0 = vld [vmem:[%s3453_s1 + $0x318] sm:$0xff]  ;;  %v2409_v6 = vpack.c.bf16 %v1616_v61, %v1615_v60  ;;  %v1687_v61 = vld [vmem:[%s3453_s1 + $0x350] sm:$0xff] }
  0x2c   : > { %2156 = vmatprep.mubr.f32.mxu0 %v2969_v31  ;;  %1981 = vmatmul.mubr.f32.gmra.mrb[2].mxu1 %v2969_v31  ;;  %v518_v9 = vrot.slane %v2924_v11, 2  ;;  %v2537_v10 = vpack.c.bf16 %v1680_v0, %v1679_v1  ;;  %v1624_v60 = vld [vmem:[%s3453_s1 + $0x158] sm:$0xff] }
  0x2d   : > { %2380 = vmatpush3.bf16.msra.mxu1 %v2377_v18  ;;  %2157 = vmatmul.mubr.f32.gmra.mrb[2].mxu0 %v2977_v38  ;;  %v225_v18 = vld [vmem:[%s3453_s1 + $0x60] sm:$0xff]  ;;  %v1688_v1 = vld [vmem:[%s3453_s1 + $0x358] sm:$0xff] }
  0x2e   : > { %2508 = vmatpush3.bf16.msra.mxu0 %v2505_v24  ;;  %2382 = vmatprep.subr.bf16.mxu1 %v2381_v36  ;;  %v1673_v24 = vld [vmem:[%s3453_s1 + $0x2e0] sm:$0xff] }
  0x2f   : > { %2510 = vmatprep.subr.bf16.mxu0 %v2509_v43  ;;  %1983 = vmatprep.mubr.f32.mxu1 %v2977_v38  ;;  %v2525_v35 = vpack.c.bf16 %v1674_v25, %v1673_v24  ;;  %v3150_v24 = vsel %vm505_vm1, %v518_v9, %v519_v34  ;;  %v524_v25 = vrot.slane %v2955_v27, 2  ;;  %v1689_v9 = vld [vmem:[%s3453_s1 + $0x360] sm:$0xff]  ;;  %v1690_v34 = vld [vmem:[%s3453_s1 + $0x368] sm:$0xff] }
  0x30   : > { %2159 = vmatprep.mubr.f32.mxu0 %v3007_v50  ;;  %1984 = vmatmul.mubr.f32.gmra.mrb[4].mxu1 %v3007_v50 }
  0x31   : > { %2384 = vmatpush3.bf16.msra.mxu1 %v2381_v36  ;;  %2160 = vmatmul.mubr.f32.gmra.mrb[4].mxu0 %v3012_v54  ;;  %v227_v36 = vld [vmem:[%s3453_s1 + $0x70] sm:$0xff] }
  0x32   : > { %2512 = vmatpush3.bf16.msra.mxu0 %v2509_v43  ;;  %2386 = vmatprep.subr.bf16.mxu1 %v2385_v53  ;;  %v1675_v43 = vld [vmem:[%s3453_s1 + $0x2f0] sm:$0xff]  ;;  %v2401_v48 = vpack.c.bf16 %v228_v37, %v227_v36  ;;  %v527_v36 = vrot.slane %v2982_v41, 2  ;;  %v528_v37 = vrot.slane %v2985_v42, 2  ;;  %v1622_v42 = vld [vmem:[%s3453_s1 + $0x148] sm:$0xff] }
  0x33   : > { %2514 = vmatprep.subr.bf16.mxu0 %v2513_v57  ;;  %1986 = vmatprep.mubr.f32.mxu1 %v3012_v54  ;;  %v2529_v49 = vpack.c.bf16 %v1676_v44, %v1675_v43  ;;  %v2417_v43 = vpack.c.bf16 %v1620_v23, %v1619_v32  ;;  %v3176_v44 = vsel %vm505_vm1, %v524_v25, %v525_v29  ;;  %v1630_v25 = vld [vmem:[%s3453_s1 + $0x188] sm:$0xff]  ;;  %v1693_v29 = vld [vmem:[%s3453_s1 + $0x380] sm:$0xff] }
  0x34   : > { %2162 = vmatprep.mubr.f32.mxu0 %v3033_v62  ;;  %1987 = vmatmul.mubr.f32.gmra.mrb[6].mxu1 %v3033_v62 }
  0x35   : > { %2388 = vmatpush3.bf16.msra.mxu1 %v2385_v53  ;;  %2163 = vmatmul.mubr.f32.gmra.mrb[6].mxu0 %v3038_v4  ;;  %v1677_v53 = vld [vmem:[%s3453_s1 + $0x300] sm:$0xff] }
  0x36   : > { %2516 = vmatpush3.bf16.msra.mxu0 %v2513_v57  ;;  %2390 = vmatprep.subr.bf16.mxu1 %v2389_v3  ;;  %v2405_v57 = vpack.c.bf16 %v1614_v52, %v1613_v51  ;;  %v2533_v59 = vpack.c.bf16 %v1678_v55, %v1677_v53  ;;  %v1621_v52 = vld [vmem:[%s3453_s1 + $0x140] sm:$0xff]  ;;  %v3197_v55 = vsel %vm505_vm1, %v527_v36, %v528_v37  ;;  %v1695_v36 = vld [vmem:[%s3453_s1 + $0x390] sm:$0xff]  ;;  %v1696_v37 = vld [vmem:[%s3453_s1 + $0x398] sm:$0xff] }
  0x37   : > { %2518 = vmatprep.subr.bf16.mxu0 %v2517_v5  ;;  %2021 = vmatprep.mubr.f32.mxu1 %v2828_v26  ;;  %v2397_v26 = vpack.c.bf16 %v226_v19, %v225_v18  ;;  %v521_v19 = vrot.slane %v2946_v22, 2  ;;  %v1685_v53 = vld [vmem:[%s3453_s1 + $0x340] sm:$0xff] }
  0x38   : > { %2197 = vmatprep.mubr.f32.mxu0 %v3057_v13 }
  0x39   : > { %2392 = vmatpush3.bf16.msra.mxu1 %v2389_v3  ;;  %v516_v3 = vrot.slane %v2918_v8, 2  ;;  %v1618_v8 = vld [vmem:[%s3453_s1 + $0x128] sm:$0xff] }
  0x3a   : > { %2520 = vmatpush3.bf16.msra.mxu0 %v2517_v5  ;;  %2394 = vmatprep.subr.bf16.mxu1 %v2393_v14  ;;  %v3126_v5 = vsel %vm505_vm1, %v512_v58, %v513_v56  ;;  %v2421_v56 = vpack.c.bf16 %v1622_v42, %v1621_v52  ;;  %v1697_v52 = vld [vmem:[%s3453_s1 + $0x3a0] sm:$0xff]  ;;  %v1698_v42 = vld [vmem:[%s3453_s1 + $0x3a8] sm:$0xff] }
  0x3b   : > { %2522 = vmatprep.subr.bf16.mxu0 %v2521_v16  ;;  %v3145_v18 = vsel %vm505_vm1, %v515_v2, %v516_v3  ;;  %v2553_v2 = vpack.c.bf16 %v1688_v1, %v1687_v61  ;;  %v1625_v3 = vld [vmem:[%s3453_s1 + $0x160] sm:$0xff] }
  0x3c   : > { %v1637_v1 = vld [vmem:[%s3453_s1 + $0x1c0] sm:$0xff] }
  0x3d   : > { %2396 = vmatpush3.bf16.msra.mxu1 %v2393_v14  ;;  %v1617_v14 = vld [vmem:[%s3453_s1 + $0x120] sm:$0xff] }
  0x3e   : > { %2524 = vmatpush3.bf16.msra.mxu0 %v2521_v16  ;;  %2398 = vmatprep.subr.bf16.mxu1 %v2397_v26  ;;  %v1681_v16 = vld [vmem:[%s3453_s1 + $0x320] sm:$0xff]  ;;  %v2413_v21 = vpack.c.bf16 %v1618_v8, %v1617_v14  ;;  %v2557_v14 = vpack.c.bf16 %v1690_v34, %v1689_v9  ;;  %v1628_v8 = vld [vmem:[%s3453_s1 + $0x178] sm:$0xff]  ;;  %v1639_v34 = vld [vmem:[%s3453_s1 + $0x1d0] sm:$0xff] }
  0x3f   : > { %2526 = vmatprep.subr.bf16.mxu0 %v2525_v35  ;;  %v2541_v30 = vpack.c.bf16 %v1682_v12, %v1681_v16  ;;  %v1691_v16 = vld [vmem:[%s3453_s1 + $0x370] sm:$0xff]  ;;  %v1692_v12 = vld [vmem:[%s3453_s1 + $0x378] sm:$0xff] }
  0x41   : > { %2400 = vmatpush3.bf16.msra.mxu1 %v2397_v26  ;;  %v1683_v26 = vld [vmem:[%s3453_s1 + $0x330] sm:$0xff] }
  0x42   : > { %2528 = vmatpush3.bf16.msra.mxu0 %v2525_v35  ;;  %2402 = vmatprep.subr.bf16.mxu1 %v2401_v48  ;;  %v3171_v35 = vsel %vm505_vm1, %v521_v19, %v522_v20  ;;  %v2545_v51 = vpack.c.bf16 %v1684_v28, %v1683_v26  ;;  %v2561_v20 = vpack.c.bf16 %v1692_v12, %v1691_v16  ;;  %v1631_v26 = vld [vmem:[%s3453_s1 + $0x190] sm:$0xff]  ;;  %v1632_v28 = vld [vmem:[%s3453_s1 + $0x198] sm:$0xff]  ;;  %v1641_v12 = vld [vmem:[%s3453_s1 + $0x1e0] sm:$0xff] }
  0x43   : > { %2530 = vmatprep.subr.bf16.mxu0 %v2529_v49 }
  0x45   : > { %2404 = vmatpush3.bf16.msra.mxu1 %v2401_v48  ;;  %v934_v48 = vrot.slane %v2992_v45, 2 }
  0x46   : > { %2532 = vmatpush3.bf16.msra.mxu0 %v2529_v49  ;;  %2406 = vmatprep.subr.bf16.mxu1 %v2405_v57  ;;  %v935_v49 = vrot.slane %v2995_v46, 2  ;;  %v1686_v46 = vld [vmem:[%s3453_s1 + $0x348] sm:$0xff] }
  0x47   : > { %2534 = vmatprep.subr.bf16.mxu0 %v2533_v59  ;;  %v2549_v58 = vpack.c.bf16 %v1686_v46, %v1685_v53  ;;  %v2573_v46 = vpack.c.bf16 %v1698_v42, %v1697_v52  ;;  %v1716_v42 = vld [vmem:[%s3453_s1 + $0x438] sm:$0xff] }
  0x48   : > { %2022 = vmatmul.mubr.f32.vlgmr.msra.gmra.mrb[0].mxu1 %v2839_v33 }
  0x49   : > { %2408 = vmatpush3.bf16.msra.mxu1 %v2405_v57  ;;  %2198 = vmatmul.mubr.f32.vlgmr.msra.gmra.mrb[0].mxu0 %v3126_v5  ;;  %v3200_v57 = vsel %vm505_vm1, %v934_v48, %v935_v49  ;;  %v2569_v48 = vpack.c.bf16 %v1696_v37, %v1695_v36  ;;  %v1633_v49 = vld [vmem:[%s3453_s1 + $0x1a0] sm:$0xff]  ;;  %v1711_v37 = vld [vmem:[%s3453_s1 + $0x410] sm:$0xff] }
  0x4a   : > { %2536 = vmatpush3.bf16.msra.mxu0 %v2533_v59  ;;  %2410 = vmatprep.subr.bf16.mxu1 %v2409_v6  ;;  %v1623_v59 = vld [vmem:[%s3453_s1 + $0x150] sm:$0xff] }
  0x4b   : > { %2538 = vmatprep.subr.bf16.mxu0 %v2537_v10  ;;  %2024 = vmatprep.mubr.f32.mxu1 %v2898_v63  ;;  %v2425_v0 = vpack.c.bf16 %v1624_v60, %v1623_v59  ;;  %v1700_v59 = vld [vmem:[%s3453_s1 + $0x3b8] sm:$0xff] }
  0x4c   : > { %2200 = vmatprep.mubr.f32.mxu0 %v3145_v18  ;;  %2025 = vmatmul.mubr.f32.gmra.mrb[2].mxu1 %v2915_v7 }
  0x4d   : > { %2412 = vmatpush3.bf16.msra.mxu1 %v2409_v6  ;;  %2201 = vmatmul.mubr.f32.gmra.mrb[2].mxu0 %v3150_v24  ;;  %v1626_v6 = vld [vmem:[%s3453_s1 + $0x168] sm:$0xff] }
  0x4e   : > { %2540 = vmatpush3.bf16.msra.mxu0 %v2537_v10  ;;  %2414 = vmatprep.subr.bf16.mxu1 %v2413_v21  ;;  %v2429_v10 = vpack.c.bf16 %v1626_v6, %v1625_v3  ;;  %v1702_v3 = vld [vmem:[%s3453_s1 + $0x3c8] sm:$0xff] }
  0x4f   : > { %2542 = vmatprep.subr.bf16.mxu0 %v2541_v30  ;;  %2027 = vmatprep.mubr.f32.mxu1 %v2924_v11 }
  0x50   : > { %2203 = vmatprep.mubr.f32.mxu0 %v3171_v35  ;;  %2028 = vmatmul.mubr.f32.gmra.mrb[4].mxu1 %v2946_v22 }
  0x51   : > { %2416 = vmatpush3.bf16.msra.mxu1 %v2413_v21  ;;  %2204 = vmatmul.mubr.f32.gmra.mrb[4].mxu0 %v3176_v44  ;;  %v1629_v21 = vld [vmem:[%s3453_s1 + $0x180] sm:$0xff] }
  0x52   : > { %2544 = vmatpush3.bf16.msra.mxu0 %v2541_v30  ;;  %2418 = vmatprep.subr.bf16.mxu1 %v2417_v43  ;;  %v1694_v30 = vld [vmem:[%s3453_s1 + $0x388] sm:$0xff]  ;;  %v2437_v32 = vpack.c.bf16 %v1630_v25, %v1629_v21 }
  0x53   : > { %2546 = vmatprep.subr.bf16.mxu0 %v2545_v51  ;;  %2030 = vmatprep.mubr.f32.mxu1 %v2955_v27  ;;  %v2565_v23 = vpack.c.bf16 %v1694_v30, %v1693_v29  ;;  %v1644_v29 = vld [vmem:[%s3453_s1 + $0x1f8] sm:$0xff]  ;;  %v1707_v30 = vld [vmem:[%s3453_s1 + $0x3f0] sm:$0xff] }
  0x54   : > { %2206 = vmatprep.mubr.f32.mxu0 %v3197_v55  ;;  %2031 = vmatmul.mubr.f32.gmra.mrb[6].mxu1 %v2982_v41 }
  0x55   : > { %2420 = vmatpush3.bf16.msra.mxu1 %v2417_v43  ;;  %2207 = vmatmul.mubr.f32.gmra.mrb[6].mxu0 %v3200_v57  ;;  %v2441_v43 = vpack.c.bf16 %v1632_v28, %v1631_v26  ;;  %v1709_v26 = vld [vmem:[%s3453_s1 + $0x400] sm:$0xff]  ;;  %v1710_v28 = vld [vmem:[%s3453_s1 + $0x408] sm:$0xff] }
  0x56   : > { %2548 = vmatpush3.bf16.msra.mxu0 %v2545_v51  ;;  %2422 = vmatprep.subr.bf16.mxu1 %v2421_v56  ;;  %v1634_v51 = vld [vmem:[%s3453_s1 + $0x1a8] sm:$0xff]  ;;  %v2597_v36 = vpack.c.bf16 %v1710_v28, %v1709_v26 }
  0x57   : > { %2550 = vmatprep.subr.bf16.mxu0 %v2549_v58  ;;  %2065 = vmatprep.mubr.f32.mxu1 %v2865_v47  ;;  %v1627_v47 = vld [vmem:[%s3453_s1 + $0x170] sm:$0xff]  ;;  %v2445_v53 = vpack.c.bf16 %v1634_v51, %v1633_v49  ;;  %v1713_v49 = vld [vmem:[%s3453_s1 + $0x420] sm:$0xff]  ;;  %v1714_v51 = vld [vmem:[%s3453_s1 + $0x428] sm:$0xff] }
  0x58   : > { %2241 = vmatprep.mubr.f32.mxu0 %v2898_v63  ;;  %v2433_v19 = vpack.c.bf16 %v1628_v8, %v1627_v47  ;;  %v1704_v47 = vld [vmem:[%s3453_s1 + $0x3d8] sm:$0xff]  ;;  %v2605_v52 = vpack.c.bf16 %v1714_v51, %v1713_v49 }
  0x59   : > { %2424 = vmatpush3.bf16.msra.mxu1 %v2421_v56  ;;  %v1636_v56 = vld [vmem:[%s3453_s1 + $0x1b8] sm:$0xff] }
  0x5a   : > { %2552 = vmatpush3.bf16.msra.mxu0 %v2549_v58  ;;  %2426 = vmatprep.subr.bf16.mxu1 %v2425_v0  ;;  %v1699_v58 = vld [vmem:[%s3453_s1 + $0x3b0] sm:$0xff] }
  0x5b   : > { %2554 = vmatprep.subr.bf16.mxu0 %v2553_v2  ;;  %v2577_v61 = vpack.c.bf16 %v1700_v59, %v1699_v58 }
  0x5d   : > { %2428 = vmatpush3.bf16.msra.mxu1 %v2425_v0  ;;  %v1638_v0 = vld [vmem:[%s3453_s1 + $0x1c8] sm:$0xff] }
  0x5e   : > { %2556 = vmatpush3.bf16.msra.mxu0 %v2553_v2  ;;  %2430 = vmatprep.subr.bf16.mxu1 %v2429_v10  ;;  %v1701_v2 = vld [vmem:[%s3453_s1 + $0x3c0] sm:$0xff]  ;;  %v2453_v6 = vpack.c.bf16 %v1638_v0, %v1637_v1 }
  0x5f   : > { %2558 = vmatprep.subr.bf16.mxu0 %v2557_v14  ;;  %v2581_v9 = vpack.c.bf16 %v1702_v3, %v1701_v2 }
  0x61   : > { %2432 = vmatpush3.bf16.msra.mxu1 %v2429_v10  ;;  %v1640_v10 = vld [vmem:[%s3453_s1 + $0x1d8] sm:$0xff] }
  0x62   : > { %2560 = vmatpush3.bf16.msra.mxu0 %v2557_v14  ;;  %2434 = vmatprep.subr.bf16.mxu1 %v2433_v19  ;;  %v1703_v14 = vld [vmem:[%s3453_s1 + $0x3d0] sm:$0xff]  ;;  %v2457_v8 = vpack.c.bf16 %v1640_v10, %v1639_v34 }
  0x63   : > { %2562 = vmatprep.subr.bf16.mxu0 %v2561_v20  ;;  %v2585_v16 = vpack.c.bf16 %v1704_v47, %v1703_v14 }
  0x65   : > { %2436 = vmatpush3.bf16.msra.mxu1 %v2433_v19  ;;  %v1642_v19 = vld [vmem:[%s3453_s1 + $0x1e8] sm:$0xff] }
  0x66   : > { %2564 = vmatpush3.bf16.msra.mxu0 %v2561_v20  ;;  %2438 = vmatprep.subr.bf16.mxu1 %v2437_v32  ;;  %v1705_v20 = vld [vmem:[%s3453_s1 + $0x3e0] sm:$0xff]  ;;  %v2461_v21 = vpack.c.bf16 %v1642_v19, %v1641_v12 }
  0x67   : > { %2566 = vmatprep.subr.bf16.mxu0 %v2565_v23 }
  0x68   : > { %2066 = vmatmul.mubr.f32.vlgmr.msra.gmra.mrb[0].mxu1 %v3057_v13  ;;  %v1635_v13 = vld [vmem:[%s3453_s1 + $0x1b0] sm:$0xff] }
  0x69   : > { %2440 = vmatpush3.bf16.msra.mxu1 %v2437_v32  ;;  %2242 = vmatmul.mubr.f32.vlgmr.msra.gmra.mrb[0].mxu0 %v2915_v7  ;;  %v2449_v60 = vpack.c.bf16 %v1636_v56, %v1635_v13 }
  0x6a   : > { %2568 = vmatpush3.bf16.msra.mxu0 %v2565_v23  ;;  %2442 = vmatprep.subr.bf16.mxu1 %v2441_v43 }
  0x6b   : > { %2570 = vmatprep.subr.bf16.mxu0 %v2569_v48  ;;  %2068 = vmatprep.mubr.f32.mxu1 %v3126_v5 }
  0x6c   : > { %2244 = vmatprep.mubr.f32.mxu0 %v2924_v11  ;;  %2069 = vmatmul.mubr.f32.gmra.mrb[2].mxu1 %v3145_v18 }
  0x6d   : > { %2444 = vmatpush3.bf16.msra.mxu1 %v2441_v43  ;;  %2245 = vmatmul.mubr.f32.gmra.mrb[2].mxu0 %v2946_v22  ;;  %v1712_v43 = vld [vmem:[%s3453_s1 + $0x418] sm:$0xff] }
  0x6e   : > { %2572 = vmatpush3.bf16.msra.mxu0 %v2569_v48  ;;  %2446 = vmatprep.subr.bf16.mxu1 %v2445_v53  ;;  %v2601_v48 = vpack.c.bf16 %v1712_v43, %v1711_v37 }
  0x6f   : > { %2574 = vmatprep.subr.bf16.mxu0 %v2573_v46  ;;  %2071 = vmatprep.mubr.f32.mxu1 %v3150_v24 }
  0x70   : > { %2247 = vmatprep.mubr.f32.mxu0 %v2955_v27  ;;  %2072 = vmatmul.mubr.f32.gmra.mrb[4].mxu1 %v3171_v35 }
  0x71   : > { %2448 = vmatpush3.bf16.msra.mxu1 %v2445_v53  ;;  %2248 = vmatmul.mubr.f32.gmra.mrb[4].mxu0 %v2982_v41 }
  0x72   : > { %2576 = vmatpush3.bf16.msra.mxu0 %v2573_v46  ;;  %2450 = vmatprep.subr.bf16.mxu1 %v2449_v60 }
  0x73   : > { %2578 = vmatprep.subr.bf16.mxu0 %v2577_v61  ;;  %2074 = vmatprep.mubr.f32.mxu1 %v3176_v44 }
  0x74   : > { %2250 = vmatprep.mubr.f32.mxu0 %v2992_v45  ;;  %2075 = vmatmul.mubr.f32.gmra.mrb[6].mxu1 %v3197_v55 }
  0x75   : > { %2452 = vmatpush3.bf16.msra.mxu1 %v2449_v60  ;;  %2251 = vmatmul.mubr.f32.gmra.mrb[6].mxu0 %v3060_v15  ;;  %v1706_v15 = vld [vmem:[%s3453_s1 + $0x3e8] sm:$0xff] }
  0x76   : > { %2580 = vmatpush3.bf16.msra.mxu0 %v2577_v61  ;;  %2454 = vmatprep.subr.bf16.mxu1 %v2453_v6  ;;  %v2589_v25 = vpack.c.bf16 %v1706_v15, %v1705_v20 }
  0x77   : > { %2582 = vmatprep.subr.bf16.mxu0 %v2581_v9  ;;  %2109 = vmatprep.mubr.f32.mxu1 %v2839_v33  ;;  %v1643_v33 = vld [vmem:[%s3453_s1 + $0x1f0] sm:$0xff] }
  0x78   : > { %2285 = vmatprep.mubr.f32.mxu0 %v2938_v17  ;;  %v1708_v17 = vld [vmem:[%s3453_s1 + $0x3f8] sm:$0xff]  ;;  %v2465_v32 = vpack.c.bf16 %v1644_v29, %v1643_v33 }
  0x79   : > { %2456 = vmatpush3.bf16.msra.mxu1 %v2453_v6  ;;  %v2593_v23 = vpack.c.bf16 %v1708_v17, %v1707_v30 }
  0x7a   : > { %2584 = vmatpush3.bf16.msra.mxu0 %v2581_v9  ;;  %2458 = vmatprep.subr.bf16.mxu1 %v2457_v8 }
  0x7b   : > { %2586 = vmatprep.subr.bf16.mxu0 %v2585_v16 }
  0x7d   : > { %2460 = vmatpush3.bf16.msra.mxu1 %v2457_v8 }
  0x7e   : > { %2588 = vmatpush3.bf16.msra.mxu0 %v2585_v16  ;;  %2462 = vmatprep.subr.bf16.mxu1 %v2461_v21 }
  0x7f   : > { %2590 = vmatprep.subr.bf16.mxu0 %v2589_v25 }
  0x81   : > { %2464 = vmatpush3.bf16.msra.mxu1 %v2461_v21  ;;  %v2727_v21 = vmov (!%p1725_p4), 0.0  }
  0x82   : > { %2592 = vmatpush3.bf16.msra.mxu0 %v2589_v25  ;;  %2466 = vmatprep.subr.bf16.mxu1 %v2465_v32  ;;  %1480 = vst [vmem:[%s3455_s3] sm:$0x1] (!%p1725_p4), %v2727_v21  ;;  %1481 = vst [vmem:[%s3456_s4] sm:$0x1] (!%p1725_p4), %v2727_v21 }
  0x83   : > { %2594 = vmatprep.subr.bf16.mxu0 %v2593_v23 }
  0x85   : > { %2468 = vmatpush3.bf16.msra.mxu1 %v2465_v32 }
  0x86   : > { %2596 = vmatpush3.bf16.msra.mxu0 %v2593_v23  ;;  %2629 = vmatprep.subr.bf16.mxu1 %v2597_v36 }
  0x87   : > { %2598 = vmatprep.subr.bf16.mxu0 %v2597_v36 }
  0x88   : > { %2110 = vmatmul.mubr.f32.vlgmr.msra.gmra.mrb[0].mxu1 %v2898_v63  ;;  %v1715_v63 = vld [vmem:[%s3453_s1 + $0x430] sm:$0xff] }
  0x89   : > { %2286 = vmatmul.mubr.f32.vlgmr.msra.gmra.mrb[0].mxu0 %v2969_v31  ;;  %2637 = vmatpush3.bf16.msra.mxu1 %v2597_v36  ;;  %v1718_v31 = vld [vmem:[%s3453_s1 + $0x448] sm:$0xff] }
  0x8a   : > { %2600 = vmatpush3.bf16.msra.mxu0 %v2597_v36  ;;  %2112 = vmatprep.mubr.f32.mxu1 %v2915_v7  ;;  %v2609_v7 = vpack.c.bf16 %v1716_v42, %v1715_v63 }
  0x8b   : > { %2288 = vmatprep.mubr.f32.mxu0 %v2977_v38  ;;  %2602 = vmatprep.subr.bf16.mxu0 %v2601_v48  ;;  %v1719_v38 = vld [vmem:[%s3453_s1 + $0x450] sm:$0xff] }
  0x8c   : > { %2113 = vmatmul.mubr.f32.gmra.mrb[2].mxu1 %v2924_v11  ;;  %2630 = vmatprep.subr.bf16.mxu1 %v2601_v48  ;;  %v1717_v11 = vld [vmem:[%s3453_s1 + $0x440] sm:$0xff] }
  0x8d   : > { %2289 = vmatmul.mubr.f32.gmra.mrb[2].mxu0 %v3007_v50  ;;  %2638 = vmatpush3.bf16.msra.mxu1 %v2601_v48  ;;  %v1720_v50 = vld [vmem:[%s3453_s1 + $0x458] sm:$0xff] }
  0x8e   : > { %2604 = vmatpush3.bf16.msra.mxu0 %v2601_v48  ;;  %2115 = vmatprep.mubr.f32.mxu1 %v2946_v22  ;;  %v2613_v22 = vpack.c.bf16 %v1718_v31, %v1717_v11 }
  0x8f   : > { %2291 = vmatprep.mubr.f32.mxu0 %v3012_v54  ;;  %2606 = vmatprep.subr.bf16.mxu0 %v2605_v52  ;;  %v1722_v54 = vld [vmem:[%s3453_s1 + $0x468] sm:$0xff] }
  0x90   : > { %2116 = vmatmul.mubr.f32.gmra.mrb[4].mxu1 %v2955_v27  ;;  %2631 = vmatprep.subr.bf16.mxu1 %v2605_v52  ;;  %v2617_v27 = vpack.c.bf16 %v1720_v50, %v1719_v38 }
  0x91   : > { %2292 = vmatmul.mubr.f32.gmra.mrb[4].mxu0 %v3033_v62  ;;  %2639 = vmatpush3.bf16.msra.mxu1 %v2605_v52  ;;  %v1723_v62 = vld [vmem:[%s3453_s1 + $0x470] sm:$0xff] }
  0x92   : > { %2608 = vmatpush3.bf16.msra.mxu0 %v2605_v52  ;;  %2118 = vmatprep.mubr.f32.mxu1 %v2982_v41  ;;  %v1721_v41 = vld [vmem:[%s3453_s1 + $0x460] sm:$0xff] }
  0x93   : > { %2294 = vmatprep.mubr.f32.mxu0 %v3038_v4  ;;  %2610 = vmatprep.subr.bf16.mxu0 %v2609_v7  ;;  %v1724_v4 = vld [vmem:[%s3453_s1 + $0x478] sm:$0xff] }
  0x94   : > { %2119 = vmatmul.mubr.f32.gmra.mrb[6].mxu1 %v2992_v45  ;;  %2632 = vmatprep.subr.bf16.mxu1 %v2609_v7  ;;  %v2621_v45 = vpack.c.bf16 %v1722_v54, %v1721_v41 }
  0x95   : > { %2295 = vmatmul.mubr.f32.gmra.mrb[6].mxu0 %v3086_v39  ;;  %2640 = vmatpush3.bf16.msra.mxu1 %v2609_v7  ;;  %v2625_v39 = vpack.c.bf16 %v1724_v4, %v1723_v62 }
  0x96   : > { %2612 = vmatpush3.bf16.msra.mxu0 %v2609_v7  ;;  %2633 = vmatprep.subr.bf16.mxu1 %v2613_v22 }
  0x97   : > { %2614 = vmatprep.subr.bf16.mxu0 %v2613_v22  ;;  %2329 = vmatprep.mubr.f32.mxu0 %v3126_v5 }
  0x98   : > { %2335 = vmatprep.mubr.f32.mxu1 %v3176_v44 }
  0x99   : > { %2641 = vmatpush3.bf16.msra.mxu1 %v2613_v22 }
  0x9a   : > { %2616 = vmatpush3.bf16.msra.mxu0 %v2613_v22  ;;  %2634 = vmatprep.subr.bf16.mxu1 %v2617_v27 }
  0x9b   : > { %2618 = vmatprep.subr.bf16.mxu0 %v2617_v27 }
  0x9d   : > { %2642 = vmatpush3.bf16.msra.mxu1 %v2617_v27 }
  0x9e   : > { %2620 = vmatpush3.bf16.msra.mxu0 %v2617_v27  ;;  %2635 = vmatprep.subr.bf16.mxu1 %v2621_v45 }
  0x9f   : > { %2622 = vmatprep.subr.bf16.mxu0 %v2621_v45 }
  0xa1   : > { %2643 = vmatpush3.bf16.msra.mxu1 %v2621_v45 }
  0xa2   : > { %2624 = vmatpush3.bf16.msra.mxu0 %v2621_v45  ;;  %2636 = vmatprep.subr.bf16.mxu1 %v2625_v39 }
  0xa3   : > { %2626 = vmatprep.subr.bf16.mxu0 %v2625_v39 }
  0xa5   : > { %2644 = vmatpush3.bf16.msra.mxu1 %v2625_v39 }
  0xa6   : > { %2628 = vmatpush3.bf16.msra.mxu0 %v2625_v39 }
  0xa8   : > { %2336 = vmatmul.mubr.f32.vlgmr.msra.gmra.mrb[8].mxu1 %v3197_v55 }
  0xa9   : > { %2330 = vmatmul.mubr.f32.vlgmr.msra.gmra.mrb[0].mxu0 %v3145_v18  ;;  %2338 = vmatprep.mubr.f32.mxu1 %v3200_v57 }
  0xaa   : > { %2332 = vmatprep.mubr.f32.mxu0 %v3150_v24 }
  0xac   : > { %2339 = vmatmul.mubr.f32.gmra.mrb[10].mxu1 %v3089_v40 }
  0xad   : > { %2333 = vmatmul.mubr.f32.gmra.mrb[2].mxu0 %v3171_v35 }
 0x15b   : > { %v2111_v5 = vpop.f32.mrb[0].mxu1 }
 0x15c   : > { %v751_v44 = vpop.f32.mrb[1].mxu1 }
 0x15f   : > { %v2114_v53 = vpop.f32.mrb[2].mxu1 }
 0x160   : > { %v761_v46 = vpop.f32.mrb[3].mxu1 }
 0x163   : > { %v2117_v13 = vpop.f32.mrb[4].mxu1 }
 0x164   : > { %v2293_v56 = vpop.f32.mrb[4].mxu0  ;;  %v771_v58 = vpop.f32.mrb[5].mxu1 }
 0x165   : > { %v2649_v59 = vadd.f32 %v2293_v56, %v2117_v13  ;;  %v1307_v55 = vpop.f32.mrb[5].mxu0 }
 0x166   : > { %v2651_v60 = vadd.f32 %v1307_v55, %v771_v58 }
 0x167   : > { %v2120_v18 = vpop.f32.mrb[6].mxu1 }
 0x168   : > { %v2296_v61 = vpop.f32.mrb[6].mxu0  ;;  %v781_v57 = vpop.f32.mrb[7].mxu1 }
 0x169   : > { %v2653_v1 = vadd.f32 %v2296_v61, %v2120_v18  ;;  %v1317_v24 = vpop.f32.mrb[7].mxu0 }
 0x16a   : > { %v2655_v0 = vadd.f32 %v1317_v24, %v781_v57 }
 0x17b   : > { %v2337_v40 = vpop.f32.mrb[8].mxu1 }
 0x17c   : > { %v2331_v35 = vpop.f32.mrb[0].mxu0  ;;  %v2650_v2 = vadd.f32 %v2649_v59, %v2337_v40  ;;  %v1441_v3 = vpop.f32.mrb[9].mxu1 }
 0x17d   : > { %v2645_v6 = vadd.f32 %v2331_v35, %v2111_v5  ;;  %v1421_v9 = vpop.f32.mrb[1].mxu0  ;;  %v2652_v34 = vadd.f32 %v2651_v60, %v1441_v3 }
 0x17e   : > { %1473 = vst [vmem:[%s192_s14 + $0x28] sm:$0xff] %v2650_v2  ;;  %v2646_v10 = vadd.f32 %v1421_v9, %v751_v44  ;;  %1479 = sbr.rel (%p1725_p4) target bundleno = 389 (0x185), region = 32 }
 0x17f   : > { %1469 = vst [vmem:[%s192_s14 + $0x8] sm:$0xff] %v2645_v6  ;;  %1472 = vst [vmem:[%s192_s14 + $0x20] sm:$0xff] %v2652_v34  ;;  %v2340_v14 = vpop.f32.mrb[10].mxu1 }
 0x180   : > { %1468 = vst [vmem:[%s192_s14] sm:$0xff] %v2646_v10  ;;  %v2334_v47 = vpop.f32.mrb[2].mxu0  ;;  %v2654_v8 = vadd.f32 %v2653_v1, %v2340_v14  ;;  %v1451_v16 = vpop.f32.mrb[11].mxu1 }
 0x181   : > { %v2647_v12 = vadd.f32 %v2334_v47, %v2114_v53  ;;  %v1431_v19 = vpop.f32.mrb[3].mxu0  ;;  %v2656_v20 = vadd.f32 %v2655_v0, %v1451_v16 }
 0x182   : > { %1475 = vst [vmem:[%s192_s14 + $0x38] sm:$0xff] %v2654_v8  ;;  %v2648_v15 = vadd.f32 %v1431_v19, %v761_v46 }
 0x183   : > { %1471 = vst [vmem:[%s192_s14 + $0x18] sm:$0xff] %v2647_v12  ;;  %1474 = vst [vmem:[%s192_s14 + $0x30] sm:$0xff] %v2656_v20 }
 0x184   : > { %1470 = vst [vmem:[%s192_s14 + $0x10] sm:$0xff] %v2648_v15 }
 0x185 PF: > { %v1483_v25 = vadd.f32 %v2646_v10, %v2645_v6  ;;  %v1499_v33 = vmul.f32 %v2646_v10, %v2646_v10  ;;  %v1500_v29 = vmul.f32 %v2645_v6, %v2645_v6  ;;  %v1501_v30 = vmul.f32 %v2648_v15, %v2648_v15  ;;  %v1482_v5 = vld [vmem:[%s3455_s3] sm:$0x1] }
 0x186   : > { %v1502_v32 = vmul.f32 %v2647_v12, %v2647_v12  ;;  %v1503_v28 = vmul.f32 %v2652_v34, %v2652_v34  ;;  %v1504_v43 = vmul.f32 %v2650_v2, %v2650_v2  ;;  %v1505_v51 = vmul.f32 %v2656_v20, %v2656_v20  ;;  %v1498_v46 = vld [vmem:[%s3456_s4] sm:$0x1] }
 0x187   : > { %v1484_v17 = vadd.f32 %v2648_v15, %v1483_v25  ;;  %v1507_v23 = vadd.f32 %v1500_v29, %v1499_v33  ;;  %v1506_v42 = vmul.f32 %v2654_v8, %v2654_v8 }
 0x189   : > { %v1485_v26 = vadd.f32 %v2647_v12, %v1484_v17  ;;  %v1508_v36 = vadd.f32 %v1507_v23, %v1501_v30 }
 0x18b   : > { %v1486_v37 = vadd.f32 %v2652_v34, %v1485_v26  ;;  %v1509_v48 = vadd.f32 %v1508_v36, %v1502_v32 }
 0x18d   : > { %v1487_v49 = vadd.f32 %v2650_v2, %v1486_v37  ;;  %v1510_v52 = vadd.f32 %v1509_v48, %v1503_v28 }
 0x18f   : > { %v1488_v63 = vadd.f32 %v2656_v20, %v1487_v49  ;;  %v1511_v7 = vadd.f32 %v1510_v52, %v1504_v43 }
 0x191   : > { %v1489_v11 = vadd.f32 %v2654_v8, %v1488_v63  ;;  %v1512_v31 = vadd.f32 %v1511_v7, %v1505_v51 }
 0x193   : > { %v1490_v22 = vrot.slane %v1489_v11, 4  ;;  %v1513_v38 = vadd.f32 %v1512_v31, %v1506_v42 }
 0x195   : > { %v1491_v50 = vadd.f32 %v1490_v22, %v1489_v11  ;;  %v1514_v27 = vrot.slane %v1513_v38, 4 }
 0x197   : > { %v1492_v41 = vrot.slane %v1491_v50, 2  ;;  %v1515_v54 = vadd.f32 %v1514_v27, %v1513_v38 }
 0x199   : > { %v1493_v45 = vadd.f32 %v1492_v41, %v1491_v50  ;;  %v1516_v62 = vrot.slane %v1515_v54, 2 }
 0x19b   : > { %v1494_v4 = vrot.slane %v1493_v45, 1  ;;  %v1517_v39 = vadd.f32 %v1516_v62, %v1515_v54 }
 0x19d   : > { %v1495_v44 = vadd.f32 %v1494_v4, %v1493_v45  ;;  %v1518_v53 = vrot.slane %v1517_v39, 1 }
 0x19f   : > { %v1496_v13 = vadd.f32 %v1495_v44, %v1482_v5  ;;  %v1519_v56 = vadd.f32 %v1518_v53, %v1517_v39 }
 0x1a1   : > { %1497 = vst [vmem:[%s3455_s3] sm:$0x1] %v1496_v13  ;;  %v1520_v58 = vadd.f32 %v1519_v56, %v1498_v46 }
 0x1a3   : > { %1521 = vst [vmem:[%s3456_s4] sm:$0x1] %v1520_v58 }
 0x1a4 PF: > { %s15_s15 = sadd.s32 1, %s2725_s15  }
 0x1a5   : > { %p12_p5 = scmp.ge.s32.totalorder %s15_s15, 6  }
 0x1a7   :  { %14 = sbr.rel (!%p12_p5) target bundleno = 1 (0x1), region = 86 }

</bundles_post_ra>
